<compile_context>
chip_gen: v6e
topology: v6e:2x2x1
jax: 0.10.0
libtpu: 0.0.40
codegen_flags: <defaults>
</compile_context>

<pallas_src>
import functools
import math

import jax
import jax.numpy as jnp
import numpy as np
from jax.experimental import pallas as pl
from jax.experimental.pallas import tpu as pltpu


def _layer_norm(x, g, b, eps=1e-5):
    mu = jnp.mean(x, axis=-1, keepdims=True)
    xc = x - mu
    var = jnp.mean(xc * xc, axis=-1, keepdims=True)
    return xc * jax.lax.rsqrt(var + eps) * g + b


def spatial_attention_kernel(
    x_ref, r_ref,
    gmat_ref, gn_g_ref, gn_b_ref,
    w_big_ref, b_big_ref,
    ln1_g_ref, ln1_b_ref,
    wffn_ref, bffn_ref,
    ln2_g_ref, ln2_b_ref,
    w_out_ref, b_out_ref,
    out_ref,
    *, C, E, num_heads, H, W, Wx, groups,
):
    f32 = jnp.float32
    bf16 = jnp.bfloat16
    HW = H * W
    HWx = H * Wx
    d = E // num_heads
    cg = C // groups

    # ---- assemble cat(x, ref) tokens in VMEM (no HBM concat copy) ----
    x3 = x_ref[...].astype(f32)                      # (H, Wx, C)
    r3 = r_ref[...].astype(f32)                      # (H, Wr, C)
    xs = jnp.concatenate([x3, r3], axis=1).reshape(HW, C)   # (HW, C)

    # ---- GroupNorm(32, eps=1e-6): two-pass centered stats via resident gmat ----
    inv_n = 1.0 / float(cg * HW)
    s = jnp.sum(xs, axis=0, keepdims=True)                               # (1, C)
    mean = jnp.dot(s, gmat_ref[...], preferred_element_type=f32) * inv_n  # (1, C)
    xc = xs - mean
    ss = jnp.sum(xc * xc, axis=0, keepdims=True)                         # (1, C)
    var = jnp.dot(ss, gmat_ref[...], preferred_element_type=f32) * inv_n
    gn = xc * jax.lax.rsqrt(var + 1e-6) * gn_g_ref[...] + gn_b_ref[...]

    # ---- fused proj_in + q/k/v: single lane-dense (HW,C)x(C,C+3E) bf16 matmul ----
    yqkv = jnp.dot(gn.astype(bf16), w_big_ref[...],
                   preferred_element_type=f32) + b_big_ref[...]          # (HW, C+3E)
    y = yqkv[:, :C]                                  # proj_in output (HW, C)

    # ---- batched multi-head attention (q already scaled by 1/sqrt(d) in weights) ----
    def split_heads(off):
        cols = [yqkv[:, off + h * d: off + (h + 1) * d] for h in range(num_heads)]
        return jnp.stack(cols, axis=0).astype(bf16)          # (nh, HW, d)

    qh = split_heads(C)
    kh = split_heads(C + E)
    vh = split_heads(C + 2 * E)

    sc = jnp.einsum('nqd,nkd->nqk', qh, kh, preferred_element_type=f32)  # (nh,HW,HW)
    sc = sc - jnp.max(sc, axis=-1, keepdims=True)
    p = jnp.exp(sc)
    denom = jnp.sum(p, axis=-1, keepdims=True)                           # (nh,HW,1)
    o3 = jnp.einsum('nqk,nkd->nqd', p.astype(bf16), vh,
                    preferred_element_type=f32)                          # (nh,HW,d)
    o3 = o3 * pl.reciprocal(denom, approx=True)
    attn = jnp.concatenate([o3[h] for h in range(num_heads)], axis=-1)   # (HW, E)

    # ---- residual + LayerNorm1, FFN, residual + LayerNorm2 ----
    n1 = _layer_norm(attn + y, ln1_g_ref[...], ln1_b_ref[...])
    ffn = jnp.dot(n1.astype(bf16), wffn_ref[...],
                  preferred_element_type=f32) + bffn_ref[...]
    n2 = _layer_norm(n1 + ffn, ln2_g_ref[...], ln2_b_ref[...])

    # ---- drop reference columns with a static reshape/slice ----
    n2x = n2.reshape(H, W, C)[:, :Wx, :].reshape(HWx, C)

    # ---- proj_out (1x1 conv) + residual with x ----
    out = jnp.dot(n2x.astype(bf16), w_out_ref[...],
                  preferred_element_type=f32) + b_out_ref[...]
    out_ref[...] = (out + x3.reshape(HWx, C)).astype(out_ref.dtype)


def spatial_attention_forward(x, reference_tensor, params, *, num_heads=8, groups=32):
    B, C, H, Wx = x.shape
    Wr = reference_tensor.shape[3]
    W = Wx + Wr
    HW, HWx = H * W, H * Wx
    E = params["wq_t"].shape[1]
    d = E // num_heads
    cg = C // groups

    # glue: NCHW -> token-major slabs (no concatenated HBM copy)
    x_tok = jnp.transpose(x, (0, 2, 3, 1))                    # (B, H, Wx, C)
    r_tok = jnp.transpose(reference_tensor, (0, 2, 3, 1))     # (B, H, Wr, C)

    # ---- host-side weight preparation (cheap, weight-only transforms) ----
    ch = jnp.arange(C) // cg
    gmat = (ch[:, None] == ch[None, :]).astype(jnp.float32)   # (C, C) group indicator

    scale = 1.0 / math.sqrt(d)
    wqkv = jnp.concatenate(
        [params["wq_t"] * scale, params["wk_t"], params["wv_t"]], axis=1)   # (C, 3E)
    bqkv = jnp.concatenate(
        [params["bq"] * scale, params["bk"], params["bv"]], axis=1)         # (1, 3E)
    # fuse proj_in into the qkv path: [ y | q | k | v ] = gn @ w_big + b_big
    w_big = jnp.concatenate(
        [params["w_in_t"], params["w_in_t"] @ wqkv], axis=1).astype(jnp.bfloat16)
    b_big = jnp.concatenate(
        [params["b_in"], params["b_in"] @ wqkv + bqkv], axis=1)             # f32

    weights = [
        gmat, params["gn_g"], params["gn_b"],
        w_big, b_big,
        params["ln1_g"], params["ln1_b"],
        params["wffn_t"].astype(jnp.bfloat16), params["bffn"],
        params["ln2_g"], params["ln2_b"],
        params["w_out_t"].astype(jnp.bfloat16), params["b_out"],
    ]
    weight_specs = [pl.BlockSpec(w.shape, lambda b: (0, 0)) for w in weights]

    kernel = functools.partial(
        spatial_attention_kernel,
        C=C, E=E, num_heads=num_heads, H=H, W=W, Wx=Wx, groups=groups)

    out_tok = pl.pallas_call(
        kernel,
        out_shape=jax.ShapeDtypeStruct((B, HWx, C), jnp.float32),
        grid_spec=pltpu.PrefetchScalarGridSpec(
            num_scalar_prefetch=0,
            grid=(B,),
            in_specs=[
                pl.BlockSpec((None, H, Wx, C), lambda b: (b, 0, 0, 0)),
                pl.BlockSpec((None, H, Wr, C), lambda b: (b, 0, 0, 0)),
            ] + weight_specs,
            out_specs=pl.BlockSpec((None, HWx, C), lambda b: (b, 0, 0)),
        ),
        compiler_params=pltpu.CompilerParams(
            dimension_semantics=("parallel",),      # batch elements are independent
            vmem_limit_bytes=48 * 1024 * 1024,
        ),
    )(x_tok, r_tok, *weights)

    # glue: tokens -> NCHW
    return jnp.transpose(out_tok.reshape(B, H, Wx, C), (0, 3, 1, 2))


# ------------------------ pure-JAX reference (for checking) ------------------------
def _ln_ref(x, g, b, eps=1e-5):
    mu = jnp.mean(x, axis=-1, keepdims=True)
    var = jnp.mean((x - mu) ** 2, axis=-1, keepdims=True)
    return (x - mu) / jnp.sqrt(var + eps) * g + b


def reference_forward(x, reference_tensor, params, *, num_heads=8, groups=32):
    B, C, H, Wx = x.shape
    concat = jnp.concatenate([x, reference_tensor], axis=3)
    W = concat.shape[3]
    E = params["wq_t"].shape[1]
    cg = C // groups
    xr = concat.reshape(B, groups, cg, H, W)
    mu = xr.mean(axis=(2, 3, 4), keepdims=True)
    var = ((xr - mu) ** 2).mean(axis=(2, 3, 4), keepdims=True)
    xn = ((xr - mu) / jnp.sqrt(var + 1e-6)).reshape(B, C, H, W)
    xn = xn * params["gn_g"].reshape(1, C, 1, 1) + params["gn_b"].reshape(1, C, 1, 1)
    tok = jnp.transpose(xn, (0, 2, 3, 1)).reshape(B, H * W, C)
    y = tok @ params["w_in_t"] + params["b_in"]
    q = y @ params["wq_t"] + params["bq"]
    k = y @ params["wk_t"] + params["bk"]
    v = y @ params["wv_t"] + params["bv"]
    d = E // num_heads
    qh = q.reshape(B, H * W, num_heads, d)
    kh = k.reshape(B, H * W, num_heads, d)
    vh = v.reshape(B, H * W, num_heads, d)
    s = jnp.einsum("bqnd,bknd->bnqk", qh, kh) / math.sqrt(d)
    p = jax.nn.softmax(s, axis=-1)
    ao = jnp.einsum("bnqk,bknd->bqnd", p, vh).reshape(B, H * W, E)
    n1 = _ln_ref(ao + y, params["ln1_g"], params["ln1_b"])
    f = n1 @ params["wffn_t"] + params["bffn"]
    n2 = _ln_ref(n1 + f, params["ln2_g"], params["ln2_b"])
    n2img = n2.reshape(B, H, W, C)[:, :, :Wx, :].reshape(B, H * Wx, C)
    out_tok = n2img @ params["w_out_t"] + params["b_out"]
    return jnp.transpose(out_tok.reshape(B, H, Wx, C), (0, 3, 1, 2)) + x


def init_params(key, C, E):
    ks = jax.random.split(key, 18)

    def lin(k, i, o):
        return jax.random.normal(k, (i, o), jnp.float32) * (1.0 / math.sqrt(i))

    def bias(k, o):
        return jax.random.normal(k, (1, o), jnp.float32) * 0.02

    return {
        "gn_g": 1.0 + 0.05 * jax.random.normal(ks[0], (1, C), jnp.float32),
        "gn_b": 0.02 * jax.random.normal(ks[1], (1, C), jnp.float32),
        "w_in_t": lin(ks[2], C, C), "b_in": bias(ks[3], C),
        "wq_t": lin(ks[4], C, E), "bq": bias(ks[5], E),
        "wk_t": lin(ks[6], C, E), "bk": bias(ks[7], E),
        "wv_t": lin(ks[8], C, E), "bv": bias(ks[9], E),
        "ln1_g": 1.0 + 0.05 * jax.random.normal(ks[10], (1, E), jnp.float32),
        "ln1_b": 0.02 * jax.random.normal(ks[11], (1, E), jnp.float32),
        "wffn_t": lin(ks[12], E, E), "bffn": bias(ks[13], E),
        "ln2_g": 1.0 + 0.05 * jax.random.normal(ks[14], (1, E), jnp.float32),
        "ln2_b": 0.02 * jax.random.normal(ks[15], (1, E), jnp.float32),
        "w_out_t": lin(ks[16], C, C), "b_out": bias(ks[17], C),
    }


if __name__ == "__main__":
    key = jax.random.PRNGKey(0)
    B, C, H, Wx, Wr = 2, 64, 8, 8, 8          # smallest config consistent with GroupNorm(32)
    E, num_heads, groups = 64, 8, 32          # embed_dim must equal C for the residual

    kx, kr, kp = jax.random.split(key, 3)
    x = jax.random.normal(kx, (B, C, H, Wx), jnp.float32)
    ref = jax.random.normal(kr, (B, C, H, Wr), jnp.float32)
    params = init_params(kp, C, E)

    fwd = jax.jit(functools.partial(
        spatial_attention_forward, num_heads=num_heads, groups=groups))

    out = jax.block_until_ready(fwd(x, ref, params))
    expected = jax.block_until_ready(
        reference_forward(x, ref, params, num_heads=num_heads, groups=groups))

    assert out.shape == x.shape and out.dtype == jnp.float32
    # bf16 MXU operands (f32 accumulation) vs. a pure-f32 reference.
    np.testing.assert_allclose(np.asarray(out), np.asarray(expected),
                               atol=5e-2, rtol=5e-2)
    print("KERNEL_OK")
</pallas_src>

<mosaic_0001>
module attributes {stable_mosaic.version = 11 : i64} {
  func.func @spatial_attention_kernel(%arg0: i32, %arg1: memref<1x8x8x64xf32, #tpu.memory_space<vmem>>, %arg2: memref<1x8x8x64xf32, #tpu.memory_space<vmem>>, %arg3: memref<64x64xf32, #tpu.memory_space<vmem>>, %arg4: memref<1x64xf32, #tpu.memory_space<vmem>>, %arg5: memref<1x64xf32, #tpu.memory_space<vmem>>, %arg6: memref<64x256xbf16, #tpu.memory_space<vmem>>, %arg7: memref<1x256xf32, #tpu.memory_space<vmem>>, %arg8: memref<1x64xf32, #tpu.memory_space<vmem>>, %arg9: memref<1x64xf32, #tpu.memory_space<vmem>>, %arg10: memref<64x64xbf16, #tpu.memory_space<vmem>>, %arg11: memref<1x64xf32, #tpu.memory_space<vmem>>, %arg12: memref<1x64xf32, #tpu.memory_space<vmem>>, %arg13: memref<1x64xf32, #tpu.memory_space<vmem>>, %arg14: memref<64x64xbf16, #tpu.memory_space<vmem>>, %arg15: memref<1x64xf32, #tpu.memory_space<vmem>>, %arg16: memref<1x64x64xf32, #tpu.memory_space<vmem>>) attributes {dimension_semantics = [#tpu.dimension_semantics<parallel>], iteration_bounds = array<i64: 2>, scalar_prefetch = 0 : i64, scratch_operands = 0 : i64, tpu.core_type = #tpu.core_type<tc>, window_params = [{transform_indices = @transform_0, window_bounds = array<i64: 1, 8, 8, 64>}, {transform_indices = @transform_1, window_bounds = array<i64: 1, 8, 8, 64>}, {pipeline_mode = #tpu.pipeline_mode<synchronous>, transform_indices = @transform_2, window_bounds = array<i64: 64, 64>}, {pipeline_mode = #tpu.pipeline_mode<synchronous>, transform_indices = @transform_3, window_bounds = array<i64: 1, 64>}, {pipeline_mode = #tpu.pipeline_mode<synchronous>, transform_indices = @transform_4, window_bounds = array<i64: 1, 64>}, {pipeline_mode = #tpu.pipeline_mode<synchronous>, transform_indices = @transform_5, window_bounds = array<i64: 64, 256>}, {pipeline_mode = #tpu.pipeline_mode<synchronous>, transform_indices = @transform_6, window_bounds = array<i64: 1, 256>}, {pipeline_mode = #tpu.pipeline_mode<synchronous>, transform_indices = @transform_7, window_bounds = array<i64: 1, 64>}, {pipeline_mode = #tpu.pipeline_mode<synchronous>, transform_indices = @transform_8, window_bounds = array<i64: 1, 64>}, {pipeline_mode = #tpu.pipeline_mode<synchronous>, transform_indices = @transform_9, window_bounds = array<i64: 64, 64>}, {pipeline_mode = #tpu.pipeline_mode<synchronous>, transform_indices = @transform_10, window_bounds = array<i64: 1, 64>}, {pipeline_mode = #tpu.pipeline_mode<synchronous>, transform_indices = @transform_11, window_bounds = array<i64: 1, 64>}, {pipeline_mode = #tpu.pipeline_mode<synchronous>, transform_indices = @transform_12, window_bounds = array<i64: 1, 64>}, {pipeline_mode = #tpu.pipeline_mode<synchronous>, transform_indices = @transform_13, window_bounds = array<i64: 64, 64>}, {pipeline_mode = #tpu.pipeline_mode<synchronous>, transform_indices = @transform_14, window_bounds = array<i64: 1, 64>}, {transform_indices = @transform_15, window_bounds = array<i64: 1, 64, 64>}]} {
    %c0 = arith.constant 0 : index
    %c0_0 = arith.constant 0 : index
    %c0_1 = arith.constant 0 : index
    %c0_2 = arith.constant 0 : index
    %0 = vector.load %arg1[%c0, %c0_0, %c0_1, %c0_2] : memref<1x8x8x64xf32, #tpu.memory_space<vmem>>, vector<1x8x8x64xf32>
    %1 = vector.shape_cast %0 : vector<1x8x8x64xf32> to vector<8x8x64xf32>
    %c0_3 = arith.constant 0 : index
    %c0_4 = arith.constant 0 : index
    %c0_5 = arith.constant 0 : index
    %c0_6 = arith.constant 0 : index
    %2 = vector.load %arg2[%c0_3, %c0_4, %c0_5, %c0_6] : memref<1x8x8x64xf32, #tpu.memory_space<vmem>>, vector<1x8x8x64xf32>
    %3 = vector.shape_cast %2 : vector<1x8x8x64xf32> to vector<8x8x64xf32>
    %4 = tpu.concatenate %1, %3 in 1 : vector<8x8x64xf32>, vector<8x8x64xf32> -> vector<8x16x64xf32>
    %5 = vector.shape_cast %4 : vector<8x16x64xf32> to vector<128x64xf32>
    %cst = arith.constant dense<0.000000e+00> : vector<64xf32>
    %6 = vector.multi_reduction <add>, %5, %cst [0] : vector<128x64xf32> to vector<64xf32>
    %7 = vector.shape_cast %6 : vector<64xf32> to vector<1x64xf32>
    %c0_7 = arith.constant 0 : index
    %c0_8 = arith.constant 0 : index
    %8 = vector.load %arg3[%c0_7, %c0_8] : memref<64x64xf32, #tpu.memory_space<vmem>>, vector<64x64xf32>
    %cst_9 = arith.constant dense<0.000000e+00> : vector<1x64xf32>
    %9 = tpu.matmul %7, %8, %cst_9 {dimension_numbers = #tpu.dot_dimension_numbers<[1], [0], [0], [1], [0, 0, 1, 1], [], []>} : vector<1x64xf32>, vector<64x64xf32>, vector<1x64xf32> -> vector<1x64xf32>
    %cst_10 = arith.constant 3.906250e-03 : f32
    %10 = vector.broadcast %cst_10 : f32 to vector<1x64xf32>
    %11 = arith.mulf %9, %10 : vector<1x64xf32>
    %12 = vector.broadcast %11 : vector<1x64xf32> to vector<128x64xf32>
    %13 = arith.subf %5, %12 : vector<128x64xf32>
    %14 = arith.mulf %13, %13 : vector<128x64xf32>
    %cst_11 = arith.constant dense<0.000000e+00> : vector<64xf32>
    %15 = vector.multi_reduction <add>, %14, %cst_11 [0] : vector<128x64xf32> to vector<64xf32>
    %16 = vector.shape_cast %15 : vector<64xf32> to vector<1x64xf32>
    %c0_12 = arith.constant 0 : index
    %c0_13 = arith.constant 0 : index
    %17 = vector.load %arg3[%c0_12, %c0_13] : memref<64x64xf32, #tpu.memory_space<vmem>>, vector<64x64xf32>
    %cst_14 = arith.constant dense<0.000000e+00> : vector<1x64xf32>
    %18 = tpu.matmul %16, %17, %cst_14 {dimension_numbers = #tpu.dot_dimension_numbers<[1], [0], [0], [1], [0, 0, 1, 1], [], []>} : vector<1x64xf32>, vector<64x64xf32>, vector<1x64xf32> -> vector<1x64xf32>
    %cst_15 = arith.constant 3.906250e-03 : f32
    %19 = vector.broadcast %cst_15 : f32 to vector<1x64xf32>
    %20 = arith.mulf %18, %19 : vector<1x64xf32>
    %cst_16 = arith.constant 9.99999997E-7 : f32
    %21 = vector.broadcast %cst_16 : f32 to vector<1x64xf32>
    %22 = arith.addf %20, %21 : vector<1x64xf32>
    %23 = math.rsqrt %22 : vector<1x64xf32>
    %24 = vector.broadcast %23 : vector<1x64xf32> to vector<128x64xf32>
    %25 = arith.mulf %13, %24 : vector<128x64xf32>
    %c0_17 = arith.constant 0 : index
    %c0_18 = arith.constant 0 : index
    %26 = vector.load %arg4[%c0_17, %c0_18] : memref<1x64xf32, #tpu.memory_space<vmem>>, vector<1x64xf32>
    %27 = vector.broadcast %26 : vector<1x64xf32> to vector<128x64xf32>
    %28 = arith.mulf %25, %27 : vector<128x64xf32>
    %c0_19 = arith.constant 0 : index
    %c0_20 = arith.constant 0 : index
    %29 = vector.load %arg5[%c0_19, %c0_20] : memref<1x64xf32, #tpu.memory_space<vmem>>, vector<1x64xf32>
    %30 = vector.broadcast %29 : vector<1x64xf32> to vector<128x64xf32>
    %31 = arith.addf %28, %30 : vector<128x64xf32>
    %32 = arith.truncf %31 : vector<128x64xf32> to vector<128x64xbf16>
    %c0_21 = arith.constant 0 : index
    %c0_22 = arith.constant 0 : index
    %33 = vector.load %arg6[%c0_21, %c0_22] : memref<64x256xbf16, #tpu.memory_space<vmem>>, vector<64x256xbf16>
    %cst_23 = arith.constant dense<0.000000e+00> : vector<128x256xf32>
    %34 = tpu.matmul %32, %33, %cst_23 {dimension_numbers = #tpu.dot_dimension_numbers<[1], [0], [0], [1], [0, 0, 1, 1], [], []>} : vector<128x64xbf16>, vector<64x256xbf16>, vector<128x256xf32> -> vector<128x256xf32>
    %c0_24 = arith.constant 0 : index
    %c0_25 = arith.constant 0 : index
    %35 = vector.load %arg7[%c0_24, %c0_25] : memref<1x256xf32, #tpu.memory_space<vmem>>, vector<1x256xf32>
    %36 = vector.broadcast %35 : vector<1x256xf32> to vector<128x256xf32>
    %37 = arith.addf %34, %36 : vector<128x256xf32>
    %38 = vector.extract_strided_slice %37 {offsets = [0, 0], sizes = [128, 64], strides = [1, 1]} : vector<128x256xf32> to vector<128x64xf32>
    %39 = vector.extract_strided_slice %37 {offsets = [0, 64], sizes = [128, 8], strides = [1, 1]} : vector<128x256xf32> to vector<128x8xf32>
    %40 = vector.extract_strided_slice %37 {offsets = [0, 72], sizes = [128, 8], strides = [1, 1]} : vector<128x256xf32> to vector<128x8xf32>
    %41 = vector.extract_strided_slice %37 {offsets = [0, 80], sizes = [128, 8], strides = [1, 1]} : vector<128x256xf32> to vector<128x8xf32>
    %42 = vector.extract_strided_slice %37 {offsets = [0, 88], sizes = [128, 8], strides = [1, 1]} : vector<128x256xf32> to vector<128x8xf32>
    %43 = vector.extract_strided_slice %37 {offsets = [0, 96], sizes = [128, 8], strides = [1, 1]} : vector<128x256xf32> to vector<128x8xf32>
    %44 = vector.extract_strided_slice %37 {offsets = [0, 104], sizes = [128, 8], strides = [1, 1]} : vector<128x256xf32> to vector<128x8xf32>
    %45 = vector.extract_strided_slice %37 {offsets = [0, 112], sizes = [128, 8], strides = [1, 1]} : vector<128x256xf32> to vector<128x8xf32>
    %46 = vector.extract_strided_slice %37 {offsets = [0, 120], sizes = [128, 8], strides = [1, 1]} : vector<128x256xf32> to vector<128x8xf32>
    %47 = vector.shape_cast %39 : vector<128x8xf32> to vector<1x128x8xf32>
    %48 = vector.shape_cast %40 : vector<128x8xf32> to vector<1x128x8xf32>
    %49 = vector.shape_cast %41 : vector<128x8xf32> to vector<1x128x8xf32>
    %50 = vector.shape_cast %42 : vector<128x8xf32> to vector<1x128x8xf32>
    %51 = vector.shape_cast %43 : vector<128x8xf32> to vector<1x128x8xf32>
    %52 = vector.shape_cast %44 : vector<128x8xf32> to vector<1x128x8xf32>
    %53 = vector.shape_cast %45 : vector<128x8xf32> to vector<1x128x8xf32>
    %54 = vector.shape_cast %46 : vector<128x8xf32> to vector<1x128x8xf32>
    %55 = tpu.concatenate %47, %48, %49, %50, %51, %52, %53, %54 in 0 : vector<1x128x8xf32>, vector<1x128x8xf32>, vector<1x128x8xf32>, vector<1x128x8xf32>, vector<1x128x8xf32>, vector<1x128x8xf32>, vector<1x128x8xf32>, vector<1x128x8xf32> -> vector<8x128x8xf32>
    %56 = arith.truncf %55 : vector<8x128x8xf32> to vector<8x128x8xbf16>
    %57 = vector.extract_strided_slice %37 {offsets = [0, 128], sizes = [128, 8], strides = [1, 1]} : vector<128x256xf32> to vector<128x8xf32>
    %58 = vector.extract_strided_slice %37 {offsets = [0, 136], sizes = [128, 8], strides = [1, 1]} : vector<128x256xf32> to vector<128x8xf32>
    %59 = vector.extract_strided_slice %37 {offsets = [0, 144], sizes = [128, 8], strides = [1, 1]} : vector<128x256xf32> to vector<128x8xf32>
    %60 = vector.extract_strided_slice %37 {offsets = [0, 152], sizes = [128, 8], strides = [1, 1]} : vector<128x256xf32> to vector<128x8xf32>
    %61 = vector.extract_strided_slice %37 {offsets = [0, 160], sizes = [128, 8], strides = [1, 1]} : vector<128x256xf32> to vector<128x8xf32>
    %62 = vector.extract_strided_slice %37 {offsets = [0, 168], sizes = [128, 8], strides = [1, 1]} : vector<128x256xf32> to vector<128x8xf32>
    %63 = vector.extract_strided_slice %37 {offsets = [0, 176], sizes = [128, 8], strides = [1, 1]} : vector<128x256xf32> to vector<128x8xf32>
    %64 = vector.extract_strided_slice %37 {offsets = [0, 184], sizes = [128, 8], strides = [1, 1]} : vector<128x256xf32> to vector<128x8xf32>
    %65 = vector.shape_cast %57 : vector<128x8xf32> to vector<1x128x8xf32>
    %66 = vector.shape_cast %58 : vector<128x8xf32> to vector<1x128x8xf32>
    %67 = vector.shape_cast %59 : vector<128x8xf32> to vector<1x128x8xf32>
    %68 = vector.shape_cast %60 : vector<128x8xf32> to vector<1x128x8xf32>
    %69 = vector.shape_cast %61 : vector<128x8xf32> to vector<1x128x8xf32>
    %70 = vector.shape_cast %62 : vector<128x8xf32> to vector<1x128x8xf32>
    %71 = vector.shape_cast %63 : vector<128x8xf32> to vector<1x128x8xf32>
    %72 = vector.shape_cast %64 : vector<128x8xf32> to vector<1x128x8xf32>
    %73 = tpu.concatenate %65, %66, %67, %68, %69, %70, %71, %72 in 0 : vector<1x128x8xf32>, vector<1x128x8xf32>, vector<1x128x8xf32>, vector<1x128x8xf32>, vector<1x128x8xf32>, vector<1x128x8xf32>, vector<1x128x8xf32>, vector<1x128x8xf32> -> vector<8x128x8xf32>
    %74 = arith.truncf %73 : vector<8x128x8xf32> to vector<8x128x8xbf16>
    %75 = vector.extract_strided_slice %37 {offsets = [0, 192], sizes = [128, 8], strides = [1, 1]} : vector<128x256xf32> to vector<128x8xf32>
    %76 = vector.extract_strided_slice %37 {offsets = [0, 200], sizes = [128, 8], strides = [1, 1]} : vector<128x256xf32> to vector<128x8xf32>
    %77 = vector.extract_strided_slice %37 {offsets = [0, 208], sizes = [128, 8], strides = [1, 1]} : vector<128x256xf32> to vector<128x8xf32>
    %78 = vector.extract_strided_slice %37 {offsets = [0, 216], sizes = [128, 8], strides = [1, 1]} : vector<128x256xf32> to vector<128x8xf32>
    %79 = vector.extract_strided_slice %37 {offsets = [0, 224], sizes = [128, 8], strides = [1, 1]} : vector<128x256xf32> to vector<128x8xf32>
    %80 = vector.extract_strided_slice %37 {offsets = [0, 232], sizes = [128, 8], strides = [1, 1]} : vector<128x256xf32> to vector<128x8xf32>
    %81 = vector.extract_strided_slice %37 {offsets = [0, 240], sizes = [128, 8], strides = [1, 1]} : vector<128x256xf32> to vector<128x8xf32>
    %82 = vector.extract_strided_slice %37 {offsets = [0, 248], sizes = [128, 8], strides = [1, 1]} : vector<128x256xf32> to vector<128x8xf32>
    %83 = vector.shape_cast %75 : vector<128x8xf32> to vector<1x128x8xf32>
    %84 = vector.shape_cast %76 : vector<128x8xf32> to vector<1x128x8xf32>
    %85 = vector.shape_cast %77 : vector<128x8xf32> to vector<1x128x8xf32>
    %86 = vector.shape_cast %78 : vector<128x8xf32> to vector<1x128x8xf32>
    %87 = vector.shape_cast %79 : vector<128x8xf32> to vector<1x128x8xf32>
    %88 = vector.shape_cast %80 : vector<128x8xf32> to vector<1x128x8xf32>
    %89 = vector.shape_cast %81 : vector<128x8xf32> to vector<1x128x8xf32>
    %90 = vector.shape_cast %82 : vector<128x8xf32> to vector<1x128x8xf32>
    %91 = tpu.concatenate %83, %84, %85, %86, %87, %88, %89, %90 in 0 : vector<1x128x8xf32>, vector<1x128x8xf32>, vector<1x128x8xf32>, vector<1x128x8xf32>, vector<1x128x8xf32>, vector<1x128x8xf32>, vector<1x128x8xf32>, vector<1x128x8xf32> -> vector<8x128x8xf32>
    %92 = arith.truncf %91 : vector<8x128x8xf32> to vector<8x128x8xbf16>
    "tpu.trace_start"() <{level = 10 : i32, message = "nqd,nkd->nqk"}> : () -> ()
    %cst_26 = arith.constant dense<0.000000e+00> : vector<8x128x128xf32>
    %93 = tpu.matmul %56, %74, %cst_26 {dimension_numbers = #tpu.dot_dimension_numbers<[2], [2], [1], [1], [0, 0, 0, 1, 1, 1], [0], [0]>} : vector<8x128x8xbf16>, vector<8x128x8xbf16>, vector<8x128x128xf32> -> vector<8x128x128xf32>
    "tpu.trace_stop"() : () -> ()
    %cst_27 = arith.constant dense<0xFF800000> : vector<8x128xf32>
    %94 = vector.multi_reduction <maximumf>, %93, %cst_27 [2] : vector<8x128x128xf32> to vector<8x128xf32>
    %95 = vector.shape_cast %94 : vector<8x128xf32> to vector<8x128x1xf32>
    %96 = vector.broadcast %95 : vector<8x128x1xf32> to vector<8x128x128xf32>
    %97 = arith.subf %93, %96 : vector<8x128x128xf32>
    %98 = math.exp %97 : vector<8x128x128xf32>
    %cst_28 = arith.constant dense<0.000000e+00> : vector<8x128xf32>
    %99 = vector.multi_reduction <add>, %98, %cst_28 [2] : vector<8x128x128xf32> to vector<8x128xf32>
    %100 = vector.shape_cast %99 : vector<8x128xf32> to vector<8x128x1xf32>
    %101 = arith.truncf %98 : vector<8x128x128xf32> to vector<8x128x128xbf16>
    "tpu.trace_start"() <{level = 10 : i32, message = "nqk,nkd->nqd"}> : () -> ()
    %cst_29 = arith.constant dense<0.000000e+00> : vector<8x128x8xf32>
    %102 = tpu.matmul %101, %92, %cst_29 {dimension_numbers = #tpu.dot_dimension_numbers<[2], [1], [1], [2], [0, 0, 0, 1, 1, 2], [0], [0]>} : vector<8x128x128xbf16>, vector<8x128x8xbf16>, vector<8x128x8xf32> -> vector<8x128x8xf32>
    "tpu.trace_stop"() : () -> ()
    %103 = tpu.reciprocal %100 {approx = true} : vector<8x128x1xf32> -> vector<8x128x1xf32>
    %104 = vector.broadcast %103 : vector<8x128x1xf32> to vector<8x128x8xf32>
    %105 = arith.mulf %102, %104 : vector<8x128x8xf32>
    %106 = vector.extract_strided_slice %105 {offsets = [0, 0, 0], sizes = [1, 128, 8], strides = [1, 1, 1]} : vector<8x128x8xf32> to vector<1x128x8xf32>
    %107 = vector.shape_cast %106 : vector<1x128x8xf32> to vector<128x8xf32>
    %108 = vector.extract_strided_slice %105 {offsets = [1, 0, 0], sizes = [1, 128, 8], strides = [1, 1, 1]} : vector<8x128x8xf32> to vector<1x128x8xf32>
    %109 = vector.shape_cast %108 : vector<1x128x8xf32> to vector<128x8xf32>
    %110 = vector.extract_strided_slice %105 {offsets = [2, 0, 0], sizes = [1, 128, 8], strides = [1, 1, 1]} : vector<8x128x8xf32> to vector<1x128x8xf32>
    %111 = vector.shape_cast %110 : vector<1x128x8xf32> to vector<128x8xf32>
    %112 = vector.extract_strided_slice %105 {offsets = [3, 0, 0], sizes = [1, 128, 8], strides = [1, 1, 1]} : vector<8x128x8xf32> to vector<1x128x8xf32>
    %113 = vector.shape_cast %112 : vector<1x128x8xf32> to vector<128x8xf32>
    %114 = vector.extract_strided_slice %105 {offsets = [4, 0, 0], sizes = [1, 128, 8], strides = [1, 1, 1]} : vector<8x128x8xf32> to vector<1x128x8xf32>
    %115 = vector.shape_cast %114 : vector<1x128x8xf32> to vector<128x8xf32>
    %116 = vector.extract_strided_slice %105 {offsets = [5, 0, 0], sizes = [1, 128, 8], strides = [1, 1, 1]} : vector<8x128x8xf32> to vector<1x128x8xf32>
    %117 = vector.shape_cast %116 : vector<1x128x8xf32> to vector<128x8xf32>
    %118 = vector.extract_strided_slice %105 {offsets = [6, 0, 0], sizes = [1, 128, 8], strides = [1, 1, 1]} : vector<8x128x8xf32> to vector<1x128x8xf32>
    %119 = vector.shape_cast %118 : vector<1x128x8xf32> to vector<128x8xf32>
    %120 = vector.extract_strided_slice %105 {offsets = [7, 0, 0], sizes = [1, 128, 8], strides = [1, 1, 1]} : vector<8x128x8xf32> to vector<1x128x8xf32>
    %121 = vector.shape_cast %120 : vector<1x128x8xf32> to vector<128x8xf32>
    %122 = tpu.concatenate %107, %109, %111, %113, %115, %117, %119, %121 in 1 : vector<128x8xf32>, vector<128x8xf32>, vector<128x8xf32>, vector<128x8xf32>, vector<128x8xf32>, vector<128x8xf32>, vector<128x8xf32>, vector<128x8xf32> -> vector<128x64xf32>
    %123 = arith.addf %122, %38 : vector<128x64xf32>
    %c0_30 = arith.constant 0 : index
    %c0_31 = arith.constant 0 : index
    %124 = vector.load %arg8[%c0_30, %c0_31] : memref<1x64xf32, #tpu.memory_space<vmem>>, vector<1x64xf32>
    %c0_32 = arith.constant 0 : index
    %c0_33 = arith.constant 0 : index
    %125 = vector.load %arg9[%c0_32, %c0_33] : memref<1x64xf32, #tpu.memory_space<vmem>>, vector<1x64xf32>
    %cst_34 = arith.constant dense<0.000000e+00> : vector<128xf32>
    %126 = vector.multi_reduction <add>, %123, %cst_34 [1] : vector<128x64xf32> to vector<128xf32>
    %127 = vector.shape_cast %126 : vector<128xf32> to vector<128x1xf32>
    %cst_35 = arith.constant 6.400000e+01 : f32
    %128 = vector.broadcast %cst_35 : f32 to vector<128x1xf32>
    %129 = arith.divf %127, %128 : vector<128x1xf32>
    %130 = vector.broadcast %129 : vector<128x1xf32> to vector<128x64xf32>
    %131 = arith.subf %123, %130 : vector<128x64xf32>
    %132 = arith.mulf %131, %131 : vector<128x64xf32>
    %cst_36 = arith.constant dense<0.000000e+00> : vector<128xf32>
    %133 = vector.multi_reduction <add>, %132, %cst_36 [1] : vector<128x64xf32> to vector<128xf32>
    %134 = vector.shape_cast %133 : vector<128xf32> to vector<128x1xf32>
    %cst_37 = arith.constant 6.400000e+01 : f32
    %135 = vector.broadcast %cst_37 : f32 to vector<128x1xf32>
    %136 = arith.divf %134, %135 : vector<128x1xf32>
    %cst_38 = arith.constant 9.99999974E-6 : f32
    %137 = vector.broadcast %cst_38 : f32 to vector<128x1xf32>
    %138 = arith.addf %136, %137 : vector<128x1xf32>
    %139 = math.rsqrt %138 : vector<128x1xf32>
    %140 = vector.broadcast %139 : vector<128x1xf32> to vector<128x64xf32>
    %141 = arith.mulf %131, %140 : vector<128x64xf32>
    %142 = vector.broadcast %124 : vector<1x64xf32> to vector<128x64xf32>
    %143 = arith.mulf %141, %142 : vector<128x64xf32>
    %144 = vector.broadcast %125 : vector<1x64xf32> to vector<128x64xf32>
    %145 = arith.addf %143, %144 : vector<128x64xf32>
    %146 = arith.truncf %145 : vector<128x64xf32> to vector<128x64xbf16>
    %c0_39 = arith.constant 0 : index
    %c0_40 = arith.constant 0 : index
    %147 = vector.load %arg10[%c0_39, %c0_40] : memref<64x64xbf16, #tpu.memory_space<vmem>>, vector<64x64xbf16>
    %cst_41 = arith.constant dense<0.000000e+00> : vector<128x64xf32>
    %148 = tpu.matmul %146, %147, %cst_41 {dimension_numbers = #tpu.dot_dimension_numbers<[1], [0], [0], [1], [0, 0, 1, 1], [], []>} : vector<128x64xbf16>, vector<64x64xbf16>, vector<128x64xf32> -> vector<128x64xf32>
    %c0_42 = arith.constant 0 : index
    %c0_43 = arith.constant 0 : index
    %149 = vector.load %arg11[%c0_42, %c0_43] : memref<1x64xf32, #tpu.memory_space<vmem>>, vector<1x64xf32>
    %150 = vector.broadcast %149 : vector<1x64xf32> to vector<128x64xf32>
    %151 = arith.addf %148, %150 : vector<128x64xf32>
    %152 = arith.addf %145, %151 : vector<128x64xf32>
    %c0_44 = arith.constant 0 : index
    %c0_45 = arith.constant 0 : index
    %153 = vector.load %arg12[%c0_44, %c0_45] : memref<1x64xf32, #tpu.memory_space<vmem>>, vector<1x64xf32>
    %c0_46 = arith.constant 0 : index
    %c0_47 = arith.constant 0 : index
    %154 = vector.load %arg13[%c0_46, %c0_47] : memref<1x64xf32, #tpu.memory_space<vmem>>, vector<1x64xf32>
    %cst_48 = arith.constant dense<0.000000e+00> : vector<128xf32>
    %155 = vector.multi_reduction <add>, %152, %cst_48 [1] : vector<128x64xf32> to vector<128xf32>
    %156 = vector.shape_cast %155 : vector<128xf32> to vector<128x1xf32>
    %cst_49 = arith.constant 6.400000e+01 : f32
    %157 = vector.broadcast %cst_49 : f32 to vector<128x1xf32>
    %158 = arith.divf %156, %157 : vector<128x1xf32>
    %159 = vector.broadcast %158 : vector<128x1xf32> to vector<128x64xf32>
    %160 = arith.subf %152, %159 : vector<128x64xf32>
    %161 = arith.mulf %160, %160 : vector<128x64xf32>
    %cst_50 = arith.constant dense<0.000000e+00> : vector<128xf32>
    %162 = vector.multi_reduction <add>, %161, %cst_50 [1] : vector<128x64xf32> to vector<128xf32>
    %163 = vector.shape_cast %162 : vector<128xf32> to vector<128x1xf32>
    %cst_51 = arith.constant 6.400000e+01 : f32
    %164 = vector.broadcast %cst_51 : f32 to vector<128x1xf32>
    %165 = arith.divf %163, %164 : vector<128x1xf32>
    %cst_52 = arith.constant 9.99999974E-6 : f32
    %166 = vector.broadcast %cst_52 : f32 to vector<128x1xf32>
    %167 = arith.addf %165, %166 : vector<128x1xf32>
    %168 = math.rsqrt %167 : vector<128x1xf32>
    %169 = vector.broadcast %168 : vector<128x1xf32> to vector<128x64xf32>
    %170 = arith.mulf %160, %169 : vector<128x64xf32>
    %171 = vector.broadcast %153 : vector<1x64xf32> to vector<128x64xf32>
    %172 = arith.mulf %170, %171 : vector<128x64xf32>
    %173 = vector.broadcast %154 : vector<1x64xf32> to vector<128x64xf32>
    %174 = arith.addf %172, %173 : vector<128x64xf32>
    %175 = vector.shape_cast %174 : vector<128x64xf32> to vector<8x16x64xf32>
    %176 = vector.extract_strided_slice %175 {offsets = [0, 0, 0], sizes = [8, 8, 64], strides = [1, 1, 1]} : vector<8x16x64xf32> to vector<8x8x64xf32>
    %177 = vector.shape_cast %176 : vector<8x8x64xf32> to vector<64x64xf32>
    %178 = arith.truncf %177 : vector<64x64xf32> to vector<64x64xbf16>
    %c0_53 = arith.constant 0 : index
    %c0_54 = arith.constant 0 : index
    %179 = vector.load %arg14[%c0_53, %c0_54] : memref<64x64xbf16, #tpu.memory_space<vmem>>, vector<64x64xbf16>
    %cst_55 = arith.constant dense<0.000000e+00> : vector<64x64xf32>
    %180 = tpu.matmul %178, %179, %cst_55 {dimension_numbers = #tpu.dot_dimension_numbers<[1], [0], [0], [1], [0, 0, 1, 1], [], []>} : vector<64x64xbf16>, vector<64x64xbf16>, vector<64x64xf32> -> vector<64x64xf32>
    %c0_56 = arith.constant 0 : index
    %c0_57 = arith.constant 0 : index
    %181 = vector.load %arg15[%c0_56, %c0_57] : memref<1x64xf32, #tpu.memory_space<vmem>>, vector<1x64xf32>
    %182 = vector.broadcast %181 : vector<1x64xf32> to vector<64x64xf32>
    %183 = arith.addf %180, %182 : vector<64x64xf32>
    %184 = vector.shape_cast %1 : vector<8x8x64xf32> to vector<64x64xf32>
    %185 = arith.addf %183, %184 : vector<64x64xf32>
    %c0_58 = arith.constant 0 : index
    %c0_59 = arith.constant 0 : index
    %c0_60 = arith.constant 0 : index
    %186 = vector.load %arg16[%c0_58, %c0_59, %c0_60] : memref<1x64x64xf32, #tpu.memory_space<vmem>>, vector<1x64x64xf32>
    %187 = vector.shape_cast %186 : vector<1x64x64xf32> to vector<64x64xf32>
    %188 = vector.shape_cast %185 : vector<64x64xf32> to vector<1x64x64xf32>
    tpu.vector_store %arg16[%c0_58, %c0_59, %c0_60], %188 {strides = array<i32>} : memref<1x64x64xf32, #tpu.memory_space<vmem>>, vector<1x64x64xf32>,
    return
  }
  func.func @transform_0(%arg0: i32) -> (i32, i32, i32, i32) {
    %c0_i32 = arith.constant 0 : i32
    %c0_i32_0 = arith.constant 0 : i32
    %c0_i32_1 = arith.constant 0 : i32
    %c0_i32_2 = arith.constant 0 : i32
    return %arg0, %c0_i32, %c0_i32_0, %c0_i32_1 : i32, i32, i32, i32
  }
  func.func @transform_1(%arg0: i32) -> (i32, i32, i32, i32) {
    %c0_i32 = arith.constant 0 : i32
    %c0_i32_0 = arith.constant 0 : i32
    %c0_i32_1 = arith.constant 0 : i32
    %c0_i32_2 = arith.constant 0 : i32
    return %arg0, %c0_i32, %c0_i32_0, %c0_i32_1 : i32, i32, i32, i32
  }
  func.func @transform_2(%arg0: i32) -> (i32, i32) {
    %c0_i32 = arith.constant 0 : i32
    %c0_i32_0 = arith.constant 0 : i32
    %c0_i32_1 = arith.constant 0 : i32
    return %c0_i32, %c0_i32_0 : i32, i32
  }
  func.func @transform_3(%arg0: i32) -> (i32, i32) {
    %c0_i32 = arith.constant 0 : i32
    %c0_i32_0 = arith.constant 0 : i32
    %c0_i32_1 = arith.constant 0 : i32
    return %c0_i32, %c0_i32_0 : i32, i32
  }
  func.func @transform_4(%arg0: i32) -> (i32, i32) {
    %c0_i32 = arith.constant 0 : i32
    %c0_i32_0 = arith.constant 0 : i32
    %c0_i32_1 = arith.constant 0 : i32
    return %c0_i32, %c0_i32_0 : i32, i32
  }
  func.func @transform_5(%arg0: i32) -> (i32, i32) {
    %c0_i32 = arith.constant 0 : i32
    %c0_i32_0 = arith.constant 0 : i32
    %c0_i32_1 = arith.constant 0 : i32
    return %c0_i32, %c0_i32_0 : i32, i32
  }
  func.func @transform_6(%arg0: i32) -> (i32, i32) {
    %c0_i32 = arith.constant 0 : i32
    %c0_i32_0 = arith.constant 0 : i32
    %c0_i32_1 = arith.constant 0 : i32
    return %c0_i32, %c0_i32_0 : i32, i32
  }
  func.func @transform_7(%arg0: i32) -> (i32, i32) {
    %c0_i32 = arith.constant 0 : i32
    %c0_i32_0 = arith.constant 0 : i32
    %c0_i32_1 = arith.constant 0 : i32
    return %c0_i32, %c0_i32_0 : i32, i32
  }
  func.func @transform_8(%arg0: i32) -> (i32, i32) {
    %c0_i32 = arith.constant 0 : i32
    %c0_i32_0 = arith.constant 0 : i32
    %c0_i32_1 = arith.constant 0 : i32
    return %c0_i32, %c0_i32_0 : i32, i32
  }
  func.func @transform_9(%arg0: i32) -> (i32, i32) {
    %c0_i32 = arith.constant 0 : i32
    %c0_i32_0 = arith.constant 0 : i32
    %c0_i32_1 = arith.constant 0 : i32
    return %c0_i32, %c0_i32_0 : i32, i32
  }
  func.func @transform_10(%arg0: i32) -> (i32, i32) {
    %c0_i32 = arith.constant 0 : i32
    %c0_i32_0 = arith.constant 0 : i32
    %c0_i32_1 = arith.constant 0 : i32
    return %c0_i32, %c0_i32_0 : i32, i32
  }
  func.func @transform_11(%arg0: i32) -> (i32, i32) {
    %c0_i32 = arith.constant 0 : i32
    %c0_i32_0 = arith.constant 0 : i32
    %c0_i32_1 = arith.constant 0 : i32
    return %c0_i32, %c0_i32_0 : i32, i32
  }
  func.func @transform_12(%arg0: i32) -> (i32, i32) {
    %c0_i32 = arith.constant 0 : i32
    %c0_i32_0 = arith.constant 0 : i32
    %c0_i32_1 = arith.constant 0 : i32
    return %c0_i32, %c0_i32_0 : i32, i32
  }
  func.func @transform_13(%arg0: i32) -> (i32, i32) {
    %c0_i32 = arith.constant 0 : i32
    %c0_i32_0 = arith.constant 0 : i32
    %c0_i32_1 = arith.constant 0 : i32
    return %c0_i32, %c0_i32_0 : i32, i32
  }
  func.func @transform_14(%arg0: i32) -> (i32, i32) {
    %c0_i32 = arith.constant 0 : i32
    %c0_i32_0 = arith.constant 0 : i32
    %c0_i32_1 = arith.constant 0 : i32
    return %c0_i32, %c0_i32_0 : i32, i32
  }
  func.func @transform_15(%arg0: i32) -> (i32, i32, i32) {
    %c0_i32 = arith.constant 0 : i32
    %c0_i32_0 = arith.constant 0 : i32
    %c0_i32_1 = arith.constant 0 : i32
    return %arg0, %c0_i32, %c0_i32_0 : i32, i32, i32
  }
}

</mosaic_0001>

<bundles_post_ra>
// kernel: spatial_attention_forward.1
= control target key start
LH: loop header
LB: loop body
LE: loop exit
PB: predicated region body
PF: predicated region fallthrough
CT: control target
= control target key end

     0   :  { %s13983_s0 = inlined_call_operand.vmem [shape: f32[2,8,8,64], index: 0, kind: input, shape index: {}]   ;;  %s13984_s1 = inlined_call_operand.vmem [shape: f32[2,8,8,64], index: 1, kind: input, shape index: {}]   ;;  %s13985_s2 = inlined_call_operand.vmem [shape: f32[64,64], index: 2, kind: input, shape index: {}]   ;;  %s13986_s3 = inlined_call_operand.vmem [shape: f32[1,64], index: 3, kind: input, shape index: {}]   ;;  %s13987_s4 = inlined_call_operand.vmem [shape: f32[1,64], index: 4, kind: input, shape index: {}]   ;;  %s13988_s5 = inlined_call_operand.vmem [shape: bf16[64,256], index: 5, kind: input, shape index: {}]   ;;  %s13989_s6 = inlined_call_operand.vmem [shape: f32[1,256], index: 6, kind: input, shape index: {}]   ;;  %s13990_s7 = inlined_call_operand.vmem [shape: f32[1,64], index: 7, kind: input, shape index: {}]   ;;  %s13991_s8 = inlined_call_operand.vmem [shape: f32[1,64], index: 8, kind: input, shape index: {}]   ;;  %s13992_s9 = inlined_call_operand.vmem [shape: bf16[64,64], index: 9, kind: input, shape index: {}]   ;;  %s13993_s10 = inlined_call_operand.vmem [shape: f32[1,64], index: 10, kind: input, shape index: {}]   ;;  %s13994_s11 = inlined_call_operand.vmem [shape: f32[1,64], index: 11, kind: input, shape index: {}]   ;;  %s13995_s12 = inlined_call_operand.vmem [shape: f32[1,64], index: 12, kind: input, shape index: {}]   ;;  %s13996_s13 = inlined_call_operand.vmem [shape: bf16[64,64], index: 13, kind: input, shape index: {}]   ;;  %s13997_s14 = inlined_call_operand.vmem [shape: f32[1,64], index: 14, kind: input, shape index: {}]   ;;  %s13998_s15 = inlined_call_operand.hbm [shape: f32[2,64,64], index: 15, kind: output, shape index: {}]  }
   0x1   :  { %14203 = sst [smem:[#allocation116_spill]] %s13983_s0 }
   0x2   :  { %14204 = sst [smem:[#allocation117_spill]] %s13984_s1 }
   0x3   :  { %20 = vsyncpa [#allocation3], 0 }
   0x4   :  { %22 = vsyncpa [#allocation3 + $0x1], 0  ;;  %s9311_s18 = smov 0   ;;  %s9313_s19 = smov 0  }
   0x5   :  { %s9315_s20 = smov 0   ;;  %s9317_s21 = smov 0  }
   0x6 LB: > { %14205 = sst [smem:[#allocation5_spill]] %s9205_s20  ;;  %s9332_s22 = sadd.s32 4294967295, %s9209_s21   ;;  %s9209_s21 = sphi %s9317_s21, %s14817_s21   ;;  %s9205_s20 = sphi %s9315_s20, %s14819_s20   ;;  %s9201_s19 = sphi %s9313_s19, %s14821_s19   ;;  %s9197_s18 = sphi %s9311_s18, %s14820_s18  }
   0x7   : > { %s6866_s23 = sadd.s32 4294967294, %s9209_s21   ;;  %s9336_s24 = sadd.s32 1, %s9209_s21  }
   0x8   : > { %14206 = sst [smem:[#allocation6_spill]] %s9336_s24  ;;  %s360_s25 = sadd.s32 1, %s9205_s20 }
   0x9   : > { %s357_s26 = ssub.s32 %s9209_s21, %s9336_s24  ;;  %p370_p0 = scmp.ne.s32.totalorder %s9205_s20, %s9201_s19 }
   0xa   : > { %p358_p1 = scmp.eq.s32.totalorder %s357_s26, 0  ;;  %p371_p2 = scmp.eq.s32.totalorder %s9332_s22, 1 }
   0xb   : > { %p376_p3 = scmp.ne.s32.totalorder %s9201_s19, %s9197_s18  ;;  %p377_p4 = scmp.eq.s32.totalorder %s6866_s23, 1 }
   0xc   : > { %s9347_s27 = scalar_select %p358_p1, %s9205_s20, %s360_s25  }
   0xd   : > { %p9349_p5 = por %p371_p2, %p370_p0  ;;  %p9353_p6 = por %p377_p4, %p376_p3 }
   0xe   : > { %14207 = sst [smem:[#allocation7_spill]] %s9347_s27  ;;  %p6869_p7 = scmp.ge.s32.totalorder %s9209_s21, 1 }
   0xf   : > { %p450_p8 = scmp.lt.s32.totalorder %s9209_s21, 3 }
  0x11   : > { %p451_p9 = pnand %p6869_p7, %p450_p8 }
  0x13   : > { %454 = sbr.rel (%p451_p9) target bundleno = 3581 (0xdfd), region = 80 }
  0x18   : > { %v575_v0 = vld [vmem:[%s13985_s2 + $0x38] sm:$0xff]  ;;  %p503_p10 = scmp.lt.s32.totalorder %s9332_s22, 1  ;;  %v9211_v1 = vmov 0.0   ;;  %v574_v2 = vld [vmem:[%s13985_s2 + $0x30] sm:$0xff]  ;;  %vm9212_vm0 = vmmov 0   ;;  %v573_v3 = vld [vmem:[%s13985_s2 + $0x28] sm:$0xff]  ;;  %v650_v62 = vlaneseq }
  0x19   : > { %7287 = vmatprep.subr.mxu0 %v9211_v1  ;;  %7303 = vmatprep.mubr.msk.f32.mxu0 %vm9212_vm0, %v9211_v1  ;;  %v572_v4 = vld [vmem:[%s13985_s2 + $0x20] sm:$0xff]  ;;  %vm530_vm1 = vcmask 523264   ;;  %s14210_s0 = sld [smem:[#allocation116_spill]]  ;;  %v571_v7 = vld [vmem:[%s13985_s2 + $0x18] sm:$0xff]  ;;  %v570_v9 = vld [vmem:[%s13985_s2 + $0x10] sm:$0xff]  ;;  %s9214_s24 = smov 120  }
  0x1a   : > { %7288 = vmatpush3.msra.mxu0 %v575_v0  ;;  %s504_s30 = scalar_select %p503_p10, %s9332_s22, 1  ;;  %7306 = vmatprep.subr.mxu1 %v9211_v1  ;;  %v569_v17 = vld [vmem:[%s13985_s2 + $0x8] sm:$0xff]  ;;  %v568_v18 = vld [vmem:[%s13985_s2] sm:$0xff]  ;;  %v9496_v63 = vshrl.u32 %v650_v62, 7  ;;  %vm1926_vm2 = vcmask 64512   ;;  %vm5967_vm3 = vcmask 130048  }
  0x1b   : > { %7289 = vmatprep.subr.mxu0 %v9211_v1  ;;  %7307 = vmatpush3.msra.mxu1 %v575_v0  ;;  %s14211_s1 = sld [smem:[#allocation117_spill]]  ;;  %s9215_s16 = smov 112   ;;  %vm5984_vm4 = vcmask 195584   ;;  %vm6001_vm5 = vcmask 261120   ;;  %vm6018_vm6 = vcmask 326656   ;;  %vm6035_vm7 = vcmask 392192  }
  0x1c   : > { %7290 = vmatpush3.msra.mxu0 %v574_v2  ;;  %s6990_s17 = sshll.u32 %s504_s30, 6  ;;  %7308 = vmatprep.subr.mxu1 %v9211_v1  ;;  %v9499_v0 = vsub.s32 0, %v9496_v63  ;;  %s9217_s23 = smov 88   ;;  %vm6052_vm8 = vcmask 457728  }
  0x1d   : > { %7291 = vmatprep.subr.mxu0 %v9211_v1  ;;  %7309 = vmatpush3.msra.mxu1 %v574_v2  ;;  %s9220_s25 = smov 64   ;;  %s9221_s30 = smov 80  }
  0x1e   : > { %7292 = vmatpush3.msra.mxu0 %v573_v3  ;;  %7310 = vmatprep.subr.mxu1 %v9211_v1  ;;  %s9223_s20 = smov 16  }
  0x1f   : > { %s9383_s26 = scalar_lea.vmem %s14210_s0, %s6990_s17  ;;  %7293 = vmatprep.subr.mxu0 %v9211_v1  ;;  %7311 = vmatpush3.msra.mxu1 %v573_v3  ;;  %s9218_s0 = smov 96  }
  0x20   : > { %v9391_v5 = vld [vmem:[%s9383_s26] sm:$0xff]  ;;  %v9394_v6 = vld [vmem:[%s9383_s26 + $0x8] sm:$0xff]  ;;  %7294 = vmatpush3.msra.mxu0 %v572_v4  ;;  %7312 = vmatprep.subr.mxu1 %v9211_v1  ;;  %v9412_v11 = vld [vmem:[%s9383_s26 + $0x10] sm:$0xff] }
  0x21   : > { %s9388_s27 = scalar_lea.vmem %s14211_s1, %s6990_s17  ;;  %v531_v8 = vsel %vm530_vm1, %v9391_v5, 0.0  ;;  %7295 = vmatprep.subr.mxu0 %v9211_v1  ;;  %v534_v15 = vsel %vm530_vm1, %v9394_v6, 0.0  ;;  %7313 = vmatpush3.msra.mxu1 %v572_v4  ;;  %v9435_v20 = vld [vmem:[%s9383_s26 + $0x18] sm:$0xff]  ;;  %v538_v22 = vsel %vm530_vm1, %v9412_v11, 0.0  ;;  %v9454_v28 = vld [vmem:[%s9383_s26 + $0x20] sm:$0xff]  ;;  %v9464_v34 = vld [vmem:[%s9383_s26 + $0x28] sm:$0xff] }
  0x22   : > { %v9407_v10 = vld [vmem:[%s9388_s27] sm:$0xff]  ;;  %v9415_v12 = vld [vmem:[%s9388_s27 + $0x8] sm:$0xff]  ;;  %v9418_v13 = vld [vmem:[%s9388_s27 + $0x10] sm:$0xff]  ;;  %7296 = vmatpush3.msra.mxu0 %v571_v7  ;;  %7314 = vmatprep.subr.mxu1 %v9211_v1  ;;  %v542_v27 = vsel %vm530_vm1, %v9435_v20, 0.0  ;;  %v546_v33 = vsel %vm530_vm1, %v9454_v28, 0.0  ;;  %v550_v39 = vsel %vm530_vm1, %v9464_v34, 0.0 }
  0x23   : > { %v532_v14 = vsel %vm530_vm1, %v9407_v10, 0.0  ;;  %7297 = vmatprep.subr.mxu0 %v9211_v1  ;;  %v536_v19 = vsel %vm530_vm1, %v9415_v12, 0.0  ;;  %7315 = vmatpush3.msra.mxu1 %v571_v7  ;;  %v540_v23 = vsel %vm530_vm1, %v9418_v13, 0.0  ;;  %v9446_v25 = vld [vmem:[%s9388_s27 + $0x18] sm:$0xff]  ;;  %v9459_v31 = vld [vmem:[%s9388_s27 + $0x20] sm:$0xff]  ;;  %v9469_v37 = vld [vmem:[%s9388_s27 + $0x28] sm:$0xff] }
  0x24   : > { %v533_v16 = vadd.f32 %v532_v14, %v531_v8  ;;  %7298 = vmatpush3.msra.mxu0 %v570_v9  ;;  %7316 = vmatprep.subr.mxu1 %v9211_v1  ;;  %v544_v30 = vsel %vm530_vm1, %v9446_v25, 0.0  ;;  %v548_v36 = vsel %vm530_vm1, %v9459_v31, 0.0  ;;  %v9474_v40 = vld [vmem:[%s9383_s26 + $0x30] sm:$0xff]  ;;  %v552_v42 = vsel %vm530_vm1, %v9469_v37, 0.0  ;;  %v9484_v46 = vld [vmem:[%s9383_s26 + $0x38] sm:$0xff]  ;;  %s9216_s17 = smov 104  }
  0x25   : > { %7299 = vmatprep.subr.mxu0 %v9211_v1  ;;  %7317 = vmatpush3.msra.mxu1 %v570_v9  ;;  %v9479_v43 = vld [vmem:[%s9388_s27 + $0x30] sm:$0xff]  ;;  %v554_v45 = vsel %vm530_vm1, %v9474_v40, 0.0  ;;  %v9489_v49 = vld [vmem:[%s9388_s27 + $0x38] sm:$0xff]  ;;  %v558_v51 = vsel %vm530_vm1, %v9484_v46, 0.0  ;;  %s9219_s1 = smov 72   ;;  %s14202_s27 = smov 8  }
  0x26   : > { %v535_v21 = vadd.f32 %v534_v15, %v533_v16  ;;  %7300 = vmatpush3.msra.mxu0 %v569_v17  ;;  %7318 = vmatprep.subr.mxu1 %v9211_v1  ;;  %v556_v48 = vsel %vm530_vm1, %v9479_v43, 0.0  ;;  %v560_v53 = vsel %vm530_vm1, %v9489_v49, 0.0 }
  0x27   : > { %7301 = vmatprep.subr.mxu0 %v9211_v1  ;;  %7319 = vmatpush3.msra.mxu1 %v569_v17 }
  0x28   : > { %v537_v24 = vadd.f32 %v536_v19, %v535_v21  ;;  %7302 = vmatpush3.msra.mxu0 %v568_v18  ;;  %7320 = vmatprep.subr.mxu1 %v9211_v1 }
  0x29   : > { %7321 = vmatpush3.msra.mxu1 %v568_v18  ;;  %7322 = vmatprep.mubr.msk.f32.mxu1 %vm9212_vm0, %v9211_v1 }
  0x2a   : > { %v539_v26 = vadd.f32 %v538_v22, %v537_v24 }
  0x2c   : > { %v541_v29 = vadd.f32 %v540_v23, %v539_v26 }
  0x2e   : > { %v543_v32 = vadd.f32 %v542_v27, %v541_v29 }
  0x30   : > { %v545_v35 = vadd.f32 %v544_v30, %v543_v32 }
  0x32   : > { %v547_v38 = vadd.f32 %v546_v33, %v545_v35 }
  0x34   : > { %v549_v41 = vadd.f32 %v548_v36, %v547_v38 }
  0x36   : > { %v551_v44 = vadd.f32 %v550_v39, %v549_v41 }
  0x38   : > { %v553_v47 = vadd.f32 %v552_v42, %v551_v44 }
  0x3a   : > { %v555_v50 = vadd.f32 %v554_v45, %v553_v47 }
  0x3c   : > { %v557_v52 = vadd.f32 %v556_v48, %v555_v50 }
  0x3e   : > { %v559_v54 = vadd.f32 %v558_v51, %v557_v52 }
  0x40   : > { %v561_v55 = vadd.f32 %v560_v53, %v559_v54 }
  0x42   : > { %v562_v56 = vrot.slane %v561_v55, 4 }
  0x44   : > { %v563_v57 = vadd.f32 %v562_v56, %v561_v55 }
  0x46   : > { %v564_v58 = vrot.slane %v563_v57, 2 }
  0x48   : > { %v565_v59 = vadd.f32 %v564_v58, %v563_v57 }
  0x4a   : > { %v566_v60 = vrot.slane %v565_v59, 1 }
  0x4c   : > { %v567_v61 = vadd.f32 %v566_v60, %v565_v59 }
  0x4e   : > { %7304 = vmatmul.mubr.msk.f32.vlgmr.msra.gmra.mxu0 %vm530_vm1, %v567_v61 }
 0x10e   : > { %v645_v1 = vpop.f32.mrf.mxu0 }
 0x10f   : > { %v649_v2 = vmul.f32 0.00390625, %v645_v1 }
 0x110   : > { %v7305_v3 = vpop.f32.mrf.mxu0 }
 0x111   : > { %v653_v4 = vrot.slane %v649_v2, %v9499_v0 }
 0x113   : > { %v9503_v7 = vsub.f32 %v9391_v5, %v653_v4  ;;  %v9506_v8 = vsub.f32 %v9407_v10, %v653_v4  ;;  %v9509_v9 = vsub.f32 %v9394_v6, %v653_v4  ;;  %v9512_v14 = vsub.f32 %v9415_v12, %v653_v4 }
 0x114   : > { %v9519_v17 = vsub.f32 %v9412_v11, %v653_v4  ;;  %v9524_v10 = vsub.f32 %v9418_v13, %v653_v4  ;;  %v9531_v21 = vsub.f32 %v9435_v20, %v653_v4  ;;  %v9537_v13 = vsub.f32 %v9446_v25, %v653_v4 }
 0x115   : > { %v670_v15 = vmul.f32 %v9503_v7, %v9503_v7  ;;  %v671_v16 = vmul.f32 %v9506_v8, %v9506_v8  ;;  %v672_v5 = vmul.f32 %v9509_v9, %v9509_v9  ;;  %v673_v6 = vmul.f32 %v9512_v14, %v9512_v14 }
 0x116   : > { %v674_v11 = vmul.f32 %v9519_v17, %v9519_v17  ;;  %v675_v24 = vmul.f32 %v9524_v10, %v9524_v10  ;;  %v9543_v29 = vsub.f32 %v9454_v28, %v653_v4  ;;  %v676_v20 = vmul.f32 %v9531_v21, %v9531_v21 }
 0x117   : > { %v686_v12 = vsel %vm530_vm1, %v670_v15, 0.0  ;;  %v687_v18 = vsel %vm530_vm1, %v671_v16, 0.0  ;;  %v689_v22 = vsel %vm530_vm1, %v672_v5, 0.0  ;;  %v691_v26 = vsel %vm530_vm1, %v673_v6, 0.0 }
 0x118   : > { %v688_v19 = vadd.f32 %v687_v18, %v686_v12  ;;  %v693_v30 = vsel %vm530_vm1, %v674_v11, 0.0  ;;  %v9549_v33 = vsub.f32 %v9459_v31, %v653_v4  ;;  %v677_v25 = vmul.f32 %v9537_v13, %v9537_v13  ;;  %v8561_v11 = vld [vmem:[%s13988_s5 + $0x34] ss:$8 sps:$4 sm:$0xff]  }
 0x119   : > { %v695_v35 = vsel %vm530_vm1, %v675_v24, 0.0  ;;  %v9555_v38 = vsub.f32 %v9464_v34, %v653_v4  ;;  %v678_v28 = vmul.f32 %v9543_v29, %v9543_v29  ;;  %v697_v39 = vsel %vm530_vm1, %v676_v20, 0.0  ;;  %965 = vmatprep.subr.bf16.mxu0 %v8561_v11  ;;  %v8564_v24 = vld [vmem:[%s13988_s5 + $0x24] ss:$8 sps:$4 sm:$0xff]  }
 0x11a   : > { %v690_v23 = vadd.f32 %v689_v22, %v688_v19  ;;  %v9561_v42 = vsub.f32 %v9469_v37, %v653_v4  ;;  %v679_v31 = vmul.f32 %v9549_v33, %v9549_v33  ;;  %v699_v44 = vsel %vm530_vm1, %v677_v25, 0.0  ;;  %v8559_v22 = vld [vmem:[%s13988_s5 + $0x30] ss:$8 sps:$4 sm:$0xff]  }
 0x11b   : > { %v9567_v47 = vsub.f32 %v9474_v40, %v653_v4  ;;  %v680_v34 = vmul.f32 %v9555_v38, %v9555_v38  ;;  %v701_v48 = vsel %vm530_vm1, %v678_v28, 0.0  ;;  %v9573_v51 = vsub.f32 %v9479_v43, %v653_v4  ;;  %966 = vmatpush1.bf16.msra.mxu0 %v8559_v22 }
 0x11c   : > { %v692_v27 = vadd.f32 %v691_v26, %v690_v23  ;;  %v681_v37 = vmul.f32 %v9561_v42, %v9561_v42  ;;  %v703_v52 = vsel %vm530_vm1, %v679_v31, 0.0  ;;  %v9579_v54 = vsub.f32 %v9484_v46, %v653_v4  ;;  %v8562_v23 = vld [vmem:[%s13988_s5 + $0x20] ss:$8 sps:$4 sm:$0xff]   ;;  %v8567_v26 = vld [vmem:[%s13988_s5 + $0x14] ss:$8 sps:$4 sm:$0xff]   ;;  %967 = vmatprep.subr.bf16.mxu0 %v8564_v24 }
 0x11d   : > { %v682_v40 = vmul.f32 %v9567_v47, %v9567_v47  ;;  %v705_v55 = vsel %vm530_vm1, %v680_v34, 0.0  ;;  %v9585_v57 = vsub.f32 %v9489_v49, %v653_v4  ;;  %v683_v43 = vmul.f32 %v9573_v51, %v9573_v51  ;;  %v9630_v31 = vld [vmem:[%s13986_s3] ss:$0 sm:$0xff] }
 0x11e   : > { %v694_v32 = vadd.f32 %v693_v30, %v692_v27  ;;  %v707_v58 = vsel %vm530_vm1, %v681_v37, 0.0  ;;  %v684_v60 = vmul.f32 %v9579_v54, %v9579_v54  ;;  %v8565_v27 = vld [vmem:[%s13988_s5 + $0x10] ss:$8 sps:$4 sm:$0xff]   ;;  %v9213_v20 = vmov 0   ;;  %v8570_v30 = vld [vmem:[%s13988_s5 + $0x4] ss:$8 sps:$4 sm:$0xff]  }
 0x11f   : > { %v709_v46 = vsel %vm530_vm1, %v682_v40, 0.0  ;;  %v685_v62 = vmul.f32 %v9585_v57, %v9585_v57  ;;  %v711_v1 = vsel %vm530_vm1, %v683_v43, 0.0  ;;  %968 = vmatpush1.bf16.msra.mxu0 %v8562_v23  ;;  %989 = vmatprep.mubr.bf16.mxu0 %v9213_v20  ;;  %v9639_v34 = vld [vmem:[%s13987_s4] ss:$0 sm:$0xff] }
 0x120   : > { %v696_v36 = vadd.f32 %v695_v35, %v694_v32  ;;  %v713_v49 = vsel %vm530_vm1, %v684_v60, 0.0  ;;  %969 = vmatprep.subr.bf16.mxu0 %v8567_v26  ;;  %v8568_v32 = vld [vmem:[%s13988_s5] ss:$8 sps:$4 sm:$0xff]  }
 0x121   : > { %v715_v4 = vsel %vm530_vm1, %v685_v62, 0.0 }
 0x122   : > { %v698_v41 = vadd.f32 %v697_v39, %v696_v36 }
 0x123   : > { %970 = vmatpush1.bf16.msra.mxu0 %v8565_v27 }
 0x124   : > { %v700_v45 = vadd.f32 %v699_v44, %v698_v41  ;;  %971 = vmatprep.subr.bf16.mxu0 %v8570_v30 }
 0x126   : > { %v702_v50 = vadd.f32 %v701_v48, %v700_v45 }
 0x127   : > { %972 = vmatpush1.bf16.msra.mxu0 %v8568_v32 }
 0x128   : > { %v704_v53 = vadd.f32 %v703_v52, %v702_v50 }
 0x12a   : > { %v706_v56 = vadd.f32 %v705_v55, %v704_v53 }
 0x12c   : > { %v708_v59 = vadd.f32 %v707_v58, %v706_v56 }
 0x12e   : > { %v710_v61 = vadd.f32 %v709_v46, %v708_v59 }
 0x130   : > { %v712_v2 = vadd.f32 %v711_v1, %v710_v61 }
 0x132   : > { %v714_v3 = vadd.f32 %v713_v49, %v712_v2 }
 0x134   : > { %v716_v15 = vadd.f32 %v715_v4, %v714_v3 }
 0x136   : > { %v717_v16 = vrot.slane %v716_v15, 4 }
 0x138   : > { %v718_v5 = vadd.f32 %v717_v16, %v716_v15 }
 0x13a   : > { %v719_v6 = vrot.slane %v718_v5, 2 }
 0x13c   : > { %v720_v12 = vadd.f32 %v719_v6, %v718_v5 }
 0x13e   : > { %v721_v18 = vrot.slane %v720_v12, 1 }
 0x140   : > { %v722_v19 = vadd.f32 %v721_v18, %v720_v12 }
 0x142   : > { %7323 = vmatmul.mubr.msk.f32.vlgmr.msra.gmra.mxu1 %vm530_vm1, %v722_v19 }
 0x202   : > { %v792_v25 = vpop.f32.mrf.mxu1 }
 0x203   : > { %v796_v35 = vmul.f32 0.00390625, %v792_v25 }
 0x204   : > { %v7324_v36 = vpop.f32.mrf.mxu1 }
 0x205   : > { %v797_v28 = vadd.f32 1e-06, %v796_v35 }
 0x207   : > { %8579 = vrsqrt.f32 %v797_v28 }
 0x214   : > { %v8580_v39 = vpop.eup %8579 }
 0x215   : > { %v9625_v41 = vrot.slane %v8580_v39, %v9499_v0 }
 0x217   : > { %v803_v44 = vmul.f32 %v9625_v41, %v9503_v7  ;;  %v804_v45 = vmul.f32 %v9625_v41, %v9506_v8  ;;  %v805_v37 = vmul.f32 %v9625_v41, %v9509_v9  ;;  %v806_v52 = vmul.f32 %v9625_v41, %v9512_v14 }
 0x218   : > { %v807_v14 = vmul.f32 %v9625_v41, %v9519_v17  ;;  %v808_v43 = vmul.f32 %v9625_v41, %v9524_v10  ;;  %v809_v62 = vmul.f32 %v9625_v41, %v9531_v21  ;;  %v810_v17 = vmul.f32 %v9625_v41, %v9537_v13 }
 0x219   : > { %v826_v48 = vmul.f32 %v9630_v31, %v803_v44  ;;  %v827_v50 = vmul.f32 %v9630_v31, %v804_v45  ;;  %v828_v40 = vmul.f32 %v9630_v31, %v805_v37  ;;  %v829_v55 = vmul.f32 %v9630_v31, %v806_v52 }
 0x21a   : > { %v830_v59 = vmul.f32 %v9630_v31, %v807_v14  ;;  %v831_v60 = vmul.f32 %v9630_v31, %v808_v43  ;;  %v832_v1 = vmul.f32 %v9630_v31, %v809_v62  ;;  %v833_v2 = vmul.f32 %v9630_v31, %v810_v17 }
 0x21b   : > { %v849_v7 = vadd.f32 %v9639_v34, %v826_v48  ;;  %v850_v53 = vadd.f32 %v9639_v34, %v827_v50  ;;  %v851_v56 = vadd.f32 %v9639_v34, %v828_v40  ;;  %v852_v9 = vadd.f32 %v9639_v34, %v829_v55 }
 0x21c   : > { %v853_v46 = vadd.f32 %v9639_v34, %v830_v59  ;;  %v854_v61 = vadd.f32 %v9639_v34, %v831_v60  ;;  %v855_v49 = vadd.f32 %v9639_v34, %v832_v1  ;;  %v856_v3 = vadd.f32 %v9639_v34, %v833_v2 }
 0x21d   : > { %v865_v8 = vpack.c.bf16 %v850_v53, %v849_v7  ;;  %v866_v58 = vpack.c.bf16 %v852_v9, %v851_v56  ;;  %v811_v4 = vmul.f32 %v9625_v41, %v9543_v29  ;;  %v812_v21 = vmul.f32 %v9625_v41, %v9549_v33 }
 0x21e   : > { %v867_v10 = vpack.c.bf16 %v854_v61, %v853_v46  ;;  %v868_v13 = vpack.c.bf16 %v856_v3, %v855_v49  ;;  %v813_v12 = vmul.f32 %v9625_v41, %v9555_v38  ;;  %v814_v29 = vmul.f32 %v9625_v41, %v9561_v42 }
 0x21f   : > { %6887 = vmatmul.mubr.msk.bf16.vlgmr.msra.gmra.mxu0 %vm530_vm1, %v865_v8  ;;  %v834_v15 = vmul.f32 %v9630_v31, %v811_v4  ;;  %v835_v16 = vmul.f32 %v9630_v31, %v812_v21  ;;  %v815_v23 = vmul.f32 %v9625_v41, %v9567_v47  ;;  %v816_v38 = vmul.f32 %v9625_v41, %v9573_v51 }
 0x220   : > { %999 = vmatprep.mubr.bf16.mxu0 %v9213_v20  ;;  %v836_v18 = vmul.f32 %v9630_v31, %v813_v12  ;;  %v837_v19 = vmul.f32 %v9630_v31, %v814_v29  ;;  %v817_v32 = vmul.f32 %v9625_v41, %v9579_v54  ;;  %v818_v47 = vmul.f32 %v9625_v41, %v9585_v57  ;;  %v881_v54 = vld [vmem:[%s13989_s6] sm:$0x3] }
 0x221   : > { %v857_v5 = vadd.f32 %v9639_v34, %v834_v15  ;;  %v858_v6 = vadd.f32 %v9639_v34, %v835_v16  ;;  %v838_v24 = vmul.f32 %v9630_v31, %v815_v23  ;;  %v839_v26 = vmul.f32 %v9630_v31, %v816_v38 }
 0x222   : > { %v859_v11 = vadd.f32 %v9639_v34, %v836_v18  ;;  %v860_v22 = vadd.f32 %v9639_v34, %v837_v19  ;;  %v840_v25 = vmul.f32 %v9630_v31, %v817_v32  ;;  %v841_v35 = vmul.f32 %v9630_v31, %v818_v47 }
 0x223   : > { %v869_v33 = vpack.c.bf16 %v858_v6, %v857_v5  ;;  %v861_v27 = vadd.f32 %v9639_v34, %v838_v24  ;;  %v862_v30 = vadd.f32 %v9639_v34, %v839_v26  ;;  %v889_v57 = vsub.s32 1, %v9496_v63 }
 0x224   : > { %v870_v42 = vpack.c.bf16 %v860_v22, %v859_v11  ;;  %v863_v36 = vadd.f32 %v9639_v34, %v840_v25  ;;  %v864_v28 = vadd.f32 %v9639_v34, %v841_v35  ;;  %v9721_v31 = vrot.slane %v881_v54, %v9499_v0 }
 0x225   : > { %v871_v51 = vpack.c.bf16 %v862_v30, %v861_v27  ;;  %v9723_v45 = vrot.slane %v881_v54, %v889_v57 }
 0x226   : > { %v872_v39 = vpack.c.bf16 %v864_v28, %v863_v36 }
 0x227   : > { %6888 = vmatmul.mubr.msk.bf16.gmra.mxu0 %vm530_vm1, %v866_v58 }
 0x228   : > { %1009 = vmatprep.mubr.bf16.mxu0 %v9213_v20 }
 0x22f   : > { %6889 = vmatmul.mubr.msk.bf16.gmra.mxu0 %vm530_vm1, %v867_v10 }
 0x230   : > { %1019 = vmatprep.mubr.bf16.mxu0 %v9213_v20 }
 0x237   : > { %6890 = vmatmul.mubr.msk.bf16.gmra.mxu0 %vm530_vm1, %v868_v13 }
 0x238   : > { %1029 = vmatprep.mubr.bf16.mxu0 %v9213_v20 }
 0x23f   : > { %6891 = vmatmul.mubr.msk.bf16.gmra.mxu0 %vm530_vm1, %v869_v33 }
 0x240   : > { %1039 = vmatprep.mubr.bf16.mxu0 %v9213_v20 }
 0x247   : > { %6892 = vmatmul.mubr.msk.bf16.gmra.mxu0 %vm530_vm1, %v870_v42 }
 0x248   : > { %1049 = vmatprep.mubr.bf16.mxu0 %v9213_v20 }
 0x24f   : > { %6893 = vmatmul.mubr.msk.bf16.gmra.mxu0 %vm530_vm1, %v871_v51 }
 0x250   : > { %1059 = vmatprep.mubr.bf16.mxu0 %v9213_v20 }
 0x257   : > { %6894 = vmatmul.mubr.msk.bf16.gmra.mxu0 %vm530_vm1, %v872_v39 }
 0x2df   : > { %v991_v41 = vpop.f32.mrf.mxu0 }
 0x2e0   : > { %v9726_v48 = vadd.f32 %v991_v41, %v9721_v31 }
 0x2e1   : > { %v993_v44 = vpop.f32.mrf.mxu0 }
 0x2e2   : > { %14212 = vst [vmem:[#allocation8_spill] sm:$0xff] %v9726_v48  ;;  %v994_v37 = vadd.f32 %v993_v44, %v9723_v45 }
 0x2e3   : > { %v995_v20 = vpop.f32.mrf.mxu0 }
 0x2e4   : > { %v9729_v34 = vadd.f32 %v995_v20, %v9721_v31 }
 0x2e5   : > { %v997_v50 = vpop.f32.mrf.mxu0 }
 0x2e6   : > { %14213 = vst [vmem:[#allocation9_spill] sm:$0xff] %v9729_v34  ;;  %v998_v52 = vadd.f32 %v997_v50, %v9723_v45  ;;  %v7999_v63 = vpack.i.bf16 %v9729_v34, %v9726_v48  ;;  %v1422_v4 = vpack.c.bf16 %v9729_v34, %v9726_v48 }
 0x2e7   : > { %v1001_v0 = vpop.f32.mrf.mxu0 }
 0x2e8   : > { %8000 = vrot.lane.b32.xlu0 %v7999_v63, %s9214_s24  ;;  %v9736_v7 = vpack.i.bf16 %v998_v52, %v994_v37  ;;  %v9764_v60 = vpack.c.bf16 %v998_v52, %v994_v37  ;;  %v9769_v61 = vadd.f32 %v1001_v0, %v9721_v31 }
 0x2e9   : > { %v1003_v53 = vpop.f32.mrf.mxu0 }
 0x2ea   : > { %8035 = vrot.lane.b32.xlu1 %v9736_v7, %s9214_s24  ;;  %14216 = vst [vmem:[#allocation12_spill] sm:$0xff] %v9769_v61  ;;  %v1004_v42 = vadd.f32 %v1003_v53, %v9723_v45 }
 0x2eb   : > { %v1005_v8 = vpop.f32.mrf.mxu0 }
 0x2ec   : > { %8005 = vrot.lane.b32.xlu0 %v7999_v63, %s9215_s16  ;;  %v9758_v58 = vadd.f32 %v1005_v8, %v9721_v31 }
 0x2ed   : > { %v1007_v40 = vpop.f32.mrf.mxu0 }
 0x2ee   : > { %8045 = vrot.lane.b32.xlu1 %v9736_v7, %s9216_s17  ;;  %14214 = vst [vmem:[#allocation10_spill] sm:$0xff] %v9758_v58  ;;  %v8069_v10 = vpack.i.bf16 %v9758_v58, %v9769_v61  ;;  %v1008_v22 = vadd.f32 %v1007_v40, %v9723_v45  ;;  %v1423_v54 = vpack.c.bf16 %v9758_v58, %v9769_v61 }
 0x2ef   : > { %v9743_v55 = vpop.f32.mrf.mxu0 }
 0x2f0   : > { %8010 = vrot.lane.b32.xlu0 %v7999_v63, %s9216_s17  ;;  %v8104_v32 = vpack.i.bf16 %v1008_v22, %v1004_v42  ;;  %v9857_v0 = vadd.f32 %v9743_v55, %v9721_v31 }
 0x2f1   : > { %v9746_v56 = vpop.f32.mrf.mxu0 }
 0x2f2   : > { %8055 = vrot.lane.b32.xlu1 %v9736_v7, %s9217_s23  ;;  %14227 = vst [vmem:[#allocation23_spill] sm:$0xff] %v9857_v0 }
 0x2f3   : > { %v9750_v9 = vpop.f32.mrf.mxu0 }
 0x2f4   : > { %8015 = vrot.lane.b32.xlu0 %v7999_v63, %s9218_s0  ;;  %v9850_v37 = vadd.f32 %v9750_v9, %v9721_v31  ;;  %v1839_v9 = vpack.c.bf16 %v1008_v22, %v1004_v42 }
 0x2f5   : > { %v9753_v14 = vpop.f32.mrf.mxu0 }
 0x2f6   : > { %8065 = vrot.lane.b32.xlu1 %v9736_v7, %s9219_s1  ;;  %14226 = vst [vmem:[#allocation22_spill] sm:$0xff] %v9850_v37  ;;  %v1018_v55 = vadd.f32 %v9753_v14, %v9723_v45 }
 0x2f7   : > { %v1021_v43 = vpop.f32.mrf.mxu0 }
 0x2f8   : > { %v9761_v59 = vadd.f32 %v1021_v43, %v9721_v31  ;;  %8020 = vrot.lane.b32.xlu0 %v7999_v63, %s9217_s23  ;;  %v1014_v43 = vadd.f32 %v9746_v56, %v9723_v45 }
 0x2f9   : > { %v9766_v46 = vpop.f32.mrf.mxu0 }
 0x2fa   : > { %14215 = vst [vmem:[#allocation11_spill] sm:$0xff] %v9761_v59  ;;  %4223 = vrot.lane.b32.xlu1 %v9764_v60, %s9220_s25  ;;  %v8174_v14 = vpack.i.bf16 %v1018_v55, %v1014_v43 }
 0x2fb   : > { %v1025_v62 = vpop.f32.mrf.mxu0 }
 0x2fc   : > { %v9774_v17 = vadd.f32 %v1025_v62, %v9721_v31  ;;  %8025 = vrot.lane.b32.xlu0 %v7999_v63, %s9221_s30 }
 0x2fd   : > { %v9779_v1 = vpop.f32.mrf.mxu0 }
 0x2fe   : > { %14217 = vst [vmem:[#allocation13_spill] sm:$0xff] %v9774_v17  ;;  %8070 = vrot.lane.b32.xlu1 %v8069_v10, %s9214_s24 }
 0x2ff   : > { %v1031_v2 = vpop.f32.mrf.mxu0 }
 0x300   : > { %v9783_v49 = vadd.f32 %v1031_v2, %v9721_v31  ;;  %8030 = vrot.lane.b32.xlu0 %v7999_v63, %s9219_s1 }
 0x301   : > { %v1033_v3 = vpop.f32.mrf.mxu0 }
 0x302   : > { %14218 = vst [vmem:[#allocation14_spill] sm:$0xff] %v9783_v49  ;;  %8075 = vrot.lane.b32.xlu1 %v8069_v10, %s9215_s16  ;;  %v9794_v16 = vadd.f32 %v1033_v3, %v9723_v45  ;;  %v1028_v3 = vadd.f32 %v9779_v1, %v9723_v45  ;;  %v1424_v1 = vpack.c.bf16 %v9850_v37, %v9857_v0 }
 0x303   : > { %v1035_v21 = vpop.f32.mrf.mxu0 }
 0x304   : > { %v9790_v13 = vadd.f32 %v1035_v21, %v9721_v31  ;;  %1910 = vrot.lane.b32.xlu0 %v1422_v4, %s9220_s25  ;;  %v1024_v4 = vadd.f32 %v9766_v46, %v9723_v45 }
 0x305   : > { %v1037_v15 = vpop.f32.mrf.mxu0 }
 0x306   : > { %14219 = vst [vmem:[#allocation15_spill] sm:$0xff] %v9790_v13  ;;  %v9797_v5 = vadd.f32 %v1037_v15, %v9723_v45  ;;  %8080 = vrot.lane.b32.xlu1 %v8069_v10, %s9216_s17  ;;  %v1841_v15 = vpack.c.bf16 %v1028_v3, %v1024_v4 }
 0x307   : > { %v1041_v6 = vpop.f32.mrf.mxu0 }
 0x308   : > { %v9801_v12 = vadd.f32 %v1041_v6, %v9721_v31  ;;  %8040 = vrot.lane.b32.xlu0 %v9736_v7, %s9215_s16  ;;  %v9807_v29 = vpack.i.bf16 %v9797_v5, %v9794_v16  ;;  %v9897_v2 = vpack.c.bf16 %v9797_v5, %v9794_v16  ;;  %v1840_v16 = vpack.c.bf16 %v1018_v55, %v1014_v43 }
 0x309   : > { %v1043_v33 = vpop.f32.mrf.mxu0  ;;  %v1961_v46 = vsel %vm1926_vm2, %v1841_v15, 0  ;;  %v8244_v6 = vpack.i.bf16 %v1028_v3, %v1024_v4 }
 0x30a   : > { %14220 = vst [vmem:[#allocation16_spill] sm:$0xff] %v9801_v12  ;;  %8085 = vrot.lane.b32.xlu1 %v8069_v10, %s9218_s0  ;;  %v1044_v23 = vadd.f32 %v1043_v33, %v9723_v45  ;;  %v1964_v21 = vsel %vm1926_vm2, %v9897_v2, 0  ;;  %v1958_v5 = vsel %vm1926_vm2, %v1840_v16, 0  ;;  %v1955_v33 = vsel %vm1926_vm2, %v1839_v9, 0 }
 0x30b   : > { %v1045_v18 = vpop.f32.mrf.mxu0 }
 0x30c   : > { %v9811_v19 = vadd.f32 %v1045_v18, %v9721_v31  ;;  %8050 = vrot.lane.b32.xlu0 %v9736_v7, %s9218_s0 }
 0x30d   : > { %v1047_v11 = vpop.f32.mrf.mxu0 }
 0x30e   : > { %14221 = vst [vmem:[#allocation17_spill] sm:$0xff] %v9811_v19  ;;  %v1048_v38 = vadd.f32 %v1047_v11, %v9723_v45  ;;  %8090 = vrot.lane.b32.xlu1 %v8069_v10, %s9217_s23  ;;  %v1952_v11 = vsel %vm1926_vm2, %v9764_v60, 0 }
 0x30f   : > { %v1051_v24 = vpop.f32.mrf.mxu0 }
 0x310   : > { %v9821_v26 = vadd.f32 %v1051_v24, %v9721_v31  ;;  %8060 = vrot.lane.b32.xlu0 %v9736_v7, %s9221_s30  ;;  %v9825_v27 = vpack.i.bf16 %v1048_v38, %v1044_v23  ;;  %v1425_v24 = vpack.c.bf16 %v9774_v17, %v9761_v59 }
 0x311   : > { %v1053_v30 = vpop.f32.mrf.mxu0 }
 0x312   : > { %14222 = vst [vmem:[#allocation18_spill] sm:$0xff] %v9821_v26  ;;  %8095 = vrot.lane.b32.xlu1 %v8069_v10, %s9221_s30  ;;  %v1054_v35 = vadd.f32 %v1053_v30, %v9723_v45 }
 0x313   : > { %v1055_v47 = vpop.f32.mrf.mxu0 }
 0x314   : > { %v9829_v51 = vadd.f32 %v1055_v47, %v9721_v31  ;;  %8105 = vrot.lane.b32.xlu0 %v8104_v32, %s9214_s24 }
 0x315   : > { %v1057_v25 = vpop.f32.mrf.mxu0 }
 0x316   : > { %14223 = vst [vmem:[#allocation19_spill] sm:$0xff] %v9829_v51  ;;  %v1058_v36 = vadd.f32 %v1057_v25, %v9723_v45  ;;  %8100 = vrot.lane.b32.xlu1 %v8069_v10, %s9219_s1  ;;  %v9885_v10 = vpack.c.bf16 %v1048_v38, %v1044_v23  ;;  %v8284_v38 = vpack.i.bf16 %v9790_v13, %v9783_v49 }
 0x317   : > { %v1061_v28 = vpop.f32.mrf.mxu0 }
 0x318   : > { %v9836_v39 = vadd.f32 %v1061_v28, %v9721_v31  ;;  %8110 = vrot.lane.b32.xlu0 %v8104_v32, %s9215_s16  ;;  %v9841_v57 = vpack.i.bf16 %v1058_v36, %v1054_v35  ;;  %v9869_v40 = vpack.c.bf16 %v1058_v36, %v1054_v35  ;;  %v1967_v56 = vsel %vm1926_vm2, %v9885_v10, 0 }
 0x319   : > { %v1063_v41 = vpop.f32.mrf.mxu0 }
 0x31a   : > { %14224 = vst [vmem:[#allocation20_spill] sm:$0xff] %v9836_v39  ;;  %1912 = vrot.lane.b32.xlu1 %v1423_v54, %s9220_s25  ;;  %v1064_v52 = vadd.f32 %v1063_v41, %v9723_v45  ;;  %v1970_v62 = vsel %vm1926_vm2, %v9869_v40, 0 }
 0x31b   : > { %v1065_v44 = vpop.f32.mrf.mxu0 }
 0x31c   : > { %v9845_v20 = vadd.f32 %v1065_v44, %v9721_v31  ;;  %8120 = vrot.lane.b32.xlu0 %v8104_v32, %s9218_s0  ;;  %v8139_v31 = vpack.i.bf16 %v9850_v37, %v9857_v0 }
 0x31d   : > { %v1067_v50 = vpop.f32.mrf.mxu0 }
 0x31e   : > { %14225 = vst [vmem:[#allocation21_spill] sm:$0xff] %v9845_v20  ;;  %v1068_v63 = vadd.f32 %v1067_v50, %v9723_v45  ;;  %8115 = vrot.lane.b32.xlu1 %v8104_v32, %s9216_s17  ;;  %v8209_v45 = vpack.i.bf16 %v9774_v17, %v9761_v59  ;;  %v1428_v59 = vpack.c.bf16 %v9829_v51, %v9821_v26 }
 0x31f   : > { %v8489_v17 = vpack.i.bf16 %v9845_v20, %v9836_v39 }
 0x320   : > { %8130 = vrot.lane.b32.xlu0 %v8104_v32, %s9221_s30  ;;  %v9860_v7 = vpack.c.bf16 %v1068_v63, %v1064_v52  ;;  %v9862_v53 = vpack.i.bf16 %v1068_v63, %v1064_v52  ;;  %v1426_v63 = vpack.c.bf16 %v9790_v13, %v9783_v49 }
 0x322   : > { %7877 = vmatprep.subr.msk.bf16.mxu1 %vm1926_vm2, %v9860_v7  ;;  %8125 = vrot.lane.b32.xlu1 %v8104_v32, %s9217_s23  ;;  %v1973_v8 = vsel %vm1926_vm2, %v9860_v7, 0 }
 0x323   : > { %7326 = vmatpush3.bf16.xpose.msra.mxu1 %v1973_v8 }
 0x324   : > { %7878 = vmatprep.subr.msk.bf16.mxu1 %vm1926_vm2, %v9869_v40  ;;  %8140 = vrot.lane.b32.xlu0 %v8139_v31, %s9214_s24 }
 0x326   : > { %8135 = vrot.lane.b32.xlu1 %v8104_v32, %s9219_s1 }
 0x328   : > { %8145 = vrot.lane.b32.xlu0 %v8139_v31, %s9215_s16 }
 0x32a   : > { %4225 = vrot.lane.b32.xlu1 %v1839_v9, %s9220_s25 }
 0x32b   : > { %7328 = vmatpush3.bf16.xpose.msra.mxu1 %v1970_v62 }
 0x32c   : > { %7879 = vmatprep.subr.msk.bf16.mxu1 %vm1926_vm2, %v9885_v10  ;;  %8150 = vrot.lane.b32.xlu0 %v8139_v31, %s9216_s17 }
 0x32e   : > { %8175 = vrot.lane.b32.xlu1 %v8174_v14, %s9214_s24 }
 0x330   : > { %8155 = vrot.lane.b32.xlu0 %v8139_v31, %s9218_s0 }
 0x332   : > { %8185 = vrot.lane.b32.xlu1 %v8174_v14, %s9216_s17 }
 0x333   : > { %7330 = vmatpush3.bf16.xpose.msra.mxu1 %v1967_v56 }
 0x334   : > { %7880 = vmatprep.subr.msk.bf16.mxu1 %vm1926_vm2, %v9897_v2  ;;  %8160 = vrot.lane.b32.xlu0 %v8139_v31, %s9217_s23 }
 0x336   : > { %8195 = vrot.lane.b32.xlu1 %v8174_v14, %s9217_s23 }
 0x338   : > { %8165 = vrot.lane.b32.xlu0 %v8139_v31, %s9221_s30 }
 0x33a   : > { %8205 = vrot.lane.b32.xlu1 %v8174_v14, %s9219_s1 }
 0x33b   : > { %7332 = vmatpush3.bf16.xpose.msra.mxu1 %v1964_v21 }
 0x33c   : > { %7881 = vmatprep.subr.msk.bf16.mxu1 %vm1926_vm2, %v1841_v15  ;;  %8170 = vrot.lane.b32.xlu0 %v8139_v31, %s9219_s1 }
 0x33e   : > { %4227 = vrot.lane.b32.xlu1 %v1840_v16, %s9220_s25 }
 0x340   : > { %8180 = vrot.lane.b32.xlu0 %v8174_v14, %s9215_s16 }
 0x342   : > { %8210 = vrot.lane.b32.xlu1 %v8209_v45, %s9214_s24 }
 0x343   : > { %7334 = vmatpush3.bf16.xpose.msra.mxu1 %v1961_v46 }
 0x344   : > { %7882 = vmatprep.subr.msk.bf16.mxu1 %vm1926_vm2, %v1840_v16  ;;  %1914 = vrot.lane.b32.xlu0 %v1424_v1, %s9220_s25  ;;  %v8419_v1 = vpack.i.bf16 %v9829_v51, %v9821_v26 }
 0x346   : > { %8215 = vrot.lane.b32.xlu1 %v8209_v45, %s9215_s16 }
 0x348   : > { %8190 = vrot.lane.b32.xlu0 %v8174_v14, %s9218_s0 }
 0x34a   : > { %8220 = vrot.lane.b32.xlu1 %v8209_v45, %s9216_s17 }
 0x34b   : > { %7336 = vmatpush3.bf16.xpose.msra.mxu1 %v1958_v5 }
 0x34c   : > { %7883 = vmatprep.subr.msk.bf16.mxu1 %vm1926_vm2, %v1839_v9  ;;  %8200 = vrot.lane.b32.xlu0 %v8174_v14, %s9221_s30  ;;  %v8349_v14 = vpack.i.bf16 %v9811_v19, %v9801_v12 }
 0x34e   : > { %8225 = vrot.lane.b32.xlu1 %v8209_v45, %s9218_s0 }
 0x350   : > { %8245 = vrot.lane.b32.xlu0 %v8244_v6, %s9214_s24 }
 0x352   : > { %8230 = vrot.lane.b32.xlu1 %v8209_v45, %s9217_s23 }
 0x353   : > { %7338 = vmatpush3.bf16.xpose.msra.mxu1 %v1955_v33 }
 0x354   : > { %7884 = vmatprep.subr.msk.bf16.mxu1 %vm1926_vm2, %v9764_v60  ;;  %8250 = vrot.lane.b32.xlu0 %v8244_v6, %s9215_s16 }
 0x356   : > { %8235 = vrot.lane.b32.xlu1 %v8209_v45, %s9221_s30 }
 0x358   : > { %8260 = vrot.lane.b32.xlu0 %v8244_v6, %s9218_s0 }
 0x35a   : > { %8240 = vrot.lane.b32.xlu1 %v8209_v45, %s9219_s1  ;;  %v9939_v18 = vpop.permute.xlu0 %8000 }
 0x35b   : > { %7340 = vmatpush3.bf16.xpose.msra.mxu1 %v1952_v11  ;;  %v8003_v61 = vunpack.i.h.bf16 %v9939_v18  ;;  %v8002_v48 = vunpack.i.l.bf16 %v9939_v18 }
 0x35c   : > { %v9943_v22 = vpop.permute.xlu1 %8035  ;;  %8270 = vrot.lane.b32.xlu0 %v8244_v6, %s9221_s30 }
 0x35e   : > { %8255 = vrot.lane.b32.xlu1 %v8244_v6, %s9216_s17  ;;  %v9947_v23 = vpop.permute.xlu0 %8005 }
 0x360   : > { %v9951_v42 = vpop.permute.xlu1 %8045  ;;  %8285 = vrot.lane.b32.xlu0 %v8284_v38, %s9215_s16 }
 0x362   : > { %1916 = vrot.lane.b32.xlu1 %v1425_v24, %s9220_s25  ;;  %v9957_v60 = vpop.permute.xlu0 %8010  ;;  %v1427_v24 = vpack.c.bf16 %v9811_v19, %v9801_v12 }
 0x364   : > { %v9959_v30 = vpop.permute.xlu1 %8055  ;;  %8290 = vrot.lane.b32.xlu0 %v8284_v38, %s9216_s17 }
 0x366   : > { %8265 = vrot.lane.b32.xlu1 %v8244_v6, %s9217_s23  ;;  %v9963_v32 = vpop.permute.xlu0 %8015 }
 0x368   : > { %v9965_v47 = vpop.permute.xlu1 %8065  ;;  %8295 = vrot.lane.b32.xlu0 %v8284_v38, %s9218_s0 }
 0x369   : > { %14228 = vst [vmem:[#allocation24_spill] sm:$0xff] %v9965_v47 }
 0x36a   : > { %8275 = vrot.lane.b32.xlu1 %v8244_v6, %s9219_s1  ;;  %v9969_v25 = vpop.permute.xlu0 %8020 }
 0x36c   : > { %v9971_v35 = vpop.permute.xlu1 %4223  ;;  %8300 = vrot.lane.b32.xlu0 %v8284_v38, %s9217_s23 }
 0x36d   : > { %14229 = vst [vmem:[#allocation25_spill] sm:$0xff] %v9971_v35  ;;  %v1430_v35 = vpack.c.bf16 %v8003_v61, %v8002_v48 }
 0x36e   : > { %4229 = vrot.lane.b32.xlu1 %v1841_v15, %s9220_s25  ;;  %v9975_v36 = vpop.permute.xlu0 %8025 }
 0x370   : > { %v9977_v28 = vpop.permute.xlu1 %8070  ;;  %8305 = vrot.lane.b32.xlu0 %v8284_v38, %s9221_s30 }
 0x372   : > { %8280 = vrot.lane.b32.xlu1 %v8284_v38, %s9214_s24  ;;  %v9981_v54 = vpop.permute.xlu0 %8030 }
 0x374   : > { %v9983_v41 = vpop.permute.xlu1 %8075  ;;  %8310 = vrot.lane.b32.xlu0 %v8284_v38, %s9219_s1 }
 0x376   : > { %8315 = vrot.lane.b32.xlu1 %v9807_v29, %s9214_s24  ;;  %v1911_v44 = vpop.permute.xlu0 %1910 }
 0x377   : > { %7341 = vmatprep.mubr.msk.bf16.mxu1 %vm1926_vm2, %v1911_v44 }
 0x378   : > { %v9989_v50 = vpop.permute.xlu1 %8080  ;;  %8320 = vrot.lane.b32.xlu0 %v9807_v29, %s9215_s16 }
 0x37a   : > { %8325 = vrot.lane.b32.xlu1 %v9807_v29, %s9216_s17  ;;  %v9995_v52 = vpop.permute.xlu0 %8040 }
 0x37c   : > { %v9999_v8 = vpop.permute.xlu1 %8085  ;;  %1918 = vrot.lane.b32.xlu0 %v1426_v63, %s9220_s25 }
 0x37e   : > { %8335 = vrot.lane.b32.xlu1 %v9807_v29, %s9217_s23  ;;  %v10004_v31 = vpop.permute.xlu0 %8050 }
 0x380   : > { %v10006_v55 = vpop.permute.xlu1 %8090  ;;  %8330 = vrot.lane.b32.xlu0 %v9807_v29, %s9218_s0 }
 0x382   : > { %8345 = vrot.lane.b32.xlu1 %v9807_v29, %s9219_s1  ;;  %v10012_v9 = vpop.permute.xlu0 %8060 }
 0x383   : > { %14230 = vst [vmem:[#allocation26_spill] sm:$0xff] %v10012_v9 }
 0x384   : > { %v10014_v43 = vpop.permute.xlu1 %8095  ;;  %8340 = vrot.lane.b32.xlu0 %v9807_v29, %s9221_s30 }
 0x386   : > { %4231 = vrot.lane.b32.xlu1 %v9897_v2, %s9220_s25  ;;  %v10020_v62 = vpop.permute.xlu0 %8105 }
 0x388   : > { %v10024_v56 = vpop.permute.xlu1 %8100  ;;  %8350 = vrot.lane.b32.xlu0 %v8349_v14, %s9214_s24 }
 0x38a   : > { %8355 = vrot.lane.b32.xlu1 %v8349_v14, %s9215_s16  ;;  %v10028_v3 = vpop.permute.xlu0 %8110 }
 0x38c   : > { %v1913_v4 = vpop.permute.xlu1 %1912  ;;  %8385 = vrot.lane.b32.xlu0 %v9825_v27, %s9214_s24 }
 0x38d   : > { %7342 = vmatmul.mubr.msk.bf16.vlgmr.msra.gmra.mxu1 %vm1926_vm2, %v1913_v4 }
 0x38e   : > { %8360 = vrot.lane.b32.xlu1 %v8349_v14, %s9216_s17  ;;  %v10034_v29 = vpop.permute.xlu0 %8120 }
 0x390   : > { %v10036_v2 = vpop.permute.xlu1 %8115  ;;  %8390 = vrot.lane.b32.xlu0 %v9825_v27, %s9215_s16 }
 0x392   : > { %8365 = vrot.lane.b32.xlu1 %v8349_v14, %s9218_s0  ;;  %v10041_v21 = vpop.permute.xlu0 %8130 }
 0x393   : > { %14231 = vst [vmem:[#allocation27_spill] sm:$0xff] %v10041_v21  ;;  %v8013_v21 = vunpack.i.h.bf16 %v9957_v60 }
 0x394   : > { %v10043_v15 = vpop.permute.xlu1 %8125  ;;  %8400 = vrot.lane.b32.xlu0 %v9825_v27, %s9218_s0 }
 0x396   : > { %8370 = vrot.lane.b32.xlu1 %v8349_v14, %s9217_s23  ;;  %v10048_v16 = vpop.permute.xlu0 %8140 }
 0x398   : > { %v10050_v45 = vpop.permute.xlu1 %8135  ;;  %8410 = vrot.lane.b32.xlu0 %v9825_v27, %s9221_s30 }
 0x399   : > { %14232 = vst [vmem:[#allocation28_spill] sm:$0xff] %v10050_v45 }
 0x39a   : > { %8375 = vrot.lane.b32.xlu1 %v8349_v14, %s9221_s30  ;;  %v10055_v46 = vpop.permute.xlu0 %8145 }
 0x39c   : > { %v10059_v5 = vpop.permute.xlu1 %4225  ;;  %8420 = vrot.lane.b32.xlu0 %v8419_v1, %s9214_s24 }
 0x39d   : > { %14233 = vst [vmem:[#allocation29_spill] sm:$0xff] %v10059_v5  ;;  %v8007_v5 = vunpack.i.l.bf16 %v9947_v23 }
 0x39e   : > { %8380 = vrot.lane.b32.xlu1 %v8349_v14, %s9219_s1  ;;  %v10063_v6 = vpop.permute.xlu0 %8150 }
 0x3a0   : > { %v10065_v33 = vpop.permute.xlu1 %8175  ;;  %8425 = vrot.lane.b32.xlu0 %v8419_v1, %s9215_s16 }
 0x3a2   : > { %8395 = vrot.lane.b32.xlu1 %v9825_v27, %s9216_s17  ;;  %v10070_v11 = vpop.permute.xlu0 %8155 }
 0x3a4   : > { %v10072_v38 = vpop.permute.xlu1 %8185  ;;  %8430 = vrot.lane.b32.xlu0 %v8419_v1, %s9216_s17 }
 0x3a6   : > { %1920 = vrot.lane.b32.xlu1 %v1427_v24, %s9220_s25  ;;  %v10078_v44 = vpop.permute.xlu0 %8160 }
 0x3a8   : > { %v10080_v63 = vpop.permute.xlu1 %8195  ;;  %8435 = vrot.lane.b32.xlu0 %v8419_v1, %s9218_s0 }
 0x3aa   : > { %8405 = vrot.lane.b32.xlu1 %v9825_v27, %s9217_s23  ;;  %v10085_v14 = vpop.permute.xlu0 %8165 }
 0x3ac   : > { %v10087_v4 = vpop.permute.xlu1 %8205  ;;  %8440 = vrot.lane.b32.xlu0 %v8419_v1, %s9217_s23 }
 0x3ad   : > { %14234 = vst [vmem:[#allocation30_spill] sm:$0xff] %v10087_v4  ;;  %v8008_v4 = vunpack.i.h.bf16 %v9947_v23 }
 0x3ae   : > { %8415 = vrot.lane.b32.xlu1 %v9825_v27, %s9219_s1  ;;  %v10092_v19 = vpop.permute.xlu0 %8170 }
 0x3af   : > { %v1438_v9 = vpack.c.bf16 %v8008_v4, %v8007_v5  ;;  %v8023_v4 = vunpack.i.h.bf16 %v9969_v25 }
 0x3b0   : > { %v10094_v24 = vpop.permute.xlu1 %4227  ;;  %8445 = vrot.lane.b32.xlu0 %v8419_v1, %s9221_s30 }
 0x3b1   : > { %14235 = vst [vmem:[#allocation31_spill] sm:$0xff] %v10094_v24 }
 0x3b2   : > { %4233 = vrot.lane.b32.xlu1 %v9885_v10, %s9220_s25  ;;  %v10099_v13 = vpop.permute.xlu0 %8180 }
 0x3b4   : > { %v10101_v12 = vpop.permute.xlu1 %8210  ;;  %8450 = vrot.lane.b32.xlu0 %v8419_v1, %s9219_s1 }
 0x3b6   : > { %8455 = vrot.lane.b32.xlu1 %v9841_v57, %s9214_s24  ;;  %v1915_v49 = vpop.permute.xlu0 %1914 }
 0x3b7   : > { %7345 = vmatprep.mubr.msk.bf16.mxu1 %vm1926_vm2, %v1915_v49 }
 0x3b8   : > { %v10107_v27 = vpop.permute.xlu1 %8215  ;;  %8460 = vrot.lane.b32.xlu0 %v9841_v57, %s9215_s16 }
 0x3ba   : > { %8465 = vrot.lane.b32.xlu1 %v9841_v57, %s9216_s17  ;;  %v10113_v10 = vpop.permute.xlu0 %8190 }
 0x3bc   : > { %v10117_v1 = vpop.permute.xlu1 %8220  ;;  %1922 = vrot.lane.b32.xlu0 %v1428_v59, %s9220_s25 }
 0x3be   : > { %8475 = vrot.lane.b32.xlu1 %v9841_v57, %s9217_s23  ;;  %v10122_v49 = vpop.permute.xlu0 %8200 }
 0x3bf   : > { %14236 = vst [vmem:[#allocation32_spill] sm:$0xff] %v10122_v49  ;;  %v8012_v49 = vunpack.i.l.bf16 %v9957_v60 }
 0x3c0   : > { %v10124_v0 = vpop.permute.xlu1 %8225  ;;  %8470 = vrot.lane.b32.xlu0 %v9841_v57, %s9218_s0 }
 0x3c1   : > { %v1446_v23 = vpack.c.bf16 %v8013_v21, %v8012_v49  ;;  %v8028_v49 = vunpack.i.h.bf16 %v9975_v36 }
 0x3c2   : > { %8485 = vrot.lane.b32.xlu1 %v9841_v57, %s9219_s1  ;;  %v10130_v34 = vpop.permute.xlu0 %8245 }
 0x3c4   : > { %v10132_v51 = vpop.permute.xlu1 %8230  ;;  %8480 = vrot.lane.b32.xlu0 %v9841_v57, %s9221_s30 }
 0x3c6   : > { %4235 = vrot.lane.b32.xlu1 %v9869_v40, %s9220_s25  ;;  %v10138_v59 = vpop.permute.xlu0 %8250 }
 0x3c8   : > { %v10140_v26 = vpop.permute.xlu1 %8235  ;;  %8525 = vrot.lane.b32.xlu0 %v9862_v53, %s9214_s24 }
 0x3ca   : > { %8490 = vrot.lane.b32.xlu1 %v8489_v17, %s9214_s24  ;;  %v10147_v37 = vpop.permute.xlu0 %8260  ;;  %s9224_s24 = smov 24  }
 0x3cb   : > { %14237 = vst [vmem:[#allocation33_spill] sm:$0xff] %v10147_v37  ;;  %v8108_v37 = vunpack.i.h.bf16 %v10020_v62 }
 0x3cc   : > { %v10149_v58 = vpop.permute.xlu1 %8240  ;;  %8530 = vrot.lane.b32.xlu0 %v9862_v53, %s9215_s16 }
 0x3ce   : > { %8495 = vrot.lane.b32.xlu1 %v8489_v17, %s9215_s16  ;;  %v10154_v57 = vpop.permute.xlu0 %8270  ;;  %s9225_s16 = smov 32  }
 0x3cf   : > { %14238 = vst [vmem:[#allocation34_spill] sm:$0xff] %v10154_v57  ;;  %v8017_v57 = vunpack.i.l.bf16 %v9963_v32 }
 0x3d0   : > { %v10156_v40 = vpop.permute.xlu1 %8255  ;;  %8540 = vrot.lane.b32.xlu0 %v9862_v53, %s9218_s0 }
 0x3d2   : > { %8500 = vrot.lane.b32.xlu1 %v8489_v17, %s9216_s17  ;;  %v10163_v47 = vpop.permute.xlu0 %8285 }
 0x3d4   : > { %v1917_v45 = vpop.permute.xlu1 %1916  ;;  %8550 = vrot.lane.b32.xlu0 %v9862_v53, %s9221_s30 }
 0x3d5   : > { %7346 = vmatmul.mubr.msk.bf16.gmra.mxu1 %vm1926_vm2, %v1917_v45  ;;  %v8018_v45 = vunpack.i.h.bf16 %v9963_v32 }
 0x3d6   : > { %8505 = vrot.lane.b32.xlu1 %v8489_v17, %s9218_s0  ;;  %v10171_v24 = vpop.permute.xlu0 %8290  ;;  %s9228_s0 = smov 56  }
 0x3d7   : > { %v1454_v60 = vpack.c.bf16 %v8018_v45, %v8017_v57  ;;  %v8033_v45 = vunpack.i.h.bf16 %v9981_v54 }
 0x3d8   : > { %v10173_v18 = vpop.permute.xlu1 %8265  ;;  %2080 = vrot.lane.b32.xlu0 %v1430_v35, %s9220_s25 }
 0x3da   : > { %8510 = vrot.lane.b32.xlu1 %v8489_v17, %s9217_s23  ;;  %v10179_v48 = vpop.permute.xlu0 %8295 }
 0x3dc   : > { %v10181_v61 = vpop.permute.xlu1 %8275  ;;  %2249 = vrot.lane.b32.xlu0 %v1438_v9, %s9220_s25 }
 0x3dd   : > { %14239 = vst [vmem:[#allocation35_spill] sm:$0xff] %v10181_v61  ;;  %v8022_v61 = vunpack.i.l.bf16 %v9969_v25 }
 0x3de   : > { %8515 = vrot.lane.b32.xlu1 %v8489_v17, %s9221_s30  ;;  %v10187_v35 = vpop.permute.xlu0 %8300 }
 0x3df   : > { %v1462_v32 = vpack.c.bf16 %v8023_v4, %v8022_v61  ;;  %v8032_v61 = vunpack.i.l.bf16 %v9981_v54 }
 0x3e0   : > { %v10189_v5 = vpop.permute.xlu1 %4229  ;;  %2418 = vrot.lane.b32.xlu0 %v1446_v23, %s9220_s25 }
 0x3e1   : > { %14240 = vst [vmem:[#allocation36_spill] sm:$0xff] %v10189_v5  ;;  %v8027_v5 = vunpack.i.l.bf16 %v9975_v36  ;;  %v1478_v4 = vpack.c.bf16 %v8033_v45, %v8032_v61  ;;  %v8038_v45 = vunpack.i.h.bf16 %v9943_v22  ;;  %v8037_v61 = vunpack.i.l.bf16 %v9943_v22 }
 0x3e2   : > { %8520 = vrot.lane.b32.xlu1 %v8489_v17, %s9219_s1  ;;  %v10195_v9 = vpop.permute.xlu0 %8305  ;;  %v1429_v17 = vpack.c.bf16 %v9845_v20, %v9836_v39  ;;  %v8043_v22 = vunpack.i.h.bf16 %v9995_v52  ;;  %v8042_v20 = vunpack.i.l.bf16 %v9995_v52  ;;  %v8047_v52 = vunpack.i.l.bf16 %v9951_v42 }
 0x3e3   : > { %v1470_v25 = vpack.c.bf16 %v8028_v49, %v8027_v5 }
 0x3e4   : > { %v10197_v21 = vpop.permute.xlu1 %8280  ;;  %2587 = vrot.lane.b32.xlu0 %v1454_v60, %s9220_s25 }
 0x3e6   : > { %8535 = vrot.lane.b32.xlu1 %v9862_v53, %s9216_s17  ;;  %v10204_v57 = vpop.permute.xlu0 %8310  ;;  %s9226_s17 = smov 40  }
 0x3e8   : > { %v10206_v23 = vpop.permute.xlu1 %8315  ;;  %2756 = vrot.lane.b32.xlu0 %v1462_v32, %s9220_s25  ;;  %v8107_v32 = vunpack.i.l.bf16 %v10020_v62 }
 0x3ea   : > { %1924 = vrot.lane.b32.xlu1 %v1429_v17, %s9220_s25  ;;  %v10214_v36 = vpop.permute.xlu0 %8320  ;;  %v10227_v49 = vpack.c.bf16 %v8108_v37, %v8107_v32  ;;  %v8118_v17 = vunpack.i.h.bf16 %v10036_v2  ;;  %v10249_v32 = vpack.c.bf16 %v8038_v45, %v8037_v61  ;;  %v8048_v45 = vunpack.i.h.bf16 %v9951_v42 }
 0x3eb   : > { %v10267_v61 = vpack.c.bf16 %v8043_v22, %v8042_v20  ;;  %v8053_v20 = vunpack.i.h.bf16 %v10004_v31  ;;  %v8052_v42 = vunpack.i.l.bf16 %v10004_v31 }
 0x3ec   : > { %v10216_v60 = vpop.permute.xlu1 %8325  ;;  %2925 = vrot.lane.b32.xlu0 %v1470_v25, %s9220_s25  ;;  %v8117_v25 = vunpack.i.l.bf16 %v10036_v2  ;;  %v8127_v2 = vunpack.i.l.bf16 %v10043_v15 }
 0x3ee   : > { %8545 = vrot.lane.b32.xlu1 %v9862_v53, %s9217_s23  ;;  %v1919_v5 = vpop.permute.xlu0 %1918  ;;  %v10241_v37 = vpack.c.bf16 %v8118_v17, %v8117_v25  ;;  %v8142_v25 = vunpack.i.l.bf16 %v10048_v16  ;;  %s9227_s23 = smov 48  }
 0x3ef   : > { %7349 = vmatprep.mubr.msk.bf16.mxu1 %vm1926_vm2, %v1919_v5 }
 0x3f0   : > { %v10224_v54 = vpop.permute.xlu1 %8335  ;;  %3094 = vrot.lane.b32.xlu0 %v1478_v4, %s9220_s25  ;;  %14242 = vst [vmem:[#allocation38_spill] sm:$0xff] %v10241_v37  ;;  %v8128_v4 = vunpack.i.h.bf16 %v10043_v15  ;;  %v8143_v15 = vunpack.i.h.bf16 %v10048_v16  ;;  %v8147_v16 = vunpack.i.l.bf16 %v10055_v46 }
 0x3f2   : > { %8555 = vrot.lane.b32.xlu1 %v9862_v53, %s9219_s1  ;;  %v10233_v62 = vpop.permute.xlu0 %8330  ;;  %v10257_v17 = vpack.c.bf16 %v8128_v4, %v8127_v2  ;;  %v1432_v4 = vpack.c.bf16 %v8143_v15, %v8142_v25  ;;  %v8148_v2 = vunpack.i.h.bf16 %v10055_v46  ;;  %v8153_v25 = vunpack.i.h.bf16 %v10063_v6 }
 0x3f3   : > { %v8152_v46 = vunpack.i.l.bf16 %v10063_v6  ;;  %v8157_v6 = vunpack.i.l.bf16 %v10070_v11 }
 0x3f4   : > { %v10237_v5 = vpop.permute.xlu1 %8345  ;;  %4354 = vrot.lane.b32.xlu0 %v10227_v49, %s9220_s25  ;;  %14245 = vst [vmem:[#allocation41_spill] sm:$0xff] %v10257_v17  ;;  %v1440_v15 = vpack.c.bf16 %v8148_v2, %v8147_v16  ;;  %v8158_v2 = vunpack.i.h.bf16 %v10070_v11  ;;  %v8162_v11 = vunpack.i.l.bf16 %v10078_v44 }
 0x3f5   : > { %14241 = vst [vmem:[#allocation37_spill] sm:$0xff] %v10237_v5 }
 0x3f6   : > { %4237 = vrot.lane.b32.xlu1 %v9860_v7, %s9220_s25  ;;  %v10247_v53 = vpop.permute.xlu0 %8340 }
 0x3f7   : > { %14243 = vst [vmem:[#allocation39_spill] sm:$0xff] %v10247_v53  ;;  %v10279_v53 = vpack.c.bf16 %v8048_v45, %v8047_v52  ;;  %v8058_v45 = vunpack.i.h.bf16 %v9959_v30  ;;  %v8057_v52 = vunpack.i.l.bf16 %v9959_v30  ;;  %v8073_v30 = vunpack.i.h.bf16 %v9977_v28 }
 0x3f8   : > { %v10253_v39 = vpop.permute.xlu1 %4231  ;;  %4612 = vrot.lane.b32.xlu0 %v10241_v37, %s9220_s25  ;;  %v10294_v37 = vpack.c.bf16 %v8053_v20, %v8052_v42  ;;  %v8072_v20 = vunpack.i.l.bf16 %v9977_v28 }
 0x3f9   : > { %14244 = vst [vmem:[#allocation40_spill] sm:$0xff] %v10253_v39  ;;  %14246 = vst [vmem:[#allocation42_spill] sm:$0xff] %v10279_v53 }
 0x3fa   : > { %4352 = vrot.lane.b32.xlu1 %v10249_v32, %s9220_s25  ;;  %v10263_v7 = vpop.permute.xlu0 %8350  ;;  %14247 = vst [vmem:[#allocation43_spill] sm:$0xff] %v10294_v37 }
 0x3fc   : > { %v10269_v39 = vpop.permute.xlu1 %8355  ;;  %4870 = vrot.lane.b32.xlu0 %v10257_v17, %s9220_s25 }
 0x3fe   : > { %v10275_v5 = vpop.permute.xlu0 %8385  ;;  %4481 = vrot.lane.b32.xlu1 %v10267_v61, %s9220_s25 }
 0x400   : > { %v10283_v22 = vpop.permute.xlu1 %8360  ;;  %2084 = vrot.lane.b32.xlu0 %v1432_v4, %s9220_s25  ;;  %v1448_v4 = vpack.c.bf16 %v8153_v25, %v8152_v46  ;;  %v8163_v25 = vunpack.i.h.bf16 %v10078_v44 }
 0x402   : > { %v10288_v17 = vpop.permute.xlu0 %8390  ;;  %4610 = vrot.lane.b32.xlu1 %v10279_v53, %s9220_s25  ;;  %v10305_v53 = vpack.c.bf16 %v8058_v45, %v8057_v52  ;;  %v1431_v45 = vpack.c.bf16 %v8073_v30, %v8072_v20  ;;  %v8078_v52 = vunpack.i.h.bf16 %v9983_v41  ;;  %v8083_v30 = vunpack.i.h.bf16 %v9989_v50 }
 0x403   : > { %v8082_v20 = vunpack.i.l.bf16 %v9989_v50 }
 0x404   : > { %v10296_v31 = vpop.permute.xlu1 %8365  ;;  %2253 = vrot.lane.b32.xlu0 %v1440_v15, %s9220_s25  ;;  %14248 = vst [vmem:[#allocation44_spill] sm:$0xff] %v10305_v53  ;;  %v1456_v15 = vpack.c.bf16 %v8158_v2, %v8157_v6  ;;  %v8168_v2 = vunpack.i.h.bf16 %v10085_v14  ;;  %v8167_v6 = vunpack.i.l.bf16 %v10085_v14 }
 0x405   : > { %v1447_v14 = vpack.c.bf16 %v8083_v30, %v8082_v20  ;;  %v8092_v30 = vunpack.i.l.bf16 %v10006_v55 }
 0x406   : > { %v10301_v16 = vpop.permute.xlu0 %8400  ;;  %4739 = vrot.lane.b32.xlu1 %v10294_v37, %s9220_s25  ;;  %v8077_v37 = vunpack.i.l.bf16 %v9983_v41  ;;  %v1472_v41 = vpack.c.bf16 %v8168_v2, %v8167_v6  ;;  %v8247_v2 = vunpack.i.l.bf16 %v10130_v34 }
 0x408   : > { %v10309_v42 = vpop.permute.xlu1 %8370  ;;  %2422 = vrot.lane.b32.xlu0 %v1448_v4, %s9220_s25  ;;  %v1464_v4 = vpack.c.bf16 %v8163_v25, %v8162_v11  ;;  %v8172_v25 = vunpack.i.l.bf16 %v10092_v19 }
 0x40a   : > { %v10314_v46 = vpop.permute.xlu0 %8410  ;;  %4868 = vrot.lane.b32.xlu1 %v10305_v53, %s9220_s25 }
 0x40b   : > { %14249 = vst [vmem:[#allocation45_spill] sm:$0xff] %v10314_v46  ;;  %v1439_v46 = vpack.c.bf16 %v8078_v52, %v8077_v37  ;;  %v8088_v37 = vunpack.i.h.bf16 %v9999_v8 }
 0x40c   : > { %v10320_v28 = vpop.permute.xlu1 %8375  ;;  %2591 = vrot.lane.b32.xlu0 %v1456_v15, %s9220_s25  ;;  %v8173_v15 = vunpack.i.h.bf16 %v10092_v19 }
 0x40e   : > { %v10325_v44 = vpop.permute.xlu0 %8420  ;;  %2082 = vrot.lane.b32.xlu1 %v1431_v45, %s9220_s25  ;;  %v8087_v45 = vunpack.i.l.bf16 %v9999_v8  ;;  %v1480_v50 = vpack.c.bf16 %v8173_v15, %v8172_v25 }
 0x410   : > { %v10330_v53 = vpop.permute.xlu1 %8380  ;;  %2760 = vrot.lane.b32.xlu0 %v1464_v4, %s9220_s25  ;;  %v8248_v4 = vunpack.i.h.bf16 %v10130_v34  ;;  %v1455_v19 = vpack.c.bf16 %v8088_v37, %v8087_v45  ;;  %v8257_v34 = vunpack.i.l.bf16 %v10156_v40 }
 0x412   : > { %v10335_v11 = vpop.permute.xlu0 %8425  ;;  %2251 = vrot.lane.b32.xlu1 %v1439_v46, %s9220_s25  ;;  %v8093_v46 = vunpack.i.h.bf16 %v10006_v55  ;;  %v10352_v8 = vpack.c.bf16 %v8248_v4, %v8247_v2  ;;  %v8097_v55 = vunpack.i.l.bf16 %v10014_v43 }
 0x414   : > { %v10340_v52 = vpop.permute.xlu1 %8395  ;;  %2929 = vrot.lane.b32.xlu0 %v1472_v41, %s9220_s25  ;;  %v8258_v41 = vunpack.i.h.bf16 %v10156_v40  ;;  %v1463_v25 = vpack.c.bf16 %v8093_v46, %v8092_v30  ;;  %v8267_v40 = vunpack.i.l.bf16 %v10173_v18 }
 0x416   : > { %v10345_v6 = vpop.permute.xlu0 %8430  ;;  %2420 = vrot.lane.b32.xlu1 %v1447_v14, %s9220_s25  ;;  %v8098_v14 = vunpack.i.h.bf16 %v10014_v43  ;;  %v10365_v45 = vpack.c.bf16 %v8258_v41, %v8257_v34  ;;  %v8102_v43 = vunpack.i.l.bf16 %v10024_v56 }
 0x418   : > { %v1921_v20 = vpop.permute.xlu1 %1920  ;;  %3098 = vrot.lane.b32.xlu0 %v1480_v50, %s9220_s25  ;;  %v8268_v50 = vunpack.i.h.bf16 %v10173_v18  ;;  %v1471_v2 = vpack.c.bf16 %v8098_v14, %v8097_v55  ;;  %v8282_v18 = vunpack.i.l.bf16 %v10197_v21  ;;  %v8288_v55 = vunpack.i.h.bf16 %v10163_v47 }
 0x419   : > { %7350 = vmatmul.mubr.msk.bf16.gmra.mxu1 %vm1926_vm2, %v1921_v20  ;;  %v8283_v20 = vunpack.i.h.bf16 %v10197_v21 }
 0x41a   : > { %v10356_v15 = vpop.permute.xlu0 %8435  ;;  %2589 = vrot.lane.b32.xlu1 %v1455_v19, %s9220_s25  ;;  %v8103_v19 = vunpack.i.h.bf16 %v10024_v56  ;;  %v10378_v30 = vpack.c.bf16 %v8268_v50, %v8267_v40  ;;  %v8112_v56 = vunpack.i.l.bf16 %v10028_v3  ;;  %v8287_v50 = vunpack.i.l.bf16 %v10163_v47 }
 0x41b   : > { %v1434_v40 = vpack.c.bf16 %v8283_v20, %v8282_v18  ;;  %v8178_v18 = vunpack.i.h.bf16 %v10065_v33 }
 0x41c   : > { %v10361_v37 = vpop.permute.xlu1 %8405  ;;  %4358 = vrot.lane.b32.xlu0 %v10352_v8, %s9220_s25  ;;  %14251 = vst [vmem:[#allocation47_spill] sm:$0xff] %v10378_v30  ;;  %v1479_v34 = vpack.c.bf16 %v8103_v19, %v8102_v43  ;;  %v8123_v19 = vunpack.i.h.bf16 %v10034_v29 }
 0x41e   : > { %v10369_v4 = vpop.permute.xlu0 %8440  ;;  %2758 = vrot.lane.b32.xlu1 %v1463_v25, %s9220_s25  ;;  %v8113_v25 = vunpack.i.h.bf16 %v10028_v3  ;;  %v8122_v3 = vunpack.i.l.bf16 %v10034_v29 }
 0x420   : > { %v10374_v46 = vpop.permute.xlu1 %8415  ;;  %4616 = vrot.lane.b32.xlu0 %v10365_v45, %s9220_s25  ;;  %v10407_v20 = vpack.c.bf16 %v8123_v19, %v8122_v3  ;;  %v8188_v3 = vunpack.i.h.bf16 %v10072_v38 }
 0x421   : > { %14250 = vst [vmem:[#allocation46_spill] sm:$0xff] %v10374_v46  ;;  %v8293_v46 = vunpack.i.h.bf16 %v10171_v24 }
 0x422   : > { %v10382_v41 = vpop.permute.xlu0 %8445  ;;  %2927 = vrot.lane.b32.xlu1 %v1471_v2, %s9220_s25  ;;  %v10396_v2 = vpack.c.bf16 %v8113_v25, %v8112_v56  ;;  %14253 = vst [vmem:[#allocation49_spill] sm:$0xff] %v10407_v20  ;;  %v8298_v56 = vunpack.i.h.bf16 %v10179_v48 }
 0x424   : > { %v10387_v14 = vpop.permute.xlu1 %4233  ;;  %4874 = vrot.lane.b32.xlu0 %v10378_v30, %s9220_s25  ;;  %v8292_v30 = vunpack.i.l.bf16 %v10171_v24  ;;  %v8297_v24 = vunpack.i.l.bf16 %v10179_v48  ;;  %v8302_v48 = vunpack.i.l.bf16 %v10187_v35 }
 0x425   : > { %14252 = vst [vmem:[#allocation48_spill] sm:$0xff] %v10387_v14  ;;  %v1442_v14 = vpack.c.bf16 %v8288_v55, %v8287_v50 }
 0x426   : > { %v10393_v21 = vpop.permute.xlu0 %8450  ;;  %3096 = vrot.lane.b32.xlu1 %v1479_v34, %s9220_s25  ;;  %v8177_v34 = vunpack.i.l.bf16 %v10065_v33  ;;  %v1450_v25 = vpack.c.bf16 %v8293_v46, %v8292_v30  ;;  %v8182_v33 = vunpack.i.l.bf16 %v10099_v13  ;;  %v1458_v46 = vpack.c.bf16 %v8298_v56, %v8297_v24 }
 0x427   : > { %v8303_v30 = vunpack.i.h.bf16 %v10187_v35  ;;  %v8308_v56 = vunpack.i.h.bf16 %v10195_v9  ;;  %v8307_v35 = vunpack.i.l.bf16 %v10195_v9 }
 0x428   : > { %v8456_v43 = vpop.permute.xlu1 %8455  ;;  %2088 = vrot.lane.b32.xlu0 %v1434_v40, %s9220_s25  ;;  %v10419_v50 = vpack.c.bf16 %v8178_v18, %v8177_v34  ;;  %v8183_v40 = vunpack.i.h.bf16 %v10099_v13  ;;  %v8187_v18 = vunpack.i.l.bf16 %v10072_v38  ;;  %v8193_v38 = vunpack.i.h.bf16 %v10113_v10 }
 0x429   : > { %v1474_v9 = vpack.c.bf16 %v8308_v56, %v8307_v35  ;;  %v8387_v35 = vunpack.i.l.bf16 %v10275_v5 }
 0x42a   : > { %v10403_v47 = vpop.permute.xlu0 %8460  ;;  %4483 = vrot.lane.b32.xlu1 %v10396_v2, %s9220_s25  ;;  %v10434_v34 = vpack.c.bf16 %v8183_v40, %v8182_v33  ;;  %v8192_v40 = vunpack.i.l.bf16 %v10113_v10  ;;  %v8197_v10 = vunpack.i.l.bf16 %v10080_v63 }
 0x42c   : > { %v10411_v29 = vpop.permute.xlu1 %8465  ;;  %2257 = vrot.lane.b32.xlu0 %v1442_v14, %s9220_s25 }
 0x42e   : > { %v1923_v55 = vpop.permute.xlu0 %1922  ;;  %4741 = vrot.lane.b32.xlu1 %v10407_v20, %s9220_s25  ;;  %v8198_v20 = vunpack.i.h.bf16 %v10080_v63  ;;  %v8462_v63 = vunpack.i.l.bf16 %v10403_v47 }
 0x42f   : > { %7353 = vmatprep.mubr.msk.bf16.mxu1 %vm1926_vm2, %v1923_v55  ;;  %v10445_v55 = vpack.c.bf16 %v8188_v3, %v8187_v18 }
 0x430   : > { %v10423_v19 = vpop.permute.xlu1 %8475  ;;  %2426 = vrot.lane.b32.xlu0 %v1450_v25, %s9220_s25  ;;  %v1466_v25 = vpack.c.bf16 %v8303_v30, %v8302_v48  ;;  %v8312_v30 = vunpack.i.l.bf16 %v10204_v57  ;;  %v8458_v48 = vunpack.i.h.bf16 %v8456_v43 }
 0x431   : > { %14254 = vst [vmem:[#allocation50_spill] sm:$0xff] %v10423_v19  ;;  %14257 = vst [vmem:[#allocation53_spill] sm:$0xff] %v10445_v55 }
 0x432   : > { %v10428_v14 = vpop.permute.xlu0 %8470  ;;  %4356 = vrot.lane.b32.xlu1 %v10419_v50, %s9220_s25 }
 0x434   : > { %v10436_v13 = vpop.permute.xlu1 %8485  ;;  %2595 = vrot.lane.b32.xlu0 %v1458_v46, %s9220_s25  ;;  %v8313_v46 = vunpack.i.h.bf16 %v10204_v57 }
 0x435   : > { %14255 = vst [vmem:[#allocation51_spill] sm:$0xff] %v10436_v13  ;;  %v8457_v13 = vunpack.i.l.bf16 %v8456_v43  ;;  %v8388_v43 = vunpack.i.h.bf16 %v10275_v5  ;;  %v8213_v5 = vunpack.i.h.bf16 %v10101_v12 }
 0x436   : > { %v10441_v24 = vpop.permute.xlu0 %8480  ;;  %4485 = vrot.lane.b32.xlu1 %v10434_v34, %s9220_s25  ;;  %v1482_v57 = vpack.c.bf16 %v8313_v46, %v8312_v30  ;;  %v10477_v30 = vpack.c.bf16 %v8198_v20, %v8197_v10  ;;  %v8397_v20 = vunpack.i.l.bf16 %v10340_v52 }
 0x437   : > { %14256 = vst [vmem:[#allocation52_spill] sm:$0xff] %v10441_v24  ;;  %v10467_v19 = vpack.c.bf16 %v8458_v48, %v8457_v13  ;;  %v8212_v13 = vunpack.i.l.bf16 %v10101_v12  ;;  %v8398_v48 = vunpack.i.h.bf16 %v10340_v52 }
 0x438   : > { %v10449_v33 = vpop.permute.xlu1 %4235  ;;  %2764 = vrot.lane.b32.xlu0 %v1466_v25, %s9220_s25  ;;  %14259 = vst [vmem:[#allocation55_spill] sm:$0xff] %v10477_v30 }
 0x439   : > { %14258 = vst [vmem:[#allocation54_spill] sm:$0xff] %v10449_v33  ;;  %v10458_v33 = vpack.c.bf16 %v8193_v38, %v8192_v40  ;;  %v1433_v10 = vpack.c.bf16 %v8213_v5, %v8212_v13  ;;  %v10507_v52 = vpack.c.bf16 %v8398_v48, %v8397_v20  ;;  %v8223_v13 = vunpack.i.h.bf16 %v10117_v1 }
 0x43a   : > { %v8526_v24 = vpop.permute.xlu0 %8525  ;;  %4614 = vrot.lane.b32.xlu1 %v10445_v55, %s9220_s25  ;;  %v8222_v48 = vunpack.i.l.bf16 %v10117_v1  ;;  %v8317_v1 = vunpack.i.l.bf16 %v10206_v23 }
 0x43b   : > { %v8528_v3 = vunpack.i.h.bf16 %v8526_v24  ;;  %v8527_v18 = vunpack.i.l.bf16 %v8526_v24  ;;  %v8463_v24 = vunpack.i.h.bf16 %v10403_v47 }
 0x43c   : > { %v10460_v25 = vpop.permute.xlu1 %8490  ;;  %2933 = vrot.lane.b32.xlu0 %v1474_v9, %s9220_s25 }
 0x43d   : > { %v10463_v56 = vpack.c.bf16 %v8528_v3, %v8527_v18  ;;  %v10494_v12 = vpack.c.bf16 %v8463_v24, %v8462_v63  ;;  %v8408_v24 = vunpack.i.h.bf16 %v10361_v37  ;;  %v8407_v63 = vunpack.i.l.bf16 %v10361_v37 }
 0x43e   : > { %v8531_v55 = vpop.permute.xlu0 %8530  ;;  %4743 = vrot.lane.b32.xlu1 %v10458_v33, %s9220_s25  ;;  %v8423_v37 = vunpack.i.h.bf16 %v10325_v44 }
 0x43f   : > { %v8533_v38 = vunpack.i.h.bf16 %v8531_v55  ;;  %v8532_v40 = vunpack.i.l.bf16 %v8531_v55  ;;  %7885 = vmatprep.subr.msk.bf16.mxu0 %vm1926_vm2, %v10463_v56  ;;  %v2142_v46 = vsel %vm1926_vm2, %v10463_v56, 0  ;;  %v1851_v55 = vpack.c.bf16 %v8388_v43, %v8387_v35 }
 0x440   : > { %v10481_v9 = vpop.permute.xlu1 %8495  ;;  %7358 = vmatpush3.bf16.xpose.msra.mxu0 %v2142_v46  ;;  %3102 = vrot.lane.b32.xlu0 %v1482_v57, %s9220_s25  ;;  %v8218_v57 = vunpack.i.h.bf16 %v10107_v27  ;;  %v8217_v43 = vunpack.i.l.bf16 %v10107_v27  ;;  %v8393_v27 = vunpack.i.h.bf16 %v10288_v17  ;;  %v2139_v46 = vsel %vm1926_vm2, %v10467_v19, 0 }
 0x441   : > { %v10484_v47 = vpack.c.bf16 %v8533_v38, %v8532_v40  ;;  %7886 = vmatprep.subr.msk.bf16.mxu0 %vm1926_vm2, %v10467_v19  ;;  %v8392_v40 = vunpack.i.l.bf16 %v10288_v17  ;;  %v8422_v17 = vunpack.i.l.bf16 %v10325_v44  ;;  %v8227_v44 = vunpack.i.l.bf16 %v10124_v0 }
 0x442   : > { %v10490_v3 = vpop.permute.xlu0 %8540  ;;  %4872 = vrot.lane.b32.xlu1 %v10477_v30, %s9220_s25  ;;  %v1441_v5 = vpack.c.bf16 %v8218_v57, %v8217_v43  ;;  %v8318_v57 = vunpack.i.h.bf16 %v10206_v23  ;;  %v1449_v30 = vpack.c.bf16 %v8223_v13, %v8222_v48  ;;  %v8322_v13 = vunpack.i.l.bf16 %v10214_v36 }
 0x443   : > { %14260 = vst [vmem:[#allocation56_spill] sm:$0xff] %v10484_v47  ;;  %7893 = vmatprep.subr.msk.bf16.mxu1 %vm1926_vm2, %v10484_v47  ;;  %v2311_v18 = vsel %vm1926_vm2, %v10484_v47, 0  ;;  %v10532_v43 = vpack.c.bf16 %v8393_v27, %v8392_v40  ;;  %v8228_v47 = vunpack.i.h.bf16 %v10124_v0  ;;  %v1436_v23 = vpack.c.bf16 %v8423_v37, %v8422_v17 }
 0x444   : > { %v10502_v35 = vpop.permute.xlu1 %8500  ;;  %7390 = vmatpush3.bf16.xpose.msra.mxu1 %v2311_v18  ;;  %4362 = vrot.lane.b32.xlu0 %v1851_v55, %s9220_s25  ;;  %v10527_v18 = vpack.c.bf16 %v8408_v24, %v8407_v63  ;;  %v8428_v63 = vunpack.i.h.bf16 %v10335_v11  ;;  %v8427_v27 = vunpack.i.l.bf16 %v10335_v11  ;;  %v8323_v0 = vunpack.i.h.bf16 %v10214_v36 }
 0x445   : > { %7894 = vmatprep.subr.msk.bf16.mxu1 %vm1926_vm2, %v10494_v12  ;;  %v2136_v48 = vsel %vm1926_vm2, %v1851_v55, 0  ;;  %v8232_v37 = vunpack.i.l.bf16 %v10132_v51  ;;  %v8432_v36 = vunpack.i.l.bf16 %v10345_v6 }
 0x446   : > { %v10511_v38 = vpop.permute.xlu0 %8550  ;;  %2086 = vrot.lane.b32.xlu1 %v1433_v10, %s9220_s25  ;;  %v1444_v11 = vpack.c.bf16 %v8428_v63, %v8427_v27  ;;  %v8438_v63 = vunpack.i.h.bf16 %v10356_v15  ;;  %v8437_v27 = vunpack.i.l.bf16 %v10356_v15 }
 0x448   : > { %v10520_v20 = vpop.permute.xlu1 %8505  ;;  %7360 = vmatpush3.bf16.xpose.msra.mxu0 %v2139_v46  ;;  %4620 = vrot.lane.b32.xlu0 %v10507_v52, %s9220_s25  ;;  %v2308_v46 = vsel %vm1926_vm2, %v10494_v12, 0  ;;  %v1460_v15 = vpack.c.bf16 %v8438_v63, %v8437_v27  ;;  %v2130_v27 = vsel %vm1926_vm2, %v10352_v8, 0 }
 0x449   : > { %7887 = vmatprep.subr.msk.bf16.mxu0 %vm1926_vm2, %v1851_v55 }
 0x44a   : > { %v2081_v10 = vpop.permute.xlu0 %2080  ;;  %2255 = vrot.lane.b32.xlu1 %v1441_v5, %s9220_s25  ;;  %v10548_v5 = vpack.c.bf16 %v8318_v57, %v8317_v1  ;;  %v8238_v1 = vunpack.i.h.bf16 %v10140_v26 }
 0x44b   : > { %7373 = vmatprep.mubr.msk.bf16.mxu0 %vm1926_vm2, %v2081_v10  ;;  %v1457_v10 = vpack.c.bf16 %v8228_v47, %v8227_v44  ;;  %v10565_v47 = vpack.c.bf16 %v8323_v0, %v8322_v13  ;;  %v8237_v44 = vunpack.i.l.bf16 %v10140_v26  ;;  %v8253_v13 = vunpack.i.h.bf16 %v10138_v59 }
 0x44c   : > { %v10539_v24 = vpop.permute.xlu1 %8510  ;;  %7392 = vmatpush3.bf16.xpose.msra.mxu1 %v2308_v46  ;;  %4878 = vrot.lane.b32.xlu0 %v10527_v18, %s9220_s25  ;;  %v8233_v46 = vunpack.i.h.bf16 %v10132_v51  ;;  %v2305_v51 = vsel %vm1926_vm2, %v10532_v43, 0  ;;  %v8252_v26 = vunpack.i.l.bf16 %v10138_v59  ;;  %v8442_v59 = vunpack.i.l.bf16 %v10369_v4 }
 0x44d   : > { %7895 = vmatprep.subr.msk.bf16.mxu1 %vm1926_vm2, %v10532_v43 }
 0x44e   : > { %v2250_v40 = vpop.permute.xlu0 %2249  ;;  %2424 = vrot.lane.b32.xlu1 %v1449_v30, %s9220_s25  ;;  %v8433_v30 = vunpack.i.h.bf16 %v10345_v6  ;;  %v1465_v55 = vpack.c.bf16 %v8233_v46, %v8232_v37  ;;  %v8243_v46 = vunpack.i.h.bf16 %v10149_v58  ;;  %v8242_v37 = vunpack.i.l.bf16 %v10149_v58 }
 0x44f   : > { %v2302_v58 = vsel %vm1926_vm2, %v10565_v47, 0 }
 0x450   : > { %v10555_v17 = vpop.permute.xlu1 %8515  ;;  %7362 = vmatpush3.bf16.xpose.msra.mxu0 %v2136_v48  ;;  %2092 = vrot.lane.b32.xlu0 %v1436_v23, %s9220_s25  ;;  %v1452_v6 = vpack.c.bf16 %v8433_v30, %v8432_v36  ;;  %v2133_v48 = vsel %vm1926_vm2, %v10548_v5, 0  ;;  %v8443_v30 = vunpack.i.h.bf16 %v10369_v4  ;;  %v8448_v4 = vunpack.i.h.bf16 %v10382_v41 }
 0x451   : > { %7888 = vmatprep.subr.msk.bf16.mxu0 %vm1926_vm2, %v10548_v5 }
 0x452   : > { %v10562_v57 = vpop.permute.xlu0 %2418  ;;  %2593 = vrot.lane.b32.xlu1 %v1457_v10, %s9220_s25  ;;  %v1473_v10 = vpack.c.bf16 %v8238_v1, %v8237_v44  ;;  %v1468_v44 = vpack.c.bf16 %v8443_v30, %v8442_v59 }
 0x454   : > { %v10571_v23 = vpop.permute.xlu1 %8520  ;;  %7394 = vmatpush3.bf16.xpose.msra.mxu1 %v2305_v51  ;;  %2261 = vrot.lane.b32.xlu0 %v1444_v11, %s9220_s25  ;;  %v1857_v51 = vpack.c.bf16 %v8253_v13, %v8252_v26  ;;  %v14261_v13 = vld [vmem:[#allocation33_spill] sm:$0xff] }
 0x455   : > { %7896 = vmatprep.subr.msk.bf16.mxu1 %vm1926_vm2, %v10565_v47  ;;  %v8263_v26 = vunpack.i.h.bf16 %v14261_v13 }
 0x456   : > { %v10578_v0 = vpop.permute.xlu0 %2587  ;;  %2762 = vrot.lane.b32.xlu1 %v1465_v55, %s9220_s25  ;;  %v1481_v55 = vpack.c.bf16 %v8243_v46, %v8242_v37  ;;  %v8452_v46 = vunpack.i.l.bf16 %v10393_v21 }
 0x458   : > { %v8536_v11 = vpop.permute.xlu1 %8535  ;;  %7364 = vmatpush3.bf16.xpose.msra.mxu0 %v2133_v48  ;;  %2430 = vrot.lane.b32.xlu0 %v1452_v6, %s9220_s25  ;;  %v8447_v6 = vunpack.i.l.bf16 %v10382_v41  ;;  %v8262_v48 = vunpack.i.l.bf16 %v14261_v13 }
 0x459   : > { %7889 = vmatprep.subr.msk.bf16.mxu0 %vm1926_vm2, %v10352_v8  ;;  %v2299_v8 = vsel %vm1926_vm2, %v1857_v51, 0 }
 0x45a   : > { %v10592_v36 = vpop.permute.xlu0 %2756  ;;  %2931 = vrot.lane.b32.xlu1 %v1473_v10, %s9220_s25  ;;  %v1476_v41 = vpack.c.bf16 %v8448_v4, %v8447_v6  ;;  %v2296_v4 = vsel %vm1926_vm2, %v10434_v34, 0  ;;  %v8327_v6 = vunpack.i.l.bf16 %v10216_v60 }
 0x45c   : > { %v1925_v1 = vpop.permute.xlu1 %1924  ;;  %7396 = vmatpush3.bf16.xpose.msra.mxu1 %v2302_v58  ;;  %2599 = vrot.lane.b32.xlu0 %v1460_v15, %s9220_s25  ;;  %v10619_v15 = vpack.c.bf16 %v8263_v26, %v8262_v48  ;;  %v8332_v48 = vunpack.i.l.bf16 %v10233_v62 }
 0x45d   : > { %7354 = vmatmul.mubr.msk.bf16.gmra.mxu1 %vm1926_vm2, %v1925_v1  ;;  %7897 = vmatprep.subr.msk.bf16.mxu1 %vm1926_vm2, %v1857_v51  ;;  %v8537_v1 = vunpack.i.l.bf16 %v8536_v11 }
 0x45e   : > { %7405 = vmatprep.mubr.msk.bf16.mxu1 %vm1926_vm2, %v2250_v40  ;;  %v10603_v63 = vpop.permute.xlu0 %2925  ;;  %3100 = vrot.lane.b32.xlu1 %v1481_v55, %s9220_s25  ;;  %v8453_v40 = vunpack.i.h.bf16 %v10393_v21  ;;  %v2127_v21 = vsel %vm1926_vm2, %v10419_v50, 0 }
 0x460   : > { %v8546_v10 = vpop.permute.xlu1 %8545  ;;  %7366 = vmatpush3.bf16.xpose.msra.mxu0 %v2130_v27  ;;  %2768 = vrot.lane.b32.xlu0 %v1468_v44, %s9220_s25  ;;  %v1484_v59 = vpack.c.bf16 %v8453_v40, %v8452_v46  ;;  %v8338_v40 = vunpack.i.h.bf16 %v10224_v54  ;;  %v8337_v46 = vunpack.i.l.bf16 %v10224_v54  ;;  %v8542_v54 = vunpack.i.l.bf16 %v10490_v3 }
 0x461   : > { %7890 = vmatprep.subr.msk.bf16.mxu0 %vm1926_vm2, %v10419_v50  ;;  %v8328_v50 = vunpack.i.h.bf16 %v10216_v60  ;;  %v8547_v13 = vunpack.i.l.bf16 %v8546_v10  ;;  %v8333_v60 = vunpack.i.h.bf16 %v10233_v62  ;;  %v2293_v62 = vsel %vm1926_vm2, %v10396_v2, 0 }
 0x462   : > { %v10615_v37 = vpop.permute.xlu0 %3094  ;;  %4487 = vrot.lane.b32.xlu1 %v1857_v51, %s9220_s25  ;;  %v8538_v51 = vunpack.i.h.bf16 %v8536_v11 }
 0x463   : > { %v10653_v26 = vpack.c.bf16 %v8328_v50, %v8327_v6  ;;  %v8352_v50 = vunpack.i.l.bf16 %v10263_v7 }
 0x464   : > { %v8556_v30 = vpop.permute.xlu1 %8555  ;;  %7398 = vmatpush3.bf16.xpose.msra.mxu1 %v2299_v8  ;;  %2937 = vrot.lane.b32.xlu0 %v1476_v41, %s9220_s25  ;;  %v1869_v11 = vpack.c.bf16 %v8538_v51, %v8537_v1  ;;  %v10672_v8 = vpack.c.bf16 %v8333_v60, %v8332_v48  ;;  %v2121_v51 = vsel %vm1926_vm2, %v10249_v32, 0  ;;  %v10688_v1 = vpack.c.bf16 %v8338_v40, %v8337_v46 }
 0x465   : > { %7898 = vmatprep.subr.msk.bf16.mxu1 %vm1926_vm2, %v10434_v34  ;;  %v2124_v34 = vsel %vm1926_vm2, %v10227_v49, 0  ;;  %v8468_v60 = vunpack.i.h.bf16 %v10411_v29  ;;  %v8467_v48 = vunpack.i.l.bf16 %v10411_v29  ;;  %v8473_v46 = vunpack.i.h.bf16 %v10428_v14 }
 0x466   : > { %v10624_v58 = vpop.permute.xlu0 %4354  ;;  %4745 = vrot.lane.b32.xlu1 %v10619_v15, %s9220_s25  ;;  %v2480_v29 = vsel %vm1926_vm2, %v1869_v11, 0 }
 0x467   : > { %14262 = vst [vmem:[#allocation33_spill] sm:$0xff] %v10624_v58 }
 0x468   : > { %v10630_v55 = vpop.permute.xlu1 %4237  ;;  %7368 = vmatpush3.bf16.xpose.msra.mxu0 %v2127_v21  ;;  %3106 = vrot.lane.b32.xlu0 %v1484_v59, %s9220_s25 }
 0x469   : > { %7891 = vmatprep.subr.msk.bf16.mxu0 %vm1926_vm2, %v10227_v49  ;;  %v8557_v49 = vunpack.i.l.bf16 %v8556_v30 }
 0x46a   : > { %4360 = vrot.lane.b32.xlu1 %v10548_v5, %s9220_s25  ;;  %v10637_v44 = vpop.permute.xlu0 %4612  ;;  %v8548_v5 = vunpack.i.h.bf16 %v8546_v10  ;;  %v8558_v10 = vunpack.i.h.bf16 %v8556_v30 }
 0x46b   : > { %14263 = vst [vmem:[#allocation57_spill] sm:$0xff] %v10637_v44 }
 0x46c   : > { %v10643_v27 = vpop.permute.xlu1 %4352  ;;  %7400 = vmatpush3.bf16.xpose.msra.mxu1 %v2296_v4  ;;  %4366 = vrot.lane.b32.xlu0 %v10463_v56, %s9220_s25  ;;  %v10680_v30 = vpack.c.bf16 %v8558_v10, %v8557_v49  ;;  %v8353_v4 = vunpack.i.h.bf16 %v10263_v7  ;;  %v8357_v7 = vunpack.i.l.bf16 %v10269_v39 }
 0x46d   : > { %14264 = vst [vmem:[#allocation58_spill] sm:$0xff] %v10643_v27  ;;  %7899 = vmatprep.subr.msk.bf16.mxu1 %vm1926_vm2, %v10396_v2  ;;  %v8543_v2 = vunpack.i.h.bf16 %v10490_v3 }
 0x46e   : > { %4489 = vrot.lane.b32.xlu1 %v10565_v47, %s9220_s25  ;;  %v10660_v41 = vpop.permute.xlu0 %4870  ;;  %v10664_v47 = vpack.c.bf16 %v8548_v5, %v8547_v13  ;;  %v1435_v5 = vpack.c.bf16 %v8353_v4, %v8352_v50  ;;  %v8358_v13 = vunpack.i.h.bf16 %v10269_v39  ;;  %v10714_v39 = vpack.c.bf16 %v8468_v60, %v8467_v48 }
 0x46f   : > { %14266 = vst [vmem:[#allocation60_spill] sm:$0xff] %v10660_v41  ;;  %v10699_v3 = vpack.c.bf16 %v8543_v2, %v8542_v54  ;;  %v8472_v2 = vunpack.i.l.bf16 %v10428_v14  ;;  %v8367_v4 = vunpack.i.l.bf16 %v10296_v31 }
 0x470   : > { %4624 = vrot.lane.b32.xlu0 %v1869_v11, %s9220_s25  ;;  %7370 = vmatpush3.bf16.xpose.msra.mxu0 %v2124_v34  ;;  %v10658_v56 = vpop.permute.xlu1 %4481  ;;  %v1443_v49 = vpack.c.bf16 %v8358_v13, %v8357_v7  ;;  %v8403_v13 = vunpack.i.h.bf16 %v10301_v16  ;;  %v8402_v7 = vunpack.i.l.bf16 %v10301_v16  ;;  %v2477_v48 = vsel %vm1926_vm2, %v10714_v39, 0 }
 0x471   : > { %14265 = vst [vmem:[#allocation59_spill] sm:$0xff] %v10658_v56  ;;  %7892 = vmatprep.subr.msk.bf16.mxu0 %vm1926_vm2, %v10249_v32  ;;  %v2290_v32 = vsel %vm1926_vm2, %v10267_v61, 0  ;;  %v10728_v50 = vpack.c.bf16 %v8473_v46, %v8472_v2 }
 0x472   : > { %4618 = vrot.lane.b32.xlu1 %v10653_v26, %s9220_s25  ;;  %v2085_v21 = vpop.permute.xlu0 %2084  ;;  %v1875_v16 = vpack.c.bf16 %v8403_v13, %v8402_v7  ;;  %v2471_v13 = vsel %vm1926_vm2, %v10653_v26, 0 }
 0x474   : > { %7402 = vmatpush3.bf16.xpose.msra.mxu1 %v2293_v62  ;;  %4882 = vrot.lane.b32.xlu0 %v10664_v47, %s9220_s25  ;;  %v10676_v59 = vpop.permute.xlu1 %4610  ;;  %v8362_v62 = vunpack.i.l.bf16 %v10283_v22 }
 0x475   : > { %14267 = vst [vmem:[#allocation61_spill] sm:$0xff] %v10676_v59  ;;  %7900 = vmatprep.subr.msk.bf16.mxu1 %vm1926_vm2, %v10267_v61  ;;  %v8363_v61 = vunpack.i.h.bf16 %v10283_v22 }
 0x476   : > { %4747 = vrot.lane.b32.xlu1 %v10672_v8, %s9220_s25  ;;  %v2254_v10 = vpop.permute.xlu0 %2253 }
 0x477   : > { %v1451_v22 = vpack.c.bf16 %v8363_v61, %v8362_v62  ;;  %v10752_v61 = vpop.f32.mrf.mxu1 }
 0x478   : > { %5140 = vrot.lane.b32.xlu0 %v10680_v30, %s9220_s25  ;;  %7372 = vmatpush3.bf16.xpose.msra.mxu0 %v2121_v51  ;;  %v10694_v6 = vpop.permute.xlu1 %4739  ;;  %v8368_v51 = vunpack.i.h.bf16 %v10296_v31  ;;  %v8372_v31 = vunpack.i.l.bf16 %v10309_v42 }
 0x479   : > { %14268 = vst [vmem:[#allocation62_spill] sm:$0xff] %v10694_v6  ;;  %7901 = vmatprep.subr.msk.bf16.mxu0 %vm1926_vm2, %v1869_v11  ;;  %v2649_v11 = vsel %vm1926_vm2, %v10699_v3, 0 }
 0x47a   : > { %4876 = vrot.lane.b32.xlu1 %v10688_v1, %s9220_s25  ;;  %v10721_v54 = vpop.permute.xlu0 %2422 }
 0x47c   : > { %v10705_v34 = vpop.permute.xlu1 %4868  ;;  %7404 = vmatpush3.bf16.xpose.msra.mxu1 %v2290_v32  ;;  %v8373_v32 = vunpack.i.h.bf16 %v10309_v42  ;;  %v8378_v42 = vunpack.i.h.bf16 %v10320_v28 }
 0x47d   : > { %14269 = vst [vmem:[#allocation63_spill] sm:$0xff] %v10705_v34  ;;  %7909 = vmatprep.subr.msk.bf16.mxu1 %vm1926_vm2, %v10699_v3 }
 0x47e   : > { %2090 = vrot.lane.b32.xlu1 %v1435_v5, %s9220_s25  ;;  %v10743_v60 = vpop.permute.xlu0 %2591 }
 0x480   : > { %v2083_v40 = vpop.permute.xlu1 %2082 }
 0x481   : > { %7374 = vmatmul.mubr.msk.bf16.vlgmr.msra.gmra.mxu0 %vm1926_vm2, %v2083_v40  ;;  %v2646_v40 = vsel %vm1926_vm2, %v10728_v50, 0 }
 0x482   : > { %7422 = vmatpush3.bf16.xpose.msra.mxu0 %v2480_v29  ;;  %2259 = vrot.lane.b32.xlu1 %v1443_v49, %s9220_s25  ;;  %v8377_v49 = vunpack.i.l.bf16 %v10320_v28  ;;  %v10759_v46 = vpop.permute.xlu0 %2760  ;;  %v8383_v29 = vunpack.i.h.bf16 %v10330_v53  ;;  %v8382_v28 = vunpack.i.l.bf16 %v10330_v53  ;;  %v2643_v53 = vsel %vm1926_vm2, %v1875_v16, 0 }
 0x483   : > { %7377 = vmatprep.mubr.msk.bf16.mxu0 %vm1926_vm2, %v2085_v21  ;;  %7902 = vmatprep.subr.msk.bf16.mxu0 %vm1926_vm2, %v10714_v39  ;;  %v1459_v21 = vpack.c.bf16 %v8368_v51, %v8367_v4  ;;  %v2474_v4 = vsel %vm1926_vm2, %v10507_v52, 0 }
 0x484   : > { %v2252_v14 = vpop.permute.xlu1 %2251  ;;  %v1475_v2 = vpack.c.bf16 %v8378_v42, %v8377_v49  ;;  %v2640_v42 = vsel %vm1926_vm2, %v10672_v8, 0 }
 0x485   : > { %7406 = vmatmul.mubr.msk.bf16.vlgmr.msra.gmra.mxu1 %vm1926_vm2, %v2252_v14  ;;  %v1483_v14 = vpack.c.bf16 %v8383_v29, %v8382_v28  ;;  %v2637_v29 = vsel %vm1926_vm2, %v10619_v15, 0 }
 0x486   : > { %7454 = vmatpush3.bf16.xpose.msra.mxu1 %v2649_v11  ;;  %2428 = vrot.lane.b32.xlu1 %v1451_v22, %s9220_s25  ;;  %v10764_v22 = vpop.f32.mrf.mxu1 }
 0x487   : > { %7409 = vmatprep.mubr.msk.bf16.mxu1 %vm1926_vm2, %v2254_v10  ;;  %7910 = vmatprep.subr.msk.bf16.mxu1 %vm1926_vm2, %v10728_v50  ;;  %v1467_v10 = vpack.c.bf16 %v8373_v32, %v8372_v31  ;;  %v10777_v32 = vpop.permute.xlu0 %2929 }
 0x488   : > { %v10739_v5 = vpop.permute.xlu1 %2420  ;;  %v10773_v11 = vpop.f32.mrf.mxu1 }
 0x48a   : > { %7424 = vmatpush3.bf16.xpose.msra.mxu0 %v2477_v48  ;;  %2597 = vrot.lane.b32.xlu1 %v1459_v21, %s9220_s25 }
 0x48b   : > { %7903 = vmatprep.subr.msk.bf16.mxu0 %vm1926_vm2, %v10507_v52  ;;  %v10784_v52 = vpop.f32.mrf.mxu1  ;;  %v10794_v48 = vpop.permute.xlu0 %3098 }
 0x48c   : > { %v10754_v62 = vpop.permute.xlu1 %2589 }
 0x48e   : > { %7456 = vmatpush3.bf16.xpose.msra.mxu1 %v2646_v40  ;;  %2766 = vrot.lane.b32.xlu1 %v1467_v10, %s9220_s25  ;;  %v2468_v40 = vsel %vm1926_vm2, %v10365_v45, 0 }
 0x48f   : > { %7911 = vmatprep.subr.msk.bf16.mxu1 %vm1926_vm2, %v1875_v16 }
 0x490   : > { %v10766_v51 = vpop.permute.xlu1 %2758 }
 0x492   : > { %7426 = vmatpush3.bf16.xpose.msra.mxu0 %v2474_v4  ;;  %2935 = vrot.lane.b32.xlu1 %v1475_v2, %s9220_s25 }
 0x493   : > { %7904 = vmatprep.subr.msk.bf16.mxu0 %vm1926_vm2, %v10653_v26  ;;  %v10811_v26 = vpop.permute.xlu0 %4358 }
 0x494   : > { %v10775_v21 = vpop.permute.xlu1 %2927  ;;  %14271 = vst [vmem:[#allocation65_spill] sm:$0xff] %v10811_v26 }
 0x495   : > { %v10790_v7 = vpop.f32.mrf.mxu1 }
 0x496   : > { %7458 = vmatpush3.bf16.xpose.msra.mxu1 %v2643_v53  ;;  %3104 = vrot.lane.b32.xlu1 %v1483_v14, %s9220_s25 }
 0x497   : > { %7912 = vmatprep.subr.msk.bf16.mxu1 %vm1926_vm2, %v10672_v8  ;;  %3259 = vmax.xlane.f32.xlu0 %v10752_v61  ;;  %v10803_v49 = vpop.f32.mrf.mxu1  ;;  %v14272_v8 = vld [vmem:[#allocation53_spill] sm:$0xff] }
 0x498   : > { %v10786_v31 = vpop.permute.xlu1 %3096  ;;  %v2465_v4 = vsel %vm1926_vm2, %v14272_v8, 0 }
 0x499   : > { %v10815_v2 = vpop.f32.mrf.mxu1 }
 0x49a   : > { %7428 = vmatpush3.bf16.xpose.msra.mxu0 %v2471_v13  ;;  %4491 = vrot.lane.b32.xlu1 %v10532_v43, %s9220_s25 }
 0x49b   : > { %7905 = vmatprep.subr.msk.bf16.mxu0 %vm1926_vm2, %v10365_v45  ;;  %3255 = vmax.xlane.f32.xlu0 %v10764_v22  ;;  %v10826_v28 = vpop.f32.mrf.mxu1  ;;  %v10830_v45 = vpop.permute.xlu0 %4616 }
 0x49c   : > { %v10799_v10 = vpop.permute.xlu1 %4483  ;;  %14274 = vst [vmem:[#allocation66_spill] sm:$0xff] %v10830_v45 }
 0x49e   : > { %7460 = vmatpush3.bf16.xpose.msra.mxu1 %v2640_v42  ;;  %4749 = vrot.lane.b32.xlu1 %v1875_v16, %s9220_s25 }
 0x49f   : > { %7913 = vmatprep.subr.msk.bf16.mxu1 %vm1926_vm2, %v10619_v15  ;;  %3261 = vmax.xlane.f32.xlu0 %v10773_v11  ;;  %v14275_v15 = vld [vmem:[#allocation38_spill] sm:$0xff]  ;;  %v10847_v42 = vpop.permute.xlu0 %4874 }
 0x4a0   : > { %v10809_v43 = vpop.permute.xlu1 %4741  ;;  %v2462_v41 = vsel %vm1926_vm2, %v14275_v15, 0 }
 0x4a1   : > { %14270 = vst [vmem:[#allocation64_spill] sm:$0xff] %v10809_v43  ;;  %v8493_v43 = vunpack.i.h.bf16 %v10460_v25 }
 0x4a2   : > { %7430 = vmatpush3.bf16.xpose.msra.mxu0 %v2468_v40  ;;  %4364 = vrot.lane.b32.xlu1 %v10467_v19, %s9220_s25  ;;  %v2634_v40 = vsel %vm1926_vm2, %v10458_v33, 0 }
 0x4a3   : > { %7906 = vmatprep.subr.msk.bf16.mxu0 %vm1926_vm2, %v14272_v8  ;;  %3269 = vmax.xlane.f32.xlu0 %v10815_v2  ;;  %v14279_v8 = vld [vmem:[#allocation49_spill] sm:$0xff] }
 0x4a4   : > { %v10822_v16 = vpop.permute.xlu1 %4356  ;;  %v2631_v6 = vsel %vm1926_vm2, %v14279_v8, 0 }
 0x4a5   : > { %14273 = vst [vmem:[#allocation53_spill] sm:$0xff] %v10822_v16 }
 0x4a6   : > { %7462 = vmatpush3.bf16.xpose.msra.mxu1 %v2637_v29  ;;  %4493 = vrot.lane.b32.xlu1 %v10494_v12, %s9220_s25  ;;  %v14276_v12 = vld [vmem:[#allocation50_spill] sm:$0xff]  ;;  %v14280_v29 = vld [vmem:[#allocation52_spill] sm:$0xff] }
 0x4a7   : > { %7914 = vmatprep.subr.msk.bf16.mxu1 %vm1926_vm2, %v10458_v33  ;;  %3265 = vmax.xlane.f32.xlu0 %v10826_v28  ;;  %v8478_v14 = vunpack.i.h.bf16 %v14276_v12  ;;  %v8477_v53 = vunpack.i.l.bf16 %v14276_v12  ;;  %14278 = vst [vmem:[#allocation50_spill] sm:$0xff] %v10847_v42  ;;  %v8482_v12 = vunpack.i.l.bf16 %v14280_v29  ;;  %v2089_v33 = vpop.permute.xlu0 %2088 }
 0x4a8   : > { %v10835_v19 = vpop.permute.xlu1 %4485 }
 0x4aa   : > { %7432 = vmatpush3.bf16.xpose.msra.mxu0 %v2465_v4  ;;  %4622 = vrot.lane.b32.xlu1 %v10714_v39, %s9220_s25  ;;  %v10855_v39 = vpack.c.bf16 %v8478_v14, %v8477_v53  ;;  %v8483_v4 = vunpack.i.h.bf16 %v14280_v29 }
 0x4ab   : > { %7907 = vmatprep.subr.msk.bf16.mxu0 %vm1926_vm2, %v14275_v15  ;;  %v2258_v59 = vpop.permute.xlu0 %2257 }
 0x4ac   : > { %v10845_v13 = vpop.permute.xlu1 %4614  ;;  %v10869_v42 = vpack.c.bf16 %v8483_v4, %v8482_v12  ;;  %v8553_v12 = vunpack.i.h.bf16 %v10511_v38 }
 0x4ad   : > { %14277 = vst [vmem:[#allocation38_spill] sm:$0xff] %v10845_v13 }
 0x4ae   : > { %7464 = vmatpush3.bf16.xpose.msra.mxu1 %v2634_v40  ;;  %4751 = vrot.lane.b32.xlu1 %v10728_v50, %s9220_s25  ;;  %v14282_v50 = vld [vmem:[#allocation42_spill] sm:$0xff]  ;;  %v14283_v40 = vld [vmem:[#allocation51_spill] sm:$0xff] }
 0x4af   : > { %7915 = vmatprep.subr.msk.bf16.mxu1 %vm1926_vm2, %v14279_v8  ;;  %v8488_v14 = vunpack.i.h.bf16 %v14283_v40  ;;  %v8487_v53 = vunpack.i.l.bf16 %v14283_v40  ;;  %v8492_v40 = vunpack.i.l.bf16 %v10460_v25  ;;  %v8498_v8 = vunpack.i.h.bf16 %v10481_v9 }
 0x4b0   : > { %v10859_v34 = vpop.permute.xlu1 %4743 }
 0x4b1   : > { %14281 = vst [vmem:[#allocation49_spill] sm:$0xff] %v10859_v34  ;;  %v10879_v15 = vpack.c.bf16 %v8488_v14, %v8487_v53  ;;  %v1437_v25 = vpack.c.bf16 %v8493_v43, %v8492_v40 }
 0x4b2   : > { %7434 = vmatpush3.bf16.xpose.msra.mxu0 %v2462_v41  ;;  %4880 = vrot.lane.b32.xlu1 %v10855_v39, %s9220_s25  ;;  %v14285_v41 = vld [vmem:[#allocation43_spill] sm:$0xff] }
 0x4b3   : > { %7908 = vmatprep.subr.msk.bf16.mxu0 %vm1926_vm2, %v14282_v50 }
 0x4b4   : > { %v10871_v29 = vpop.permute.xlu1 %4872 }
 0x4b5   : > { %14284 = vst [vmem:[#allocation52_spill] sm:$0xff] %v10871_v29  ;;  %v8552_v29 = vunpack.i.l.bf16 %v10511_v38  ;;  %v8497_v38 = vunpack.i.l.bf16 %v10481_v9  ;;  %v8503_v9 = vunpack.i.h.bf16 %v10502_v35 }
 0x4b6   : > { %7466 = vmatpush3.bf16.xpose.msra.mxu1 %v2631_v6  ;;  %5009 = vrot.lane.b32.xlu1 %v10869_v42, %s9220_s25  ;;  %v2459_v6 = vsel %vm1926_vm2, %v14282_v50, 0  ;;  %v2628_v50 = vsel %vm1926_vm2, %v14285_v41, 0 }
 0x4b7   : > { %7916 = vmatprep.subr.msk.bf16.mxu1 %vm1926_vm2, %v14285_v41  ;;  %v10895_v53 = vpack.c.bf16 %v8553_v12, %v8552_v29  ;;  %v1445_v43 = vpack.c.bf16 %v8498_v8, %v8497_v38  ;;  %v8502_v29 = vunpack.i.l.bf16 %v10502_v35  ;;  %v8507_v12 = vunpack.i.l.bf16 %v10520_v20 }
 0x4b8   : > { %v2087_v4 = vpop.permute.xlu1 %2086  ;;  %v8513_v8 = vunpack.i.h.bf16 %v10539_v24  ;;  %v8512_v35 = vunpack.i.l.bf16 %v10539_v24  ;;  %v8522_v24 = vunpack.i.l.bf16 %v10571_v23 }
 0x4b9   : > { %7378 = vmatmul.mubr.msk.bf16.gmra.mxu0 %vm1926_vm2, %v2087_v4  ;;  %v1453_v41 = vpack.c.bf16 %v8503_v9, %v8502_v29  ;;  %v8508_v4 = vunpack.i.h.bf16 %v10520_v20  ;;  %v8518_v20 = vunpack.i.h.bf16 %v10555_v17 }
 0x4ba   : > { %7436 = vmatpush3.bf16.xpose.msra.mxu0 %v2459_v6  ;;  %5138 = vrot.lane.b32.xlu1 %v10879_v15, %s9220_s25 }
 0x4bb   : > { %7381 = vmatprep.mubr.msk.bf16.mxu0 %vm1926_vm2, %v2089_v33  ;;  %7917 = vmatprep.subr.msk.bf16.mxu0 %vm1926_vm2, %v10664_v47  ;;  %v10901_v33 = vpop.permute.xlu0 %2426 }
 0x4bc   : > { %v2256_v14 = vpop.permute.xlu1 %2255 }
 0x4bd   : > { %7410 = vmatmul.mubr.msk.bf16.gmra.mxu1 %vm1926_vm2, %v2256_v14 }
 0x4be   : > { %7468 = vmatpush3.bf16.xpose.msra.mxu1 %v2628_v50  ;;  %2094 = vrot.lane.b32.xlu1 %v1437_v25, %s9220_s25  ;;  %v1461_v25 = vpack.c.bf16 %v8508_v4, %v8507_v12  ;;  %v1469_v50 = vpack.c.bf16 %v8513_v8, %v8512_v35 }
 0x4bf   : > { %7413 = vmatprep.mubr.msk.bf16.mxu1 %vm1926_vm2, %v2258_v59  ;;  %7925 = vmatprep.subr.msk.bf16.mxu1 %vm1926_vm2, %v10895_v53  ;;  %v10915_v59 = vpop.permute.xlu0 %2595 }
 0x4c0   : > { %v10908_v40 = vpop.permute.xlu1 %2424 }
 0x4c2   : > { %2263 = vrot.lane.b32.xlu1 %v1445_v43, %s9220_s25  ;;  %v8517_v43 = vunpack.i.l.bf16 %v10555_v17 }
 0x4c3   : > { %v10923_v14 = vpop.permute.xlu0 %2764 }
 0x4c4   : > { %v10913_v6 = vpop.permute.xlu1 %2593  ;;  %v1477_v29 = vpack.c.bf16 %v8518_v20, %v8517_v43  ;;  %v14289_v20 = vld [vmem:[#allocation56_spill] sm:$0xff] }
 0x4c6   : > { %2432 = vrot.lane.b32.xlu1 %v1453_v41, %s9220_s25  ;;  %v8523_v41 = vunpack.i.h.bf16 %v10571_v23 }
 0x4c7   : > { %v10934_v12 = vpop.permute.xlu0 %2933 }
 0x4c8   : > { %v10920_v38 = vpop.permute.xlu1 %2762 }
 0x4ca   : > { %2601 = vrot.lane.b32.xlu1 %v1461_v25, %s9220_s25  ;;  %v1485_v25 = vpack.c.bf16 %v8523_v41, %v8522_v24 }
 0x4cb   : > { %v10940_v17 = vpop.permute.xlu0 %3102 }
 0x4cc   : > { %v10927_v9 = vpop.permute.xlu1 %2931  ;;  %14287 = vst [vmem:[#allocation51_spill] sm:$0xff] %v10940_v17 }
 0x4ce   : > { %2770 = vrot.lane.b32.xlu1 %v1469_v50, %s9220_s25 }
 0x4cf   : > { %v10952_v34 = vpop.permute.xlu0 %4362 }
 0x4d0   : > { %v10932_v4 = vpop.permute.xlu1 %3100  ;;  %14291 = vst [vmem:[#allocation67_spill] sm:$0xff] %v10952_v34 }
 0x4d1   : > { %14286 = vst [vmem:[#allocation42_spill] sm:$0xff] %v10932_v4 }
 0x4d2   : > { %2939 = vrot.lane.b32.xlu1 %v1477_v29, %s9220_s25 }
 0x4d4   : > { %v10937_v8 = vpop.permute.xlu1 %4487 }
 0x4d6   : > { %3108 = vrot.lane.b32.xlu1 %v1485_v25, %s9220_s25  ;;  %v10966_v25 = vpop.permute.xlu0 %4620 }
 0x4d7   : > { %14292 = vst [vmem:[#allocation68_spill] sm:$0xff] %v10966_v25 }
 0x4d8   : > { %v10942_v35 = vpop.permute.xlu1 %4745 }
 0x4d9   : > { %14288 = vst [vmem:[#allocation43_spill] sm:$0xff] %v10942_v35  ;;  %v10944_v50 = vpop.f32.mrf.mxu1 }
 0x4da   : > { %4495 = vrot.lane.b32.xlu1 %v14289_v20, %s9220_s25  ;;  %v10972_v35 = vpop.permute.xlu0 %4878 }
 0x4db   : > { %v10948_v23 = vpop.f32.mrf.mxu1  ;;  %14295 = vst [vmem:[#allocation71_spill] sm:$0xff] %v10972_v35 }
 0x4dc   : > { %v10950_v43 = vpop.permute.xlu1 %4360 }
 0x4dd   : > { %14290 = vst [vmem:[#allocation56_spill] sm:$0xff] %v10950_v43  ;;  %v10954_v29 = vpop.f32.mrf.mxu1 }
 0x4de   : > { %3277 = vmax.xlane.f32.xlu0 %v10954_v29  ;;  %4753 = vrot.lane.b32.xlu1 %v10699_v3, %s9220_s25  ;;  %v2093_v3 = vpop.permute.xlu0 %2092 }
 0x4df   : > { %v10961_v24 = vpop.f32.mrf.mxu1 }
 0x4e0   : > { %v10959_v41 = vpop.permute.xlu1 %4489 }
 0x4e2   : > { %3273 = vmax.xlane.f32.xlu0 %v10961_v24  ;;  %5011 = vrot.lane.b32.xlu1 %v10895_v53, %s9220_s25  ;;  %v2262_v58 = vpop.permute.xlu0 %2261 }
 0x4e4   : > { %v10968_v20 = vpop.permute.xlu1 %4618 }
 0x4e5   : > { %14293 = vst [vmem:[#allocation69_spill] sm:$0xff] %v10968_v20 }
 0x4e8   : > { %v10970_v44 = vpop.permute.xlu1 %4747 }
 0x4e9   : > { %14294 = vst [vmem:[#allocation70_spill] sm:$0xff] %v10970_v44 }
 0x4ec   : > { %v10974_v13 = vpop.permute.xlu1 %4876 }
 0x4ed   : > { %14296 = vst [vmem:[#allocation72_spill] sm:$0xff] %v10974_v13 }
 0x4f0   : > { %v2091_v45 = vpop.permute.xlu1 %2090 }
 0x4f1   : > { %7382 = vmatmul.mubr.msk.bf16.gmra.mxu0 %vm1926_vm2, %v2091_v45 }
 0x4f2   : > { %7385 = vmatprep.mubr.msk.bf16.mxu0 %vm1926_vm2, %v2093_v3 }
 0x4f4   : > { %v2260_v27 = vpop.permute.xlu1 %2259 }
 0x4f5   : > { %7414 = vmatmul.mubr.msk.bf16.gmra.mxu1 %vm1926_vm2, %v2260_v27 }
 0x4f6   : > { %7417 = vmatprep.mubr.msk.bf16.mxu1 %vm1926_vm2, %v2262_v58 }
 0x4f8   : > { %v10980_v25 = vpop.permute.xlu1 %2428 }
 0x4fc   : > { %v10982_v20 = vpop.permute.xlu1 %2597 }
 0x500   : > { %v10984_v44 = vpop.permute.xlu1 %2766 }
 0x504   : > { %v10986_v35 = vpop.permute.xlu1 %2935 }
 0x506   : > { %3257 = vmax.xlane.f32.xlu1 %v10784_v52 }
 0x508   : > { %v10989_v13 = vpop.permute.xlu1 %3104 }
 0x509   : > { %14297 = vst [vmem:[#allocation73_spill] sm:$0xff] %v10989_v13 }
 0x50a   : > { %3267 = vmax.xlane.f32.xlu1 %v10790_v7 }
 0x50c   : > { %v10992_v45 = vpop.permute.xlu1 %4491 }
 0x50e   : > { %3263 = vmax.xlane.f32.xlu1 %v10803_v49 }
 0x510   : > { %v10995_v27 = vpop.permute.xlu1 %4749 }
 0x511   : > { %14298 = vst [vmem:[#allocation74_spill] sm:$0xff] %v10995_v27 }
 0x512   : > { %3275 = vmax.xlane.f32.xlu1 %v10944_v50 }
 0x514   : > { %v10998_v58 = vpop.permute.xlu1 %4364 }
 0x516   : > { %3271 = vmax.xlane.f32.xlu1 %v10948_v23 }
 0x518   : > { %v11001_v3 = vpop.permute.xlu1 %4493 }
 0x51c   : > { %v11003_v16 = vpop.permute.xlu1 %4622 }
 0x51d   : > { %14299 = vst [vmem:[#allocation75_spill] sm:$0xff] %v11003_v16  ;;  %v11005_v26 = vpop.f32.mrf.mxu1 }
 0x51e   : > { %3283 = vmax.xlane.f32.xlu1 %v11005_v26 }
 0x51f   : > { %v11008_v13 = vpop.f32.mrf.mxu1 }
 0x520   : > { %v11010_v43 = vpop.permute.xlu1 %4751 }
 0x521   : > { %14300 = vst [vmem:[#allocation76_spill] sm:$0xff] %v11010_v43  ;;  %v11012_v17 = vpop.f32.mrf.mxu1 }
 0x522   : > { %3285 = vmax.xlane.f32.xlu0 %v11012_v17  ;;  %3279 = vmax.xlane.f32.xlu1 %v11008_v13 }
 0x523   : > { %v11018_v4 = vpop.f32.mrf.mxu1 }
 0x524   : > { %v11016_v27 = vpop.permute.xlu1 %4880 }
 0x525   : > { %14301 = vst [vmem:[#allocation77_spill] sm:$0xff] %v11016_v27 }
 0x526   : > { %3281 = vmax.xlane.f32.xlu0 %v11018_v4 }
 0x528   : > { %v11021_v16 = vpop.permute.xlu1 %5009 }
 0x529   : > { %14302 = vst [vmem:[#allocation78_spill] sm:$0xff] %v11021_v16  ;;  %v2818_v16 = vsel %vm1926_vm2, %v10664_v47, 0 }
 0x52c   : > { %v11023_v56 = vpop.permute.xlu1 %5138 }
 0x52d   : > { %14303 = vst [vmem:[#allocation79_spill] sm:$0xff] %v11023_v56 }
 0x530   : > { %v2095_v34 = vpop.permute.xlu1 %2094 }
 0x531   : > { %7386 = vmatmul.mubr.msk.bf16.gmra.mxu0 %vm1926_vm2, %v2095_v34 }
 0x532   : > { %7437 = vmatprep.mubr.msk.bf16.mxu0 %vm1926_vm2, %v10562_v57  ;;  %v2987_v57 = vsel %vm1926_vm2, %v10895_v53, 0 }
 0x534   : > { %v2264_v43 = vpop.permute.xlu1 %2263 }
 0x535   : > { %7418 = vmatmul.mubr.msk.bf16.gmra.mxu1 %vm1926_vm2, %v2264_v43 }
 0x536   : > { %7469 = vmatprep.mubr.msk.bf16.mxu1 %vm1926_vm2, %v10578_v0  ;;  %v14304_v0 = vld [vmem:[#allocation45_spill] sm:$0xff] }
 0x537   : > { %v8413_v47 = vunpack.i.h.bf16 %v14304_v0  ;;  %v8412_v34 = vunpack.i.l.bf16 %v14304_v0 }
 0x539   : > { %7438 = vmatmul.mubr.msk.bf16.vlgmr.msra.gmra.mxu0 %vm1926_vm2, %v10739_v5 }
 0x53a   : > { %7486 = vmatpush3.bf16.xpose.msra.mxu0 %v2818_v16  ;;  %7441 = vmatprep.mubr.msk.bf16.mxu0 %vm1926_vm2, %v10721_v54  ;;  %v2431_v54 = vpop.permute.xlu0 %2430  ;;  %v11062_v16 = vpack.c.bf16 %v8413_v47, %v8412_v34 }
 0x53b   : > { %7918 = vmatprep.subr.msk.bf16.mxu0 %vm1926_vm2, %v10855_v39 }
 0x53c   : > { %14305 = vst [vmem:[#allocation45_spill] sm:$0xff] %v11062_v16 }
 0x53d   : > { %7470 = vmatmul.mubr.msk.bf16.vlgmr.msra.gmra.mxu1 %vm1926_vm2, %v10754_v62  ;;  %v2815_v62 = vsel %vm1926_vm2, %v10855_v39, 0  ;;  %v2984_v39 = vsel %vm1926_vm2, %v10869_v42, 0 }
 0x53e   : > { %7518 = vmatpush3.bf16.xpose.msra.mxu1 %v2987_v57  ;;  %7473 = vmatprep.mubr.msk.bf16.mxu1 %vm1926_vm2, %v10743_v60  ;;  %v14306_v57 = vld [vmem:[#allocation39_spill] sm:$0xff] }
 0x53f   : > { %7926 = vmatprep.subr.msk.bf16.mxu1 %vm1926_vm2, %v10869_v42  ;;  %v8343_v0 = vunpack.i.h.bf16 %v14306_v57  ;;  %v2812_v42 = vsel %vm1926_vm2, %v10527_v18, 0 }
 0x541   : > { %v11049_v5 = vpop.f32.mrf.mxu0  ;;  %7442 = vmatmul.mubr.msk.bf16.gmra.mxu0 %vm1926_vm2, %v10908_v40 }
 0x542   : > { %7488 = vmatpush3.bf16.xpose.msra.mxu0 %v2815_v62  ;;  %3291 = vmax.xlane.f32.xlu0 %v11049_v5 }
 0x543   : > { %7445 = vmatprep.mubr.msk.bf16.mxu0 %vm1926_vm2, %v10901_v33  ;;  %7919 = vmatprep.subr.msk.bf16.mxu0 %vm1926_vm2, %v10527_v18  ;;  %v11060_v60 = vpop.f32.mrf.mxu0  ;;  %v2600_v33 = vpop.permute.xlu0 %2599  ;;  %v2981_v18 = vsel %vm1926_vm2, %v11062_v16, 0 }
 0x545   : > { %v11064_v53 = vpop.f32.mrf.mxu0  ;;  %v11066_v43 = vpop.f32.mrf.mxu1  ;;  %7474 = vmatmul.mubr.msk.bf16.gmra.mxu1 %vm1926_vm2, %v10913_v6  ;;  %v8342_v6 = vunpack.i.l.bf16 %v14306_v57  ;;  %v2809_v57 = vsel %vm1926_vm2, %v10688_v1, 0 }
 0x546   : > { %7520 = vmatpush3.bf16.xpose.msra.mxu1 %v2984_v39  ;;  %3293 = vmax.xlane.f32.xlu0 %v11064_v53 }
 0x547   : > { %7477 = vmatprep.mubr.msk.bf16.mxu1 %vm1926_vm2, %v10915_v59  ;;  %7927 = vmatprep.subr.msk.bf16.mxu1 %vm1926_vm2, %v11062_v16  ;;  %v11077_v40 = vpop.f32.mrf.mxu1  ;;  %v11093_v59 = vpack.c.bf16 %v8343_v0, %v8342_v6  ;;  %v11095_v34 = vpop.permute.xlu0 %2768  ;;  %v14309_v6 = vld [vmem:[#allocation47_spill] sm:$0xff] }
 0x548   : > { %3323 = vmax.xlane.f32.xlu1 %v11066_v43  ;;  %v11101_v62 = vpop.f32.mrf.mxu0 }
 0x549   : > { %v11082_v47 = vpop.f32.mrf.mxu1  ;;  %7446 = vmatmul.mubr.msk.bf16.gmra.mxu0 %vm1926_vm2, %v10980_v25  ;;  %14307 = vst [vmem:[#allocation39_spill] sm:$0xff] %v11093_v59  ;;  %v2433_v25 = vpop.permute.xlu1 %2432 }
 0x54a   : > { %7490 = vmatpush3.bf16.xpose.msra.mxu0 %v2812_v42  ;;  %7449 = vmatprep.mubr.msk.bf16.mxu0 %vm1926_vm2, %v2431_v54  ;;  %v14308_v54 = vld [vmem:[#allocation34_spill] sm:$0xff] }
 0x54b   : > { %7920 = vmatprep.subr.msk.bf16.mxu0 %vm1926_vm2, %v10688_v1  ;;  %3325 = vmax.xlane.f32.xlu0 %v11082_v47  ;;  %v8273_v39 = vunpack.i.h.bf16 %v14308_v54  ;;  %v11113_v0 = vpop.f32.mrf.mxu1  ;;  %v2978_v1 = vsel %vm1926_vm2, %v11093_v59, 0 }
 0x54c   : > { %3287 = vmax.xlane.f32.xlu1 %v11060_v60 }
 0x54d   : > { %7478 = vmatmul.mubr.msk.bf16.gmra.mxu1 %vm1926_vm2, %v10982_v20  ;;  %v8272_v20 = vunpack.i.l.bf16 %v14308_v54  ;;  %v2602_v42 = vpop.permute.xlu1 %2601 }
 0x54e   : > { %7522 = vmatpush3.bf16.xpose.msra.mxu1 %v2981_v18  ;;  %7481 = vmatprep.mubr.msk.bf16.mxu1 %vm1926_vm2, %v2600_v33  ;;  %v11117_v33 = vpop.permute.xlu0 %2937 }
 0x54f   : > { %7928 = vmatprep.subr.msk.bf16.mxu1 %vm1926_vm2, %v11093_v59  ;;  %3289 = vmax.xlane.f32.xlu0 %v11101_v62  ;;  %v11122_v18 = vpack.c.bf16 %v8273_v39, %v8272_v20  ;;  %v2806_v39 = vsel %vm1926_vm2, %v14309_v6, 0  ;;  %v14312_v20 = vld [vmem:[#allocation55_spill] sm:$0xff] }
 0x550   : > { %3319 = vmax.xlane.f32.xlu1 %v11077_v40 }
 0x551   : > { %7450 = vmatmul.mubr.msk.bf16.gmra.mxu0 %vm1926_vm2, %v2433_v25  ;;  %14310 = vst [vmem:[#allocation34_spill] sm:$0xff] %v11122_v18 }
 0x552   : > { %7492 = vmatpush3.bf16.xpose.msra.mxu0 %v2809_v57  ;;  %7501 = vmatprep.mubr.msk.bf16.mxu0 %vm1926_vm2, %v10592_v36  ;;  %v14311_v36 = vld [vmem:[#allocation32_spill] sm:$0xff]  ;;  %v11133_v57 = vpop.permute.xlu0 %3106 }
 0x553   : > { %7921 = vmatprep.subr.msk.bf16.mxu0 %vm1926_vm2, %v14309_v6  ;;  %3321 = vmax.xlane.f32.xlu0 %v11113_v0  ;;  %v8203_v25 = vunpack.i.h.bf16 %v14311_v36  ;;  %v8202_v54 = vunpack.i.l.bf16 %v14311_v36  ;;  %v14314_v36 = vld [vmem:[#allocation27_spill] sm:$0xff]  ;;  %v2803_v6 = vsel %vm1926_vm2, %v14312_v20, 0 }
 0x554   : > { %v8133_v56 = vunpack.i.h.bf16 %v14314_v36  ;;  %v8132_v27 = vunpack.i.l.bf16 %v14314_v36 }
 0x555   : > { %7482 = vmatmul.mubr.msk.bf16.gmra.mxu1 %vm1926_vm2, %v2602_v42  ;;  %v11139_v42 = vpack.c.bf16 %v8203_v25, %v8202_v54 }
 0x556   : > { %7524 = vmatpush3.bf16.xpose.msra.mxu1 %v2978_v1  ;;  %7533 = vmatprep.mubr.msk.bf16.mxu1 %vm1926_vm2, %v10603_v63  ;;  %v2975_v63 = vsel %vm1926_vm2, %v11122_v18, 0  ;;  %v11143_v1 = vpop.permute.xlu0 %4366  ;;  %v11153_v25 = vpack.c.bf16 %v8133_v56, %v8132_v27  ;;  %v14318_v56 = vld [vmem:[#allocation44_spill] sm:$0xff] }
 0x557   : > { %7929 = vmatprep.subr.msk.bf16.mxu1 %vm1926_vm2, %v11122_v18  ;;  %14313 = vst [vmem:[#allocation47_spill] sm:$0xff] %v11139_v42  ;;  %v14317_v18 = vld [vmem:[#allocation26_spill] sm:$0xff] }
 0x558   : > { %14316 = vst [vmem:[#allocation32_spill] sm:$0xff] %v11153_v25  ;;  %v8063_v36 = vunpack.i.h.bf16 %v14317_v18  ;;  %v8062_v59 = vunpack.i.l.bf16 %v14317_v18 }
 0x55a   : > { %7494 = vmatpush3.bf16.xpose.msra.mxu0 %v2806_v39  ;;  %v14315_v39 = vld [vmem:[#allocation41_spill] sm:$0xff]  ;;  %v11155_v54 = vpop.permute.xlu0 %4624  ;;  %v11169_v27 = vpack.c.bf16 %v8063_v36, %v8062_v59 }
 0x55b   : > { %7922 = vmatprep.subr.msk.bf16.mxu0 %vm1926_vm2, %v14312_v20  ;;  %v2800_v20 = vsel %vm1926_vm2, %v14315_v39, 0 }
 0x55c   : > { %14319 = vst [vmem:[#allocation55_spill] sm:$0xff] %v11169_v27  ;;  %v2966_v36 = vsel %vm1926_vm2, %v11169_v27, 0 }
 0x55e   : > { %7526 = vmatpush3.bf16.xpose.msra.mxu1 %v2975_v63  ;;  %v2972_v63 = vsel %vm1926_vm2, %v11139_v42, 0 }
 0x55f   : > { %7930 = vmatprep.subr.msk.bf16.mxu1 %vm1926_vm2, %v11139_v42  ;;  %v11171_v42 = vpop.permute.xlu1 %2770 }
 0x562   : > { %7496 = vmatpush3.bf16.xpose.msra.mxu0 %v2803_v6  ;;  %v11165_v6 = vpop.permute.xlu0 %4882 }
 0x563   : > { %7923 = vmatprep.subr.msk.bf16.mxu0 %vm1926_vm2, %v14315_v39  ;;  %v2797_v39 = vsel %vm1926_vm2, %v14318_v56, 0 }
 0x566   : > { %7528 = vmatpush3.bf16.xpose.msra.mxu1 %v2972_v63  ;;  %v2969_v63 = vsel %vm1926_vm2, %v11153_v25, 0  ;;  %v11177_v18 = vpop.permute.xlu0 %5140 }
 0x567   : > { %7931 = vmatprep.subr.msk.bf16.mxu1 %vm1926_vm2, %v11153_v25  ;;  %14320 = vst [vmem:[#allocation27_spill] sm:$0xff] %v11177_v18 }
 0x56a   : > { %7498 = vmatpush3.bf16.xpose.msra.mxu0 %v2800_v20  ;;  %v11181_v20 = vpop.permute.xlu1 %2939  ;;  %v11185_v59 = vpop.xlane.xlu0 %3259 }
 0x56b   : > { %7924 = vmatprep.subr.msk.bf16.mxu0 %vm1926_vm2, %v14318_v56 }
 0x56e   : > { %7530 = vmatpush3.bf16.xpose.msra.mxu1 %v2969_v63  ;;  %v11190_v63 = vpop.permute.xlu1 %3108  ;;  %v3256_v25 = vpop.xlane.xlu0 %3255 }
 0x56f   : > { %7932 = vmatprep.subr.msk.bf16.mxu1 %vm1926_vm2, %v11169_v27  ;;  %v14322_v27 = vld [vmem:[#allocation46_spill] sm:$0xff] }
 0x570   : > { %v8418_v18 = vunpack.i.h.bf16 %v14322_v27 }
 0x572   : > { %7500 = vmatpush3.bf16.xpose.msra.mxu0 %v2797_v39  ;;  %v3156_v39 = vsel %vm1926_vm2, %v10680_v30, 0 }
 0x573   : > { %7933 = vmatprep.subr.msk.bf16.mxu0 %vm1926_vm2, %v10680_v30 }
 0x576   : > { %7532 = vmatpush3.bf16.xpose.msra.mxu1 %v2966_v36 }
 0x577   : > { %7581 = vmatprep.subr.bf16.mxu1 %v10630_v55 }
 0x579   : > { %7502 = vmatmul.mubr.msk.bf16.vlgmr.msra.gmra.mxu0 %vm1926_vm2, %v10766_v51  ;;  %v11194_v56 = vpop.f32.mrf.mxu0  ;;  %v8417_v51 = vunpack.i.l.bf16 %v14322_v27  ;;  %v3262_v27 = vpop.xlane.xlu0 %3261 }
 0x57a   : > { %14321 = vst [vmem:[#allocation41_spill] sm:$0xff] %v11194_v56  ;;  %7505 = vmatprep.mubr.msk.bf16.mxu0 %vm1926_vm2, %v10759_v46  ;;  %7550 = vmatpush3.bf16.xpose.msra.mxu0 %v3156_v39  ;;  %v11216_v46 = vpop.permute.xlu1 %4495  ;;  %v14324_v39 = vld [vmem:[#allocation54_spill] sm:$0xff] }
 0x57b   : > { %7934 = vmatprep.subr.msk.bf16.mxu0 %vm1926_vm2, %v10879_v15  ;;  %3299 = vmax.xlane.f32.xlu0 %v11194_v56  ;;  %v11203_v36 = vpop.f32.mrf.mxu0 }
 0x57d   : > { %7534 = vmatmul.mubr.msk.bf16.vlgmr.msra.gmra.mxu1 %vm1926_vm2, %v10775_v21  ;;  %v11209_v30 = vpop.f32.mrf.mxu0  ;;  %v11211_v16 = vpop.f32.mrf.mxu1  ;;  %v11223_v21 = vpack.c.bf16 %v8418_v18, %v8417_v51  ;;  %v14327_v18 = vld [vmem:[#allocation48_spill] sm:$0xff]  ;;  %v14328_v51 = vld [vmem:[#allocation37_spill] sm:$0xff] }
 0x57e   : > { %14323 = vst [vmem:[#allocation26_spill] sm:$0xff] %v11211_v16  ;;  %7537 = vmatprep.mubr.msk.bf16.mxu1 %vm1926_vm2, %v10777_v32  ;;  %7582 = vmatpush3.bf16.msra.mxu1 %v10630_v55  ;;  %v3153_v32 = vsel %vm1926_vm2, %v10879_v15, 0  ;;  %v11240_v15 = vpop.permute.xlu1 %4753 }
 0x57f   : > { %7583 = vmatprep.subr.bf16.mxu1 %v14324_v39  ;;  %3301 = vmax.xlane.f32.xlu0 %v11209_v30  ;;  %v11220_v56 = vpop.f32.mrf.mxu1  ;;  %14325 = vst [vmem:[#allocation44_spill] sm:$0xff] %v11223_v21 }
 0x580   : > { %3331 = vmax.xlane.f32.xlu1 %v11211_v16  ;;  %v8347_v16 = vunpack.i.l.bf16 %v14328_v51 }
 0x581   : > { %7506 = vmatmul.mubr.msk.bf16.gmra.mxu0 %vm1926_vm2, %v10920_v38  ;;  %v11229_v55 = vpop.f32.mrf.mxu1  ;;  %v8348_v38 = vunpack.i.h.bf16 %v14328_v51 }
 0x582   : > { %14326 = vst [vmem:[#allocation46_spill] sm:$0xff] %v11229_v55  ;;  %7509 = vmatprep.mubr.msk.bf16.mxu0 %vm1926_vm2, %v10923_v14  ;;  %7552 = vmatpush3.bf16.xpose.msra.mxu0 %v3153_v32  ;;  %v3270_v14 = vpop.xlane.xlu0 %3269  ;;  %v14330_v32 = vld [vmem:[#allocation40_spill] sm:$0xff] }
 0x583   : > { %7584 = vmatpush3.bf16.msra.mxu1 %v14324_v39  ;;  %7935 = vmatprep.subr.msk.bf16.mxu0 %vm1926_vm2, %v11223_v21  ;;  %v11248_v39 = vpop.f32.mrf.mxu0  ;;  %v11252_v51 = vpack.c.bf16 %v8348_v38, %v8347_v16  ;;  %v11268_v16 = vpop.f32.mrf.mxu1  ;;  %v14333_v38 = vld [vmem:[#allocation35_spill] sm:$0xff] }
 0x584   : > { %7585 = vmatprep.subr.bf16.mxu1 %v14327_v18  ;;  %3295 = vmax.xlane.f32.xlu1 %v11203_v36  ;;  %14329 = vst [vmem:[#allocation54_spill] sm:$0xff] %v11248_v39 }
 0x585   : > { %3333 = vmax.xlane.f32.xlu0 %v11229_v55  ;;  %7538 = vmatmul.mubr.msk.bf16.gmra.mxu1 %vm1926_vm2, %v10927_v9  ;;  %14331 = vst [vmem:[#allocation48_spill] sm:$0xff] %v11252_v51  ;;  %v3150_v9 = vsel %vm1926_vm2, %v11223_v21, 0  ;;  %v11263_v55 = vpop.permute.xlu1 %5011  ;;  %v8278_v21 = vunpack.i.h.bf16 %v14333_v38 }
 0x586   : > { %7541 = vmatprep.mubr.msk.bf16.mxu1 %vm1926_vm2, %v10934_v12  ;;  %v3511_v12 = vsub.f32 %v10764_v22, %v3256_v25  ;;  %v8277_v22 = vunpack.i.l.bf16 %v14333_v38  ;;  %v3266_v25 = vpop.xlane.xlu0 %3265 }
 0x587   : > { %7586 = vmatpush3.bf16.msra.mxu1 %v14327_v18  ;;  %v3514_v18 = vsub.f32 %v10773_v11, %v3262_v27 }
 0x588   : > { %7587 = vmatprep.subr.bf16.mxu1 %v14330_v32  ;;  %3327 = vmax.xlane.f32.xlu1 %v11220_v56  ;;  %v3639_v11 = vmul.f32 1.442695, %v3511_v12 }
 0x589   : > { %3297 = vmax.xlane.f32.xlu0 %v11248_v39  ;;  %7510 = vmatmul.mubr.msk.bf16.gmra.mxu0 %vm1926_vm2, %v10984_v44  ;;  %v14332_v44 = vld [vmem:[#allocation36_spill] sm:$0xff]  ;;  %v3645_v27 = vmul.f32 1.442695, %v3514_v18  ;;  %v11283_v39 = vpack.c.bf16 %v8278_v21, %v8277_v22  ;;  %v14337_v18 = vld [vmem:[#allocation30_spill] sm:$0xff]  ;;  %v3518_v22 = vsub.f32 %v10815_v2, %v3270_v14 }
 0x58a   : > { %7513 = vmatprep.mubr.msk.bf16.mxu0 %vm1926_vm2, %v11095_v34  ;;  %7554 = vmatpush3.bf16.xpose.msra.mxu0 %v3150_v9  ;;  %v3513_v34 = vsub.f32 %v10752_v61, %v11185_v59  ;;  %v14334_v9 = vld [vmem:[#allocation31_spill] sm:$0xff]  ;;  %v3278_v59 = vpop.xlane.xlu0 %3277  ;;  %8581 = vpow2.f32 %v3639_v11 }
 0x58b   : > { %7588 = vmatpush3.bf16.msra.mxu1 %v14330_v32  ;;  %7936 = vmatprep.subr.msk.bf16.mxu0 %vm1926_vm2, %v11252_v51  ;;  %14335 = vst [vmem:[#allocation37_spill] sm:$0xff] %v11283_v39  ;;  %8583 = vpow2.f32 %v3645_v27  ;;  %v14338_v27 = vld [vmem:[#allocation25_spill] sm:$0xff] }
 0x58c   : > { %7589 = vmatprep.subr.bf16.mxu1 %v14332_v44  ;;  %v3643_v61 = vmul.f32 1.442695, %v3513_v34 }
 0x58d   : > { %3329 = vmax.xlane.f32.xlu0 %v11268_v16  ;;  %7542 = vmatmul.mubr.msk.bf16.gmra.mxu1 %vm1926_vm2, %v10986_v35  ;;  %v3147_v35 = vsel %vm1926_vm2, %v11252_v51, 0 }
 0x58e   : > { %7545 = vmatprep.mubr.msk.bf16.mxu1 %vm1926_vm2, %v11117_v33  ;;  %v3516_v33 = vsub.f32 %v10826_v28, %v3266_v25  ;;  %v8207_v28 = vunpack.i.l.bf16 %v14337_v18  ;;  %v3274_v34 = vpop.xlane.xlu0 %3273 }
 0x58f   : > { %7590 = vmatpush3.bf16.msra.mxu1 %v14332_v44  ;;  %v3258_v32 = vpop.xlane.xlu1 %3257  ;;  %v8208_v44 = vunpack.i.h.bf16 %v14337_v18  ;;  %v3520_v2 = vsub.f32 %v10961_v24, %v3274_v34  ;;  %v3522_v24 = vsub.f32 %v10954_v29, %v3278_v59 }
 0x590   : > { %7591 = vmatprep.subr.bf16.mxu1 %v14334_v9  ;;  %v3512_v38 = vsub.f32 %v10784_v52, %v3258_v32 }
 0x591   : > { %7514 = vmatmul.mubr.msk.bf16.gmra.mxu0 %vm1926_vm2, %v11171_v42  ;;  %v14336_v42 = vld [vmem:[#allocation29_spill] sm:$0xff]  ;;  %v11305_v32 = vpack.c.bf16 %v8208_v44, %v8207_v28 }
 0x592   : > { %v3641_v12 = vmul.f32 1.442695, %v3512_v38  ;;  %7556 = vmatpush3.bf16.xpose.msra.mxu0 %v3147_v35  ;;  %7565 = vmatprep.mubr.msk.bf16.mxu0 %vm1926_vm2, %v10615_v37  ;;  %v3649_v37 = vmul.f32 1.442695, %v3516_v33  ;;  %v3144_v38 = vsel %vm1926_vm2, %v11283_v39, 0 }
 0x593   : > { %7592 = vmatpush3.bf16.msra.mxu1 %v14334_v9  ;;  %7937 = vmatprep.subr.msk.bf16.mxu0 %vm1926_vm2, %v11283_v39  ;;  %v3268_v52 = vpop.xlane.xlu1 %3267  ;;  %14339 = vst [vmem:[#allocation40_spill] sm:$0xff] %v11305_v32  ;;  %v3653_v9 = vmul.f32 1.442695, %v3518_v22 }
 0x594   : > { %8585 = vpow2.f32 %v3641_v12  ;;  %7593 = vmatprep.subr.bf16.mxu1 %v14336_v42  ;;  %v3517_v21 = vsub.f32 %v10790_v7, %v3268_v52  ;;  %v3657_v12 = vmul.f32 1.442695, %v3520_v2 }
 0x595   : > { %8587 = vpow2.f32 %v3643_v61  ;;  %7546 = vmatmul.mubr.msk.bf16.gmra.mxu1 %vm1926_vm2, %v11181_v20  ;;  %v14340_v61 = vld [vmem:[#allocation28_spill] sm:$0xff] }
 0x596   : > { %v3651_v25 = vmul.f32 1.442695, %v3517_v21  ;;  %8589 = vpow2.f32 %v3649_v37  ;;  %v8138_v35 = vunpack.i.h.bf16 %v14340_v61  ;;  %v8137_v33 = vunpack.i.l.bf16 %v14340_v61 }
 0x597   : > { %7594 = vmatpush3.bf16.msra.mxu1 %v14336_v42  ;;  %v3264_v11 = vpop.xlane.xlu1 %3263  ;;  %v11318_v52 = vpop.eup %8581  ;;  %v3141_v37 = vsel %vm1926_vm2, %v11305_v32, 0 }
 0x598   : > { %7595 = vmatprep.subr.bf16.mxu1 %v14338_v27  ;;  %v3515_v7 = vsub.f32 %v10803_v49, %v3264_v11  ;;  %8591 = vpow2.f32 %v3651_v25  ;;  %14341 = vst [vmem:[#allocation36_spill] sm:$0xff] %v11318_v52  ;;  %v11320_v18 = vpop.eup %8583  ;;  %v11325_v22 = vpack.c.bf16 %v8138_v35, %v8137_v33  ;;  %v14346_v25 = vld [vmem:[#allocation24_spill] sm:$0xff] }
 0x599   : > { %14342 = vst [vmem:[#allocation35_spill] sm:$0xff] %v11320_v18  ;;  %v8068_v11 = vunpack.i.h.bf16 %v14346_v25 }
 0x59a   : > { %v3647_v20 = vmul.f32 1.442695, %v3515_v7  ;;  %7558 = vmatpush3.bf16.xpose.msra.mxu0 %v3144_v38  ;;  %14344 = vst [vmem:[#allocation29_spill] sm:$0xff] %v11325_v22 }
 0x59b   : > { %7596 = vmatpush3.bf16.msra.mxu1 %v14338_v27  ;;  %7938 = vmatprep.subr.msk.bf16.mxu0 %vm1926_vm2, %v11305_v32  ;;  %v3276_v14 = vpop.xlane.xlu1 %3275  ;;  %v8067_v27 = vunpack.i.l.bf16 %v14346_v25 }
 0x59c   : > { %8593 = vpow2.f32 %v3647_v20  ;;  %7645 = vmatprep.subr.bf16.mxu1 %v11216_v46  ;;  %v3521_v49 = vsub.f32 %v10944_v50, %v3276_v14  ;;  %v3661_v50 = vmul.f32 1.442695, %v3522_v24  ;;  %v3138_v14 = vsel %vm1926_vm2, %v11325_v22, 0 }
 0x59d   : > { %8595 = vpow2.f32 %v3653_v9  ;;  %v11347_v20 = vpack.c.bf16 %v8068_v11, %v8067_v27 }
 0x59e   : > { %v3659_v42 = vmul.f32 1.442695, %v3521_v49  ;;  %8597 = vpow2.f32 %v3657_v12 }
 0x59f   : > { %v3272_v21 = vpop.xlane.xlu1 %3271  ;;  %14350 = vst [vmem:[#allocation80_spill] sm:$0xff] %v11347_v20 }
 0x5a0   : > { %v3519_v44 = vsub.f32 %v10948_v23, %v3272_v21  ;;  %8599 = vpow2.f32 %v3659_v42 }
 0x5a1   : > { %v11323_v28 = vpop.eup %8585 }
 0x5a2   : > { %14343 = vst [vmem:[#allocation31_spill] sm:$0xff] %v11323_v28  ;;  %v11329_v34 = vpop.eup %8587  ;;  %v3655_v29 = vmul.f32 1.442695, %v3519_v44  ;;  %7560 = vmatpush3.bf16.xpose.msra.mxu0 %v3141_v37  ;;  %v4151_v59 = vpack.c.bf16 %v11323_v28, %v11318_v52 }
 0x5a3   : > { %14345 = vst [vmem:[#allocation30_spill] sm:$0xff] %v11329_v34  ;;  %7939 = vmatprep.subr.msk.bf16.mxu0 %vm1926_vm2, %v11325_v22  ;;  %v4152_v23 = vpack.c.bf16 %v11320_v18, %v11329_v34  ;;  %v11340_v7 = vpop.eup %8589 }
 0x5a4   : > { %8601 = vpow2.f32 %v3655_v29  ;;  %7597 = vmatprep.mubr.bf16.mxu1 %v4151_v59  ;;  %14347 = vst [vmem:[#allocation25_spill] sm:$0xff] %v11340_v7 }
 0x5a5   : > { %8603 = vpow2.f32 %v3661_v50  ;;  %7598 = vmatmul.mubr.bf16.vlgmr.msra.gmra.mxu1 %v4152_v23  ;;  %v11343_v38 = vpop.eup %8591 }
 0x5a6   : > { %7646 = vmatpush3.bf16.msra.mxu1 %v11216_v46  ;;  %14348 = vst [vmem:[#allocation28_spill] sm:$0xff] %v11343_v38 }
 0x5a7   : > { %7647 = vmatprep.subr.bf16.mxu1 %v11001_v3  ;;  %v3284_v9 = vpop.xlane.xlu1 %3283 }
 0x5a9   : > { %v11345_v2 = vpop.eup %8593 }
 0x5aa   : > { %14349 = vst [vmem:[#allocation24_spill] sm:$0xff] %v11345_v2  ;;  %v11351_v49 = vpop.eup %8595  ;;  %7562 = vmatpush3.bf16.xpose.msra.mxu0 %v3138_v14  ;;  %7648 = vmatpush3.bf16.msra.mxu1 %v11001_v3  ;;  %v4153_v46 = vpack.c.bf16 %v11340_v7, %v11345_v2  ;;  %v3525_v3 = vsub.f32 %v11005_v26, %v3284_v9  ;;  %v3135_v26 = vsel %vm1926_vm2, %v11347_v20, 0 }
 0x5ab   : > { %14351 = vst [vmem:[#allocation81_spill] sm:$0xff] %v11351_v49  ;;  %7940 = vmatprep.subr.msk.bf16.mxu0 %vm1926_vm2, %v11347_v20  ;;  %7649 = vmatprep.subr.bf16.mxu1 %v10992_v45  ;;  %v3286_v61 = vpop.xlane.xlu0 %3285  ;;  %v3280_v35 = vpop.xlane.xlu1 %3279  ;;  %v4154_v33 = vpack.c.bf16 %v11351_v49, %v11343_v38 }
 0x5ac   : > { %v3526_v24 = vsub.f32 %v11012_v17, %v3286_v61  ;;  %v3523_v12 = vsub.f32 %v11008_v13, %v3280_v35  ;;  %7601 = vmatprep.mubr.bf16.mxu1 %v4153_v46  ;;  %v11365_v21 = vpop.eup %8597  ;;  %v3667_v13 = vmul.f32 1.442695, %v3525_v3  ;;  %v14361_v61 = vld [vmem:[#allocation42_spill] sm:$0xff]  ;;  %v14365_v3 = vld [vmem:[#allocation65_spill] sm:$0xff] }
 0x5ad   : > { %7602 = vmatmul.mubr.bf16.gmra.mxu1 %v4154_v33  ;;  %14352 = vst [vmem:[#allocation82_spill] sm:$0xff] %v11365_v21  ;;  %v11368_v37 = vpop.eup %8599  ;;  %v14364_v33 = vld [vmem:[#allocation56_spill] sm:$0xff] }
 0x5ae   : > { %v3669_v42 = vmul.f32 1.442695, %v3526_v24  ;;  %7650 = vmatpush3.bf16.msra.mxu1 %v10992_v45  ;;  %v3663_v44 = vmul.f32 1.442695, %v3523_v12  ;;  %14353 = vst [vmem:[#allocation83_spill] sm:$0xff] %v11368_v37 }
 0x5af   : > { %7651 = vmatprep.subr.bf16.mxu1 %v10959_v41  ;;  %v3282_v50 = vpop.xlane.xlu0 %3281 }
 0x5b0   : > { %v3524_v29 = vsub.f32 %v11018_v4, %v3282_v50  ;;  %8605 = vpow2.f32 %v3669_v42  ;;  %v14366_v42 = vld [vmem:[#allocation73_spill] sm:$0xff] }
 0x5b1   : > { %v11371_v17 = vpop.eup %8601  ;;  %v11373_v59 = vpop.f32.mrf.mxu0  ;;  %8607 = vpow2.f32 %v3663_v44  ;;  %v14367_v44 = vld [vmem:[#allocation53_spill] sm:$0xff] }
 0x5b2   : > { %14354 = vst [vmem:[#allocation84_spill] sm:$0xff] %v11371_v17  ;;  %v11377_v23 = vpop.eup %8603  ;;  %v3665_v45 = vmul.f32 1.442695, %v3524_v29  ;;  %7564 = vmatpush3.bf16.xpose.msra.mxu0 %v3135_v26  ;;  %7652 = vmatpush3.bf16.msra.mxu1 %v10959_v41  ;;  %v4155_v25 = vpack.c.bf16 %v11365_v21, %v11371_v17  ;;  %v14368_v29 = vld [vmem:[#allocation33_spill] sm:$0xff] }
 0x5b3   : > { %14355 = vst [vmem:[#allocation85_spill] sm:$0xff] %v11377_v23  ;;  %7613 = vmatprep.subr.bf16.mxu0 %v11143_v1  ;;  %7653 = vmatprep.subr.bf16.mxu1 %v10937_v8  ;;  %v11384_v4 = vpop.f32.mrf.mxu0  ;;  %v4156_v11 = vpack.c.bf16 %v11377_v23, %v11368_v37  ;;  %v14390_v37 = vld [vmem:[#allocation64_spill] sm:$0xff] }
 0x5b4   : > { %8609 = vpow2.f32 %v3665_v45  ;;  %3307 = vmax.xlane.f32.xlu0 %v11373_v59  ;;  %7605 = vmatprep.mubr.bf16.mxu1 %v4155_v25  ;;  %v14369_v25 = vld [vmem:[#allocation58_spill] sm:$0xff] }
 0x5b5   : > { %8611 = vpow2.f32 %v3667_v13  ;;  %v11389_v27 = vpop.f32.mrf.mxu0  ;;  %v11391_v41 = vpop.f32.mrf.mxu1  ;;  %7606 = vmatmul.mubr.bf16.gmra.mxu1 %v4156_v11 }
 0x5b6   : > { %7654 = vmatpush3.bf16.msra.mxu1 %v10937_v8  ;;  %3339 = vmax.xlane.f32.xlu1 %v11391_v41  ;;  %v14357_v8 = vld [vmem:[#allocation67_spill] sm:$0xff] }
 0x5b7   : > { %7655 = vmatprep.subr.bf16.mxu1 %v10835_v19  ;;  %v11396_v9 = vpop.f32.mrf.mxu1 }
 0x5b8   : > { %3309 = vmax.xlane.f32.xlu0 %v11389_v27 }
 0x5b9   : > { %7566 = vmatmul.mubr.msk.bf16.vlgmr.msra.gmra.mxu0 %vm1926_vm2, %v10786_v31  ;;  %v11401_v14 = vpop.f32.mrf.mxu1 }
 0x5ba   : > { %7569 = vmatprep.mubr.msk.bf16.mxu0 %vm1926_vm2, %v10794_v48  ;;  %7614 = vmatpush3.bf16.msra.mxu0 %v11143_v1  ;;  %v11418_v1 = vpop.f32.mrf.mxu0 }
 0x5bb   : > { %7656 = vmatpush3.bf16.msra.mxu1 %v10835_v19  ;;  %7615 = vmatprep.subr.bf16.mxu0 %v10998_v58  ;;  %v14359_v19 = vld [vmem:[#allocation59_spill] sm:$0xff]  ;;  %v11438_v12 = vpop.f32.mrf.mxu1 }
 0x5bc   : > { %7657 = vmatprep.subr.bf16.mxu1 %v10799_v10  ;;  %3303 = vmax.xlane.f32.xlu1 %v11384_v4 }
 0x5bd   : > { %3341 = vmax.xlane.f32.xlu0 %v11401_v14  ;;  %v11412_v31 = vpop.eup %8605 }
 0x5be   : > { %7616 = vmatpush3.bf16.msra.mxu0 %v10998_v58  ;;  %14356 = vst [vmem:[#allocation86_spill] sm:$0xff] %v11412_v31  ;;  %v11416_v48 = vpop.eup %8607 }
 0x5bf   : > { %7658 = vmatpush3.bf16.msra.mxu1 %v10799_v10  ;;  %7617 = vmatprep.subr.bf16.mxu0 %v14357_v8  ;;  %14358 = vst [vmem:[#allocation67_spill] sm:$0xff] %v11416_v48  ;;  %v14363_v10 = vld [vmem:[#allocation51_spill] sm:$0xff] }
 0x5c0   : > { %7659 = vmatprep.subr.bf16.mxu1 %v14359_v19  ;;  %3335 = vmax.xlane.f32.xlu1 %v11396_v9 }
 0x5c1   : > { %v11422_v46 = vpop.eup %8609  ;;  %3305 = vmax.xlane.f32.xlu0 %v11418_v1  ;;  %7570 = vmatmul.mubr.msk.bf16.gmra.mxu0 %vm1926_vm2, %v14361_v61 }
 0x5c2   : > { %14360 = vst [vmem:[#allocation59_spill] sm:$0xff] %v11422_v46  ;;  %v11427_v58 = vpop.eup %8611  ;;  %7573 = vmatprep.mubr.msk.bf16.mxu0 %vm1926_vm2, %v14363_v10  ;;  %7618 = vmatpush3.bf16.msra.mxu0 %v14357_v8  ;;  %v4157_v35 = vpack.c.bf16 %v11422_v46, %v11416_v48 }
 0x5c3   : > { %14362 = vst [vmem:[#allocation42_spill] sm:$0xff] %v11427_v58  ;;  %7660 = vmatpush3.bf16.msra.mxu1 %v14359_v19  ;;  %7619 = vmatprep.subr.bf16.mxu0 %v14364_v33  ;;  %v4158_v24 = vpack.c.bf16 %v11412_v31, %v11427_v58 }
 0x5c4   : > { %7709 = vmatprep.subr.bf16.mxu1 %v11240_v15  ;;  %7609 = vmatprep.mubr.bf16.mxu1 %v4157_v35 }
 0x5c5   : > { %3337 = vmax.xlane.f32.xlu0 %v11438_v12  ;;  %7610 = vmatmul.mubr.bf16.gmra.mxu1 %v4158_v24 }
 0x5c6   : > { %7620 = vmatpush3.bf16.msra.mxu0 %v14364_v33 }
 0x5c7   : > { %7621 = vmatprep.subr.bf16.mxu0 %v14365_v3 }
 0x5c9   : > { %7574 = vmatmul.mubr.msk.bf16.gmra.mxu0 %vm1926_vm2, %v14366_v42 }
 0x5ca   : > { %7577 = vmatprep.mubr.msk.bf16.mxu0 %vm1926_vm2, %v11133_v57  ;;  %7622 = vmatpush3.bf16.msra.mxu0 %v14365_v3 }
 0x5cb   : > { %7623 = vmatprep.subr.bf16.mxu0 %v14367_v44  ;;  %v3292_v50 = vpop.xlane.xlu0 %3291 }
 0x5cc   : > { %v3529_v8 = vsub.f32 %v11049_v5, %v3292_v50 }
 0x5ce   : > { %7624 = vmatpush3.bf16.msra.mxu0 %v14367_v44  ;;  %v3675_v24 = vmul.f32 1.442695, %v3529_v8 }
 0x5cf   : > { %7625 = vmatprep.subr.bf16.mxu0 %v14368_v29  ;;  %v3294_v13 = vpop.xlane.xlu0 %3293 }
 0x5d0   : > { %v3530_v45 = vsub.f32 %v11064_v53, %v3294_v13 }
 0x5d1   : > { %v3324_v26 = vpop.xlane.xlu1 %3323  ;;  %7578 = vmatmul.mubr.msk.bf16.gmra.mxu0 %vm1926_vm2, %v11190_v63 }
 0x5d2   : > { %7626 = vmatpush3.bf16.msra.mxu0 %v14368_v29  ;;  %v3677_v61 = vmul.f32 1.442695, %v3530_v45  ;;  %v3545_v3 = vsub.f32 %v11066_v43, %v3324_v26 }
 0x5d3   : > { %7627 = vmatprep.subr.bf16.mxu0 %v14369_v25 }
 0x5d4   : > { %v3326_v57 = vpop.xlane.xlu0 %3325  ;;  %8613 = vpow2.f32 %v3677_v61  ;;  %v3707_v29 = vmul.f32 1.442695, %v3545_v3  ;;  %v14378_v61 = vld [vmem:[#allocation75_spill] sm:$0xff] }
 0x5d5   : > { %v3288_v11 = vpop.xlane.xlu1 %3287  ;;  %v3546_v10 = vsub.f32 %v11082_v47, %v3326_v57 }
 0x5d6   : > { %v3527_v19 = vsub.f32 %v11060_v60, %v3288_v11  ;;  %7628 = vmatpush3.bf16.msra.mxu0 %v14369_v25 }
 0x5d7   : > { %7677 = vmatprep.subr.bf16.mxu0 %v11155_v54  ;;  %v3709_v5 = vmul.f32 1.442695, %v3546_v10 }
 0x5d8   : > { %v3671_v63 = vmul.f32 1.442695, %v3527_v19  ;;  %v3290_v35 = vpop.xlane.xlu0 %3289 }
 0x5d9   : > { %v3320_v33 = vpop.xlane.xlu1 %3319  ;;  %v3528_v53 = vsub.f32 %v11101_v62, %v3290_v35 }
 0x5da   : > { %v3543_v42 = vsub.f32 %v11077_v40, %v3320_v33  ;;  %8615 = vpow2.f32 %v3671_v63  ;;  %v14380_v33 = vld [vmem:[#allocation76_spill] sm:$0xff] }
 0x5db   : > { %v3673_v60 = vmul.f32 1.442695, %v3528_v53 }
 0x5dc   : > { %v3703_v44 = vmul.f32 1.442695, %v3543_v42  ;;  %v3322_v50 = vpop.xlane.xlu0 %3321  ;;  %v14381_v42 = vld [vmem:[#allocation69_spill] sm:$0xff] }
 0x5dd   : > { %8617 = vpow2.f32 %v3673_v60  ;;  %v3544_v47 = vsub.f32 %v11113_v0, %v3322_v50 }
 0x5de   : > { %8619 = vpow2.f32 %v3675_v24 }
 0x5df   : > { %8621 = vpow2.f32 %v3709_v5  ;;  %v3705_v13 = vmul.f32 1.442695, %v3544_v47  ;;  %v14382_v5 = vld [vmem:[#allocation74_spill] sm:$0xff] }
 0x5e0   : > { %8623 = vpow2.f32 %v3703_v44 }
 0x5e1   : > { %8625 = vpow2.f32 %v3705_v13  ;;  %v11466_v62 = vpop.eup %8613  ;;  %v14384_v13 = vld [vmem:[#allocation70_spill] sm:$0xff] }
 0x5e2   : > { %8627 = vpow2.f32 %v3707_v29  ;;  %14370 = vst [vmem:[#allocation51_spill] sm:$0xff] %v11466_v62  ;;  %v14383_v29 = vld [vmem:[#allocation66_spill] sm:$0xff] }
 0x5e7   : > { %v11468_v43 = vpop.eup %8615 }
 0x5e8   : > { %14371 = vst [vmem:[#allocation56_spill] sm:$0xff] %v11468_v43 }
 0x5ea   : > { %v11470_v40 = vpop.eup %8617 }
 0x5eb   : > { %14372 = vst [vmem:[#allocation65_spill] sm:$0xff] %v11470_v40  ;;  %v11472_v26 = vpop.eup %8619  ;;  %v4159_v45 = vpack.c.bf16 %v11470_v40, %v11468_v43 }
 0x5ec   : > { %14373 = vst [vmem:[#allocation73_spill] sm:$0xff] %v11472_v26  ;;  %v11476_v25 = vpop.eup %8621  ;;  %v4160_v0 = vpack.c.bf16 %v11466_v62, %v11472_v26 }
 0x5ed   : > { %14374 = vst [vmem:[#allocation53_spill] sm:$0xff] %v11476_v25  ;;  %v11480_v57 = vpop.eup %8623  ;;  %7629 = vmatprep.mubr.bf16.mxu0 %v4159_v45 }
 0x5ee   : > { %14375 = vst [vmem:[#allocation33_spill] sm:$0xff] %v11480_v57  ;;  %v11482_v11 = vpop.eup %8625  ;;  %7630 = vmatmul.mubr.bf16.vlgmr.msra.gmra.mxu0 %v4160_v0 }
 0x5ef   : > { %14376 = vst [vmem:[#allocation58_spill] sm:$0xff] %v11482_v11  ;;  %v11484_v8 = vpop.eup %8627  ;;  %7678 = vmatpush3.bf16.msra.mxu0 %v11155_v54  ;;  %v4167_v19 = vpack.c.bf16 %v11482_v11, %v11480_v57  ;;  %v14379_v54 = vld [vmem:[#allocation68_spill] sm:$0xff] }
 0x5f0   : > { %14377 = vst [vmem:[#allocation87_spill] sm:$0xff] %v11484_v8  ;;  %7679 = vmatprep.subr.bf16.mxu0 %v14378_v61  ;;  %v4168_v10 = vpack.c.bf16 %v11476_v25, %v11484_v8  ;;  %v14395_v8 = vld [vmem:[#allocation26_spill] sm:$0xff] }
 0x5f1   : > { %7661 = vmatprep.mubr.bf16.mxu1 %v4167_v19  ;;  %v11492_v63 = vpop.f32.mrf.mxu0 }
 0x5f2   : > { %7662 = vmatmul.mubr.bf16.vlgmr.msra.gmra.mxu1 %v4168_v10  ;;  %3315 = vmax.xlane.f32.xlu0 %v11492_v63  ;;  %v14386_v10 = vld [vmem:[#allocation43_spill] sm:$0xff] }
 0x5f3   : > { %7680 = vmatpush3.bf16.msra.mxu0 %v14378_v61  ;;  %7710 = vmatpush3.bf16.msra.mxu1 %v11240_v15  ;;  %v11497_v35 = vpop.f32.mrf.mxu0  ;;  %v14385_v61 = vld [vmem:[#allocation38_spill] sm:$0xff] }
 0x5f4   : > { %7681 = vmatprep.subr.bf16.mxu0 %v14379_v54  ;;  %7711 = vmatprep.subr.bf16.mxu1 %v14380_v33 }
 0x5f5   : > { %v11501_v53 = vpop.f32.mrf.mxu0  ;;  %v11503_v24 = vpop.f32.mrf.mxu1 }
 0x5f6   : > { %3317 = vmax.xlane.f32.xlu0 %v11501_v53  ;;  %3347 = vmax.xlane.f32.xlu1 %v11503_v24 }
 0x5f7   : > { %7682 = vmatpush3.bf16.msra.mxu0 %v14379_v54  ;;  %7712 = vmatpush3.bf16.msra.mxu1 %v14380_v33  ;;  %v11509_v3 = vpop.f32.mrf.mxu0  ;;  %v11511_v15 = vpop.f32.mrf.mxu1 }
 0x5f8   : > { %7683 = vmatprep.subr.bf16.mxu0 %v14381_v42  ;;  %7713 = vmatprep.subr.bf16.mxu1 %v14382_v5 }
 0x5f9   : > { %v11515_v60 = vpop.f32.mrf.mxu1  ;;  %v11517_v44 = vpop.f32.mrf.mxu0 }
 0x5fa   : > { %3311 = vmax.xlane.f32.xlu1 %v11497_v35  ;;  %3349 = vmax.xlane.f32.xlu0 %v11515_v60 }
 0x5fb   : > { %7684 = vmatpush3.bf16.msra.mxu0 %v14381_v42  ;;  %7714 = vmatpush3.bf16.msra.mxu1 %v14382_v5  ;;  %v11523_v50 = vpop.f32.mrf.mxu1  ;;  %v11525_v47 = vpop.f32.mrf.mxu0 }
 0x5fc   : > { %7685 = vmatprep.subr.bf16.mxu0 %v14383_v29  ;;  %7715 = vmatprep.subr.bf16.mxu1 %v14384_v13 }
 0x5fd   : > { %v11529_v45 = vpop.f32.mrf.mxu0  ;;  %v11531_v0 = vpop.f32.mrf.mxu1 }
 0x5fe   : > { %3343 = vmax.xlane.f32.xlu1 %v11511_v15  ;;  %3313 = vmax.xlane.f32.xlu0 %v11509_v3 }
 0x5ff   : > { %7686 = vmatpush3.bf16.msra.mxu0 %v14383_v29  ;;  %7716 = vmatpush3.bf16.msra.mxu1 %v14384_v13  ;;  %v11537_v19 = vpop.f32.mrf.mxu1  ;;  %v11541_v54 = vpop.f32.mrf.mxu0  ;;  %v14387_v29 = vld [vmem:[#allocation57_spill] sm:$0xff] }
 0x600   : > { %7687 = vmatprep.subr.bf16.mxu0 %v14385_v61  ;;  %7717 = vmatprep.subr.bf16.mxu1 %v14386_v10  ;;  %v14388_v13 = vld [vmem:[#allocation49_spill] sm:$0xff] }
 0x601   : > { %v11543_v33 = vpop.f32.mrf.mxu1  ;;  %v11551_v5 = vpop.f32.mrf.mxu0 }
 0x602   : > { %3345 = vmax.xlane.f32.xlu0 %v11523_v50  ;;  %3387 = vmax.xlane.f32.xlu1 %v11531_v0 }
 0x603   : > { %7688 = vmatpush3.bf16.msra.mxu0 %v14385_v61  ;;  %7718 = vmatpush3.bf16.msra.mxu1 %v14386_v10  ;;  %v11549_v42 = vpop.f32.mrf.mxu1  ;;  %v11561_v61 = vpop.f32.mrf.mxu0  ;;  %v14389_v10 = vld [vmem:[#allocation61_spill] sm:$0xff] }
 0x604   : > { %7689 = vmatprep.subr.bf16.mxu0 %v14387_v29  ;;  %7719 = vmatprep.subr.bf16.mxu1 %v14388_v13  ;;  %v3300_v58 = vpop.xlane.xlu0 %3299 }
 0x605   : > { %v11555_v48 = vpop.f32.mrf.mxu1 }
 0x606   : > { %3355 = vmax.xlane.f32.xlu0 %v11517_v44  ;;  %3351 = vmax.xlane.f32.xlu1 %v11525_v47 }
 0x607   : > { %7690 = vmatpush3.bf16.msra.mxu0 %v14387_v29  ;;  %7720 = vmatpush3.bf16.msra.mxu1 %v14388_v13  ;;  %v11565_v2 = vpop.f32.mrf.mxu1  ;;  %v11571_v29 = vpop.f32.mrf.mxu0  ;;  %v14391_v13 = vld [vmem:[#allocation62_spill] sm:$0xff] }
 0x608   : > { %7691 = vmatprep.subr.bf16.mxu0 %v14389_v10  ;;  %7721 = vmatprep.subr.bf16.mxu1 %v14390_v37  ;;  %v3302_v17 = vpop.xlane.xlu0 %3301 }
 0x609   : > { %v3332_v38 = vpop.xlane.xlu1 %3331  ;;  %v3534_v34 = vsub.f32 %v11209_v30, %v3302_v17  ;;  %v11576_v31 = vpop.f32.mrf.mxu1  ;;  %v14393_v30 = vld [vmem:[#allocation46_spill] sm:$0xff] }
 0x60a   : > { %3357 = vmax.xlane.f32.xlu0 %v11529_v45  ;;  %3383 = vmax.xlane.f32.xlu1 %v11537_v19  ;;  %v11583_v21 = vpop.f32.mrf.mxu0  ;;  %v3549_v57 = vsub.f32 %v14395_v8, %v3332_v38 }
 0x60b   : > { %7692 = vmatpush3.bf16.msra.mxu0 %v14389_v10  ;;  %7722 = vmatpush3.bf16.msra.mxu1 %v14390_v37  ;;  %v14392_v37 = vld [vmem:[#allocation41_spill] sm:$0xff]  ;;  %v3685_v49 = vmul.f32 1.442695, %v3534_v34  ;;  %v11587_v7 = vpop.f32.mrf.mxu1 }
 0x60c   : > { %7723 = vmatprep.subr.bf16.mxu1 %v14391_v13  ;;  %7741 = vmatprep.subr.bf16.mxu0 %v11165_v6  ;;  %v3533_v10 = vsub.f32 %v14392_v37, %v3300_v58  ;;  %v11594_v34 = vpop.f32.mrf.mxu0 }
 0x60d   : > { %v3296_v52 = vpop.xlane.xlu1 %3295  ;;  %8629 = vpow2.f32 %v3685_v49 }
 0x60e   : > { %v3531_v46 = vsub.f32 %v11203_v36, %v3296_v52  ;;  %v3334_v23 = vpop.xlane.xlu0 %3333  ;;  %3389 = vmax.xlane.f32.xlu0 %v11543_v33  ;;  %3395 = vmax.xlane.f32.xlu1 %v11555_v48  ;;  %v3683_v37 = vmul.f32 1.442695, %v3533_v10  ;;  %v11601_v38 = vpop.f32.mrf.mxu0 }
 0x60f   : > { %7724 = vmatpush3.bf16.msra.mxu1 %v14391_v13  ;;  %v3550_v17 = vsub.f32 %v14393_v30, %v3334_v23  ;;  %v14394_v13 = vld [vmem:[#allocation54_spill] sm:$0xff]  ;;  %v11596_v30 = vpop.f32.mrf.mxu1 }
 0x610   : > { %7773 = vmatprep.subr.bf16.mxu1 %v11263_v55  ;;  %v3679_v36 = vmul.f32 1.442695, %v3531_v46  ;;  %14396 = vst [vmem:[#allocation75_spill] sm:$0xff] %v11596_v30  ;;  %v11607_v10 = vpop.f32.mrf.mxu0 }
 0x611   : > { %v3328_v18 = vpop.xlane.xlu1 %3327  ;;  %v3717_v23 = vmul.f32 1.442695, %v3550_v17  ;;  %v11603_v49 = vpop.f32.mrf.mxu1 }
 0x612   : > { %v3547_v52 = vsub.f32 %v11220_v56, %v3328_v18  ;;  %v3298_v28 = vpop.xlane.xlu0 %3297  ;;  %3353 = vmax.xlane.f32.xlu0 %v11541_v54  ;;  %3359 = vmax.xlane.f32.xlu1 %v11561_v61  ;;  %8631 = vpow2.f32 %v3679_v36 }
 0x613   : > { %v3532_v58 = vsub.f32 %v14394_v13, %v3298_v28  ;;  %v3715_v28 = vmul.f32 1.442695, %v3549_v57 }
 0x614   : > { %v3711_v46 = vmul.f32 1.442695, %v3547_v52 }
 0x615   : > { %v3681_v26 = vmul.f32 1.442695, %v3532_v58 }
 0x616   : > { %v3330_v56 = vpop.xlane.xlu0 %3329  ;;  %3385 = vmax.xlane.f32.xlu0 %v11549_v42  ;;  %3391 = vmax.xlane.f32.xlu1 %v11565_v2 }
 0x617   : > { %8633 = vpow2.f32 %v3681_v26  ;;  %v3548_v18 = vsub.f32 %v11268_v16, %v3330_v56  ;;  %v11609_v26 = vpop.f32.mrf.mxu1  ;;  %v11613_v16 = vpop.f32.mrf.mxu0 }
 0x618   : > { %8635 = vpow2.f32 %v3683_v37 }
 0x619   : > { %8637 = vpow2.f32 %v3717_v23  ;;  %v3713_v8 = vmul.f32 1.442695, %v3548_v18  ;;  %v11615_v57 = vpop.f32.mrf.mxu1  ;;  %v11627_v58 = vpop.f32.mrf.mxu0 }
 0x61a   : > { %8639 = vpow2.f32 %v3711_v46  ;;  %3363 = vmax.xlane.f32.xlu0 %v11551_v5  ;;  %3403 = vmax.xlane.f32.xlu1 %v11596_v30  ;;  %14397 = vst [vmem:[#allocation68_spill] sm:$0xff] %v11615_v57  ;;  %v11617_v17 = vpop.eup %8629  ;;  %14402 = vst [vmem:[#allocation70_spill] sm:$0xff] %v11627_v58 }
 0x61b   : > { %8641 = vpow2.f32 %v3713_v8  ;;  %14398 = vst [vmem:[#allocation76_spill] sm:$0xff] %v11617_v17  ;;  %v11629_v37 = vpop.f32.mrf.mxu1  ;;  %v11645_v43 = vpop.f32.mrf.mxu0 }
 0x61c   : > { %8643 = vpow2.f32 %v3715_v28  ;;  %14403 = vst [vmem:[#allocation38_spill] sm:$0xff] %v11629_v37  ;;  %14408 = vst [vmem:[#allocation64_spill] sm:$0xff] %v11645_v43 }
 0x61e   : > { %3365 = vmax.xlane.f32.xlu0 %v11571_v29  ;;  %3367 = vmax.xlane.f32.xlu1 %v11601_v38 }
 0x61f   : > { %v11621_v36 = vpop.eup %8631 }
 0x620   : > { %14399 = vst [vmem:[#allocation69_spill] sm:$0xff] %v11621_v36 }
 0x622   : > { %3397 = vmax.xlane.f32.xlu0 %v11576_v31  ;;  %3399 = vmax.xlane.f32.xlu1 %v11603_v49 }
 0x624   : > { %v11623_v52 = vpop.eup %8633 }
 0x625   : > { %14400 = vst [vmem:[#allocation74_spill] sm:$0xff] %v11623_v52  ;;  %v11625_v13 = vpop.eup %8635  ;;  %v4161_v23 = vpack.c.bf16 %v11623_v52, %v11621_v36 }
 0x626   : > { %14401 = vst [vmem:[#allocation66_spill] sm:$0xff] %v11625_v13  ;;  %v11633_v46 = vpop.eup %8637  ;;  %v4162_v56 = vpack.c.bf16 %v11617_v17, %v11625_v13  ;;  %3361 = vmax.xlane.f32.xlu0 %v11583_v21  ;;  %3411 = vmax.xlane.f32.xlu1 %v11629_v37 }
 0x627   : > { %14404 = vst [vmem:[#allocation43_spill] sm:$0xff] %v11633_v46  ;;  %v11639_v18 = vpop.eup %8639  ;;  %7633 = vmatprep.mubr.bf16.mxu0 %v4161_v23  ;;  %v11653_v23 = vpop.f32.mrf.mxu1 }
 0x628   : > { %14405 = vst [vmem:[#allocation57_spill] sm:$0xff] %v11639_v18  ;;  %v11641_v28 = vpop.eup %8641  ;;  %7634 = vmatmul.mubr.bf16.gmra.mxu0 %v4162_v56  ;;  %14409 = vst [vmem:[#allocation62_spill] sm:$0xff] %v11653_v23  ;;  %v11658_v56 = vpop.f32.mrf.mxu0 }
 0x629   : > { %14406 = vst [vmem:[#allocation49_spill] sm:$0xff] %v11641_v28  ;;  %v11643_v8 = vpop.eup %8643  ;;  %v4169_v36 = vpack.c.bf16 %v11641_v28, %v11639_v18 }
 0x62a   : > { %14407 = vst [vmem:[#allocation61_spill] sm:$0xff] %v11643_v8  ;;  %v4170_v13 = vpack.c.bf16 %v11633_v46, %v11643_v8  ;;  %3393 = vmax.xlane.f32.xlu0 %v11587_v7  ;;  %3375 = vmax.xlane.f32.xlu1 %v11645_v43  ;;  %v11661_v18 = vpop.f32.mrf.mxu0  ;;  %v11663_v8 = vpop.f32.mrf.mxu1 }
 0x62b   : > { %7665 = vmatprep.mubr.bf16.mxu1 %v4169_v36 }
 0x62c   : > { %7666 = vmatmul.mubr.bf16.gmra.mxu1 %v4170_v13  ;;  %v11668_v36 = vpop.f32.mrf.mxu1 }
 0x62e   : > { %3371 = vmax.xlane.f32.xlu0 %v11594_v34  ;;  %3407 = vmax.xlane.f32.xlu1 %v11653_v23 }
 0x632   : > { %3373 = vmax.xlane.f32.xlu0 %v11607_v10 }
 0x636   : > { %3405 = vmax.xlane.f32.xlu0 %v11609_v26 }
 0x639   : > { %v11665_v46 = vpop.f32.mrf.mxu0 }
 0x63a   : > { %3369 = vmax.xlane.f32.xlu0 %v11613_v16 }
 0x63b   : > { %v11670_v13 = vpop.f32.mrf.mxu0 }
 0x63c   : > { %14410 = vst [vmem:[#allocation41_spill] sm:$0xff] %v11670_v13 }
 0x63d   : > { %v3308_v28 = vpop.xlane.xlu0 %3307  ;;  %v11672_v17 = vpop.f32.mrf.mxu1 }
 0x63e   : > { %14411 = vst [vmem:[#allocation46_spill] sm:$0xff] %v11672_v17  ;;  %3401 = vmax.xlane.f32.xlu0 %v11615_v57  ;;  %3451 = vmax.xlane.f32.xlu1 %v11672_v17  ;;  %v11678_v11 = vpop.f32.mrf.mxu0  ;;  %v3537_v23 = vsub.f32 %v11373_v59, %v3308_v28 }
 0x63f   : > { %v3340_v52 = vpop.xlane.xlu1 %3339  ;;  %v11676_v25 = vpop.f32.mrf.mxu1 }
 0x640   : > { %v11684_v20 = vpop.f32.mrf.mxu0 }
 0x641   : > { %v3310_v62 = vpop.xlane.xlu0 %3309  ;;  %v11680_v40 = vpop.f32.mrf.mxu1 }
 0x642   : > { %3379 = vmax.xlane.f32.xlu0 %v11627_v58  ;;  %3415 = vmax.xlane.f32.xlu1 %v11670_v13  ;;  %v3538_v22 = vsub.f32 %v11389_v27, %v3310_v62  ;;  %v11693_v58 = vpop.f32.mrf.mxu0 }
 0x643   : > { %v11687_v39 = vpop.f32.mrf.mxu1 }
 0x644   : > { %v3693_v43 = vmul.f32 1.442695, %v3538_v22  ;;  %v3553_v22 = vsub.f32 %v11391_v41, %v3340_v52 }
 0x645   : > { %v3304_v32 = vpop.xlane.xlu1 %3303  ;;  %v11696_v27 = vpop.f32.mrf.mxu1 }
 0x646   : > { %v3535_v17 = vsub.f32 %v11384_v4, %v3304_v32  ;;  %v3342_v37 = vpop.xlane.xlu0 %3341  ;;  %3381 = vmax.xlane.f32.xlu0 %v11658_v56  ;;  %3447 = vmax.xlane.f32.xlu1 %v11676_v25  ;;  %14412 = vst [vmem:[#allocation54_spill] sm:$0xff] %v11696_v27  ;;  %v3691_v4 = vmul.f32 1.442695, %v3537_v23  ;;  %8645 = vpow2.f32 %v3693_v43 }
 0x647   : > { %v3554_v13 = vsub.f32 %v11401_v14, %v3342_v37  ;;  %v11703_v14 = vpop.f32.mrf.mxu0  ;;  %v11708_v41 = vpop.f32.mrf.mxu1 }
 0x648   : > { %v3687_v57 = vmul.f32 1.442695, %v3535_v17  ;;  %14413 = vst [vmem:[#allocation26_spill] sm:$0xff] %v11708_v41 }
 0x649   : > { %v3336_v51 = vpop.xlane.xlu1 %3335  ;;  %v3725_v59 = vmul.f32 1.442695, %v3554_v13 }
 0x64a   : > { %v3551_v62 = vsub.f32 %v11396_v9, %v3336_v51  ;;  %v3306_v30 = vpop.xlane.xlu0 %3305  ;;  %3413 = vmax.xlane.f32.xlu0 %v11663_v8  ;;  %3459 = vmax.xlane.f32.xlu1 %v11696_v27  ;;  %8647 = vpow2.f32 %v3687_v57  ;;  %v3723_v9 = vmul.f32 1.442695, %v3553_v22 }
 0x64b   : > { %v3536_v32 = vsub.f32 %v11418_v1, %v3306_v30 }
 0x64c   : > { %v3719_v17 = vmul.f32 1.442695, %v3551_v62 }
 0x64d   : > { %v3689_v28 = vmul.f32 1.442695, %v3536_v32 }
 0x64e   : > { %v3338_v37 = vpop.xlane.xlu0 %3337  ;;  %3377 = vmax.xlane.f32.xlu0 %v11661_v18  ;;  %3423 = vmax.xlane.f32.xlu1 %v11703_v14 }
 0x64f   : > { %8649 = vpow2.f32 %v3689_v28  ;;  %v3552_v51 = vsub.f32 %v11438_v12, %v3338_v37  ;;  %v14422_v28 = vld [vmem:[#allocation45_spill] sm:$0xff] }
 0x650   : > { %8651 = vpow2.f32 %v3691_v4 }
 0x651   : > { %8653 = vpow2.f32 %v3725_v59  ;;  %v3721_v1 = vmul.f32 1.442695, %v3552_v51 }
 0x652   : > { %8655 = vpow2.f32 %v3719_v17  ;;  %3409 = vmax.xlane.f32.xlu0 %v11668_v36  ;;  %3455 = vmax.xlane.f32.xlu1 %v11708_v41  ;;  %v11744_v17 = vpop.f32.mrf.mxu0 }
 0x653   : > { %8657 = vpow2.f32 %v3721_v1  ;;  %v11713_v43 = vpop.eup %8645 }
 0x654   : > { %8659 = vpow2.f32 %v3723_v9  ;;  %14414 = vst [vmem:[#allocation88_spill] sm:$0xff] %v11713_v43  ;;  %v11746_v51 = vpop.f32.mrf.mxu0 }
 0x656   : > { %3419 = vmax.xlane.f32.xlu0 %v11665_v46 }
 0x657   : > { %v11716_v12 = vpop.eup %8647 }
 0x658   : > { %14415 = vst [vmem:[#allocation89_spill] sm:$0xff] %v11716_v12 }
 0x65a   : > { %3421 = vmax.xlane.f32.xlu0 %v11678_v11 }
 0x65c   : > { %v11718_v30 = vpop.eup %8649 }
 0x65d   : > { %14416 = vst [vmem:[#allocation90_spill] sm:$0xff] %v11718_v30  ;;  %v11720_v57 = vpop.eup %8651  ;;  %v4163_v52 = vpack.c.bf16 %v11718_v30, %v11716_v12 }
 0x65e   : > { %14417 = vst [vmem:[#allocation91_spill] sm:$0xff] %v11720_v57  ;;  %v11724_v23 = vpop.eup %8653  ;;  %v4164_v13 = vpack.c.bf16 %v11713_v43, %v11720_v57  ;;  %3453 = vmax.xlane.f32.xlu0 %v11680_v40 }
 0x65f   : > { %14418 = vst [vmem:[#allocation92_spill] sm:$0xff] %v11724_v23  ;;  %v11729_v62 = vpop.eup %8655  ;;  %7637 = vmatprep.mubr.bf16.mxu0 %v4163_v52  ;;  %v14423_v52 = vld [vmem:[#allocation44_spill] sm:$0xff] }
 0x660   : > { %14419 = vst [vmem:[#allocation93_spill] sm:$0xff] %v11729_v62  ;;  %v11731_v32 = vpop.eup %8657  ;;  %7638 = vmatmul.mubr.bf16.gmra.mxu0 %v4164_v13 }
 0x661   : > { %14420 = vst [vmem:[#allocation94_spill] sm:$0xff] %v11731_v32  ;;  %v11733_v4 = vpop.eup %8659  ;;  %v4171_v22 = vpack.c.bf16 %v11731_v32, %v11729_v62 }
 0x662   : > { %14421 = vst [vmem:[#allocation95_spill] sm:$0xff] %v11733_v4  ;;  %v4172_v59 = vpack.c.bf16 %v11724_v23, %v11733_v4  ;;  %3417 = vmax.xlane.f32.xlu0 %v11684_v20 }
 0x663   : > { %7669 = vmatprep.mubr.bf16.mxu1 %v4171_v22  ;;  %5007 = vrot.lane.b32.xlu1 %v14422_v28, %s9220_s25  ;;  %v11751_v22 = vpop.f32.mrf.mxu0 }
 0x664   : > { %7670 = vmatmul.mubr.bf16.gmra.mxu1 %v4172_v59 }
 0x665   : > { %v11756_v23 = vpop.f32.mrf.mxu0 }
 0x666   : > { %3449 = vmax.xlane.f32.xlu0 %v11687_v39 }
 0x66a   : > { %3427 = vmax.xlane.f32.xlu0 %v11693_v58 }
 0x67b   : > { %v3316_v37 = vpop.xlane.xlu0 %3315 }
 0x67c   : > { %v3541_v4 = vsub.f32 %v11492_v63, %v3316_v37 }
 0x67f   : > { %v3318_v9 = vpop.xlane.xlu0 %3317  ;;  %v3348_v1 = vpop.xlane.xlu1 %3347 }
 0x680   : > { %5136 = vrot.lane.b32.xlu0 %v14423_v52, %s9220_s25  ;;  %v3542_v13 = vsub.f32 %v11501_v53, %v3318_v9  ;;  %v3699_v9 = vmul.f32 1.442695, %v3541_v4  ;;  %v3557_v30 = vsub.f32 %v11503_v24, %v3348_v1 }
 0x682   : > { %v3701_v57 = vmul.f32 1.442695, %v3542_v13 }
 0x683   : > { %v3350_v59 = vpop.xlane.xlu0 %3349  ;;  %v3312_v28 = vpop.xlane.xlu1 %3311 }
 0x684   : > { %v3539_v62 = vsub.f32 %v11497_v35, %v3312_v28  ;;  %v3558_v12 = vsub.f32 %v11515_v60, %v3350_v59  ;;  %8661 = vpow2.f32 %v3701_v57  ;;  %v3731_v59 = vmul.f32 1.442695, %v3557_v30 }
 0x686   : > { %v3695_v32 = vmul.f32 1.442695, %v3539_v62  ;;  %v3733_v63 = vmul.f32 1.442695, %v3558_v12 }
 0x687   : > { %v3314_v43 = vpop.xlane.xlu0 %3313  ;;  %3431 = vmax.xlane.f32.xlu1 %v11756_v23  ;;  %v3344_v52 = vpop.xlane.xlu1 %3343 }
 0x688   : > { %v3540_v53 = vsub.f32 %v11509_v3, %v3314_v43  ;;  %v3555_v27 = vsub.f32 %v11511_v15, %v3344_v52  ;;  %8663 = vpow2.f32 %v3695_v32  ;;  %v14427_v52 = vld [vmem:[#allocation39_spill] sm:$0xff] }
 0x68a   : > { %v3697_v35 = vmul.f32 1.442695, %v3540_v53  ;;  %v3727_v37 = vmul.f32 1.442695, %v3555_v27 }
 0x68b   : > { %v3346_v60 = vpop.xlane.xlu0 %3345  ;;  %v3388_v13 = vpop.xlane.xlu1 %3387 }
 0x68c   : > { %8665 = vpow2.f32 %v3697_v35  ;;  %v3556_v62 = vsub.f32 %v11523_v50, %v3346_v60 }
 0x68d   : > { %8667 = vpow2.f32 %v3699_v9 }
 0x68e   : > { %8669 = vpow2.f32 %v3733_v63  ;;  %v3729_v28 = vmul.f32 1.442695, %v3556_v62 }
 0x68f   : > { %8671 = vpow2.f32 %v3727_v37  ;;  %v3356_v3 = vpop.xlane.xlu0 %3355  ;;  %v3352_v24 = vpop.xlane.xlu1 %3351 }
 0x690   : > { %8673 = vpow2.f32 %v3729_v28  ;;  %v3559_v12 = vsub.f32 %v11525_v47, %v3352_v24  ;;  %v3561_v1 = vsub.f32 %v11517_v44, %v3356_v3 }
 0x691   : > { %8675 = vpow2.f32 %v3731_v59  ;;  %v11764_v57 = vpop.eup %8661 }
 0x692   : > { %14424 = vst [vmem:[#allocation45_spill] sm:$0xff] %v11764_v57  ;;  %v3735_v9 = vmul.f32 1.442695, %v3559_v12  ;;  %v3739_v24 = vmul.f32 1.442695, %v3561_v1 }
 0x693   : > { %v3358_v15 = vpop.xlane.xlu0 %3357  ;;  %v3384_v43 = vpop.xlane.xlu1 %3383 }
 0x694   : > { %v3562_v27 = vsub.f32 %v11529_v45, %v3358_v15  ;;  %v3575_v47 = vsub.f32 %v11537_v19, %v3384_v43  ;;  %v3577_v19 = vsub.f32 %v11531_v0, %v3388_v13  ;;  %8677 = vpow2.f32 %v3735_v9 }
 0x695   : > { %v11767_v50 = vpop.eup %8663 }
 0x696   : > { %14425 = vst [vmem:[#allocation44_spill] sm:$0xff] %v11767_v50  ;;  %v3741_v35 = vmul.f32 1.442695, %v3562_v27  ;;  %v3771_v1 = vmul.f32 1.442695, %v3577_v19 }
 0x697   : > { %v3390_v32 = vpop.xlane.xlu0 %3389  ;;  %v11769_v4 = vpop.xlane.xlu1 %3395 }
 0x698   : > { %5005 = vrot.lane.b32.xlu1 %v14427_v52, %s9220_s25  ;;  %v3578_v37 = vsub.f32 %v11543_v33, %v3390_v32  ;;  %v3767_v33 = vmul.f32 1.442695, %v3575_v47  ;;  %8679 = vpow2.f32 %v3741_v35  ;;  %v11800_v52 = vpop.f32.mrf.mxu1 }
 0x699   : > { %v11771_v30 = vpop.eup %8665  ;;  %14433 = vst [vmem:[#allocation101_spill] sm:$0xff] %v11800_v52 }
 0x69a   : > { %14426 = vst [vmem:[#allocation96_spill] sm:$0xff] %v11771_v30  ;;  %v11776_v53 = vpop.eup %8667  ;;  %v4165_v45 = vpack.c.bf16 %v11771_v30, %v11767_v50  ;;  %v3773_v27 = vmul.f32 1.442695, %v3578_v37 }
 0x69b   : > { %14428 = vst [vmem:[#allocation39_spill] sm:$0xff] %v11776_v53  ;;  %v11781_v63 = vpop.eup %8669  ;;  %v3354_v60 = vpop.xlane.xlu0 %3353  ;;  %v4166_v44 = vpack.c.bf16 %v11764_v57, %v11776_v53 }
 0x69c   : > { %14429 = vst [vmem:[#allocation97_spill] sm:$0xff] %v11781_v63  ;;  %v11786_v62 = vpop.eup %8671  ;;  %v3560_v59 = vsub.f32 %v11541_v54, %v3354_v60  ;;  %v3360_v28 = vpop.xlane.xlu1 %3359  ;;  %7641 = vmatprep.mubr.bf16.mxu0 %v4165_v45 }
 0x69d   : > { %14430 = vst [vmem:[#allocation98_spill] sm:$0xff] %v11786_v62  ;;  %v11789_v3 = vpop.eup %8673  ;;  %7642 = vmatmul.mubr.bf16.gmra.mxu0 %v4166_v44  ;;  %v11803_v45 = vpop.f32.mrf.mxu0  ;;  %v3563_v44 = vsub.f32 %v11561_v61, %v3360_v28 }
 0x69e   : > { %14431 = vst [vmem:[#allocation99_spill] sm:$0xff] %v11789_v3  ;;  %v11792_v15 = vpop.eup %8675  ;;  %v3737_v43 = vmul.f32 1.442695, %v3560_v59  ;;  %v4173_v12 = vpack.c.bf16 %v11789_v3, %v11786_v62  ;;  %v11810_v60 = vpop.f32.mrf.mxu1 }
 0x69f   : > { %14432 = vst [vmem:[#allocation100_spill] sm:$0xff] %v11792_v15  ;;  %v3386_v32 = vpop.xlane.xlu0 %3385  ;;  %3429 = vmax.xlane.f32.xlu0 %v11744_v17  ;;  %v4174_v54 = vpack.c.bf16 %v11781_v63, %v11792_v15  ;;  %v11808_v37 = vpop.f32.mrf.mxu0  ;;  %14434 = vst [vmem:[#allocation102_spill] sm:$0xff] %v11810_v60  ;;  %v3743_v61 = vmul.f32 1.442695, %v3563_v44  ;;  %v3581_v44 = vsub.f32 %v11555_v48, %v11769_v4 }
 0x6a0   : > { %8681 = vpow2.f32 %v3737_v43  ;;  %v3576_v0 = vsub.f32 %v11549_v42, %v3386_v32  ;;  %v3392_v13 = vpop.xlane.xlu1 %3391  ;;  %7673 = vmatprep.mubr.bf16.mxu1 %v4173_v12 }
 0x6a1   : > { %8683 = vpow2.f32 %v3739_v24  ;;  %7674 = vmatmul.mubr.bf16.gmra.mxu1 %v4174_v54  ;;  %v11813_v59 = vpop.eup %8677  ;;  %v3579_v28 = vsub.f32 %v11565_v2, %v3392_v13 }
 0x6a2   : > { %8685 = vpow2.f32 %v3767_v33  ;;  %v3769_v9 = vmul.f32 1.442695, %v3576_v0 }
 0x6a3   : > { %8687 = vpow2.f32 %v3773_v27  ;;  %v3364_v47 = vpop.xlane.xlu0 %3363  ;;  %3461 = vmax.xlane.f32.xlu0 %v11800_v52  ;;  %v11823_v27 = vpop.f32.mrf.mxu0  ;;  %v14451_v52 = vld [vmem:[#allocation60_spill] sm:$0xff] }
 0x6a4   : > { %8689 = vpow2.f32 %v3769_v9  ;;  %v11805_v35 = vpop.xlane.xlu1 %3403  ;;  %v3565_v32 = vsub.f32 %v11551_v5, %v3364_v47 }
 0x6a5   : > { %8691 = vpow2.f32 %v3771_v1  ;;  %v11817_v33 = vpop.eup %8679  ;;  %v11842_v13 = vpop.f32.mrf.mxu0 }
 0x6a6   : > { %v3747_v62 = vmul.f32 1.442695, %v3565_v32  ;;  %8693 = vpow2.f32 %v3743_v61 }
 0x6a7   : > { %v3366_v42 = vpop.xlane.xlu0 %3365  ;;  %3425 = vmax.xlane.f32.xlu0 %v11746_v51  ;;  %v11858_v32 = vpop.f32.mrf.mxu0 }
 0x6a8   : > { %v3566_v19 = vsub.f32 %v11571_v29, %v3366_v42  ;;  %v11819_v43 = vpop.xlane.xlu1 %3367 }
 0x6aa   : > { %v3749_v9 = vmul.f32 1.442695, %v3566_v19 }
 0x6ab   : > { %v3398_v24 = vpop.xlane.xlu0 %3397  ;;  %3457 = vmax.xlane.f32.xlu0 %v11810_v60 }
 0x6ac   : > { %v3582_v42 = vsub.f32 %v11576_v31, %v3398_v24  ;;  %v3775_v31 = vmul.f32 1.442695, %v3579_v28  ;;  %v11848_v24 = vpop.xlane.xlu1 %3399  ;;  %8695 = vpow2.f32 %v3749_v9  ;;  %v14436_v28 = vld [vmem:[#allocation71_spill] sm:$0xff] }
 0x6ad   : > { %v11821_v12 = vpop.eup %8681 }
 0x6ae   : > { %v11826_v54 = vpop.eup %8683  ;;  %v4175_v29 = vpack.c.bf16 %v11821_v12, %v11813_v59 }
 0x6af   : > { %v11831_v0 = vpop.eup %8685  ;;  %v4176_v1 = vpack.c.bf16 %v11817_v33, %v11826_v54  ;;  %v3362_v15 = vpop.xlane.xlu0 %3361  ;;  %3435 = vmax.xlane.f32.xlu0 %v11751_v22 }
 0x6b0   : > { %v11837_v5 = vpop.eup %8687  ;;  %v3564_v47 = vsub.f32 %v11583_v21, %v3362_v15  ;;  %7693 = vmatprep.mubr.bf16.mxu0 %v4175_v29  ;;  %v3781_v15 = vmul.f32 1.442695, %v3582_v42  ;;  %v14435_v29 = vld [vmem:[#allocation77_spill] sm:$0xff]  ;;  %v11864_v9 = vpop.xlane.xlu1 %3411 }
 0x6b1   : > { %v11840_v2 = vpop.eup %8689  ;;  %7694 = vmatmul.mubr.bf16.vlgmr.msra.gmra.mxu0 %v4176_v1  ;;  %v14437_v1 = vld [vmem:[#allocation78_spill] sm:$0xff]  ;;  %v11876_v42 = vpop.f32.mrf.mxu1 }
 0x6b2   : > { %v11846_v19 = vpop.eup %8691  ;;  %v3745_v53 = vmul.f32 1.442695, %v3564_v47  ;;  %7742 = vmatpush3.bf16.msra.mxu0 %v11165_v6  ;;  %v4183_v21 = vpack.c.bf16 %v11840_v2, %v11831_v0  ;;  %v3779_v6 = vmul.f32 1.442695, %v3581_v44  ;;  %v3567_v47 = vsub.f32 %v11601_v38, %v11819_v43 }
 0x6b3   : > { %7743 = vmatprep.subr.bf16.mxu0 %v14435_v29  ;;  %v3394_v50 = vpop.xlane.xlu0 %3393  ;;  %3437 = vmax.xlane.f32.xlu0 %v11803_v45  ;;  %v4184_v48 = vpack.c.bf16 %v11837_v5, %v11846_v19 }
 0x6b4   : > { %8697 = vpow2.f32 %v3745_v53  ;;  %v3580_v4 = vsub.f32 %v11587_v7, %v3394_v50  ;;  %7725 = vmatprep.mubr.bf16.mxu1 %v4183_v21  ;;  %v11867_v7 = vpop.f32.mrf.mxu0  ;;  %v11880_v44 = vpop.xlane.xlu1 %3375 }
 0x6b5   : > { %8699 = vpow2.f32 %v3747_v62  ;;  %7726 = vmatmul.mubr.bf16.vlgmr.msra.gmra.mxu1 %v4184_v48 }
 0x6b6   : > { %8701 = vpow2.f32 %v3775_v31  ;;  %v3777_v61 = vmul.f32 1.442695, %v3580_v4  ;;  %7744 = vmatpush3.bf16.msra.mxu0 %v14435_v29  ;;  %7774 = vmatpush3.bf16.msra.mxu1 %v11263_v55  ;;  %v11871_v50 = vpop.f32.mrf.mxu0  ;;  %v14439_v55 = vld [vmem:[#allocation72_spill] sm:$0xff]  ;;  %v11883_v31 = vpop.eup %8693  ;;  %v14441_v29 = vld [vmem:[#allocation50_spill] sm:$0xff] }
 0x6b7   : > { %8703 = vpow2.f32 %v3781_v15  ;;  %7745 = vmatprep.subr.bf16.mxu0 %v14436_v28  ;;  %7775 = vmatprep.subr.bf16.mxu1 %v14437_v1  ;;  %v3372_v53 = vpop.xlane.xlu0 %3371  ;;  %14438 = vst [vmem:[#allocation77_spill] sm:$0xff] %v11871_v50  ;;  %14440 = vst [vmem:[#allocation71_spill] sm:$0xff] %v11883_v31 }
 0x6b8   : > { %8705 = vpow2.f32 %v3777_v61  ;;  %3433 = vmax.xlane.f32.xlu0 %v11808_v37  ;;  %v11885_v21 = vpop.f32.mrf.mxu0  ;;  %v3569_v38 = vsub.f32 %v11594_v34, %v3372_v53  ;;  %v11897_v61 = vpop.f32.mrf.mxu1  ;;  %v14446_v53 = vld [vmem:[#allocation52_spill] sm:$0xff] }
 0x6b9   : > { %8707 = vpow2.f32 %v3779_v6  ;;  %v11889_v4 = vpop.eup %8695 }
 0x6ba   : > { %7746 = vmatpush3.bf16.msra.mxu0 %v14436_v28  ;;  %7776 = vmatpush3.bf16.msra.mxu1 %v14437_v1  ;;  %14442 = vst [vmem:[#allocation78_spill] sm:$0xff] %v11889_v4  ;;  %v3751_v28 = vmul.f32 1.442695, %v3567_v47  ;;  %v3583_v1 = vsub.f32 %v11603_v49, %v11848_v24  ;;  %v11914_v49 = vpop.xlane.xlu1 %3407 }
 0x6bb   : > { %7747 = vmatprep.subr.bf16.mxu0 %v14439_v55  ;;  %v3374_v62 = vpop.xlane.xlu0 %3373 }
 0x6bc   : > { %3443 = vmax.xlane.f32.xlu0 %v11823_v27  ;;  %3439 = vmax.xlane.f32.xlu1 %v11842_v13  ;;  %v3570_v15 = vsub.f32 %v11607_v10, %v3374_v62  ;;  %v11906_v62 = vpop.f32.mrf.mxu0  ;;  %8709 = vpow2.f32 %v3751_v28  ;;  %v14452_v28 = vld [vmem:[#allocation68_spill] sm:$0xff] }
 0x6be   : > { %7748 = vmatpush3.bf16.msra.mxu0 %v14439_v55  ;;  %v3757_v63 = vmul.f32 1.442695, %v3570_v15  ;;  %v14449_v15 = vld [vmem:[#allocation75_spill] sm:$0xff] }
 0x6bf   : > { %7749 = vmatprep.subr.bf16.mxu0 %v14441_v29  ;;  %v3406_v48 = vpop.xlane.xlu0 %3405 }
 0x6c0   : > { %3445 = vmax.xlane.f32.xlu0 %v11858_v32  ;;  %v3586_v34 = vsub.f32 %v11609_v26, %v3406_v48  ;;  %v3585_v26 = vsub.f32 %v14449_v15, %v11805_v35  ;;  %v3755_v48 = vmul.f32 1.442695, %v3569_v38  ;;  %8711 = vpow2.f32 %v3757_v63 }
 0x6c1   : > { %v11892_v6 = vpop.eup %8697 }
 0x6c2   : > { %14443 = vst [vmem:[#allocation72_spill] sm:$0xff] %v11892_v6  ;;  %v11895_v43 = vpop.eup %8699  ;;  %7750 = vmatpush3.bf16.msra.mxu0 %v14441_v29  ;;  %v4177_v10 = vpack.c.bf16 %v11892_v6, %v11883_v31  ;;  %v11924_v31 = vpop.f32.mrf.mxu1 }
 0x6c3   : > { %14444 = vst [vmem:[#allocation50_spill] sm:$0xff] %v11895_v43  ;;  %v11904_v55 = vpop.eup %8701  ;;  %7751 = vmatprep.subr.bf16.mxu0 %v14446_v53  ;;  %v3370_v3 = vpop.xlane.xlu0 %3369  ;;  %v4178_v47 = vpack.c.bf16 %v11889_v4, %v11895_v43  ;;  %v3783_v43 = vmul.f32 1.442695, %v3583_v1 }
 0x6c4   : > { %14445 = vst [vmem:[#allocation103_spill] sm:$0xff] %v11904_v55  ;;  %v11912_v57 = vpop.eup %8703  ;;  %v3568_v24 = vsub.f32 %v11613_v16, %v3370_v3  ;;  %3441 = vmax.xlane.f32.xlu0 %v11867_v7  ;;  %7697 = vmatprep.mubr.bf16.mxu0 %v4177_v10  ;;  %v11929_v3 = vpop.f32.mrf.mxu0  ;;  %v3789_v10 = vmul.f32 1.442695, %v3586_v34 }
 0x6c5   : > { %14447 = vst [vmem:[#allocation52_spill] sm:$0xff] %v11912_v57  ;;  %v11918_v29 = vpop.eup %8705  ;;  %7698 = vmatmul.mubr.bf16.gmra.mxu0 %v4178_v47 }
 0x6c6   : > { %14448 = vst [vmem:[#allocation104_spill] sm:$0xff] %v11918_v29  ;;  %v11922_v30 = vpop.eup %8707  ;;  %v3753_v41 = vmul.f32 1.442695, %v3568_v24  ;;  %7752 = vmatpush3.bf16.msra.mxu0 %v14446_v53  ;;  %v4185_v16 = vpack.c.bf16 %v11918_v29, %v11904_v55  ;;  %v3787_v53 = vmul.f32 1.442695, %v3585_v26  ;;  %v11938_v24 = vpop.f32.mrf.mxu1  ;;  %v14455_v26 = vld [vmem:[#allocation48_spill] sm:$0xff] }
 0x6c7   : > { %14450 = vst [vmem:[#allocation75_spill] sm:$0xff] %v11922_v30  ;;  %7753 = vmatprep.subr.bf16.mxu0 %v14451_v52  ;;  %v3402_v35 = vpop.xlane.xlu0 %3401  ;;  %v4186_v38 = vpack.c.bf16 %v11912_v57, %v11922_v30  ;;  %v11934_v47 = vpop.xlane.xlu1 %3451  ;;  %14453 = vst [vmem:[#allocation60_spill] sm:$0xff] %v11938_v24  ;;  %v14462_v55 = vld [vmem:[#allocation70_spill] sm:$0xff] }
 0x6c8   : > { %8713 = vpow2.f32 %v3753_v41  ;;  %v3584_v1 = vsub.f32 %v14452_v28, %v3402_v35  ;;  %3483 = vmax.xlane.f32.xlu0 %v11871_v50  ;;  %7729 = vmatprep.mubr.bf16.mxu1 %v4185_v16  ;;  %v11941_v34 = vpop.f32.mrf.mxu0  ;;  %v14454_v41 = vld [vmem:[#allocation63_spill] sm:$0xff] }
 0x6c9   : > { %8715 = vpow2.f32 %v3755_v48  ;;  %7730 = vmatmul.mubr.bf16.gmra.mxu1 %v4186_v38  ;;  %v11958_v28 = vpop.eup %8709 }
 0x6ca   : > { %8717 = vpow2.f32 %v3783_v43  ;;  %v3785_v63 = vmul.f32 1.442695, %v3584_v1  ;;  %7754 = vmatpush3.bf16.msra.mxu0 %v14451_v52  ;;  %v11950_v43 = vpop.f32.mrf.mxu0  ;;  %v14456_v52 = vld [vmem:[#allocation27_spill] sm:$0xff]  ;;  %14458 = vst [vmem:[#allocation68_spill] sm:$0xff] %v11958_v28 }
 0x6cb   : > { %8719 = vpow2.f32 %v3789_v10  ;;  %7755 = vmatprep.subr.bf16.mxu0 %v14454_v41  ;;  %v3380_v15 = vpop.xlane.xlu0 %3379  ;;  %v11944_v35 = vpop.xlane.xlu1 %3415  ;;  %v14457_v10 = vld [vmem:[#allocation64_spill] sm:$0xff] }
 0x6cc   : > { %8721 = vpow2.f32 %v3785_v63  ;;  %3465 = vmax.xlane.f32.xlu0 %v11938_v24  ;;  %v3571_v38 = vsub.f32 %v14457_v10, %v11880_v44  ;;  %v11960_v1 = vpop.f32.mrf.mxu0  ;;  %v3573_v24 = vsub.f32 %v14462_v55, %v3380_v15  ;;  %v14464_v10 = vld [vmem:[#allocation62_spill] sm:$0xff] }
 0x6cd   : > { %8723 = vpow2.f32 %v3787_v53  ;;  %5134 = vrot.lane.b32.xlu1 %v14455_v26, %s9220_s25  ;;  %v3587_v29 = vsub.f32 %v14464_v10, %v11914_v49 }
 0x6ce   : > { %7756 = vmatpush3.bf16.msra.mxu0 %v14454_v41  ;;  %v11963_v41 = vpop.eup %8711  ;;  %v3759_v44 = vmul.f32 1.442695, %v3571_v38  ;;  %v11979_v4 = vpop.f32.mrf.mxu0 }
 0x6cf   : > { %7805 = vmatprep.subr.bf16.mxu0 %v14456_v52  ;;  %v3382_v48 = vpop.xlane.xlu0 %3381  ;;  %v11953_v16 = vpop.xlane.xlu1 %3447  ;;  %14459 = vst [vmem:[#allocation63_spill] sm:$0xff] %v11963_v41 }
 0x6d0   : > { %3485 = vmax.xlane.f32.xlu0 %v11906_v62  ;;  %v3574_v53 = vsub.f32 %v11658_v56, %v3382_v48  ;;  %8725 = vpow2.f32 %v3759_v44  ;;  %v11998_v50 = vpop.f32.mrf.mxu0 }
 0x6d2   : > { %v12006_v44 = vpop.f32.mrf.mxu0 }
 0x6d3   : > { %v3414_v63 = vpop.xlane.xlu0 %3413  ;;  %v11965_v26 = vpop.xlane.xlu1 %3459 }
 0x6d4   : > { %14460 = vst [vmem:[#allocation48_spill] sm:$0xff] %v11965_v26  ;;  %3481 = vmax.xlane.f32.xlu0 %v11929_v3  ;;  %v3765_v26 = vmul.f32 1.442695, %v3574_v53  ;;  %v3590_v60 = vsub.f32 %v11663_v8, %v3414_v63  ;;  %v3791_v63 = vmul.f32 1.442695, %v3587_v29 }
 0x6d5   : > { %v11968_v30 = vpop.eup %8713 }
 0x6d6   : > { %14461 = vst [vmem:[#allocation27_spill] sm:$0xff] %v11968_v30  ;;  %v11971_v57 = vpop.eup %8715  ;;  %v4179_v56 = vpack.c.bf16 %v11968_v30, %v11958_v28  ;;  %v14468_v28 = vld [vmem:[#allocation38_spill] sm:$0xff]  ;;  %v3763_v30 = vmul.f32 1.442695, %v3573_v24  ;;  %8727 = vpow2.f32 %v3765_v26 }
 0x6d7   : > { %14463 = vst [vmem:[#allocation64_spill] sm:$0xff] %v11971_v57  ;;  %v11977_v48 = vpop.eup %8717  ;;  %v3378_v6 = vpop.xlane.xlu0 %3377  ;;  %v4180_v55 = vpack.c.bf16 %v11963_v41, %v11971_v57  ;;  %v3589_v53 = vsub.f32 %v14468_v28, %v11864_v9 }
 0x6d8   : > { %14465 = vst [vmem:[#allocation70_spill] sm:$0xff] %v11977_v48  ;;  %v11984_v15 = vpop.eup %8719  ;;  %v11986_v38 = vpop.xlane.xlu1 %3423  ;;  %v3572_v49 = vsub.f32 %v11661_v18, %v3378_v6  ;;  %3491 = vmax.xlane.f32.xlu0 %v11941_v34  ;;  %7701 = vmatprep.mubr.bf16.mxu0 %v4179_v56  ;;  %v3797_v18 = vmul.f32 1.442695, %v3590_v60 }
 0x6d9   : > { %14466 = vst [vmem:[#allocation62_spill] sm:$0xff] %v11984_v15  ;;  %v11990_v10 = vpop.eup %8721  ;;  %7702 = vmatmul.mubr.bf16.gmra.mxu0 %v4180_v55  ;;  %v3795_v29 = vmul.f32 1.442695, %v3589_v53 }
 0x6da   : > { %14467 = vst [vmem:[#allocation105_spill] sm:$0xff] %v11990_v10  ;;  %v11994_v8 = vpop.eup %8723  ;;  %v3761_v57 = vmul.f32 1.442695, %v3572_v49  ;;  %v4187_v41 = vpack.c.bf16 %v11990_v10, %v11977_v48 }
 0x6db   : > { %14469 = vst [vmem:[#allocation38_spill] sm:$0xff] %v11994_v8  ;;  %v3410_v6 = vpop.xlane.xlu0 %3409  ;;  %v4188_v56 = vpack.c.bf16 %v11984_v15, %v11994_v8 }
 0x6dc   : > { %8729 = vpow2.f32 %v3761_v57  ;;  %v12002_v9 = vpop.xlane.xlu1 %3455  ;;  %v3588_v24 = vsub.f32 %v11668_v36, %v3410_v6  ;;  %3493 = vmax.xlane.f32.xlu0 %v11960_v1  ;;  %7733 = vmatprep.mubr.bf16.mxu1 %v4187_v41  ;;  %v12009_v36 = vpop.f32.mrf.mxu0 }
 0x6dd   : > { %8731 = vpow2.f32 %v3763_v30  ;;  %7734 = vmatmul.mubr.bf16.gmra.mxu1 %v4188_v56  ;;  %v14470_v30 = vld [vmem:[#allocation41_spill] sm:$0xff]  ;;  %v12014_v55 = vpop.eup %8725 }
 0x6de   : > { %8733 = vpow2.f32 %v3791_v63  ;;  %v3793_v28 = vmul.f32 1.442695, %v3588_v24  ;;  %v3591_v41 = vsub.f32 %v14470_v30, %v11944_v35  ;;  %14471 = vst [vmem:[#allocation41_spill] sm:$0xff] %v12014_v55  ;;  %v12016_v49 = vpop.f32.mrf.mxu0 }
 0x6df   : > { %8735 = vpow2.f32 %v3797_v18  ;;  %v3420_v60 = vpop.xlane.xlu0 %3419 }
 0x6e0   : > { %8737 = vpow2.f32 %v3793_v28  ;;  %v5008_v26 = vpop.permute.xlu1 %5007  ;;  %3489 = vmax.xlane.f32.xlu0 %v11979_v4  ;;  %v3593_v56 = vsub.f32 %v11665_v46, %v3420_v60 }
 0x6e1   : > { %8739 = vpow2.f32 %v3795_v29  ;;  %7777 = vmatprep.subr.bf16.mxu1 %v5008_v26  ;;  %v3799_v29 = vmul.f32 1.442695, %v3591_v41 }
 0x6e2   : > { %7778 = vmatpush3.bf16.msra.mxu1 %v5008_v26  ;;  %v3803_v41 = vmul.f32 1.442695, %v3593_v56 }
 0x6e3   : > { %v3422_v57 = vpop.xlane.xlu0 %3421  ;;  %v12021_v18 = vpop.eup %8727  ;;  %8741 = vpow2.f32 %v3799_v29 }
 0x6e4   : > { %3469 = vmax.xlane.f32.xlu0 %v11924_v31  ;;  %v3594_v53 = vsub.f32 %v11678_v11, %v3422_v57  ;;  %14472 = vst [vmem:[#allocation106_spill] sm:$0xff] %v12021_v18  ;;  %v3607_v11 = vsub.f32 %v11676_v25, %v11953_v16 }
 0x6e6   : > { %v3805_v26 = vmul.f32 1.442695, %v3594_v53  ;;  %v3831_v53 = vmul.f32 1.442695, %v3607_v11 }
 0x6e7   : > { %v12019_v63 = vpop.xlane.xlu0 %3453 }
 0x6e8   : > { %3497 = vmax.xlane.f32.xlu0 %v12016_v49  ;;  %8743 = vpow2.f32 %v3805_v26 }
 0x6e9   : > { %v12024_v6 = vpop.eup %8729 }
 0x6ea   : > { %14473 = vst [vmem:[#allocation107_spill] sm:$0xff] %v12024_v6  ;;  %v12027_v24 = vpop.eup %8731  ;;  %v4181_v35 = vpack.c.bf16 %v12024_v6, %v12014_v55 }
 0x6eb   : > { %14474 = vst [vmem:[#allocation108_spill] sm:$0xff] %v12027_v24  ;;  %v12031_v28 = vpop.eup %8733  ;;  %v3418_v57 = vpop.xlane.xlu0 %3417  ;;  %v4182_v30 = vpack.c.bf16 %v12021_v18, %v12027_v24 }
 0x6ec   : > { %14475 = vst [vmem:[#allocation109_spill] sm:$0xff] %v12031_v28  ;;  %v12037_v8 = vpop.eup %8735  ;;  %v3592_v46 = vsub.f32 %v11684_v20, %v3418_v57  ;;  %3499 = vmax.xlane.f32.xlu0 %v11998_v50  ;;  %7705 = vmatprep.mubr.bf16.mxu0 %v4181_v35 }
 0x6ed   : > { %14476 = vst [vmem:[#allocation110_spill] sm:$0xff] %v12037_v8  ;;  %v12041_v60 = vpop.eup %8737  ;;  %7706 = vmatmul.mubr.bf16.gmra.mxu0 %v4182_v30 }
 0x6ee   : > { %14477 = vst [vmem:[#allocation111_spill] sm:$0xff] %v12041_v60  ;;  %v12043_v55 = vpop.eup %8739  ;;  %v3801_v25 = vmul.f32 1.442695, %v3592_v46  ;;  %v4189_v16 = vpack.c.bf16 %v12041_v60, %v12031_v28 }
 0x6ef   : > { %14478 = vst [vmem:[#allocation112_spill] sm:$0xff] %v12043_v55  ;;  %v3450_v24 = vpop.xlane.xlu0 %3449  ;;  %v4190_v20 = vpack.c.bf16 %v12037_v8, %v12043_v55 }
 0x6f0   : > { %8745 = vpow2.f32 %v3801_v25  ;;  %v3608_v35 = vsub.f32 %v11687_v39, %v3450_v24  ;;  %3501 = vmax.xlane.f32.xlu0 %v12009_v36  ;;  %7737 = vmatprep.mubr.bf16.mxu1 %v4189_v16  ;;  %v12054_v29 = vpop.eup %8741  ;;  %v14479_v16 = vld [vmem:[#allocation79_spill] sm:$0xff] }
 0x6f1   : > { %8747 = vpow2.f32 %v3803_v41  ;;  %7738 = vmatmul.mubr.bf16.gmra.mxu1 %v4190_v20  ;;  %3479 = vmax.xlane.f32.xlu1 %v11885_v21  ;;  %v14480_v20 = vld [vmem:[#allocation37_spill] sm:$0xff] }
 0x6f2   : > { %v3833_v56 = vmul.f32 1.442695, %v3608_v35  ;;  %8749 = vpow2.f32 %v3831_v53 }
 0x6f3   : > { %v3428_v46 = vpop.xlane.xlu0 %3427 }
 0x6f4   : > { %8751 = vpow2.f32 %v3833_v56  ;;  %v14481_v56 = vld [vmem:[#allocation34_spill] sm:$0xff]  ;;  %v3597_v18 = vsub.f32 %v11693_v58, %v3428_v46 }
 0x6f5   : > { %3463 = vmax.xlane.f32.xlu1 %v11897_v61  ;;  %v12056_v11 = vpop.eup %8743 }
 0x6f7   : > { %v5137_v53 = vpop.permute.xlu0 %5136 }
 0x6f9   : > { %3487 = vmax.xlane.f32.xlu1 %v11950_v43 }
 0x6fd   : > { %v12058_v26 = vpop.eup %8745  ;;  %3467 = vmax.xlane.f32.xlu1 %v11876_v42 }
 0x6fe   : > { %v12060_v39 = vpop.eup %8747  ;;  %v4191_v24 = vpack.c.bf16 %v12058_v26, %v12054_v29 }
 0x6ff   : > { %v4192_v57 = vpack.c.bf16 %v12056_v11, %v12060_v39  ;;  %v12067_v30 = vpop.eup %8749 }
 0x700   : > { %7757 = vmatprep.mubr.bf16.mxu0 %v4191_v24 }
 0x701   : > { %v12069_v41 = vpop.eup %8751  ;;  %7758 = vmatmul.mubr.bf16.vlgmr.msra.gmra.mxu0 %v4192_v57  ;;  %3495 = vmax.xlane.f32.xlu1 %v12006_v44  ;;  %v12083_v57 = vpop.f32.mrf.mxu1 }
 0x702   : > { %7806 = vmatpush3.bf16.msra.mxu0 %v14456_v52  ;;  %v4199_v25 = vpack.c.bf16 %v12069_v41, %v12067_v30  ;;  %v14482_v52 = vld [vmem:[#allocation47_spill] sm:$0xff] }
 0x703   : > { %7807 = vmatprep.subr.bf16.mxu0 %v14479_v16 }
 0x704   : > { %7789 = vmatprep.mubr.bf16.mxu1 %v4199_v25  ;;  %v14483_v25 = vld [vmem:[#allocation40_spill] sm:$0xff] }
 0x706   : > { %7808 = vmatpush3.bf16.msra.mxu0 %v14479_v16  ;;  %5132 = vrot.lane.b32.xlu0 %v14480_v20, %s9220_s25  ;;  %v12087_v16 = vpop.f32.mrf.mxu1 }
 0x707   : > { %7809 = vmatprep.subr.bf16.mxu0 %v5137_v53 }
 0x708   : > { %v12089_v20 = vpop.f32.mrf.mxu1 }
 0x709   : > { %14484 = vst [vmem:[#allocation79_spill] sm:$0xff] %v12089_v20 }
 0x70a   : > { %7810 = vmatpush3.bf16.msra.mxu0 %v5137_v53  ;;  %v12091_v53 = vpop.f32.mrf.mxu0  ;;  %v12093_v55 = vpop.f32.mrf.mxu1 }
 0x710   : > { %v3432_v35 = vpop.xlane.xlu1 %3431 }
 0x711   : > { %v3599_v58 = vsub.f32 %v11756_v23, %v3432_v35 }
 0x712   : > { %5003 = vrot.lane.b32.xlu1 %v14481_v56, %s9220_s25  ;;  %v12095_v56 = vpop.f32.mrf.mxu0 }
 0x714   : > { %v5006_v24 = vpop.permute.xlu1 %5005 }
 0x715   : > { %7779 = vmatprep.subr.bf16.mxu1 %v5006_v24 }
 0x716   : > { %7780 = vmatpush3.bf16.msra.mxu1 %v5006_v24  ;;  %5001 = vrot.lane.b32.xlu1 %v14482_v52, %s9220_s25  ;;  %v12098_v24 = vpop.f32.mrf.mxu0 }
 0x718   : > { %v12103_v28 = vpop.f32.mrf.mxu0 }
 0x71a   : > { %5130 = vrot.lane.b32.xlu1 %v14483_v25, %s9220_s25  ;;  %v3595_v25 = vsub.f32 %v11703_v14, %v11986_v38 }
 0x71c   : > { %v3807_v6 = vmul.f32 1.442695, %v3595_v25 }
 0x71e   : > { %8753 = vpow2.f32 %v3807_v6 }
 0x725   : > { %3473 = vmax.xlane.f32.xlu0 %v12093_v55 }
 0x728   : > { %v3430_v52 = vpop.xlane.xlu0 %3429 }
 0x729   : > { %3477 = vmax.xlane.f32.xlu0 %v12089_v20  ;;  %v3598_v8 = vsub.f32 %v11744_v17, %v3430_v52  ;;  %v3811_v20 = vmul.f32 1.442695, %v3597_v18 }
 0x72b   : > { %v3813_v48 = vmul.f32 1.442695, %v3598_v8 }
 0x72c   : > { %v12106_v60 = vpop.xlane.xlu0 %3461 }
 0x72d   : > { %3505 = vmax.xlane.f32.xlu0 %v12103_v28  ;;  %8755 = vpow2.f32 %v3813_v48 }
 0x730   : > { %v3426_v15 = vpop.xlane.xlu0 %3425 }
 0x731   : > { %v3596_v10 = vsub.f32 %v11746_v51, %v3426_v15  ;;  %3507 = vmax.xlane.f32.xlu0 %v12091_v53  ;;  %v12119_v15 = vpop.eup %8753 }
 0x733   : > { %v3809_v14 = vmul.f32 1.442695, %v3596_v10  ;;  %v3815_v10 = vmul.f32 1.442695, %v3599_v58 }
 0x734   : > { %v12112_v38 = vpop.xlane.xlu0 %3457 }
 0x735   : > { %8757 = vpow2.f32 %v3809_v14  ;;  %3509 = vmax.xlane.f32.xlu0 %v12098_v24 }
 0x736   : > { %8759 = vpow2.f32 %v3811_v20 }
 0x737   : > { %8761 = vpow2.f32 %v3815_v10  ;;  %v14485_v10 = vld [vmem:[#allocation29_spill] sm:$0xff] }
 0x738   : > { %v3436_v17 = vpop.xlane.xlu0 %3435 }
 0x739   : > { %v3601_v51 = vsub.f32 %v11751_v22, %v3436_v17 }
 0x73a   : > { %v12121_v48 = vpop.eup %8755 }
 0x73b   : > { %v3819_v23 = vmul.f32 1.442695, %v3601_v51 }
 0x73c   : > { %v3438_v46 = vpop.xlane.xlu0 %3437 }
 0x73d   : > { %v3602_v8 = vsub.f32 %v11803_v45, %v3438_v46 }
 0x73e   : > { %3471 = vmax.xlane.f32.xlu1 %v12087_v16 }
 0x73f   : > { %v3821_v18 = vmul.f32 1.442695, %v3602_v8 }
 0x741   : > { %v3434_v6 = vpop.xlane.xlu0 %3433  ;;  %8763 = vpow2.f32 %v3821_v18 }
 0x742   : > { %v12123_v52 = vpop.eup %8757  ;;  %v3600_v20 = vsub.f32 %v11808_v37, %v3434_v6  ;;  %3475 = vmax.xlane.f32.xlu1 %v12083_v57 }
 0x743   : > { %v12126_v25 = vpop.eup %8759  ;;  %v4193_v22 = vpack.c.bf16 %v12123_v52, %v12119_v15 }
 0x744   : > { %v3817_v45 = vmul.f32 1.442695, %v3600_v20  ;;  %v4194_v35 = vpack.c.bf16 %v12121_v48, %v12126_v25 }
 0x745   : > { %v3444_v14 = vpop.xlane.xlu0 %3443  ;;  %7761 = vmatprep.mubr.bf16.mxu0 %v4193_v22  ;;  %v3440_v17 = vpop.xlane.xlu1 %3439 }
 0x746   : > { %8765 = vpow2.f32 %v3817_v45  ;;  %7762 = vmatmul.mubr.bf16.gmra.mxu0 %v4194_v35  ;;  %3503 = vmax.xlane.f32.xlu1 %v12095_v56  ;;  %v3603_v37 = vsub.f32 %v11842_v13, %v3440_v17  ;;  %v3605_v51 = vsub.f32 %v11823_v27, %v3444_v14  ;;  %v12140_v13 = vpop.eup %8761 }
 0x747   : > { %8767 = vpow2.f32 %v3819_v23  ;;  %14486 = vst [vmem:[#allocation37_spill] sm:$0xff] %v12140_v13 }
 0x748   : > { %v3823_v18 = vmul.f32 1.442695, %v3603_v37  ;;  %v3827_v22 = vmul.f32 1.442695, %v3605_v51 }
 0x749   : > { %v3446_v58 = vpop.xlane.xlu0 %3445  ;;  %v5135_v46 = vpop.permute.xlu1 %5134 }
 0x74a   : > { %v3606_v8 = vsub.f32 %v11858_v32, %v3446_v58  ;;  %7811 = vmatprep.subr.bf16.mxu0 %v5135_v46  ;;  %8769 = vpow2.f32 %v3823_v18  ;;  %v14490_v58 = vld [vmem:[#allocation32_spill] sm:$0xff] }
 0x74b   : > { %5128 = vrot.lane.b32.xlu0 %v14485_v10, %s9220_s25  ;;  %7812 = vmatpush3.bf16.msra.mxu0 %v5135_v46 }
 0x74c   : > { %v3829_v6 = vmul.f32 1.442695, %v3606_v8  ;;  %v14491_v8 = vld [vmem:[#allocation55_spill] sm:$0xff] }
 0x74d   : > { %v3442_v20 = vpop.xlane.xlu0 %3441 }
 0x74e   : > { %v3604_v23 = vsub.f32 %v11867_v7, %v3442_v20  ;;  %8771 = vpow2.f32 %v3829_v6  ;;  %v12144_v32 = vpop.eup %8763 }
 0x74f   : > { %14487 = vst [vmem:[#allocation34_spill] sm:$0xff] %v12144_v32 }
 0x750   : > { %v3825_v45 = vmul.f32 1.442695, %v3604_v23  ;;  %v14496_v23 = vld [vmem:[#allocation80_spill] sm:$0xff] }
 0x751   : > { %v12142_v35 = vpop.xlane.xlu0 %3483 }
 0x752   : > { %8773 = vpow2.f32 %v3825_v45 }
 0x753   : > { %v12146_v27 = vpop.eup %8765  ;;  %8775 = vpow2.f32 %v3827_v22 }
 0x754   : > { %14488 = vst [vmem:[#allocation47_spill] sm:$0xff] %v12146_v27  ;;  %v12148_v14 = vpop.eup %8767  ;;  %v4195_v17 = vpack.c.bf16 %v12146_v27, %v12140_v13  ;;  %v14498_v13 = vld [vmem:[#allocation51_spill] sm:$0xff] }
 0x755   : > { %14489 = vst [vmem:[#allocation40_spill] sm:$0xff] %v12148_v14  ;;  %v12152_v7 = vpop.xlane.xlu0 %3465  ;;  %v4196_v37 = vpack.c.bf16 %v12144_v32, %v12148_v14  ;;  %v14500_v32 = vld [vmem:[#allocation53_spill] sm:$0xff] }
 0x756   : > { %7765 = vmatprep.mubr.bf16.mxu0 %v4195_v17 }
 0x757   : > { %7766 = vmatmul.mubr.bf16.gmra.mxu0 %v4196_v37  ;;  %4999 = vrot.lane.b32.xlu1 %v14490_v58, %s9220_s25  ;;  %v12160_v51 = vpop.eup %8769 }
 0x758   : > { %14492 = vst [vmem:[#allocation29_spill] sm:$0xff] %v12160_v51 }
 0x759   : > { %v3486_v46 = vpop.xlane.xlu0 %3485 }
 0x75b   : > { %4997 = vrot.lane.b32.xlu1 %v14491_v8, %s9220_s25  ;;  %v12162_v18 = vpop.eup %8771  ;;  %v14497_v8 = vld [vmem:[#allocation65_spill] sm:$0xff] }
 0x75c   : > { %14493 = vst [vmem:[#allocation32_spill] sm:$0xff] %v12162_v18 }
 0x75d   : > { %v3482_v10 = vpop.xlane.xlu0 %3481 }
 0x75f   : > { %v12164_v6 = vpop.eup %8773  ;;  %5126 = vrot.lane.b32.xlu1 %v14496_v23, %s9220_s25 }
 0x760   : > { %14494 = vst [vmem:[#allocation55_spill] sm:$0xff] %v12164_v6  ;;  %v12166_v20 = vpop.eup %8775  ;;  %v4197_v22 = vpack.c.bf16 %v12164_v6, %v12160_v51  ;;  %v14499_v51 = vld [vmem:[#allocation58_spill] sm:$0xff] }
 0x761   : > { %14495 = vst [vmem:[#allocation113_spill] sm:$0xff] %v12166_v20  ;;  %v12172_v45 = vpop.xlane.xlu0 %3491  ;;  %v4198_v17 = vpack.c.bf16 %v12162_v18, %v12166_v20 }
 0x762   : > { %7769 = vmatprep.mubr.bf16.mxu0 %v4197_v22  ;;  %v3624_v22 = vsub.f32 %v11929_v3, %v3482_v10  ;;  %v3610_v3 = vsub.f32 %v11680_v40, %v12019_v63  ;;  %v14501_v10 = vld [vmem:[#allocation56_spill] sm:$0xff] }
 0x763   : > { %7770 = vmatmul.mubr.bf16.gmra.mxu0 %v4198_v17 }
 0x764   : > { %v3865_v20 = vmul.f32 1.442695, %v3624_v22 }
 0x765   : > { %v12176_v37 = vpop.xlane.xlu0 %3493 }
 0x766   : > { %8777 = vpow2.f32 %v3865_v20 }
 0x769   : > { %v12178_v58 = vpop.xlane.xlu0 %3489 }
 0x76a   : > { %3929 = vadd.xlane.f32.xlu0 %v14497_v8 }
 0x76d   : > { %v12181_v14 = vpop.xlane.xlu0 %3469 }
 0x76e   : > { %3933 = vadd.xlane.f32.xlu0 %v14498_v13 }
 0x771   : > { %v12184_v23 = vpop.xlane.xlu0 %3497 }
 0x772   : > { %3961 = vadd.xlane.f32.xlu0 %v14499_v51 }
 0x773   : > { %v8778_v63 = vpop.eup %8777 }
 0x775   : > { %v12187_v6 = vpop.xlane.xlu0 %3499 }
 0x776   : > { %3965 = vadd.xlane.f32.xlu0 %v14500_v32  ;;  %v3837_v32 = vmul.f32 1.442695, %v3610_v3 }
 0x779   : > { %v12191_v17 = vpop.xlane.xlu0 %3501 }
 0x77a   : > { %3993 = vadd.xlane.f32.xlu0 %v11821_v12  ;;  %v3480_v8 = vpop.xlane.xlu1 %3479 }
 0x77b   : > { %v3623_v18 = vsub.f32 %v11885_v21, %v3480_v8  ;;  %v14504_v8 = vld [vmem:[#allocation87_spill] sm:$0xff] }
 0x77d   : > { %v5133_v27 = vpop.permute.xlu0 %5132  ;;  %v3863_v13 = vmul.f32 1.442695, %v3623_v18  ;;  %v14502_v18 = vld [vmem:[#allocation73_spill] sm:$0xff] }
 0x77e   : > { %7813 = vmatprep.subr.bf16.mxu0 %v5133_v27  ;;  %3997 = vadd.xlane.f32.xlu0 %v11817_v33  ;;  %v12196_v51 = vpop.xlane.xlu1 %3463  ;;  %v3626_v33 = vsub.f32 %v11906_v62, %v3486_v46  ;;  %v14505_v46 = vld [vmem:[#allocation46_spill] sm:$0xff] }
 0x77f   : > { %7814 = vmatpush3.bf16.msra.mxu0 %v5133_v27  ;;  %8779 = vpow2.f32 %v3863_v13  ;;  %v14503_v27 = vld [vmem:[#allocation33_spill] sm:$0xff]  ;;  %v3609_v13 = vsub.f32 %v14505_v46, %v11934_v47 }
 0x780   : > { %8781 = vpow2.f32 %v3837_v32  ;;  %v14507_v32 = vld [vmem:[#allocation77_spill] sm:$0xff] }
 0x782   : > { %4025 = vadd.xlane.f32.xlu0 %v11840_v2  ;;  %v12201_v12 = vpop.xlane.xlu1 %3487  ;;  %v3869_v2 = vmul.f32 1.442695, %v3626_v33  ;;  %v14509_v33 = vld [vmem:[#allocation49_spill] sm:$0xff] }
 0x783   : > { %3927 = vadd.xlane.f32.xlu1 %v14501_v10  ;;  %v14508_v10 = vld [vmem:[#allocation76_spill] sm:$0xff] }
 0x784   : > { %8783 = vpow2.f32 %v3869_v2  ;;  %v14513_v2 = vld [vmem:[#allocation78_spill] sm:$0xff] }
 0x786   : > { %4029 = vadd.xlane.f32.xlu0 %v11837_v5  ;;  %v12205_v21 = vpop.xlane.xlu1 %3467 }
 0x787   : > { %3931 = vadd.xlane.f32.xlu1 %v14502_v18 }
 0x78a   : > { %4057 = vadd.xlane.f32.xlu0 %v12058_v26  ;;  %v12210_v40 = vpop.xlane.xlu1 %3495 }
 0x78b   : > { %3959 = vadd.xlane.f32.xlu1 %v14503_v27 }
 0x78c   : > { %v8780_v20 = vpop.eup %8779 }
 0x78d   : > { %v4207_v22 = vpack.c.bf16 %v8778_v63, %v8780_v20  ;;  %v12216_v26 = vpop.eup %8781 }
 0x78e   : > { %4061 = vadd.xlane.f32.xlu0 %v12056_v11  ;;  %v5004_v5 = vpop.permute.xlu1 %5003 }
 0x78f   : > { %7781 = vmatprep.subr.bf16.mxu1 %v5004_v5  ;;  %7821 = vmatprep.mubr.bf16.mxu0 %v4207_v22  ;;  %v14514_v22 = vld [vmem:[#allocation101_spill] sm:$0xff] }
 0x790   : > { %3963 = vadd.xlane.f32.xlu1 %v14504_v8  ;;  %7782 = vmatpush3.bf16.msra.mxu1 %v5004_v5  ;;  %v3614_v5 = vsub.f32 %v14514_v22, %v12106_v60  ;;  %v3630_v60 = vsub.f32 %v11960_v1, %v12176_v37  ;;  %v3627_v37 = vsub.f32 %v11950_v43, %v12201_v12  ;;  %v14525_v43 = vld [vmem:[#allocation60_spill] sm:$0xff] }
 0x791   : > { %v12223_v3 = vpop.eup %8783  ;;  %v3616_v12 = vsub.f32 %v14525_v43, %v12152_v7  ;;  %v3632_v7 = vsub.f32 %v12016_v49, %v12184_v23 }
 0x792   : > { %4089 = vadd.xlane.f32.xlu0 %v12069_v41  ;;  %v5002_v62 = vpop.permute.xlu1 %5001  ;;  %v3835_v41 = vmul.f32 1.442695, %v3609_v13  ;;  %v3845_v46 = vmul.f32 1.442695, %v3614_v5  ;;  %v14517_v13 = vld [vmem:[#allocation52_spill] sm:$0xff]  ;;  %v14524_v5 = vld [vmem:[#allocation71_spill] sm:$0xff] }
 0x793   : > { %7783 = vmatprep.subr.bf16.mxu1 %v5002_v62  ;;  %v3871_v22 = vmul.f32 1.442695, %v3627_v37  ;;  %v3881_v49 = vmul.f32 1.442695, %v3632_v7 }
 0x794   : > { %3991 = vadd.xlane.f32.xlu1 %v11813_v59  ;;  %7784 = vmatpush3.bf16.msra.mxu1 %v5002_v62  ;;  %v14506_v59 = vld [vmem:[#allocation74_spill] sm:$0xff]  ;;  %8785 = vpow2.f32 %v3835_v41  ;;  %v14515_v62 = vld [vmem:[#allocation104_spill] sm:$0xff] }
 0x796   : > { %4093 = vadd.xlane.f32.xlu0 %v12216_v26  ;;  %v5131_v11 = vpop.permute.xlu1 %5130 }
 0x797   : > { %7815 = vmatprep.subr.bf16.mxu0 %v5131_v11 }
 0x798   : > { %3995 = vadd.xlane.f32.xlu1 %v11826_v54  ;;  %7816 = vmatpush3.bf16.msra.mxu0 %v5131_v11  ;;  %v3625_v54 = vsub.f32 %v14507_v32, %v12142_v35  ;;  %v14511_v35 = vld [vmem:[#allocation72_spill] sm:$0xff]  ;;  %v14518_v32 = vld [vmem:[#allocation66_spill] sm:$0xff] }
 0x79a   : > { %4121 = vadd.xlane.f32.xlu0 %v8778_v63  ;;  %v3867_v47 = vmul.f32 1.442695, %v3625_v54  ;;  %v14512_v63 = vld [vmem:[#allocation102_spill] sm:$0xff] }
 0x79c   : > { %4023 = vadd.xlane.f32.xlu1 %v11831_v0  ;;  %8787 = vpow2.f32 %v3867_v47  ;;  %v14510_v0 = vld [vmem:[#allocation43_spill] sm:$0xff] }
 0x79e   : > { %4125 = vadd.xlane.f32.xlu0 %v12223_v3 }
 0x7a0   : > { %4027 = vadd.xlane.f32.xlu1 %v11846_v19 }
 0x7a1   : > { %v12239_v18 = vpop.eup %8785 }
 0x7a2   : > { %3937 = vadd.xlane.f32.xlu0 %v14506_v59 }
 0x7a4   : > { %4055 = vadd.xlane.f32.xlu1 %v12054_v29 }
 0x7a6   : > { %3941 = vadd.xlane.f32.xlu0 %v14508_v10  ;;  %v3877_v10 = vmul.f32 1.442695, %v3630_v60 }
 0x7a8   : > { %4059 = vadd.xlane.f32.xlu1 %v12060_v39  ;;  %v3612_v39 = vsub.f32 %v14512_v63, %v12112_v38  ;;  %v3628_v38 = vsub.f32 %v11979_v4, %v12178_v58  ;;  %v14519_v4 = vld [vmem:[#allocation57_spill] sm:$0xff]  ;;  %v14520_v58 = vld [vmem:[#allocation26_spill] sm:$0xff] }
 0x7a9   : > { %v3611_v47 = vsub.f32 %v14520_v58, %v12002_v9  ;;  %v14528_v58 = vld [vmem:[#allocation75_spill] sm:$0xff] }
 0x7aa   : > { %3969 = vadd.xlane.f32.xlu0 %v14509_v33  ;;  %v3841_v8 = vmul.f32 1.442695, %v3612_v39  ;;  %v3873_v59 = vmul.f32 1.442695, %v3628_v38  ;;  %v14523_v39 = vld [vmem:[#allocation54_spill] sm:$0xff]  ;;  %v3631_v38 = vsub.f32 %v12006_v44, %v12210_v40  ;;  %v3618_v44 = vsub.f32 %v11924_v31, %v12181_v14 }
 0x7ab   : > { %v3634_v31 = vsub.f32 %v12009_v36, %v12191_v17  ;;  %v4200_v36 = vpack.c.bf16 %v12216_v26, %v12239_v18 }
 0x7ac   : > { %4087 = vadd.xlane.f32.xlu1 %v12067_v30  ;;  %v12250_v30 = vpop.eup %8787  ;;  %8789 = vpow2.f32 %v3841_v8  ;;  %v3629_v8 = vsub.f32 %v11941_v34, %v12172_v45  ;;  %v3617_v34 = vsub.f32 %v11876_v42, %v12205_v21  ;;  %v3879_v40 = vmul.f32 1.442695, %v3631_v38 }
 0x7ad   : > { %8791 = vpow2.f32 %v3845_v46 }
 0x7ae   : > { %3973 = vadd.xlane.f32.xlu0 %v14510_v0  ;;  %v12237_v19 = vpop.xlane.xlu0 %3473  ;;  %8793 = vpow2.f32 %v3873_v59  ;;  %v3839_v0 = vmul.f32 1.442695, %v3611_v47  ;;  %v3875_v45 = vmul.f32 1.442695, %v3629_v8  ;;  %v3851_v23 = vmul.f32 1.442695, %v3617_v34 }
 0x7af   : > { %8795 = vpow2.f32 %v3877_v10  ;;  %v3620_v42 = vsub.f32 %v12093_v55, %v12237_v19  ;;  %v3853_v10 = vmul.f32 1.442695, %v3618_v44  ;;  %v3885_v47 = vmul.f32 1.442695, %v3634_v31  ;;  %v14539_v31 = vld [vmem:[#allocation89_spill] sm:$0xff] }
 0x7b0   : > { %4091 = vadd.xlane.f32.xlu1 %v12239_v18  ;;  %8797 = vpow2.f32 %v3839_v0  ;;  %v14531_v18 = vld [vmem:[#allocation88_spill] sm:$0xff] }
 0x7b1   : > { %8799 = vpow2.f32 %v3871_v22  ;;  %v3857_v55 = vmul.f32 1.442695, %v3620_v42 }
 0x7b2   : > { %4001 = vadd.xlane.f32.xlu0 %v14511_v35  ;;  %v12243_v29 = vpop.xlane.xlu0 %3477  ;;  %v3615_v35 = vsub.f32 %v11897_v61, %v12196_v51 }
 0x7b4   : > { %4119 = vadd.xlane.f32.xlu1 %v8780_v20  ;;  %v14516_v20 = vld [vmem:[#allocation69_spill] sm:$0xff]  ;;  %v3847_v61 = vmul.f32 1.442695, %v3615_v35 }
 0x7b6   : > { %4005 = vadd.xlane.f32.xlu0 %v14513_v2  ;;  %v12248_v27 = vpop.xlane.xlu0 %3505  ;;  %8801 = vpow2.f32 %v3847_v61 }
 0x7b7   : > { %v3636_v19 = vsub.f32 %v12103_v28, %v12248_v27  ;;  %v14530_v28 = vld [vmem:[#allocation79_spill] sm:$0xff] }
 0x7b8   : > { %4123 = vadd.xlane.f32.xlu1 %v12250_v30  ;;  %v3622_v27 = vsub.f32 %v14530_v28, %v12243_v29  ;;  %v14548_v28 = vld [vmem:[#allocation95_spill] sm:$0xff] }
 0x7b9   : > { %v12272_v1 = vpop.eup %8789  ;;  %v3889_v26 = vmul.f32 1.442695, %v3636_v19  ;;  %v12399_v19 = vpop.f32.mrf.mxu0 }
 0x7ba   : > { %4033 = vadd.xlane.f32.xlu0 %v14515_v62  ;;  %v12256_v11 = vpop.xlane.xlu0 %3507  ;;  %v12282_v9 = vpop.eup %8791 }
 0x7bb   : > { %v12292_v62 = vpop.eup %8793 }
 0x7bc   : > { %3935 = vadd.xlane.f32.xlu1 %v14516_v20  ;;  %v14526_v20 = vld [vmem:[#allocation50_spill] sm:$0xff] }
 0x7be   : > { %4037 = vadd.xlane.f32.xlu0 %v14517_v13  ;;  %v12262_v41 = vpop.xlane.xlu0 %3509  ;;  %v3849_v13 = vmul.f32 1.442695, %v3616_v12 }
 0x7bf   : > { %v3638_v29 = vsub.f32 %v12098_v24, %v12262_v41 }
 0x7c0   : > { %3939 = vadd.xlane.f32.xlu1 %v14518_v32  ;;  %v12303_v32 = vpop.eup %8795 }
 0x7c2   : > { %4065 = vadd.xlane.f32.xlu0 %v12123_v52  ;;  %v5129_v54 = vpop.permute.xlu0 %5128  ;;  %v14521_v52 = vld [vmem:[#allocation61_spill] sm:$0xff] }
 0x7c3   : > { %7817 = vmatprep.subr.bf16.mxu0 %v5129_v54 }
 0x7c4   : > { %7818 = vmatpush3.bf16.msra.mxu0 %v5129_v54  ;;  %3967 = vadd.xlane.f32.xlu1 %v14519_v4  ;;  %v14527_v54 = vld [vmem:[#allocation103_spill] sm:$0xff] }
 0x7c6   : > { %4069 = vadd.xlane.f32.xlu0 %v12121_v48  ;;  %v14522_v48 = vld [vmem:[#allocation48_spill] sm:$0xff] }
 0x7c7   : > { %v3472_v33 = vpop.xlane.xlu1 %3471  ;;  %v3613_v2 = vsub.f32 %v14523_v39, %v14522_v48  ;;  %v3637_v39 = vsub.f32 %v12091_v53, %v12256_v11 }
 0x7c8   : > { %3971 = vadd.xlane.f32.xlu1 %v14521_v52  ;;  %v3619_v60 = vsub.f32 %v12087_v16, %v3472_v33  ;;  %v3633_v16 = vsub.f32 %v11998_v50, %v12187_v6  ;;  %v14529_v50 = vld [vmem:[#allocation90_spill] sm:$0xff]  ;;  %v8798_v6 = vpop.eup %8797 }
 0x7c9   : > { %v3843_v46 = vmul.f32 1.442695, %v3613_v2  ;;  %v4201_v37 = vpack.c.bf16 %v12272_v1, %v8798_v6  ;;  %v8800_v0 = vpop.eup %8799  ;;  %v3891_v53 = vmul.f32 1.442695, %v3637_v39 }
 0x7ca   : > { %4097 = vadd.xlane.f32.xlu0 %v12272_v1  ;;  %v3855_v14 = vmul.f32 1.442695, %v3619_v60  ;;  %v3883_v17 = vmul.f32 1.442695, %v3633_v16  ;;  %v4208_v1 = vpack.c.bf16 %v12223_v3, %v12250_v30  ;;  %v12333_v35 = vpop.eup %8801  ;;  %v14532_v3 = vld [vmem:[#allocation94_spill] sm:$0xff] }
 0x7cb   : > { %v12280_v63 = vpop.xlane.xlu1 %3475  ;;  %8803 = vpow2.f32 %v3843_v46  ;;  %v3893_v30 = vmul.f32 1.442695, %v3638_v29 }
 0x7cc   : > { %3999 = vadd.xlane.f32.xlu1 %v14524_v5  ;;  %8805 = vpow2.f32 %v3849_v13  ;;  %v14533_v5 = vld [vmem:[#allocation92_spill] sm:$0xff] }
 0x7cd   : > { %8807 = vpow2.f32 %v3875_v45  ;;  %v14535_v45 = vld [vmem:[#allocation63_spill] sm:$0xff] }
 0x7ce   : > { %4101 = vadd.xlane.f32.xlu0 %v12282_v9  ;;  %8809 = vpow2.f32 %v3879_v40 }
 0x7cf   : > { %v3504_v51 = vpop.xlane.xlu1 %3503  ;;  %8811 = vpow2.f32 %v3881_v49 }
 0x7d0   : > { %4003 = vadd.xlane.f32.xlu1 %v14526_v20  ;;  %v3635_v4 = vsub.f32 %v12095_v56, %v3504_v51  ;;  %8813 = vpow2.f32 %v3851_v23  ;;  %v3621_v56 = vsub.f32 %v12083_v57, %v12280_v63  ;;  %v4209_v63 = vpack.c.bf16 %v12292_v62, %v8800_v0 }
 0x7d1   : > { %8815 = vpow2.f32 %v3855_v14 }
 0x7d2   : > { %4129 = vadd.xlane.f32.xlu0 %v12292_v62  ;;  %8817 = vpow2.f32 %v3853_v10  ;;  %v3887_v52 = vmul.f32 1.442695, %v3635_v4  ;;  %v3859_v57 = vmul.f32 1.442695, %v3621_v56  ;;  %v14534_v62 = vld [vmem:[#allocation27_spill] sm:$0xff]  ;;  %v12407_v56 = vpop.f32.mrf.mxu0 }
 0x7d3   : > { %v5000_v59 = vpop.permute.xlu1 %4999  ;;  %8819 = vpow2.f32 %v3857_v55  ;;  %v14542_v55 = vld [vmem:[#allocation91_spill] sm:$0xff] }
 0x7d4   : > { %4031 = vadd.xlane.f32.xlu1 %v14527_v54  ;;  %7785 = vmatprep.subr.bf16.mxu1 %v5000_v59  ;;  %8821 = vpow2.f32 %v3883_v17  ;;  %v14537_v54 = vld [vmem:[#allocation105_spill] sm:$0xff] }
 0x7d5   : > { %7786 = vmatpush3.bf16.msra.mxu1 %v5000_v59  ;;  %8823 = vpow2.f32 %v3885_v47  ;;  %v14545_v17 = vld [vmem:[#allocation93_spill] sm:$0xff]  ;;  %v14546_v47 = vld [vmem:[#allocation34_spill] sm:$0xff] }
 0x7d6   : > { %4133 = vadd.xlane.f32.xlu0 %v12303_v32  ;;  %8825 = vpow2.f32 %v3887_v52 }
 0x7d7   : > { %v4998_v21 = vpop.permute.xlu1 %4997  ;;  %8827 = vpow2.f32 %v3889_v26  ;;  %v14550_v26 = vld [vmem:[#allocation68_spill] sm:$0xff] }
 0x7d8   : > { %4035 = vadd.xlane.f32.xlu1 %v14528_v58  ;;  %7787 = vmatprep.subr.bf16.mxu1 %v4998_v21  ;;  %v8804_v48 = vpop.eup %8803  ;;  %8829 = vpow2.f32 %v3859_v57 }
 0x7d9   : > { %7788 = vmatpush3.bf16.msra.mxu1 %v4998_v21  ;;  %v12339_v2 = vpop.eup %8805  ;;  %v4202_v24 = vpack.c.bf16 %v12282_v9, %v8804_v48  ;;  %v14540_v21 = vld [vmem:[#allocation62_spill] sm:$0xff] }
 0x7da   : > { %3945 = vadd.xlane.f32.xlu0 %v14529_v50  ;;  %v8808_v41 = vpop.eup %8807  ;;  %v14543_v50 = vld [vmem:[#allocation47_spill] sm:$0xff] }
 0x7db   : > { %v5127_v33 = vpop.permute.xlu1 %5126  ;;  %v12345_v22 = vpop.eup %8809  ;;  %v4210_v9 = vpack.c.bf16 %v12303_v32, %v8808_v41 }
 0x7dc   : > { %4063 = vadd.xlane.f32.xlu1 %v12119_v15  ;;  %7790 = vmatmul.mubr.bf16.vlgmr.msra.gmra.mxu1 %v4200_v36  ;;  %v3861_v15 = vmul.f32 1.442695, %v3622_v27  ;;  %v12347_v11 = vpop.eup %8811  ;;  %v12373_v32 = vpop.f32.mrf.mxu1 }
 0x7dd   : > { %7819 = vmatprep.subr.bf16.mxu0 %v5127_v33  ;;  %7793 = vmatprep.mubr.bf16.mxu1 %v4201_v37  ;;  %v12350_v43 = vpop.eup %8813  ;;  %v4211_v8 = vpack.c.bf16 %v12347_v11, %v12345_v22  ;;  %14536 = vst [vmem:[#allocation80_spill] sm:$0xff] %v12373_v32  ;;  %v12415_v27 = vpop.f32.mrf.mxu0  ;;  %v14594_v32 = vld [vmem:[#allocation100_spill] sm:$0xff] }
 0x7de   : > { %7820 = vmatpush3.bf16.msra.mxu0 %v5127_v33  ;;  %3949 = vadd.xlane.f32.xlu0 %v14531_v18  ;;  %8831 = vpow2.f32 %v3861_v15  ;;  %v12353_v12 = vpop.eup %8815  ;;  %v12386_v23 = vpop.f32.mrf.mxu1  ;;  %v14552_v15 = vld [vmem:[#allocation64_spill] sm:$0xff] }
 0x7df   : > { %8833 = vpow2.f32 %v3893_v30  ;;  %v8818_v61 = vpop.eup %8817  ;;  %14538 = vst [vmem:[#allocation65_spill] sm:$0xff] %v12386_v23  ;;  %v12423_v57 = vpop.f32.mrf.mxu0 }
 0x7e0   : > { %4067 = vadd.xlane.f32.xlu1 %v12126_v25  ;;  %v4203_v25 = vpack.c.bf16 %v12339_v2, %v12333_v35  ;;  %8835 = vpow2.f32 %v3891_v53  ;;  %v12357_v51 = vpop.eup %8819  ;;  %v4204_v46 = vpack.c.bf16 %v8818_v61, %v12350_v43  ;;  %v12396_v58 = vpop.f32.mrf.mxu1 }
 0x7e1   : > { %7822 = vmatmul.mubr.bf16.vlgmr.msra.gmra.mxu0 %v4208_v1  ;;  %v12361_v38 = vpop.eup %8821  ;;  %v4205_v20 = vpack.c.bf16 %v12357_v51, %v12353_v12  ;;  %14541 = vst [vmem:[#allocation51_spill] sm:$0xff] %v12396_v58  ;;  %v12427_v1 = vpop.f32.mrf.mxu0 }
 0x7e2   : > { %7825 = vmatprep.mubr.bf16.mxu0 %v4209_v63  ;;  %3977 = vadd.xlane.f32.xlu0 %v14532_v3  ;;  %v8824_v13 = vpop.eup %8823  ;;  %v12404_v36 = vpop.f32.mrf.mxu1 }
 0x7e3   : > { %v12365_v7 = vpop.eup %8825  ;;  %v4212_v59 = vpack.c.bf16 %v8824_v13, %v12361_v38  ;;  %14544 = vst [vmem:[#allocation58_spill] sm:$0xff] %v12404_v36  ;;  %v14591_v36 = vld [vmem:[#allocation98_spill] sm:$0xff] }
 0x7e4   : > { %4095 = vadd.xlane.f32.xlu1 %v8798_v6  ;;  %7794 = vmatmul.mubr.bf16.gmra.mxu1 %v4202_v24  ;;  %v12367_v34 = vpop.eup %8827  ;;  %v12412_v37 = vpop.f32.mrf.mxu1 }
 0x7e5   : > { %7797 = vmatprep.mubr.bf16.mxu1 %v4203_v25  ;;  %v12370_v60 = vpop.eup %8829  ;;  %v4213_v44 = vpack.c.bf16 %v12367_v34, %v12365_v7  ;;  %14547 = vst [vmem:[#allocation53_spill] sm:$0xff] %v12412_v37  ;;  %v14589_v37 = vld [vmem:[#allocation55_spill] sm:$0xff] }
 0x7e6   : > { %3981 = vadd.xlane.f32.xlu0 %v14533_v5 }
 0x7e8   : > { %4099 = vadd.xlane.f32.xlu1 %v8804_v48  ;;  %v12435_v48 = vpop.f32.mrf.mxu0 }
 0x7e9   : > { %7826 = vmatmul.mubr.bf16.gmra.mxu0 %v4210_v9 }
 0x7ea   : > { %7829 = vmatprep.mubr.bf16.mxu0 %v4211_v8  ;;  %4009 = vadd.xlane.f32.xlu0 %v14534_v62  ;;  %v12444_v30 = vpop.f32.mrf.mxu0 }
 0x7eb   : > { %v12377_v40 = vpop.eup %8831  ;;  %14555 = vst [vmem:[#allocation87_spill] sm:$0xff] %v12444_v30  ;;  %v14604_v30 = vld [vmem:[#allocation109_spill] sm:$0xff] }
 0x7ec   : > { %4127 = vadd.xlane.f32.xlu1 %v8800_v0  ;;  %7798 = vmatmul.mubr.bf16.gmra.mxu1 %v4204_v46  ;;  %v4206_v42 = vpack.c.bf16 %v12377_v40, %v12370_v60  ;;  %v12384_v16 = vpop.eup %8833  ;;  %v12420_v0 = vpop.f32.mrf.mxu1 }
 0x7ed   : > { %7801 = vmatprep.mubr.bf16.mxu1 %v4205_v20  ;;  %v12389_v14 = vpop.eup %8835  ;;  %14549 = vst [vmem:[#allocation56_spill] sm:$0xff] %v12420_v0  ;;  %v12454_v9 = vpop.f32.mrf.mxu0  ;;  %v14563_v20 = vld [vmem:[#allocation45_spill] sm:$0xff] }
 0x7ee   : > { %4013 = vadd.xlane.f32.xlu0 %v14535_v45  ;;  %v4214_v4 = vpack.c.bf16 %v12384_v16, %v12389_v14  ;;  %v12429_v29 = vpop.f32.mrf.mxu1  ;;  %14559 = vst [vmem:[#allocation74_spill] sm:$0xff] %v12454_v9 }
 0x7ef   : > { %14551 = vst [vmem:[#allocation73_spill] sm:$0xff] %v12429_v29  ;;  %v12461_v46 = vpop.f32.mrf.mxu0 }
 0x7f0   : > { %4131 = vadd.xlane.f32.xlu1 %v8808_v41  ;;  %v12437_v39 = vpop.f32.mrf.mxu1  ;;  %v14557_v41 = vld [vmem:[#allocation38_spill] sm:$0xff]  ;;  %14562 = vst [vmem:[#allocation76_spill] sm:$0xff] %v12461_v46 }
 0x7f1   : > { %7830 = vmatmul.mubr.bf16.gmra.mxu0 %v4212_v59  ;;  %14553 = vst [vmem:[#allocation33_spill] sm:$0xff] %v12437_v39  ;;  %v14565_v59 = vld [vmem:[#allocation40_spill] sm:$0xff] }
 0x7f2   : > { %7833 = vmatprep.mubr.bf16.mxu0 %v4213_v44  ;;  %4041 = vadd.xlane.f32.xlu0 %v14537_v54  ;;  %v12446_v25 = vpop.f32.mrf.mxu1  ;;  %v12469_v44 = vpop.f32.mrf.mxu0  ;;  %v14592_v39 = vld [vmem:[#allocation32_spill] sm:$0xff] }
 0x7f3   : > { %v12380_v49 = vpop.xlane.xlu0 %3929  ;;  %14556 = vst [vmem:[#allocation46_spill] sm:$0xff] %v12446_v25  ;;  %14566 = vst [vmem:[#allocation43_spill] sm:$0xff] %v12469_v44 }
 0x7f4   : > { %3943 = vadd.xlane.f32.xlu1 %v14539_v31  ;;  %7802 = vmatmul.mubr.bf16.gmra.mxu1 %v4206_v42  ;;  %v12456_v8 = vpop.f32.mrf.mxu1  ;;  %v14567_v42 = vld [vmem:[#allocation99_spill] sm:$0xff]  ;;  %8837 = vrcp.f32 %v12380_v49 }
 0x7f5   : > { %14560 = vst [vmem:[#allocation77_spill] sm:$0xff] %v12456_v8 }
 0x7f6   : > { %4045 = vadd.xlane.f32.xlu0 %v14540_v21  ;;  %v12466_v45 = vpop.f32.mrf.mxu1 }
 0x7f7   : > { %v12392_v10 = vpop.xlane.xlu0 %3933  ;;  %14564 = vst [vmem:[#allocation49_spill] sm:$0xff] %v12466_v45  ;;  %v14585_v45 = vld [vmem:[#allocation110_spill] sm:$0xff] }
 0x7f8   : > { %3947 = vadd.xlane.f32.xlu1 %v14542_v55  ;;  %v12476_v21 = vpop.f32.mrf.mxu1 }
 0x7f9   : > { %7834 = vmatmul.mubr.bf16.gmra.mxu0 %v4214_v4  ;;  %14568 = vst [vmem:[#allocation72_spill] sm:$0xff] %v12476_v21  ;;  %v12479_v4 = vpop.f32.mrf.mxu0 }
 0x7fa   : > { %4073 = vadd.xlane.f32.xlu0 %v14543_v50  ;;  %14569 = vst [vmem:[#allocation102_spill] sm:$0xff] %v12479_v4  ;;  %v12483_v50 = vpop.f32.mrf.mxu1 }
 0x7fb   : > { %v12402_v6 = vpop.xlane.xlu0 %3961  ;;  %14570 = vst [vmem:[#allocation78_spill] sm:$0xff] %v12483_v50 }
 0x7fc   : > { %3975 = vadd.xlane.f32.xlu1 %v14545_v17  ;;  %v14571_v17 = vld [vmem:[#allocation97_spill] sm:$0xff] }
 0x7fe   : > { %4077 = vadd.xlane.f32.xlu0 %v14546_v47 }
 0x7ff   : > { %v12410_v33 = vpop.xlane.xlu0 %3965 }
 0x800   : > { %3979 = vadd.xlane.f32.xlu1 %v14548_v28  ;;  %v12489_v28 = vpop.f32.mrf.mxu0 }
 0x801   : > { %14572 = vst [vmem:[#allocation101_spill] sm:$0xff] %v12489_v28  ;;  %v14600_v28 = vld [vmem:[#allocation108_spill] sm:$0xff] }
 0x802   : > { %4105 = vadd.xlane.f32.xlu0 %v12339_v2  ;;  %v14554_v2 = vld [vmem:[#allocation70_spill] sm:$0xff] }
 0x803   : > { %v12418_v52 = vpop.xlane.xlu0 %3993 }
 0x804   : > { %4007 = vadd.xlane.f32.xlu1 %v14550_v26 }
 0x806   : > { %4109 = vadd.xlane.f32.xlu0 %v8818_v61  ;;  %v14561_v61 = vld [vmem:[#allocation37_spill] sm:$0xff] }
 0x807   : > { %v12425_v18 = vpop.xlane.xlu0 %3997 }
 0x808   : > { %4011 = vadd.xlane.f32.xlu1 %v14552_v15  ;;  %v12493_v15 = vpop.f32.mrf.mxu1 }
 0x809   : > { %14573 = vst [vmem:[#allocation104_spill] sm:$0xff] %v12493_v15 }
 0x80a   : > { %4137 = vadd.xlane.f32.xlu0 %v12347_v11  ;;  %v14558_v11 = vld [vmem:[#allocation96_spill] sm:$0xff] }
 0x80b   : > { %v12433_v63 = vpop.xlane.xlu0 %4025 }
 0x80c   : > { %4039 = vadd.xlane.f32.xlu1 %v14554_v2  ;;  %v12440_v3 = vpop.xlane.xlu1 %3927  ;;  %v14574_v2 = vld [vmem:[#allocation107_spill] sm:$0xff] }
 0x80e   : > { %4141 = vadd.xlane.f32.xlu0 %v8824_v13 }
 0x80f   : > { %v12442_v24 = vpop.xlane.xlu0 %4029 }
 0x810   : > { %4043 = vadd.xlane.f32.xlu1 %v14557_v41  ;;  %v12449_v53 = vpop.xlane.xlu1 %3931  ;;  %v12498_v41 = vpop.f32.mrf.mxu0 }
 0x811   : > { %14575 = vst [vmem:[#allocation69_spill] sm:$0xff] %v12498_v41 }
 0x812   : > { %3953 = vadd.xlane.f32.xlu0 %v14558_v11 }
 0x813   : > { %v12452_v5 = vpop.xlane.xlu0 %4057 }
 0x814   : > { %4071 = vadd.xlane.f32.xlu1 %v14561_v61  ;;  %v12459_v62 = vpop.xlane.xlu1 %3959  ;;  %v12503_v61 = vpop.f32.mrf.mxu1 }
 0x815   : > { %14576 = vst [vmem:[#allocation52_spill] sm:$0xff] %v12503_v61  ;;  %v14584_v61 = vld [vmem:[#allocation44_spill] sm:$0xff]  ;;  %8839 = vrcp.f32 %v12459_v62 }
 0x816   : > { %3957 = vadd.xlane.f32.xlu0 %v14563_v20  ;;  %v14577_v20 = vld [vmem:[#allocation106_spill] sm:$0xff] }
 0x817   : > { %v12464_v13 = vpop.xlane.xlu0 %4061 }
 0x818   : > { %4075 = vadd.xlane.f32.xlu1 %v14565_v59  ;;  %v12508_v59 = vpop.f32.mrf.mxu0 }
 0x819   : > { %v12471_v54 = vpop.xlane.xlu1 %3963  ;;  %14579 = vst [vmem:[#allocation57_spill] sm:$0xff] %v12508_v59 }
 0x81a   : > { %3985 = vadd.xlane.f32.xlu0 %v14567_v42  ;;  %8841 = vrcp.f32 %v12471_v54 }
 0x81b   : > { %v12474_v31 = vpop.xlane.xlu0 %4089 }
 0x81c   : > { %4103 = vadd.xlane.f32.xlu1 %v12333_v35 }
 0x81d   : > { %v12481_v55 = vpop.xlane.xlu1 %3991 }
 0x81e   : > { %3989 = vadd.xlane.f32.xlu0 %v14571_v17  ;;  %v12513_v17 = vpop.f32.mrf.mxu1  ;;  %8843 = vrcp.f32 %v12481_v55  ;;  %v14664_v55 = vld [vmem:[#allocation67_spill] sm:$0xff] }
 0x81f   : > { %v12486_v47 = vpop.xlane.xlu0 %4093  ;;  %14580 = vst [vmem:[#allocation26_spill] sm:$0xff] %v12513_v17  ;;  %v14588_v17 = vld [vmem:[#allocation39_spill] sm:$0xff] }
 0x820   : > { %4107 = vadd.xlane.f32.xlu1 %v12350_v43  ;;  %v12520_v15 = vpop.f32.mrf.mxu1 }
 0x821   : > { %v12491_v26 = vpop.xlane.xlu1 %3995 }
 0x822   : > { %4017 = vadd.xlane.f32.xlu0 %v14574_v2  ;;  %v14581_v2 = vld [vmem:[#allocation111_spill] sm:$0xff]  ;;  %v12530_v25 = vpop.f32.mrf.mxu1  ;;  %8845 = vrcp.f32 %v12491_v26 }
 0x823   : > { %v12496_v35 = vpop.xlane.xlu0 %4121 }
 0x824   : > { %4135 = vadd.xlane.f32.xlu1 %v12345_v22  ;;  %v12518_v22 = vpop.f32.mrf.mxu0 }
 0x825   : > { %v12501_v11 = vpop.xlane.xlu1 %4023  ;;  %14583 = vst [vmem:[#allocation48_spill] sm:$0xff] %v12518_v22 }
 0x826   : > { %4021 = vadd.xlane.f32.xlu0 %v14577_v20  ;;  %8847 = vrcp.f32 %v12501_v11 }
 0x827   : > { %v12506_v43 = vpop.xlane.xlu0 %4125  ;;  %8849 = vrcp.f32 %v12440_v3 }
 0x828   : > { %14578 = vst [vmem:[#allocation66_spill] sm:$0xff] %v12506_v43  ;;  %4139 = vadd.xlane.f32.xlu1 %v12361_v38  ;;  %v12528_v38 = vpop.f32.mrf.mxu0 }
 0x829   : > { %v12511_v42 = vpop.xlane.xlu1 %4027  ;;  %14587 = vst [vmem:[#allocation71_spill] sm:$0xff] %v12528_v38  ;;  %v14597_v38 = vld [vmem:[#allocation41_spill] sm:$0xff] }
 0x82a   : > { %4049 = vadd.xlane.f32.xlu0 %v14581_v2  ;;  %v12533_v2 = vpop.f32.mrf.mxu0  ;;  %8851 = vrcp.f32 %v12511_v42 }
 0x82b   : > { %v12516_v50 = vpop.xlane.xlu0 %3937  ;;  %8853 = vrcp.f32 %v12449_v53 }
 0x82c   : > { %14582 = vst [vmem:[#allocation61_spill] sm:$0xff] %v12516_v50  ;;  %3951 = vadd.xlane.f32.xlu1 %v14584_v61  ;;  %v12540_v61 = vpop.f32.mrf.mxu1 }
 0x82d   : > { %v12523_v20 = vpop.xlane.xlu1 %4055 }
 0x82e   : > { %4053 = vadd.xlane.f32.xlu0 %v14585_v45  ;;  %v12543_v45 = vpop.f32.mrf.mxu0  ;;  %8855 = vrcp.f32 %v12523_v20 }
 0x82f   : > { %v12526_v21 = vpop.xlane.xlu0 %3941  ;;  %8857 = vrcp.f32 %v12392_v10 }
 0x830   : > { %14586 = vst [vmem:[#allocation54_spill] sm:$0xff] %v12526_v21  ;;  %3955 = vadd.xlane.f32.xlu1 %v14588_v17  ;;  %v12550_v17 = vpop.f32.mrf.mxu1  ;;  %v12553_v23 = vpop.f32.mrf.mxu0 }
 0x831   : > { %v12535_v8 = vpop.xlane.xlu1 %4059 }
 0x832   : > { %4081 = vadd.xlane.f32.xlu0 %v14589_v37  ;;  %v12557_v22 = vpop.f32.mrf.mxu1  ;;  %v12563_v41 = vpop.f32.mrf.mxu0  ;;  %8859 = vrcp.f32 %v12535_v8 }
 0x833   : > { %v12538_v0 = vpop.xlane.xlu0 %3969  ;;  %14595 = vst [vmem:[#allocation103_spill] sm:$0xff] %v12557_v22  ;;  %v14653_v22 = vld [vmem:[#allocation28_spill] sm:$0xff]  ;;  %8861 = vrcp.f32 %v12402_v6 }
 0x834   : > { %14590 = vst [vmem:[#allocation60_spill] sm:$0xff] %v12538_v0  ;;  %3983 = vadd.xlane.f32.xlu1 %v14591_v36  ;;  %v12567_v59 = vpop.f32.mrf.mxu1  ;;  %v12572_v4 = vpop.f32.mrf.mxu0  ;;  %v14619_v0 = vld [vmem:[#allocation113_spill] sm:$0xff]  ;;  %8863 = vrcp.f32 %v12410_v33 }
 0x835   : > { %v12545_v29 = vpop.xlane.xlu1 %4087  ;;  %14599 = vst [vmem:[#allocation79_spill] sm:$0xff] %v12572_v4 }
 0x836   : > { %4085 = vadd.xlane.f32.xlu0 %v14592_v39  ;;  %v12582_v44 = vpop.f32.mrf.mxu0  ;;  %8865 = vrcp.f32 %v12545_v29 }
 0x837   : > { %v12548_v58 = vpop.xlane.xlu0 %3973  ;;  %14603 = vst [vmem:[#allocation92_spill] sm:$0xff] %v12582_v44  ;;  %8867 = vrcp.f32 %v12418_v52 }
 0x838   : > { %14593 = vst [vmem:[#allocation50_spill] sm:$0xff] %v12548_v58  ;;  %3987 = vadd.xlane.f32.xlu1 %v14594_v32 }
 0x839   : > { %v12555_v37 = vpop.xlane.xlu1 %4091 }
 0x83a   : > { %4113 = vadd.xlane.f32.xlu0 %v12357_v51  ;;  %v12577_v51 = vpop.f32.mrf.mxu1 }
 0x83b   : > { %v12560_v36 = vpop.xlane.xlu0 %4001  ;;  %14601 = vst [vmem:[#allocation88_spill] sm:$0xff] %v12577_v51  ;;  %v14609_v51 = vld [vmem:[#allocation112_spill] sm:$0xff] }
 0x83c   : > { %14596 = vst [vmem:[#allocation75_spill] sm:$0xff] %v12560_v36  ;;  %4015 = vadd.xlane.f32.xlu1 %v14597_v38 }
 0x83d   : > { %v12565_v39 = vpop.xlane.xlu1 %4119 }
 0x83e   : > { %4117 = vadd.xlane.f32.xlu0 %v12377_v40  ;;  %v12587_v40 = vpop.f32.mrf.mxu1 }
 0x83f   : > { %v12570_v32 = vpop.xlane.xlu0 %4005  ;;  %14605 = vst [vmem:[#allocation27_spill] sm:$0xff] %v12587_v40  ;;  %v14614_v40 = vld [vmem:[#allocation29_spill] sm:$0xff] }
 0x840   : > { %14598 = vst [vmem:[#allocation90_spill] sm:$0xff] %v12570_v32  ;;  %4019 = vadd.xlane.f32.xlu1 %v14600_v28  ;;  %v12592_v28 = vpop.f32.mrf.mxu0  ;;  %v12594_v36 = vpop.f32.mrf.mxu1 }
 0x841   : > { %v12575_v46 = vpop.xlane.xlu1 %4123  ;;  %14607 = vst [vmem:[#allocation105_spill] sm:$0xff] %v12592_v28  ;;  %14608 = vst [vmem:[#allocation89_spill] sm:$0xff] %v12594_v36  ;;  %v14616_v28 = vld [vmem:[#allocation35_spill] sm:$0xff] }
 0x842   : > { %4145 = vadd.xlane.f32.xlu0 %v12367_v34  ;;  %v12604_v4 = vpop.f32.mrf.mxu1 }
 0x843   : > { %v12580_v38 = vpop.xlane.xlu0 %4033  ;;  %14613 = vst [vmem:[#allocation47_spill] sm:$0xff] %v12604_v4 }
 0x844   : > { %14602 = vst [vmem:[#allocation94_spill] sm:$0xff] %v12580_v38  ;;  %4047 = vadd.xlane.f32.xlu1 %v14604_v30  ;;  %v14610_v38 = vld [vmem:[#allocation31_spill] sm:$0xff]  ;;  %v12602_v30 = vpop.f32.mrf.mxu0 }
 0x845   : > { %v12585_v9 = vpop.xlane.xlu1 %3935  ;;  %14612 = vst [vmem:[#allocation91_spill] sm:$0xff] %v12602_v30  ;;  %v14621_v30 = vld [vmem:[#allocation25_spill] sm:$0xff] }
 0x846   : > { %4149 = vadd.xlane.f32.xlu0 %v12384_v16  ;;  %v12607_v16 = vpop.f32.mrf.mxu0 }
 0x847   : > { %v12590_v32 = vpop.xlane.xlu0 %4037  ;;  %14615 = vst [vmem:[#allocation93_spill] sm:$0xff] %v12607_v16 }
 0x848   : > { %14606 = vst [vmem:[#allocation63_spill] sm:$0xff] %v12590_v32  ;;  %4051 = vadd.xlane.f32.xlu1 %v14609_v51  ;;  %v12614_v51 = vpop.f32.mrf.mxu1 }
 0x849   : > { %v12597_v34 = vpop.xlane.xlu1 %3939  ;;  %14618 = vst [vmem:[#allocation95_spill] sm:$0xff] %v12614_v51  ;;  %v14626_v51 = vld [vmem:[#allocation81_spill] sm:$0xff] }
 0x84a   : > { %3897 = vadd.xlane.f32.xlu0 %v14610_v38  ;;  %v12617_v38 = vpop.f32.mrf.mxu0 }
 0x84b   : > { %v12600_v58 = vpop.xlane.xlu0 %4065  ;;  %14620 = vst [vmem:[#allocation68_spill] sm:$0xff] %v12617_v38 }
 0x84c   : > { %14611 = vst [vmem:[#allocation62_spill] sm:$0xff] %v12600_v58  ;;  %4079 = vadd.xlane.f32.xlu1 %v14614_v40  ;;  %v12624_v40 = vpop.f32.mrf.mxu1  ;;  %v12627_v16 = vpop.f32.mrf.mxu0 }
 0x84d   : > { %v12609_v32 = vpop.xlane.xlu1 %3967  ;;  %14623 = vst [vmem:[#allocation70_spill] sm:$0xff] %v12624_v40  ;;  %14624 = vst [vmem:[#allocation38_spill] sm:$0xff] %v12627_v16  ;;  %v14630_v40 = vld [vmem:[#allocation82_spill] sm:$0xff] }
 0x84e   : > { %3901 = vadd.xlane.f32.xlu0 %v14616_v28  ;;  %v12637_v38 = vpop.f32.mrf.mxu0 }
 0x84f   : > { %v12612_v36 = vpop.xlane.xlu0 %4069  ;;  %14628 = vst [vmem:[#allocation45_spill] sm:$0xff] %v12637_v38 }
 0x850   : > { %14617 = vst [vmem:[#allocation34_spill] sm:$0xff] %v12612_v36  ;;  %4083 = vadd.xlane.f32.xlu1 %v14619_v0  ;;  %v12631_v36 = vpop.f32.mrf.mxu1  ;;  %v12646_v16 = vpop.f32.mrf.mxu0 }
 0x851   : > { %v12619_v58 = vpop.xlane.xlu1 %3971  ;;  %14625 = vst [vmem:[#allocation96_spill] sm:$0xff] %v12631_v36  ;;  %14632 = vst [vmem:[#allocation97_spill] sm:$0xff] %v12646_v16 }
 0x852   : > { %3905 = vadd.xlane.f32.xlu0 %v14621_v30  ;;  %v12656_v38 = vpop.f32.mrf.mxu0 }
 0x853   : > { %v12622_v4 = vpop.xlane.xlu0 %4097  ;;  %14636 = vst [vmem:[#allocation111_spill] sm:$0xff] %v12656_v38 }
 0x854   : > { %14622 = vst [vmem:[#allocation64_spill] sm:$0xff] %v12622_v4  ;;  %4111 = vadd.xlane.f32.xlu1 %v12353_v12  ;;  %v12641_v4 = vpop.f32.mrf.mxu1 }
 0x855   : > { %v12629_v28 = vpop.xlane.xlu1 %3999  ;;  %14629 = vst [vmem:[#allocation40_spill] sm:$0xff] %v12641_v4 }
 0x856   : > { %3909 = vadd.xlane.f32.xlu0 %v14626_v51  ;;  %v12651_v51 = vpop.f32.mrf.mxu1 }
 0x857   : > { %v12634_v0 = vpop.xlane.xlu0 %4101  ;;  %14633 = vst [vmem:[#allocation107_spill] sm:$0xff] %v12651_v51  ;;  %v14642_v51 = vld [vmem:[#allocation36_spill] sm:$0xff] }
 0x858   : > { %14627 = vst [vmem:[#allocation37_spill] sm:$0xff] %v12634_v0  ;;  %4115 = vadd.xlane.f32.xlu1 %v12370_v60  ;;  %v14634_v0 = vld [vmem:[#allocation85_spill] sm:$0xff] }
 0x859   : > { %v12639_v30 = vpop.xlane.xlu1 %4003 }
 0x85a   : > { %3913 = vadd.xlane.f32.xlu0 %v14630_v40  ;;  %v12661_v40 = vpop.f32.mrf.mxu1 }
 0x85b   : > { %v12644_v12 = vpop.xlane.xlu0 %4129  ;;  %14638 = vst [vmem:[#allocation110_spill] sm:$0xff] %v12661_v40  ;;  %v14647_v40 = vld [vmem:[#allocation30_spill] sm:$0xff] }
 0x85c   : > { %14631 = vst [vmem:[#allocation99_spill] sm:$0xff] %v12644_v12  ;;  %4143 = vadd.xlane.f32.xlu1 %v12365_v7  ;;  %v14639_v12 = vld [vmem:[#allocation59_spill] sm:$0xff]  ;;  %v12666_v7 = vpop.f32.mrf.mxu0  ;;  %v12668_v44 = vpop.f32.mrf.mxu1 }
 0x85d   : > { %v12649_v36 = vpop.xlane.xlu1 %4031  ;;  %14641 = vst [vmem:[#allocation55_spill] sm:$0xff] %v12666_v7 }
 0x85e   : > { %3917 = vadd.xlane.f32.xlu0 %v14634_v0  ;;  %v12674_v38 = vpop.f32.mrf.mxu0  ;;  %v12678_v21 = vpop.f32.mrf.mxu1 }
 0x85f   : > { %v12654_v60 = vpop.xlane.xlu0 %4133  ;;  %14645 = vst [vmem:[#allocation32_spill] sm:$0xff] %v12674_v38 }
 0x860   : > { %14635 = vst [vmem:[#allocation106_spill] sm:$0xff] %v12654_v60  ;;  %4147 = vadd.xlane.f32.xlu1 %v12389_v14  ;;  %v14644_v60 = vld [vmem:[#allocation86_spill] sm:$0xff] }
 0x861   : > { %v12659_v4 = vpop.xlane.xlu1 %4035 }
 0x862   : > { %14637 = vst [vmem:[#allocation44_spill] sm:$0xff] %v12659_v4  ;;  %3921 = vadd.xlane.f32.xlu0 %v14639_v12  ;;  %v12681_v12 = vpop.f32.mrf.mxu0  ;;  %v14657_v4 = vld [vmem:[#allocation84_spill] sm:$0xff] }
 0x863   : > { %v12664_v16 = vpop.xlane.xlu0 %3945 }
 0x864   : > { %14640 = vst [vmem:[#allocation39_spill] sm:$0xff] %v12664_v16  ;;  %3895 = vadd.xlane.f32.xlu1 %v14642_v51  ;;  %v12688_v51 = vpop.f32.mrf.mxu1 }
 0x865   : > { %v12671_v0 = vpop.xlane.xlu1 %4063 }
 0x866   : > { %14643 = vst [vmem:[#allocation98_spill] sm:$0xff] %v12671_v0  ;;  %3925 = vadd.xlane.f32.xlu0 %v14644_v60  ;;  %v14650_v0 = vld [vmem:[#allocation24_spill] sm:$0xff]  ;;  %v12691_v60 = vpop.f32.mrf.mxu0 }
 0x867   : > { %v12676_v14 = vpop.xlane.xlu0 %3949 }
 0x868   : > { %14646 = vst [vmem:[#allocation100_spill] sm:$0xff] %v12676_v14  ;;  %3899 = vadd.xlane.f32.xlu1 %v14647_v40  ;;  %v12698_v40 = vpop.f32.mrf.mxu1 }
 0x869   : > { %v12683_v16 = vpop.xlane.xlu1 %4067 }
 0x86a   : > { %14648 = vst [vmem:[#allocation41_spill] sm:$0xff] %v12683_v16  ;;  %v12701_v16 = vpop.f32.mrf.mxu0 }
 0x86b   : > { %v12686_v7 = vpop.xlane.xlu0 %3977 }
 0x86c   : > { %14649 = vst [vmem:[#allocation108_spill] sm:$0xff] %v12686_v7  ;;  %3903 = vadd.xlane.f32.xlu1 %v14650_v0  ;;  %v12705_v7 = vpop.f32.mrf.mxu1 }
 0x86d   : > { %v12693_v38 = vpop.xlane.xlu1 %4095  ;;  %14655 = vst [vmem:[#allocation29_spill] sm:$0xff] %v12705_v7  ;;  %v14661_v7 = vld [vmem:[#allocation83_spill] sm:$0xff] }
 0x86e   : > { %14651 = vst [vmem:[#allocation109_spill] sm:$0xff] %v12693_v38  ;;  %v12711_v38 = vpop.f32.mrf.mxu0 }
 0x86f   : > { %v12696_v14 = vpop.xlane.xlu0 %3981 }
 0x870   : > { %14652 = vst [vmem:[#allocation112_spill] sm:$0xff] %v12696_v14  ;;  %3907 = vadd.xlane.f32.xlu1 %v14653_v22  ;;  %v12715_v14 = vpop.f32.mrf.mxu1  ;;  %v8838_v22 = vpop.eup %8837  ;;  %8869 = vrcp.f32 %v12555_v37 }
 0x871   : > { %v12703_v49 = vpop.xlane.xlu1 %4099  ;;  %14659 = vst [vmem:[#allocation25_spill] sm:$0xff] %v12715_v14  ;;  %v12718_v50 = vpop.f32.mrf.mxu0 }
 0x872   : > { %14654 = vst [vmem:[#allocation31_spill] sm:$0xff] %v12703_v49 }
 0x873   : > { %v12708_v0 = vpop.xlane.xlu0 %4009  ;;  %v12729_v43 = vpop.f32.mrf.mxu0 }
 0x874   : > { %14656 = vst [vmem:[#allocation35_spill] sm:$0xff] %v12708_v0  ;;  %3911 = vadd.xlane.f32.xlu1 %v14657_v4  ;;  %v12725_v0 = vpop.f32.mrf.mxu1  ;;  %v5392_v4 = vmul.f32 %v8838_v22, %v12423_v57 }
 0x875   : > { %v12713_v62 = vpop.xlane.xlu1 %4127  ;;  %14662 = vst [vmem:[#allocation82_spill] sm:$0xff] %v12725_v0  ;;  %v12741_v57 = vpop.f32.mrf.mxu0 }
 0x876   : > { %14658 = vst [vmem:[#allocation113_spill] sm:$0xff] %v12713_v62  ;;  %v8840_v62 = vpop.eup %8839  ;;  %8871 = vrcp.f32 %v12425_v18 }
 0x877   : > { %v12720_v49 = vpop.xlane.xlu0 %4013  ;;  %v5407_v26 = vmul.f32 %v8840_v62, %v12530_v25  ;;  %v8842_v0 = vpop.eup %8841  ;;  %8873 = vrcp.f32 %v12565_v39 }
 0x878   : > { %14660 = vst [vmem:[#allocation81_spill] sm:$0xff] %v12720_v49  ;;  %3915 = vadd.xlane.f32.xlu1 %v14661_v7  ;;  %v12737_v7 = vpop.f32.mrf.mxu1  ;;  %v5409_v25 = vmul.f32 %v8842_v0, %v12520_v15  ;;  %v8844_v11 = vpop.eup %8843  ;;  %8875 = vrcp.f32 %v12433_v63 }
 0x879   : > { %v12723_v54 = vpop.xlane.xlu1 %4131  ;;  %v12754_v62 = vpop.f32.mrf.mxu0  ;;  %v5423_v42 = vmul.f32 %v8844_v11, %v12543_v45 }
 0x87a   : > { %v8846_v15 = vpop.eup %8845  ;;  %8877 = vrcp.f32 %v12575_v46 }
 0x87b   : > { %v12731_v14 = vpop.xlane.xlu0 %4041  ;;  %v5425_v20 = vmul.f32 %v8846_v15, %v12533_v2 }
 0x87c   : > { %14663 = vst [vmem:[#allocation85_spill] sm:$0xff] %v12731_v14  ;;  %3919 = vadd.xlane.f32.xlu1 %v14664_v55  ;;  %5521 = vrot.lane.b32.xlu0 %v5392_v4, %s14202_s27  ;;  %v12746_v14 = vpop.f32.mrf.mxu1  ;;  %v14666_v55 = vld [vmem:[#allocation42_spill] sm:$0xff] }
 0x87d   : > { %v12735_v49 = vpop.xlane.xlu1 %3943 }
 0x87f   : > { %v12744_v22 = vpop.xlane.xlu0 %4045 }
 0x880   : > { %14665 = vst [vmem:[#allocation59_spill] sm:$0xff] %v12744_v22  ;;  %3923 = vadd.xlane.f32.xlu1 %v14666_v55  ;;  %5583 = vrot.lane.b32.xlu0 %v5407_v26, %s9223_s20  ;;  %v12759_v22 = vpop.f32.mrf.mxu1  ;;  %v12762_v55 = vpop.f32.mrf.mxu0 }
 0x881   : > { %v12750_v4 = vpop.xlane.xlu1 %3947  ;;  %14668 = vst [vmem:[#allocation86_spill] sm:$0xff] %v12762_v55  ;;  %v8848_v55 = vpop.eup %8847  ;;  %8879 = vrcp.f32 %v12442_v24 }
 0x882   : > { %v12771_v53 = vpop.f32.mrf.mxu1  ;;  %v8850_v10 = vpop.eup %8849  ;;  %v5439_v8 = vmul.f32 %v8848_v55, %v12678_v21  ;;  %8881 = vrcp.f32 %v12585_v9 }
 0x883   : > { %v12757_v3 = vpop.xlane.xlu0 %4073  ;;  %14670 = vst [vmem:[#allocation24_spill] sm:$0xff] %v12771_v53  ;;  %v5391_v6 = vmul.f32 %v8850_v10, %v12407_v56 }
 0x884   : > { %14667 = vst [vmem:[#allocation36_spill] sm:$0xff] %v12757_v3  ;;  %5587 = vrot.lane.b32.xlu0 %v5409_v25, %s9223_s20  ;;  %v12774_v3 = vpop.f32.mrf.mxu0  ;;  %v12783_v11 = vpop.f32.mrf.mxu1 }
 0x885   : > { %v12764_v26 = vpop.xlane.xlu1 %3975  ;;  %14671 = vst [vmem:[#allocation28_spill] sm:$0xff] %v12774_v3  ;;  %v8852_v3 = vpop.eup %8851  ;;  %8883 = vrcp.f32 %v12452_v5 }
 0x886   : > { %v12786_v53 = vpop.f32.mrf.mxu0  ;;  %v8854_v15 = vpop.eup %8853  ;;  %v5441_v33 = vmul.f32 %v8852_v3, %v12668_v44  ;;  %8885 = vrcp.f32 %v12597_v34 }
 0x887   : > { %v12769_v0 = vpop.xlane.xlu0 %4077  ;;  %14672 = vst [vmem:[#allocation84_spill] sm:$0xff] %v12786_v53  ;;  %v8856_v55 = vpop.eup %8855  ;;  %8887 = vrcp.f32 %v12464_v13 }
 0x888   : > { %14669 = vst [vmem:[#allocation30_spill] sm:$0xff] %v12769_v0  ;;  %5647 = vrot.lane.b32.xlu0 %v5423_v42, %s9224_s24  ;;  %v12790_v0 = vpop.f32.mrf.mxu1  ;;  %v5455_v44 = vmul.f32 %v8856_v55, %v12691_v60 }
 0x889   : > { %v12776_v25 = vpop.xlane.xlu1 %3979  ;;  %14673 = vst [vmem:[#allocation83_spill] sm:$0xff] %v12790_v0  ;;  %v8858_v0 = vpop.eup %8857  ;;  %8889 = vrcp.f32 %v12609_v32 }
 0x88a   : > { %v12804_v21 = vpop.f32.mrf.mxu1  ;;  %v8860_v52 = vpop.eup %8859  ;;  %8891 = vrcp.f32 %v12619_v58 }
 0x88b   : > { %v12781_v45 = vpop.xlane.xlu0 %4105  ;;  %v5457_v18 = vmul.f32 %v8860_v52, %v12681_v12 }
 0x88c   : > { %5651 = vrot.lane.b32.xlu0 %v5425_v20, %s9224_s24  ;;  %v12798_v20 = vpop.f32.mrf.mxu0 }
 0x88d   : > { %v12788_v42 = vpop.xlane.xlu1 %4007 }
 0x88e   : > { %v12808_v56 = vpop.f32.mrf.mxu0 }
 0x88f   : > { %v12794_v2 = vpop.xlane.xlu0 %4109  ;;  %14674 = vst [vmem:[#allocation67_spill] sm:$0xff] %v12808_v56 }
 0x890   : > { %5711 = vrot.lane.b32.xlu0 %v5439_v8, %s9225_s16  ;;  %v5393_v8 = vmul.f32 %v8854_v15, %v12399_v19  ;;  %v12822_v3 = vpop.f32.mrf.mxu0  ;;  %v5394_v19 = vmul.f32 %v8858_v0, %v12415_v27  ;;  %v8862_v15 = vpop.eup %8861  ;;  %8893 = vrcp.f32 %v12474_v31 }
 0x891   : > { %v12801_v53 = vpop.xlane.xlu1 %4011  ;;  %5519 = vrot.lane.b32.xlu1 %v5391_v6, %s14202_s27  ;;  %v12818_v6 = vpop.f32.mrf.mxu1  ;;  %v5408_v27 = vmul.f32 %v8862_v15, %v12550_v17 }
 0x892   : > { %14675 = vst [vmem:[#allocation42_spill] sm:$0xff] %v12818_v6  ;;  %v8864_v0 = vpop.eup %8863  ;;  %8895 = vrcp.f32 %v12629_v28 }
 0x893   : > { %v12810_v10 = vpop.xlane.xlu0 %4137  ;;  %v12832_v60 = vpop.f32.mrf.mxu1 }
 0x894   : > { %5715 = vrot.lane.b32.xlu0 %v5441_v33, %s9225_s16  ;;  %v12836_v33 = vpop.f32.mrf.mxu0 }
 0x895   : > { %v12815_v29 = vpop.xlane.xlu1 %4039  ;;  %5523 = vrot.lane.b32.xlu1 %v5393_v8, %s14202_s27  ;;  %14676 = vst [vmem:[#allocation114_spill] sm:$0xff] %v12836_v33  ;;  %v14690_v33 = vld [vmem:[#allocation109_spill] sm:$0xff] }
 0x896   : > { %v12847_v12 = vpop.f32.mrf.mxu0 }
 0x897   : > { %v12824_v56 = vpop.xlane.xlu0 %4141  ;;  %14677 = vst [vmem:[#allocation115_spill] sm:$0xff] %v12847_v12 }
 0x898   : > { %5775 = vrot.lane.b32.xlu0 %v5455_v44, %s9226_s17  ;;  %v8866_v44 = vpop.eup %8865  ;;  %8897 = vrcp.f32 %v12486_v47 }
 0x899   : > { %v12829_v37 = vpop.xlane.xlu1 %4043  ;;  %5525 = vrot.lane.b32.xlu1 %v5394_v19, %s14202_s27  ;;  %v5410_v19 = vmul.f32 %v8864_v0, %v12540_v61  ;;  %v8868_v15 = vpop.eup %8867  ;;  %8899 = vrcp.f32 %v12639_v30 }
 0x89a   : > { %v8870_v24 = vpop.eup %8869  ;;  %8901 = vrcp.f32 %v12496_v35 }
 0x89b   : > { %v12838_v55 = vpop.xlane.xlu0 %3953  ;;  %v8872_v61 = vpop.eup %8871  ;;  %8903 = vrcp.f32 %v12649_v36  ;;  %v14680_v36 = vld [vmem:[#allocation44_spill] sm:$0xff] }
 0x89c   : > { %5779 = vrot.lane.b32.xlu0 %v5457_v18, %s9226_s17  ;;  %v7791_v39 = vpop.f32.mrf.mxu1 }
 0x89d   : > { %v12843_v8 = vpop.xlane.xlu1 %4071  ;;  %5585 = vrot.lane.b32.xlu1 %v5408_v27, %s9223_s20  ;;  %v5473_v9 = vmul.f32 %v8870_v24, %v7791_v39  ;;  %v5426_v39 = vmul.f32 %v8872_v61, %v12553_v23 }
 0x89e   : > { %v5055_v63 = vpop.f32.mrf.mxu1 }
 0x89f   : > { %v5471_v52 = vmul.f32 %v8866_v44, %v5055_v63  ;;  %v12850_v17 = vpop.xlane.xlu0 %3957  ;;  %v5424_v44 = vmul.f32 %v8868_v15, %v12563_v41 }
 0x8a1   : > { %v12853_v18 = vpop.xlane.xlu1 %4075  ;;  %v7823_v46 = vpop.f32.mrf.mxu0  ;;  %5589 = vrot.lane.b32.xlu1 %v5410_v19, %s9223_s20  ;;  %5839 = vrot.lane.b32.xlu0 %v5471_v52, %s9227_s23 }
 0x8a2   : > { %v8874_v19 = vpop.eup %8873 }
 0x8a3   : > { %v12859_v27 = vpop.xlane.xlu0 %3985  ;;  %v5184_v0 = vpop.f32.mrf.mxu0 }
 0x8a4   : > { %v5487_v5 = vmul.f32 %v8874_v19, %v5184_v0  ;;  %v8876_v52 = vpop.eup %8875 }
 0x8a5   : > { %v12862_v63 = vpop.xlane.xlu1 %4103  ;;  %5649 = vrot.lane.b32.xlu1 %v5424_v44, %s9224_s24  ;;  %5843 = vrot.lane.b32.xlu0 %v5473_v9, %s9227_s23  ;;  %v8878_v15 = vpop.eup %8877  ;;  %v5440_v32 = vmul.f32 %v8876_v52, %v12698_v40 }
 0x8a6   : > { %v8880_v24 = vpop.eup %8879  ;;  %v5489_v13 = vmul.f32 %v8878_v15, %v7823_v46 }
 0x8a7   : > { %v12868_v34 = vpop.xlane.xlu0 %3989  ;;  %v8882_v44 = vpop.eup %8881  ;;  %v5442_v58 = vmul.f32 %v8880_v24, %v12688_v51  ;;  %v14678_v24 = vld [vmem:[#allocation66_spill] sm:$0xff] }
 0x8a8   : > { %v8884_v61 = vpop.eup %8883  ;;  %v5395_v46 = vmul.f32 %v8882_v44, %v12435_v48  ;;  %v7792_v48 = vpop.f32.mrf.mxu1  ;;  %8905 = vrcp.f32 %v14678_v24 }
 0x8a9   : > { %v12871_v41 = vpop.xlane.xlu1 %4107  ;;  %5653 = vrot.lane.b32.xlu1 %v5426_v39, %s9224_s24  ;;  %5903 = vrot.lane.b32.xlu0 %v5487_v5, %s9228_s0  ;;  %v8886_v19 = vpop.eup %8885  ;;  %v5456_v28 = vmul.f32 %v8884_v61, %v12711_v38 }
 0x8aa   : > { %v8888_v31 = vpop.eup %8887  ;;  %v5397_v51 = vmul.f32 %v8886_v19, %v12427_v1  ;;  %v5058_v1 = vpop.f32.mrf.mxu1 }
 0x8ab   : > { %v12876_v9 = vpop.xlane.xlu0 %4017  ;;  %v8890_v39 = vpop.eup %8889  ;;  %v5458_v30 = vmul.f32 %v8888_v31, %v12701_v16  ;;  %v14681_v16 = vld [vmem:[#allocation103_spill] sm:$0xff] }
 0x8ac   : > { %v5411_v38 = vmul.f32 %v8890_v39, %v12567_v59  ;;  %v8892_v15 = vpop.eup %8891 }
 0x8ad   : > { %v12880_v23 = vpop.xlane.xlu1 %4135  ;;  %5713 = vrot.lane.b32.xlu1 %v5440_v32, %s9225_s16  ;;  %5907 = vrot.lane.b32.xlu0 %v5489_v13, %s9228_s0  ;;  %v8894_v35 = vpop.eup %8893  ;;  %v14679_v32 = vld [vmem:[#allocation61_spill] sm:$0xff]  ;;  %v5413_v59 = vmul.f32 %v8892_v15, %v14681_v16 }
 0x8ae   : > { %8907 = vrcp.f32 %v14679_v32  ;;  %v5472_v44 = vmul.f32 %v8894_v35, %v5058_v1 }
 0x8af   : > { %v12885_v0 = vpop.xlane.xlu0 %4021  ;;  %8909 = vrcp.f32 %v14680_v36  ;;  %v14685_v36 = vld [vmem:[#allocation60_spill] sm:$0xff] }
 0x8b1   : > { %v12890_v40 = vpop.xlane.xlu1 %4139  ;;  %5717 = vrot.lane.b32.xlu1 %v5442_v58, %s9225_s16  ;;  %5527 = vrot.lane.b32.xlu0 %v5395_v46, %s14202_s27  ;;  %v8896_v58 = vpop.eup %8895 }
 0x8b2   : > { %v7824_v46 = vpop.f32.mrf.mxu0  ;;  %v8898_v31 = vpop.eup %8897 }
 0x8b3   : > { %v12895_v5 = vpop.xlane.xlu0 %4049  ;;  %v5474_v39 = vmul.f32 %v8898_v31, %v7792_v48  ;;  %v8900_v24 = vpop.eup %8899  ;;  %v14687_v48 = vld [vmem:[#allocation79_spill] sm:$0xff] }
 0x8b4   : > { %v5187_v15 = vpop.f32.mrf.mxu0  ;;  %v8902_v32 = vpop.eup %8901  ;;  %v5429_v31 = vmul.f32 %v8900_v24, %v14687_v48  ;;  %v14691_v48 = vld [vmem:[#allocation75_spill] sm:$0xff] }
 0x8b5   : > { %v12900_v47 = vpop.xlane.xlu1 %3951  ;;  %5777 = vrot.lane.b32.xlu1 %v5456_v28, %s9226_s17  ;;  %5531 = vrot.lane.b32.xlu0 %v5397_v51, %s14202_s27  ;;  %v14682_v28 = vld [vmem:[#allocation54_spill] sm:$0xff]  ;;  %v5488_v16 = vmul.f32 %v8902_v32, %v5187_v15 }
 0x8b6   : > { %8911 = vrcp.f32 %v14682_v28  ;;  %v14683_v51 = vld [vmem:[#allocation98_spill] sm:$0xff]  ;;  %v8904_v28 = vpop.eup %8903 }
 0x8b7   : > { %v12905_v52 = vpop.xlane.xlu0 %4053  ;;  %8913 = vrcp.f32 %v14683_v51  ;;  %v8906_v51 = vpop.eup %8905 }
 0x8b8   : > { %8915 = vrcp.f32 %v14685_v36 }
 0x8b9   : > { %v12910_v13 = vpop.xlane.xlu1 %3955  ;;  %5781 = vrot.lane.b32.xlu1 %v5458_v30, %s9226_s17  ;;  %5591 = vrot.lane.b32.xlu0 %v5411_v38, %s9223_s20  ;;  %v14684_v38 = vld [vmem:[#allocation92_spill] sm:$0xff] }
 0x8ba   : > { %v5427_v1 = vmul.f32 %v8896_v58, %v14684_v38  ;;  %v14688_v38 = vld [vmem:[#allocation50_spill] sm:$0xff] }
 0x8bb   : > { %v12916_v61 = vpop.xlane.xlu0 %4081 }
 0x8bd   : > { %v12919_v19 = vpop.xlane.xlu1 %3983  ;;  %5841 = vrot.lane.b32.xlu1 %v5472_v44, %s9227_s23  ;;  %5595 = vrot.lane.b32.xlu0 %v5413_v59, %s9223_s20  ;;  %v14686_v44 = vld [vmem:[#allocation41_spill] sm:$0xff] }
 0x8be   : > { %8917 = vrcp.f32 %v14686_v44  ;;  %v14689_v44 = vld [vmem:[#allocation25_spill] sm:$0xff] }
 0x8bf   : > { %v12925_v30 = vpop.xlane.xlu0 %4085  ;;  %8919 = vrcp.f32 %v14688_v38  ;;  %v5443_v15 = vmul.f32 %v8904_v28, %v14689_v44  ;;  %v14693_v38 = vld [vmem:[#allocation74_spill] sm:$0xff]  ;;  %v14695_v28 = vld [vmem:[#allocation31_spill] sm:$0xff] }
 0x8c0   : > { %8921 = vrcp.f32 %v14690_v33 }
 0x8c1   : > { %v12928_v35 = vpop.xlane.xlu1 %3987  ;;  %5845 = vrot.lane.b32.xlu1 %v5474_v39, %s9227_s23  ;;  %5655 = vrot.lane.b32.xlu0 %v5427_v1, %s9224_s24  ;;  %v8908_v39 = vpop.eup %8907  ;;  %v5490_v1 = vmul.f32 %v8906_v51, %v7824_v46  ;;  %8923 = vrcp.f32 %v14691_v48  ;;  %v14694_v51 = vld [vmem:[#allocation29_spill] sm:$0xff]  ;;  %v14698_v48 = vld [vmem:[#allocation87_spill] sm:$0xff] }
 0x8c2   : > { %v8910_v32 = vpop.eup %8909  ;;  %v5396_v46 = vmul.f32 %v8908_v39, %v14693_v38  ;;  %8925 = vrcp.f32 %v14695_v28 }
 0x8c3   : > { %v12934_v59 = vpop.xlane.xlu0 %4113  ;;  %v5445_v12 = vmul.f32 %v8910_v32, %v14694_v51  ;;  %v7795_v32 = vpop.f32.mrf.mxu1  ;;  %v14699_v51 = vld [vmem:[#allocation113_spill] sm:$0xff] }
 0x8c5   : > { %v12937_v58 = vpop.xlane.xlu1 %4015  ;;  %5905 = vrot.lane.b32.xlu1 %v5488_v16, %s9228_s0  ;;  %5659 = vrot.lane.b32.xlu0 %v5429_v31, %s9224_s24  ;;  %v8912_v16 = vpop.eup %8911 }
 0x8c6   : > { %v8914_v6 = vpop.eup %8913 }
 0x8c7   : > { %v12942_v36 = vpop.xlane.xlu0 %4117  ;;  %v8916_v33 = vpop.eup %8915  ;;  %v5459_v39 = vmul.f32 %v8914_v6, %v12729_v43 }
 0x8c8   : > { %v5071_v43 = vpop.f32.mrf.mxu1 }
 0x8c9   : > { %v12946_v24 = vpop.xlane.xlu1 %4019  ;;  %5909 = vrot.lane.b32.xlu1 %v5490_v1, %s9228_s0  ;;  %5719 = vrot.lane.b32.xlu0 %v5443_v15, %s9225_s16  ;;  %v14696_v1 = vld [vmem:[#allocation90_spill] sm:$0xff] }
 0x8ca   : > { %8927 = vrcp.f32 %v14696_v1  ;;  %v14702_v1 = vld [vmem:[#allocation27_spill] sm:$0xff] }
 0x8cb   : > { %v12951_v31 = vpop.xlane.xlu0 %4145  ;;  %v8918_v38 = vpop.eup %8917  ;;  %8929 = vrcp.f32 %v14699_v51 }
 0x8cc   : > { %14692 = vst [vmem:[#allocation66_spill] sm:$0xff] %v12951_v31  ;;  %v5398_v31 = vmul.f32 %v8912_v16, %v14698_v48  ;;  %v5461_v16 = vmul.f32 %v8918_v38, %v12718_v50  ;;  %v8920_v48 = vpop.eup %8919 }
 0x8cd   : > { %v12956_v44 = vpop.xlane.xlu1 %4047  ;;  %5529 = vrot.lane.b32.xlu1 %v5396_v46, %s14202_s27  ;;  %5723 = vrot.lane.b32.xlu0 %v5445_v12, %s9225_s16  ;;  %v14700_v12 = vld [vmem:[#allocation94_spill] sm:$0xff] }
 0x8ce   : > { %8931 = vrcp.f32 %v14700_v12 }
 0x8cf   : > { %v12961_v15 = vpop.xlane.xlu0 %4149  ;;  %8933 = vrcp.f32 %v12723_v54 }
 0x8d0   : > { %14697 = vst [vmem:[#allocation61_spill] sm:$0xff] %v12961_v15  ;;  %v5412_v15 = vmul.f32 %v8916_v33, %v14702_v1  ;;  %v14704_v33 = vld [vmem:[#allocation88_spill] sm:$0xff]  ;;  %v7827_v1 = vpop.f32.mrf.mxu0 }
 0x8d1   : > { %v12966_v28 = vpop.xlane.xlu1 %4051  ;;  %5533 = vrot.lane.b32.xlu1 %v5398_v31, %s14202_s27  ;;  %5783 = vrot.lane.b32.xlu0 %v5459_v39, %s9226_s17  ;;  %v8922_v31 = vpop.eup %8921  ;;  %v14703_v39 = vld [vmem:[#allocation63_spill] sm:$0xff]  ;;  %v5414_v50 = vmul.f32 %v8920_v48, %v14704_v33 }
 0x8d2   : > { %8935 = vrcp.f32 %v14703_v39  ;;  %v5475_v51 = vmul.f32 %v8922_v31, %v5071_v43  ;;  %v8924_v38 = vpop.eup %8923  ;;  %v14707_v43 = vld [vmem:[#allocation91_spill] sm:$0xff]  ;;  %v5200_v48 = vpop.f32.mrf.mxu0 }
 0x8d3   : > { %v12971_v46 = vpop.xlane.xlu0 %3897  ;;  %8937 = vrcp.f32 %v12735_v49  ;;  %v8926_v54 = vpop.eup %8925  ;;  %v5428_v31 = vmul.f32 %v8924_v38, %v14707_v43 }
 0x8d4   : > { %14701 = vst [vmem:[#allocation44_spill] sm:$0xff] %v12971_v46 }
 0x8d5   : > { %v12976_v6 = vpop.xlane.xlu1 %4079  ;;  %5593 = vrot.lane.b32.xlu1 %v5412_v15, %s9223_s20  ;;  %5787 = vrot.lane.b32.xlu0 %v5461_v16, %s9226_s17  ;;  %v14705_v15 = vld [vmem:[#allocation62_spill] sm:$0xff]  ;;  %v5477_v16 = vmul.f32 %v8926_v54, %v7795_v32  ;;  %v14709_v32 = vld [vmem:[#allocation105_spill] sm:$0xff] }
 0x8d6   : > { %8939 = vrcp.f32 %v14705_v15 }
 0x8d7   : > { %v12982_v12 = vpop.xlane.xlu0 %3901  ;;  %8941 = vrcp.f32 %v12750_v4  ;;  %v8928_v39 = vpop.eup %8927 }
 0x8d8   : > { %v5430_v54 = vmul.f32 %v8928_v39, %v14709_v32 }
 0x8d9   : > { %v12985_v46 = vpop.xlane.xlu1 %4083  ;;  %5597 = vrot.lane.b32.xlu1 %v5414_v50, %s9223_s20  ;;  %5847 = vrot.lane.b32.xlu0 %v5475_v51, %s9227_s23  ;;  %v8930_v50 = vpop.eup %8929  ;;  %v14708_v51 = vld [vmem:[#allocation34_spill] sm:$0xff] }
 0x8da   : > { %8943 = vrcp.f32 %v14708_v51  ;;  %v5491_v15 = vmul.f32 %v8930_v50, %v5200_v48  ;;  %v14711_v50 = vld [vmem:[#allocation64_spill] sm:$0xff] }
 0x8db   : > { %v12991_v49 = vpop.xlane.xlu0 %3905  ;;  %8945 = vrcp.f32 %v12764_v26 }
 0x8dc   : > { %14706 = vst [vmem:[#allocation103_spill] sm:$0xff] %v12991_v49  ;;  %v8932_v49 = vpop.eup %8931  ;;  %8947 = vrcp.f32 %v12776_v25  ;;  %v14713_v25 = vld [vmem:[#allocation82_spill] sm:$0xff] }
 0x8dd   : > { %v12994_v33 = vpop.xlane.xlu1 %4111  ;;  %5657 = vrot.lane.b32.xlu1 %v5428_v31, %s9224_s24  ;;  %5851 = vrot.lane.b32.xlu0 %v5477_v16, %s9227_s23  ;;  %v8934_v43 = vpop.eup %8933  ;;  %v5444_v26 = vmul.f32 %v8932_v49, %v12737_v7  ;;  %8949 = vrcp.f32 %v14711_v50  ;;  %v14715_v7 = vld [vmem:[#allocation37_spill] sm:$0xff]  ;;  %v14717_v50 = vld [vmem:[#allocation76_spill] sm:$0xff] }
 0x8de   : > { %v5493_v16 = vmul.f32 %v8934_v43, %v7827_v1  ;;  %8951 = vrcp.f32 %v12788_v42 }
 0x8df   : > { %v13000_v4 = vpop.xlane.xlu0 %3909  ;;  %v8936_v31 = vpop.eup %8935  ;;  %8953 = vrcp.f32 %v14715_v7 }
 0x8e0   : > { %v8938_v48 = vpop.eup %8937  ;;  %v5446_v1 = vmul.f32 %v8936_v31, %v14713_v25  ;;  %8955 = vrcp.f32 %v12801_v53 }
 0x8e1   : > { %v13003_v38 = vpop.xlane.xlu1 %4115  ;;  %5661 = vrot.lane.b32.xlu1 %v5430_v54, %s9224_s24  ;;  %5911 = vrot.lane.b32.xlu0 %v5491_v15, %s9228_s0  ;;  %v14714_v54 = vld [vmem:[#allocation43_spill] sm:$0xff] }
 0x8e2   : > { %v5399_v43 = vmul.f32 %v8938_v48, %v14714_v54  ;;  %v7796_v48 = vpop.f32.mrf.mxu1  ;;  %v14718_v54 = vld [vmem:[#allocation99_spill] sm:$0xff] }
 0x8e3   : > { %v13008_v51 = vpop.xlane.xlu0 %3913  ;;  %v8940_v32 = vpop.eup %8939  ;;  %8957 = vrcp.f32 %v14718_v54 }
 0x8e4   : > { %14710 = vst [vmem:[#allocation54_spill] sm:$0xff] %v13008_v51  ;;  %v8942_v51 = vpop.eup %8941  ;;  %v5460_v42 = vmul.f32 %v8940_v32, %v12754_v62  ;;  %8959 = vrcp.f32 %v12815_v29 }
 0x8e5   : > { %v13012_v39 = vpop.xlane.xlu1 %4143  ;;  %5721 = vrot.lane.b32.xlu1 %v5444_v26, %s9225_s16  ;;  %5915 = vrot.lane.b32.xlu0 %v5493_v16, %s9228_s0  ;;  %v5401_v31 = vmul.f32 %v8942_v51, %v14717_v50  ;;  %v5074_v51 = vpop.f32.mrf.mxu1  ;;  %v14721_v50 = vld [vmem:[#allocation106_spill] sm:$0xff] }
 0x8e6   : > { %8961 = vrcp.f32 %v14721_v50 }
 0x8e7   : > { %v13017_v15 = vpop.xlane.xlu0 %3917  ;;  %v8944_v26 = vpop.eup %8943 }
 0x8e8   : > { %14712 = vst [vmem:[#allocation98_spill] sm:$0xff] %v13017_v15  ;;  %v8946_v25 = vpop.eup %8945  ;;  %v5462_v53 = vmul.f32 %v8944_v26, %v12741_v57  ;;  %v14724_v57 = vld [vmem:[#allocation89_spill] sm:$0xff] }
 0x8e9   : > { %v13022_v49 = vpop.xlane.xlu1 %4147  ;;  %5725 = vrot.lane.b32.xlu1 %v5446_v1, %s9225_s16  ;;  %5535 = vrot.lane.b32.xlu0 %v5399_v43, %s14202_s27  ;;  %v14720_v43 = vld [vmem:[#allocation47_spill] sm:$0xff]  ;;  %v8948_v32 = vpop.eup %8947 }
 0x8ea   : > { %v5415_v62 = vmul.f32 %v8946_v25, %v14720_v43  ;;  %v5417_v26 = vmul.f32 %v8948_v32, %v14724_v57  ;;  %v7828_v43 = vpop.f32.mrf.mxu0 }
 0x8eb   : > { %v13027_v16 = vpop.xlane.xlu0 %3921 }
 0x8ec   : > { %14716 = vst [vmem:[#allocation92_spill] sm:$0xff] %v13027_v16  ;;  %v5203_v32 = vpop.f32.mrf.mxu0 }
 0x8ed   : > { %v13032_v7 = vpop.xlane.xlu1 %3895  ;;  %5785 = vrot.lane.b32.xlu1 %v5460_v42, %s9226_s17  ;;  %5539 = vrot.lane.b32.xlu0 %v5401_v31, %s14202_s27  ;;  %v8950_v42 = vpop.eup %8949  ;;  %v14722_v31 = vld [vmem:[#allocation39_spill] sm:$0xff] }
 0x8ee   : > { %8963 = vrcp.f32 %v14722_v31  ;;  %v5476_v29 = vmul.f32 %v8950_v42, %v5074_v51  ;;  %v8952_v25 = vpop.eup %8951  ;;  %v14726_v51 = vld [vmem:[#allocation68_spill] sm:$0xff] }
 0x8ef   : > { %v13037_v1 = vpop.xlane.xlu0 %3925  ;;  %8965 = vrcp.f32 %v12829_v37  ;;  %v5431_v42 = vmul.f32 %v8952_v25, %v14726_v51  ;;  %v14731_v51 = vld [vmem:[#allocation112_spill] sm:$0xff] }
 0x8f0   : > { %14719 = vst [vmem:[#allocation60_spill] sm:$0xff] %v13037_v1 }
 0x8f1   : > { %v13042_v16 = vpop.xlane.xlu1 %3899  ;;  %5789 = vrot.lane.b32.xlu1 %v5462_v53, %s9226_s17  ;;  %5599 = vrot.lane.b32.xlu0 %v5415_v62, %s9223_s20  ;;  %v8954_v53 = vpop.eup %8953  ;;  %v14725_v62 = vld [vmem:[#allocation100_spill] sm:$0xff] }
 0x8f2   : > { %8967 = vrcp.f32 %v14725_v62  ;;  %v5478_v50 = vmul.f32 %v8954_v53, %v7796_v48  ;;  %v8956_v31 = vpop.eup %8955  ;;  %v14729_v48 = vld [vmem:[#allocation93_spill] sm:$0xff] }
 0x8f3   : > { %v13048_v54 = vpop.permute.xlu0 %5521  ;;  %8969 = vrcp.f32 %v12843_v8  ;;  %v5433_v53 = vmul.f32 %v8956_v31, %v14729_v48 }
 0x8f4   : > { %14723 = vst [vmem:[#allocation41_spill] sm:$0xff] %v13048_v54  ;;  %v14738_v54 = vld [vmem:[#allocation28_spill] sm:$0xff] }
 0x8f5   : > { %v13051_v1 = vpop.xlane.xlu1 %3903  ;;  %5849 = vrot.lane.b32.xlu1 %v5476_v29, %s9227_s23  ;;  %5603 = vrot.lane.b32.xlu0 %v5417_v26, %s9223_s20  ;;  %v8958_v29 = vpop.eup %8957  ;;  %v14728_v26 = vld [vmem:[#allocation108_spill] sm:$0xff] }
 0x8f6   : > { %8971 = vrcp.f32 %v14728_v26  ;;  %v5492_v62 = vmul.f32 %v8958_v29, %v5203_v32  ;;  %v8960_v15 = vpop.eup %8959 }
 0x8f7   : > { %v13057_v37 = vpop.permute.xlu0 %5583  ;;  %8973 = vrcp.f32 %v12853_v18  ;;  %v5447_v32 = vmul.f32 %v8960_v15, %v12759_v22  ;;  %v14736_v15 = vld [vmem:[#allocation81_spill] sm:$0xff] }
 0x8f8   : > { %8975 = vrcp.f32 %v14731_v51 }
 0x8f9   : > { %v13060_v57 = vpop.xlane.xlu1 %3907  ;;  %5853 = vrot.lane.b32.xlu1 %v5478_v50, %s9227_s23  ;;  %5663 = vrot.lane.b32.xlu0 %v5431_v42, %s9224_s24  ;;  %v8962_v50 = vpop.eup %8961  ;;  %8977 = vrcp.f32 %v12862_v63  ;;  %v14734_v63 = vld [vmem:[#allocation101_spill] sm:$0xff] }
 0x8fa   : > { %14727 = vst [vmem:[#allocation79_spill] sm:$0xff] %v13060_v57  ;;  %v5494_v26 = vmul.f32 %v8962_v50, %v7828_v43 }
 0x8fb   : > { %v13066_v8 = vpop.permute.xlu0 %5587  ;;  %v8964_v42 = vpop.eup %8963 }
 0x8fc   : > { %v8966_v29 = vpop.eup %8965  ;;  %v5400_v43 = vmul.f32 %v8964_v42, %v14734_v63 }
 0x8fd   : > { %v13069_v25 = vpop.xlane.xlu1 %3911  ;;  %5913 = vrot.lane.b32.xlu1 %v5492_v62, %s9228_s0  ;;  %5667 = vrot.lane.b32.xlu0 %v5433_v53, %s9224_s24  ;;  %v14733_v62 = vld [vmem:[#allocation35_spill] sm:$0xff]  ;;  %v5449_v50 = vmul.f32 %v8966_v29, %v12746_v14  ;;  %v14740_v29 = vld [vmem:[#allocation85_spill] sm:$0xff] }
 0x8fe   : > { %14730 = vst [vmem:[#allocation50_spill] sm:$0xff] %v13069_v25  ;;  %8979 = vrcp.f32 %v14733_v62 }
 0x8ff   : > { %v13075_v18 = vpop.permute.xlu0 %5647  ;;  %v8968_v48 = vpop.eup %8967  ;;  %8981 = vrcp.f32 %v12871_v41  ;;  %v14737_v41 = vld [vmem:[#allocation102_spill] sm:$0xff] }
 0x900   : > { %v8970_v51 = vpop.eup %8969  ;;  %8983 = vrcp.f32 %v14736_v15  ;;  %v5402_v62 = vmul.f32 %v8968_v48, %v14737_v41  ;;  %v14741_v15 = vld [vmem:[#allocation70_spill] sm:$0xff] }
 0x901   : > { %v13078_v31 = vpop.xlane.xlu1 %3915  ;;  %5917 = vrot.lane.b32.xlu1 %v5494_v26, %s9228_s0  ;;  %5727 = vrot.lane.b32.xlu0 %v5447_v32, %s9225_s16  ;;  %8985 = vrcp.f32 %v12880_v23  ;;  %v5463_v42 = vmul.f32 %v8970_v51, %v14738_v54  ;;  %v14742_v48 = vld [vmem:[#allocation86_spill] sm:$0xff] }
 0x902   : > { %14732 = vst [vmem:[#allocation25_spill] sm:$0xff] %v13078_v31  ;;  %8987 = vrcp.f32 %v14740_v29  ;;  %v14744_v31 = vld [vmem:[#allocation95_spill] sm:$0xff] }
 0x903   : > { %v13084_v53 = vpop.permute.xlu0 %5651  ;;  %v8972_v26 = vpop.eup %8971  ;;  %8989 = vrcp.f32 %v12890_v40 }
 0x904   : > { %v8974_v63 = vpop.eup %8973 }
 0x905   : > { %v13088_v22 = vpop.xlane.xlu1 %3919  ;;  %5537 = vrot.lane.b32.xlu1 %v5400_v43, %s14202_s27  ;;  %5731 = vrot.lane.b32.xlu0 %v5449_v50, %s9225_s16  ;;  %v7799_v43 = vpop.f32.mrf.mxu1  ;;  %v5465_v41 = vmul.f32 %v8974_v63, %v14742_v48 }
 0x906   : > { %14735 = vst [vmem:[#allocation109_spill] sm:$0xff] %v13088_v22  ;;  %v8976_v50 = vpop.eup %8975  ;;  %v5416_v22 = vmul.f32 %v8972_v26, %v14741_v15  ;;  %v7831_v48 = vpop.f32.mrf.mxu0 }
 0x907   : > { %v13094_v32 = vpop.permute.xlu0 %5711  ;;  %v8978_v54 = vpop.eup %8977  ;;  %v5418_v26 = vmul.f32 %v8976_v50, %v14744_v31  ;;  %v14747_v50 = vld [vmem:[#allocation30_spill] sm:$0xff] }
 0x909   : > { %v13098_v14 = vpop.xlane.xlu1 %3923  ;;  %5541 = vrot.lane.b32.xlu1 %v5402_v62, %s14202_s27  ;;  %5791 = vrot.lane.b32.xlu0 %v5463_v42, %s9226_s17  ;;  %v14743_v62 = vld [vmem:[#allocation59_spill] sm:$0xff]  ;;  %v5087_v42 = vpop.f32.mrf.mxu1 }
 0x90a   : > { %14739 = vst [vmem:[#allocation75_spill] sm:$0xff] %v13098_v14  ;;  %8991 = vrcp.f32 %v14743_v62  ;;  %v5479_v14 = vmul.f32 %v8978_v54, %v5087_v42 }
 0x90b   : > { %v13104_v23 = vpop.permute.xlu0 %5715  ;;  %v8980_v29 = vpop.eup %8979  ;;  %8993 = vrcp.f32 %v12900_v47  ;;  %v14746_v47 = vld [vmem:[#allocation45_spill] sm:$0xff] }
 0x90c   : > { %v8982_v15 = vpop.eup %8981  ;;  %v5432_v42 = vmul.f32 %v8980_v29, %v14746_v47 }
 0x90d   : > { %v13108_v51 = vpop.permute.xlu1 %5519  ;;  %5601 = vrot.lane.b32.xlu1 %v5416_v22, %s9223_s20  ;;  %5795 = vrot.lane.b32.xlu0 %v5465_v41, %s9226_s17  ;;  %v14745_v22 = vld [vmem:[#allocation36_spill] sm:$0xff]  ;;  %v8984_v41 = vpop.eup %8983  ;;  %v5481_v62 = vmul.f32 %v8982_v15, %v7799_v43 }
 0x90e   : > { %8995 = vrcp.f32 %v14745_v22  ;;  %v8986_v25 = vpop.eup %8985 }
 0x90f   : > { %v13114_v40 = vpop.permute.xlu0 %5775  ;;  %8997 = vrcp.f32 %v12910_v13  ;;  %v14748_v13 = vld [vmem:[#allocation38_spill] sm:$0xff] }
 0x910   : > { %8999 = vrcp.f32 %v14747_v50  ;;  %v5434_v15 = vmul.f32 %v8984_v41, %v14748_v13 }
 0x911   : > { %v13117_v63 = vpop.permute.xlu1 %5523  ;;  %5605 = vrot.lane.b32.xlu1 %v5418_v26, %s9223_s20  ;;  %5855 = vrot.lane.b32.xlu0 %v5479_v14, %s9227_s23  ;;  %v5216_v14 = vpop.f32.mrf.mxu0  ;;  %9001 = vrcp.f32 %v12919_v19 }
 0x912   : > { %v8988_v26 = vpop.eup %8987  ;;  %v5495_v22 = vmul.f32 %v8986_v25, %v5216_v14  ;;  %9003 = vrcp.f32 %v12928_v35 }
 0x913   : > { %v13123_v54 = vpop.permute.xlu0 %5779  ;;  %v8990_v57 = vpop.eup %8989  ;;  %v5448_v25 = vmul.f32 %v8988_v26, %v12783_v11  ;;  %9005 = vrcp.f32 %v12781_v45 }
 0x914   : > { %9007 = vrcp.f32 %v12937_v58 }
 0x915   : > { %v13126_v31 = vpop.permute.xlu1 %5525  ;;  %5665 = vrot.lane.b32.xlu1 %v5432_v42, %s9224_s24  ;;  %5859 = vrot.lane.b32.xlu0 %v5481_v62, %s9227_s23  ;;  %v5497_v62 = vmul.f32 %v8990_v57, %v7831_v48  ;;  %v14749_v57 = vld [vmem:[#allocation24_spill] sm:$0xff]  ;;  %v14750_v48 = vld [vmem:[#allocation57_spill] sm:$0xff]  ;;  %9009 = vrcp.f32 %v12794_v2 }
 0x916   : > { %9011 = vrcp.f32 %v12946_v24  ;;  %v14752_v24 = vld [vmem:[#allocation84_spill] sm:$0xff] }
 0x917   : > { %v13132_v43 = vpop.permute.xlu0 %5839  ;;  %v8992_v47 = vpop.eup %8991  ;;  %9013 = vrcp.f32 %v12810_v10 }
 0x918   : > { %v8994_v19 = vpop.eup %8993  ;;  %v5450_v35 = vmul.f32 %v8992_v47, %v14749_v57  ;;  %9015 = vrcp.f32 %v12956_v44 }
 0x919   : > { %v13135_v29 = vpop.permute.xlu1 %5585  ;;  %5669 = vrot.lane.b32.xlu1 %v5434_v15, %s9224_s24  ;;  %5919 = vrot.lane.b32.xlu0 %v5495_v22, %s9228_s0  ;;  %v5403_v22 = vmul.f32 %v8994_v19, %v14750_v48  ;;  %v14751_v15 = vld [vmem:[#allocation69_spill] sm:$0xff]  ;;  %9017 = vrcp.f32 %v12824_v56 }
 0x91a   : > { %9019 = vrcp.f32 %v12838_v55 }
 0x91b   : > { %v13140_v42 = vpop.permute.xlu0 %5843  ;;  %v8996_v41 = vpop.eup %8995  ;;  %9021 = vrcp.f32 %v12966_v28  ;;  %v14755_v28 = vld [vmem:[#allocation111_spill] sm:$0xff] }
 0x91c   : > { %v8998_v13 = vpop.eup %8997  ;;  %v5464_v58 = vmul.f32 %v8996_v41, %v12798_v20  ;;  %9023 = vrcp.f32 %v12850_v17 }
 0x91d   : > { %v13144_v50 = vpop.permute.xlu1 %5589  ;;  %5729 = vrot.lane.b32.xlu1 %v5448_v25, %s9225_s16  ;;  %5923 = vrot.lane.b32.xlu0 %v5497_v62, %s9228_s0  ;;  %v9000_v45 = vpop.eup %8999  ;;  %v5405_v47 = vmul.f32 %v8998_v13, %v14751_v15  ;;  %9025 = vrcp.f32 %v12976_v6  ;;  %v14756_v6 = vld [vmem:[#allocation97_spill] sm:$0xff] }
 0x91e   : > { %v9002_v62 = vpop.eup %9001  ;;  %v7800_v25 = vpop.f32.mrf.mxu1  ;;  %v5466_v57 = vmul.f32 %v9000_v45, %v14752_v24  ;;  %v14754_v45 = vld [vmem:[#allocation96_spill] sm:$0xff]  ;;  %9027 = vrcp.f32 %v12859_v27 }
 0x91f   : > { %v13149_v14 = vpop.permute.xlu0 %5903  ;;  %v9004_v41 = vpop.eup %9003  ;;  %9029 = vrcp.f32 %v12985_v46 }
 0x920   : > { %v5090_v48 = vpop.f32.mrf.mxu1  ;;  %v9006_v10 = vpop.eup %9005  ;;  %9031 = vrcp.f32 %v12868_v34 }
 0x921   : > { %v13154_v11 = vpop.permute.xlu1 %5649  ;;  %5733 = vrot.lane.b32.xlu1 %v5450_v35, %s9225_s16  ;;  %5543 = vrot.lane.b32.xlu0 %v5403_v22, %s14202_s27  ;;  %v14753_v35 = vld [vmem:[#allocation40_spill] sm:$0xff]  ;;  %v5480_v44 = vmul.f32 %v9006_v10, %v5090_v48  ;;  %v9008_v15 = vpop.eup %9007  ;;  %9033 = vrcp.f32 %v12994_v33 }
 0x922   : > { %v5419_v20 = vmul.f32 %v9002_v62, %v14753_v35  ;;  %v9010_v56 = vpop.eup %9009  ;;  %9035 = vrcp.f32 %v12876_v9 }
 0x923   : > { %v13159_v26 = vpop.permute.xlu0 %5907  ;;  %v5482_v24 = vmul.f32 %v9010_v56, %v7800_v25  ;;  %v9012_v35 = vpop.eup %9011  ;;  %9037 = vrcp.f32 %v13003_v38  ;;  %v14759_v38 = vld [vmem:[#allocation48_spill] sm:$0xff] }
 0x924   : > { %v9014_v48 = vpop.eup %9013  ;;  %v5437_v25 = vmul.f32 %v9012_v35, %v14756_v6  ;;  %v14758_v35 = vld [vmem:[#allocation83_spill] sm:$0xff]  ;;  %9039 = vrcp.f32 %v12885_v0 }
 0x925   : > { %v13164_v2 = vpop.permute.xlu1 %5653  ;;  %5793 = vrot.lane.b32.xlu1 %v5464_v58, %s9226_s17  ;;  %5547 = vrot.lane.b32.xlu0 %v5405_v47, %s14202_s27  ;;  %v5421_v58 = vmul.f32 %v9004_v41, %v14754_v45  ;;  %v7832_v47 = vpop.f32.mrf.mxu0  ;;  %9041 = vrcp.f32 %v13012_v39 }
 0x926   : > { %9043 = vrcp.f32 %v12895_v5 }
 0x927   : > { %v13169_v19 = vpop.permute.xlu0 %5527  ;;  %9045 = vrcp.f32 %v13022_v49  ;;  %v14762_v49 = vld [vmem:[#allocation107_spill] sm:$0xff] }
 0x929   : > { %v13174_v22 = vpop.permute.xlu1 %5713  ;;  %5797 = vrot.lane.b32.xlu1 %v5466_v57, %s9226_s17  ;;  %5607 = vrot.lane.b32.xlu0 %v5419_v20, %s9223_s20  ;;  %v5435_v57 = vmul.f32 %v9008_v15, %v14755_v28  ;;  %v5219_v20 = vpop.f32.mrf.mxu0 }
 0x92a   : > { %v5496_v10 = vmul.f32 %v9014_v48, %v5219_v20 }
 0x92b   : > { %v13180_v13 = vpop.permute.xlu0 %5531 }
 0x92d   : > { %v13183_v62 = vpop.permute.xlu1 %5717  ;;  %5857 = vrot.lane.b32.xlu1 %v5480_v44, %s9227_s23  ;;  %5611 = vrot.lane.b32.xlu0 %v5421_v58, %s9223_s20  ;;  %v9016_v44 = vpop.eup %9015  ;;  %9047 = vrcp.f32 %v12905_v52 }
 0x92e   : > { %v9018_v58 = vpop.eup %9017  ;;  %v5451_v46 = vmul.f32 %v9016_v44, %v12804_v21  ;;  %9049 = vrcp.f32 %v12916_v61  ;;  %v14764_v61 = vld [vmem:[#allocation55_spill] sm:$0xff] }
 0x92f   : > { %v13189_v55 = vpop.permute.xlu0 %5591  ;;  %v9020_v15 = vpop.eup %9019  ;;  %v5498_v56 = vmul.f32 %v9018_v58, %v7832_v47  ;;  %v14757_v47 = vld [vmem:[#allocation71_spill] sm:$0xff]  ;;  %9051 = vrcp.f32 %v13032_v7 }
 0x930   : > { %v5404_v33 = vmul.f32 %v9020_v15, %v14757_v47  ;;  %v7803_v15 = vpop.f32.mrf.mxu1 }
 0x931   : > { %v13192_v41 = vpop.permute.xlu1 %5777  ;;  %5861 = vrot.lane.b32.xlu1 %v5482_v24, %s9227_s23  ;;  %5671 = vrot.lane.b32.xlu0 %v5435_v57, %s9224_s24  ;;  %v9022_v24 = vpop.eup %9021  ;;  %9053 = vrcp.f32 %v12925_v30 }
 0x932   : > { %v9024_v57 = vpop.eup %9023  ;;  %v5453_v20 = vmul.f32 %v9022_v24, %v14758_v35  ;;  %v14761_v24 = vld [vmem:[#allocation67_spill] sm:$0xff]  ;;  %9055 = vrcp.f32 %v13042_v16 }
 0x933   : > { %v13198_v17 = vpop.permute.xlu0 %5595  ;;  %v9026_v48 = vpop.eup %9025  ;;  %v5406_v6 = vmul.f32 %v9024_v57, %v14759_v38  ;;  %9057 = vrcp.f32 %v12934_v59 }
 0x935   : > { %v13201_v45 = vpop.permute.xlu1 %5781  ;;  %5921 = vrot.lane.b32.xlu1 %v5496_v10, %s9228_s0  ;;  %5675 = vrot.lane.b32.xlu0 %v5437_v25, %s9224_s24  ;;  %v9028_v10 = vpop.eup %9027  ;;  %v5467_v25 = vmul.f32 %v9026_v48, %v12822_v3  ;;  %9059 = vrcp.f32 %v12942_v36  ;;  %v14769_v36 = vld [vmem:[#allocation65_spill] sm:$0xff] }
 0x936   : > { %v9030_v44 = vpop.eup %9029 }
 0x937   : > { %v13207_v27 = vpop.permute.xlu0 %5655  ;;  %v9032_v0 = vpop.eup %9031  ;;  %v5469_v57 = vmul.f32 %v9030_v44, %v14761_v24 }
 0x938   : > { %v9034_v3 = vpop.eup %9033 }
 0x939   : > { %v13210_v28 = vpop.permute.xlu1 %5841  ;;  %5925 = vrot.lane.b32.xlu1 %v5498_v56, %s9228_s0  ;;  %5735 = vrot.lane.b32.xlu0 %v5451_v46, %s9225_s16  ;;  %v14760_v56 = vld [vmem:[#allocation110_spill] sm:$0xff]  ;;  %v9036_v35 = vpop.eup %9035 }
 0x93a   : > { %v5420_v46 = vmul.f32 %v9028_v10, %v14760_v56  ;;  %v9038_v38 = vpop.eup %9037  ;;  %v14763_v56 = vld [vmem:[#allocation32_spill] sm:$0xff] }
 0x93b   : > { %v13216_v34 = vpop.permute.xlu0 %5659  ;;  %v5436_v52 = vmul.f32 %v9036_v35, %v14763_v56 }
 0x93d   : > { %v13220_v21 = vpop.permute.xlu1 %5845  ;;  %5545 = vrot.lane.b32.xlu1 %v5404_v33, %s14202_s27  ;;  %5739 = vrot.lane.b32.xlu0 %v5453_v20, %s9225_s16  ;;  %v5103_v33 = vpop.f32.mrf.mxu1  ;;  %v5422_v20 = vmul.f32 %v9032_v0, %v14762_v49 }
 0x93e   : > { %v5483_v48 = vmul.f32 %v9034_v3, %v5103_v33 }
 0x93f   : > { %v13226_v9 = vpop.permute.xlu0 %5719 }
 0x941   : > { %v13230_v58 = vpop.permute.xlu1 %5905  ;;  %5549 = vrot.lane.b32.xlu1 %v5406_v6, %s14202_s27  ;;  %5799 = vrot.lane.b32.xlu0 %v5467_v25, %s9226_s17  ;;  %v7835_v6 = vpop.f32.mrf.mxu0 }
 0x942   : > { %v9040_v25 = vpop.eup %9039 }
 0x943   : > { %v13236_v39 = vpop.permute.xlu0 %5723  ;;  %v9042_v24 = vpop.eup %9041  ;;  %v5438_v49 = vmul.f32 %v9040_v25, %v14764_v61  ;;  %v14765_v25 = vld [vmem:[#allocation42_spill] sm:$0xff] }
 0x944   : > { %v9044_v3 = vpop.eup %9043 }
 0x945   : > { %v13240_v47 = vpop.permute.xlu1 %5909  ;;  %5609 = vrot.lane.b32.xlu1 %v5420_v46, %s9223_s20  ;;  %5803 = vrot.lane.b32.xlu0 %v5469_v57, %s9226_s17  ;;  %v5485_v46 = vmul.f32 %v9038_v38, %v7803_v15  ;;  %v5232_v57 = vpop.f32.mrf.mxu0  ;;  %v5452_v30 = vmul.f32 %v9044_v3, %v12832_v60  ;;  %v14766_v60 = vld [vmem:[#allocation66_spill] sm:$0xff] }
 0x946   : > { %v9046_v35 = vpop.eup %9045  ;;  %9061 = vrcp.f32 %v14766_v60 }
 0x947   : > { %v13245_v5 = vpop.permute.xlu0 %5783  ;;  %v9048_v38 = vpop.eup %9047  ;;  %9063 = vrcp.f32 %v12982_v12  ;;  %v14772_v12 = vld [vmem:[#allocation80_spill] sm:$0xff] }
 0x949   : > { %v13248_v10 = vpop.permute.xlu1 %5529  ;;  %5613 = vrot.lane.b32.xlu1 %v5422_v20, %s9223_s20  ;;  %5863 = vrot.lane.b32.xlu0 %v5483_v48, %s9227_s23  ;;  %v5499_v20 = vmul.f32 %v9042_v24, %v5232_v57  ;;  %v5501_v48 = vmul.f32 %v9046_v35, %v7835_v6  ;;  %v14768_v57 = vld [vmem:[#allocation115_spill] sm:$0xff] }
 0x94b   : > { %v13253_v44 = vpop.permute.xlu0 %5787 }
 0x94d   : > { %v13257_v0 = vpop.permute.xlu1 %5533  ;;  %5673 = vrot.lane.b32.xlu1 %v5436_v52, %s9224_s24  ;;  %5867 = vrot.lane.b32.xlu0 %v5485_v46, %s9227_s23  ;;  %v5454_v52 = vmul.f32 %v9048_v38, %v14765_v25  ;;  %v9050_v46 = vpop.eup %9049  ;;  %v14770_v38 = vld [vmem:[#allocation61_spill] sm:$0xff] }
 0x94e   : > { %v9052_v59 = vpop.eup %9051  ;;  %v5468_v3 = vmul.f32 %v9050_v46, %v14768_v57  ;;  %9065 = vrcp.f32 %v14770_v38 }
 0x94f   : > { %v13262_v33 = vpop.permute.xlu0 %5847  ;;  %v9054_v61 = vpop.eup %9053 }
 0x951   : > { %v13266_v15 = vpop.permute.xlu1 %5593  ;;  %5677 = vrot.lane.b32.xlu1 %v5438_v49, %s9224_s24  ;;  %5927 = vrot.lane.b32.xlu0 %v5499_v20, %s9228_s0  ;;  %v5375_v49 = vmul.f32 %v9052_v59, %v14769_v36  ;;  %v9056_v20 = vpop.eup %9055  ;;  %s6992_s24 = sshll.u32 %s9332_s22, 10 }
 0x952   : > { %v9058_v60 = vpop.eup %9057  ;;  %v5377_v57 = vmul.f32 %v9056_v20, %v14772_v12  ;;  %s13931_s1 = scalar_lea.hbm %s13998_s15, %s6992_s24 }
 0x953   : > { %v13271_v7 = vpop.permute.xlu0 %5851  ;;  %v9060_v38 = vpop.eup %9059 }
 0x955   : > { %v13274_v56 = vpop.permute.xlu1 %5597  ;;  %5737 = vrot.lane.b32.xlu1 %v5452_v30, %s9225_s16  ;;  %5931 = vrot.lane.b32.xlu0 %v5501_v48, %s9228_s0  ;;  %v7804_v30 = vpop.f32.mrf.mxu1  ;;  %v5951_v48 = vsel %vm1926_vm2, %v5375_v49, %v13108_v51  ;;  %v5953_v51 = vsel %vm1926_vm2, %v5377_v57, %v13117_v63 }
 0x956   : > { %v5968_v59 = vsel %vm5967_vm3, %v5951_v48, %v13057_v37  ;;  %v5970_v37 = vsel %vm5967_vm3, %v5953_v51, %v13066_v8  ;;  %v14774_v51 = vld [vmem:[#allocation51_spill] sm:$0xff] }
 0x957   : > { %v13279_v16 = vpop.permute.xlu0 %5911  ;;  %v5985_v20 = vsel %vm5984_vm4, %v5968_v59, %v13075_v18  ;;  %v5987_v18 = vsel %vm5984_vm4, %v5970_v37, %v13084_v53 }
 0x958   : > { %v6002_v63 = vsel %vm6001_vm5, %v5985_v20, %v13094_v32  ;;  %v6004_v32 = vsel %vm6001_vm5, %v5987_v18, %v13104_v23 }
 0x959   : > { %v13282_v24 = vpop.permute.xlu1 %5657  ;;  %5741 = vrot.lane.b32.xlu1 %v5454_v52, %s9225_s16  ;;  %v14771_v52 = vld [vmem:[#allocation114_spill] sm:$0xff] }
 0x95a   : > { %v5470_v46 = vmul.f32 %v9054_v61, %v14771_v52  ;;  %v7836_v52 = vpop.f32.mrf.mxu0 }
 0x95b   : > { %v13286_v6 = vpop.permute.xlu0 %5915 }
 0x95c   : > { %14767 = vst [vmem:[#allocation74_spill] sm:$0xff] %v13286_v6  ;;  %v14773_v6 = vld [vmem:[#allocation103_spill] sm:$0xff]  ;;  %v5235_v57 = vpop.f32.mrf.mxu0 }
 0x95d   : > { %v13291_v35 = vpop.permute.xlu1 %5661  ;;  %5801 = vrot.lane.b32.xlu1 %v5468_v3, %s9226_s17  ;;  %v5106_v3 = vpop.f32.mrf.mxu1  ;;  %9067 = vrcp.f32 %v14773_v6 }
 0x95e   : > { %v5484_v61 = vmul.f32 %v9058_v60, %v5106_v3  ;;  %9069 = vrcp.f32 %v13000_v4  ;;  %v9062_v60 = vpop.eup %9061  ;;  %v6019_v4 = vsel %vm6018_vm6, %v6002_v63, %v13114_v40  ;;  %v6021_v40 = vsel %vm6018_vm6, %v6004_v32, %v13123_v54 }
 0x95f   : > { %v13297_v25 = vpop.permute.xlu0 %5535  ;;  %v9064_v8 = vpop.eup %9063  ;;  %v5500_v3 = vmul.f32 %v9062_v60, %v5235_v57 }
 0x960   : > { %v9066_v53 = vpop.eup %9065 }
 0x961   : > { %v13303_v36 = vpop.permute.xlu1 %5721  ;;  %5805 = vrot.lane.b32.xlu1 %v5470_v46, %s9226_s17  ;;  %v5486_v46 = vmul.f32 %v9060_v38, %v7804_v30  ;;  %v6036_v30 = vsel %vm6035_vm7, %v6019_v4, %v13132_v43  ;;  %v6038_v43 = vsel %vm6035_vm7, %v6021_v40, %v13140_v42  ;;  %v5502_v18 = vmul.f32 %v9066_v53, %v7836_v52  ;;  %v14778_v53 = vld [vmem:[#allocation44_spill] sm:$0xff] }
 0x962   : > { %v6053_v38 = vsel %vm6052_vm8, %v6036_v30, %v13149_v14  ;;  %v14777_v30 = vld [vmem:[#allocation12_spill] sm:$0xff]  ;;  %9071 = vrcp.f32 %v14778_v53  ;;  %v14785_v53 = vld [vmem:[#allocation58_spill] sm:$0xff] }
 0x963   : > { %v13309_v49 = vpop.permute.xlu0 %5539  ;;  %9073 = vrcp.f32 %v13051_v1 }
 0x965   : > { %v13315_v48 = vpop.permute.xlu1 %5725  ;;  %5865 = vrot.lane.b32.xlu1 %v5484_v61, %s9227_s23  ;;  %v5378_v61 = vmul.f32 %v9064_v8, %v14774_v51  ;;  %v6055_v8 = vsel %vm6052_vm8, %v6038_v43, %v13159_v26 }
 0x966   : > { %v13362_v52 = vadd.f32 %v6055_v8, %v14777_v30 }
 0x967   : > { %v13321_v6 = vpop.permute.xlu0 %5599  ;;  %v5954_v23 = vsel %vm1926_vm2, %v5378_v61, %v13126_v31 }
 0x968   : > { %v5971_v63 = vsel %vm5967_vm3, %v5954_v23, %v13144_v50  ;;  %v14776_v50 = vld [vmem:[#allocation33_spill] sm:$0xff]  ;;  %v14780_v23 = vld [vmem:[#allocation10_spill] sm:$0xff] }
 0x969   : > { %v5786_v12 = vpop.permute.xlu1 %5785  ;;  %5869 = vrot.lane.b32.xlu1 %v5486_v46, %s9227_s23  ;;  %v14775_v46 = vld [vmem:[#allocation8_spill] sm:$0xff]  ;;  %v5988_v54 = vsel %vm5984_vm4, %v5971_v63, %v13164_v2 }
 0x96a   : > { %v9068_v37 = vpop.eup %9067  ;;  %v13347_v60 = vadd.f32 %v6053_v38, %v14775_v46  ;;  %v6005_v31 = vsel %vm6001_vm5, %v5988_v54, %v13183_v62  ;;  %v14779_v38 = vld [vmem:[#allocation73_spill] sm:$0xff] }
 0x96b   : > { %v13332_v59 = vpop.permute.xlu0 %5603  ;;  %v6022_v42 = vsel %vm6018_vm6, %v6005_v31, %v13201_v45  ;;  %v5380_v4 = vmul.f32 %v9068_v37, %v14776_v50  ;;  %v9070_v32 = vpop.eup %9069 }
 0x96c   : > { %v6039_v26 = vsel %vm6035_vm7, %v6022_v42, %v13220_v21  ;;  %v6087_v2 = vsel %vm530_vm1, %v13347_v60, 0.0  ;;  %v5382_v21 = vmul.f32 %v9070_v32, %v14779_v38 }
 0x96d   : > { %v5790_v20 = vpop.permute.xlu1 %5789  ;;  %5929 = vrot.lane.b32.xlu1 %v5500_v3, %s9228_s0  ;;  %v6056_v62 = vsel %vm6052_vm8, %v6039_v26, %v13240_v47  ;;  %v5956_v45 = vsel %vm1926_vm2, %v5380_v4, %v13248_v10  ;;  %v6093_v10 = vsel %vm530_vm1, %v13362_v52, 0.0  ;;  %v14783_v4 = vld [vmem:[#allocation13_spill] sm:$0xff]  ;;  %v14784_v26 = vld [vmem:[#allocation50_spill] sm:$0xff] }
 0x96e   : > { %v5973_v51 = vsel %vm5967_vm3, %v5956_v45, %v13266_v15  ;;  %v13381_v37 = vadd.f32 %v6056_v62, %v14780_v23  ;;  %v5958_v15 = vsel %vm1926_vm2, %v5382_v21, %v13257_v0  ;;  %v14781_v0 = vld [vmem:[#allocation22_spill] sm:$0xff] }
 0x96f   : > { %v13349_v14 = vpop.permute.xlu0 %5663  ;;  %v5990_v40 = vsel %vm5984_vm4, %v5973_v51, %v13282_v24  ;;  %v5975_v24 = vsel %vm5967_vm3, %v5958_v15, %v13274_v56 }
 0x970   : > { %v6007_v47 = vsel %vm6001_vm5, %v5990_v40, %v13303_v36  ;;  %v5992_v36 = vsel %vm5984_vm4, %v5975_v24, %v13291_v35  ;;  %v6096_v1 = vsel %vm530_vm1, %v13381_v37, 0.0  ;;  %v14787_v40 = vld [vmem:[#allocation41_spill] sm:$0xff] }
 0x971   : > { %v5850_v57 = vpop.permute.xlu1 %5849  ;;  %5933 = vrot.lane.b32.xlu1 %v5502_v18, %s9228_s0  ;;  %v6024_v63 = vsel %vm6018_vm6, %v6007_v47, %v5786_v12  ;;  %v6009_v54 = vsel %vm6001_vm5, %v5992_v36, %v13315_v48  ;;  %s500_s0 = sand.u32 1, %s9201_s19  }
 0x972   : > { %v6041_v46 = vsel %vm6035_vm7, %v6024_v63, %v5850_v57  ;;  %v6026_v56 = vsel %vm6018_vm6, %v6009_v54, %v5790_v20  ;;  %v14782_v57 = vld [vmem:[#allocation79_spill] sm:$0xff]  ;;  %v9072_v20 = vpop.eup %9071  ;;  %v14788_v63 = vld [vmem:[#allocation56_spill] sm:$0xff]  ;;  %s6870_s30 = sshll.u32 %s500_s0, 6  ;;  %s13942_s22 = scalar_lea.sflag [#allocation3], %s500_s0 }
 0x973   : > { %v13366_v3 = vpop.permute.xlu0 %5667  ;;  %9075 = vrcp.f32 %v14782_v57  ;;  %v5376_v51 = vmul.f32 %v9072_v20, %v14785_v53  ;;  %v9074_v21 = vpop.eup %9073  ;;  %s13906_s20 = scalar_lea.vmem [#allocation2], %s6870_s30  ;;  %s9229_s30 = smov [#allocation2]  }
 0x974   : > { %6088 = vadd.xlane.f32.xlu0 %v6087_v2  ;;  %9077 = vrcp.f32 %v14784_v26  ;;  %v5379_v24 = vmul.f32 %v9074_v21, %v14788_v63  ;;  %s6792_s16 = sshll.u32 %s13906_s20, 4  ;;  %s9153_s24 = sshll.u32 %s9229_s30, 4  ;;  %s13936_s16 = int_to_ptr.vmem [resolvable:$true] %s6792_s16  ;;  %s9154_s24 = int_to_ptr.vmem [resolvable:$false] %s9153_s24 }
 0x975   : > { %v5854_v61 = vpop.permute.xlu1 %5853  ;;  %v5952_v23 = vsel %vm1926_vm2, %v5376_v51, %v14787_v40  ;;  %v14792_v51 = vld [vmem:[#allocation23_spill] sm:$0xff]  ;;  %s9149_s25 = scalar_lea.vmem %s13936_s16, 1024  ;;  %p9156_p0 = scmp.lt.s32.totalorder %s13936_s16, %s9154_s24 }
 0x976   : > { %v6043_v35 = vsel %vm6035_vm7, %v6026_v56, %v5854_v61  ;;  %v14786_v61 = vld [vmem:[#allocation25_spill] sm:$0xff]  ;;  %p9150_p11 = scmp.ne.s32.totalorder %s13936_s16, %s9149_s25 }
 0x977   : > { %v13385_v43 = vpop.permute.xlu0 %5727  ;;  %9079 = vrcp.f32 %v14786_v61 }
 0x978   : > { %6094 = vadd.xlane.f32.xlu0 %v6093_v10  ;;  %v5969_v10 = vsel %vm5967_vm3, %v5952_v23, %v13135_v29  ;;  %p9151_p12 = pnand %p9150_p11, %p9349_p5 }
 0x979   : > { %v5914_v18 = vpop.permute.xlu1 %5913  ;;  %v5986_v15 = vsel %vm5984_vm4, %v5969_v10, %v13154_v11 }
 0x97a   : > { %v6058_v8 = vsel %vm6052_vm8, %v6041_v46, %v5914_v18  ;;  %v6003_v36 = vsel %vm6001_vm5, %v5986_v15, %v13174_v22  ;;  %p9152_p13 = pneg %p9151_p12 }
 0x97b   : > { %v13402_v31 = vadd.f32 %v6058_v8, %v14781_v0  ;;  %v13404_v12 = vpop.permute.xlu0 %5731  ;;  %v5955_v8 = vsel %vm1926_vm2, %v5379_v24, %v13169_v19  ;;  %v6020_v54 = vsel %vm6018_vm6, %v6003_v36, %v13192_v41  ;;  %v14795_v24 = vld [vmem:[#allocation11_spill] sm:$0xff] }
 0x97c   : > { %6097 = vadd.xlane.f32.xlu0 %v6096_v1  ;;  %v5972_v29 = vsel %vm5967_vm3, %v5955_v8, %v13189_v55  ;;  %v6037_v11 = vsel %vm6035_vm7, %v6020_v54, %v13210_v28  ;;  %v14789_v1 = vld [vmem:[#allocation53_spill] sm:$0xff] }
 0x97d   : > { %v5918_v42 = vpop.permute.xlu1 %5917  ;;  %v6102_v30 = vsel %vm530_vm1, %v13402_v31, 0.0  ;;  %v5989_v57 = vsel %vm5984_vm4, %v5972_v29, %v13207_v27  ;;  %v6054_v22 = vsel %vm6052_vm8, %v6037_v11, %v13230_v58  ;;  %v14790_v27 = vld [vmem:[#allocation9_spill] sm:$0xff] }
 0x97e   : > { %v6060_v50 = vsel %vm6052_vm8, %v6043_v35, %v5918_v42  ;;  %v6006_v41 = vsel %vm6001_vm5, %v5989_v57, %v13226_v9 }
 0x97f   : > { %v13413_v48 = vadd.f32 %v6060_v50, %v14783_v4  ;;  %v5792_v32 = vpop.permute.xlu0 %5791  ;;  %v6023_v28 = vsel %vm6018_vm6, %v6006_v41, %v13245_v5  ;;  %v13463_v4 = vadd.f32 %v6054_v22, %v14790_v27  ;;  %v14799_v41 = vld [vmem:[#allocation16_spill] sm:$0xff] }
 0x980   : > { %6103 = vadd.xlane.f32.xlu0 %v6102_v30  ;;  %v9076_v18 = vpop.eup %9075  ;;  %v6040_v58 = vsel %vm6035_vm7, %v6023_v28, %v13262_v33 }
 0x981   : > { %v13418_v2 = vpop.permute.xlu1 %5537  ;;  %v6108_v45 = vsel %vm530_vm1, %v13413_v48, 0.0  ;;  %v5381_v56 = vmul.f32 %v9076_v18, %v14789_v1  ;;  %v9078_v19 = vpop.eup %9077  ;;  %v6057_v9 = vsel %vm6052_vm8, %v6040_v58, %v13279_v16  ;;  %v6090_v21 = vsel %vm530_vm1, %v13463_v4, 0.0  ;;  %v14797_v1 = vld [vmem:[#allocation14_spill] sm:$0xff] }
 0x982   : > { %v13481_v61 = vadd.f32 %v6057_v9, %v14792_v51  ;;  %v14800_v9 = vld [vmem:[#allocation72_spill] sm:$0xff] }
 0x983   : > { %v13420_v62 = vpop.permute.xlu0 %5795  ;;  %v5957_v55 = vsel %vm1926_vm2, %v5381_v56, %v13180_v13  ;;  %v14791_v13 = vld [vmem:[#allocation77_spill] sm:$0xff] }
 0x984   : > { %6109 = vadd.xlane.f32.xlu0 %v6108_v45  ;;  %v5974_v50 = vsel %vm5967_vm3, %v5957_v55, %v13198_v17  ;;  %v5383_v26 = vmul.f32 %v9078_v19, %v14791_v13  ;;  %v9080_v5 = vpop.eup %9079  ;;  %v6099_v8 = vsel %vm530_vm1, %v13481_v61, 0.0  ;;  %v14798_v19 = vld [vmem:[#allocation98_spill] sm:$0xff] }
 0x985   : > { %v13426_v38 = vpop.permute.xlu1 %5541  ;;  %v5991_v30 = vsel %vm5984_vm4, %v5974_v50, %v13216_v34 }
 0x986   : > { %v6008_v45 = vsel %vm6001_vm5, %v5991_v30, %v13236_v39  ;;  %v5959_v53 = vsel %vm1926_vm2, %v5383_v26, %v13297_v25  ;;  %v14793_v39 = vld [vmem:[#allocation74_spill] sm:$0xff] }
 0x987   : > { %v5856_v47 = vpop.permute.xlu0 %5855  ;;  %v6025_v17 = vsel %vm6018_vm6, %v6008_v45, %v13253_v44  ;;  %v5976_v16 = vsel %vm5967_vm3, %v5959_v53, %v13321_v6  ;;  %v14794_v44 = vld [vmem:[#allocation46_spill] sm:$0xff] }
 0x988   : > { %v6042_v34 = vsel %vm6035_vm7, %v6025_v17, %v13271_v7  ;;  %v5385_v23 = vmul.f32 %v9080_v5, %v14794_v44  ;;  %v5993_v25 = vsel %vm5984_vm4, %v5976_v16, %v13349_v14 }
 0x989   : > { %v13435_v46 = vpop.permute.xlu1 %5601  ;;  %v6059_v40 = vsel %vm6052_vm8, %v6042_v34, %v14793_v39  ;;  %v6010_v7 = vsel %vm6001_vm5, %v5993_v25, %v13385_v43  ;;  %v14802_v39 = vld [vmem:[#allocation109_spill] sm:$0xff] }
 0x98a   : > { %v5961_v15 = vsel %vm1926_vm2, %v5385_v23, %v13309_v49  ;;  %v6027_v6 = vsel %vm6018_vm6, %v6010_v7, %v5792_v32  ;;  %v13500_v18 = vadd.f32 %v6059_v40, %v14795_v24  ;;  %v14796_v32 = vld [vmem:[#allocation54_spill] sm:$0xff] }
 0x98b   : > { %v5860_v0 = vpop.permute.xlu0 %5859  ;;  %v5978_v36 = vsel %vm5967_vm3, %v5961_v15, %v13332_v59  ;;  %v6044_v14 = vsel %vm6035_vm7, %v6027_v6, %v5856_v47  ;;  %9081 = vrcp.f32 %v14796_v32  ;;  %v14803_v15 = vld [vmem:[#allocation15_spill] sm:$0xff] }
 0x98c   : > { %v5995_v43 = vsel %vm5984_vm4, %v5978_v36, %v13366_v3  ;;  %v6105_v3 = vsel %vm530_vm1, %v13500_v18, 0.0  ;;  %9083 = vrcp.f32 %v14798_v19  ;;  %v14804_v36 = vld [vmem:[#allocation75_spill] sm:$0xff] }
 0x98d   : > { %v13452_v35 = vpop.permute.xlu1 %5605  ;;  %v6012_v29 = vsel %vm6001_vm5, %v5995_v43, %v13404_v12  ;;  %9085 = vrcp.f32 %v14802_v39  ;;  %v14805_v43 = vld [vmem:[#allocation17_spill] sm:$0xff] }
 0x98e   : > { %v6029_v59 = vsel %vm6018_vm6, %v6012_v29, %v13420_v62  ;;  %9087 = vrcp.f32 %v14804_v36 }
 0x98f   : > { %v5920_v42 = vpop.permute.xlu0 %5919  ;;  %v6046_v47 = vsel %vm6035_vm7, %v6029_v59, %v5860_v0 }
 0x990   : > { %v6061_v49 = vsel %vm6052_vm8, %v6044_v14, %v5920_v42 }
 0x991   : > { %v5666_v20 = vpop.permute.xlu1 %5665  ;;  %v13519_v56 = vadd.f32 %v6061_v49, %v14797_v1 }
 0x993   : > { %v5924_v33 = vpop.permute.xlu0 %5923  ;;  %v6111_v62 = vsel %vm530_vm1, %v13519_v56, 0.0 }
 0x994   : > { %v6063_v57 = vsel %vm6052_vm8, %v6046_v47, %v5924_v33  ;;  %v14801_v33 = vld [vmem:[#allocation49_spill] sm:$0xff] }
 0x995   : > { %v5670_v10 = vpop.permute.xlu1 %5669  ;;  %6091 = vadd.xlane.f32.xlu1 %v6090_v21  ;;  %v13526_v55 = vadd.f32 %v6063_v57, %v14799_v41  ;;  %v14806_v57 = vld [vmem:[#allocation104_spill] sm:$0xff] }
 0x997   : > { %v13497_v63 = vpop.permute.xlu0 %5543  ;;  %v6117_v42 = vsel %vm530_vm1, %v13526_v55, 0.0 }
 0x998   : > { %v9082_v27 = vpop.eup %9081 }
 0x999   : > { %v5730_v54 = vpop.permute.xlu1 %5729  ;;  %6100 = vadd.xlane.f32.xlu1 %v6099_v8  ;;  %v5384_v13 = vmul.f32 %v9082_v27, %v14800_v9  ;;  %v9084_v26 = vpop.eup %9083 }
 0x99a   : > { %v5386_v34 = vmul.f32 %v9084_v26, %v14801_v33  ;;  %v9086_v47 = vpop.eup %9085 }
 0x99b   : > { %v13515_v11 = vpop.permute.xlu0 %5547  ;;  %v5960_v45 = vsel %vm1926_vm2, %v5384_v13, %v13418_v2  ;;  %v9088_v19 = vpop.eup %9087 }
 0x99c   : > { %v5977_v17 = vsel %vm5967_vm3, %v5960_v45, %v13435_v46  ;;  %v5962_v40 = vsel %vm1926_vm2, %v5386_v34, %v13426_v38 }
 0x99d   : > { %v5734_v22 = vpop.permute.xlu1 %5733  ;;  %6106 = vadd.xlane.f32.xlu1 %v6105_v3  ;;  %v5994_v51 = vsel %vm5984_vm4, %v5977_v17, %v5666_v20  ;;  %v5979_v2 = vsel %vm5967_vm3, %v5962_v40, %v13452_v35 }
 0x99e   : > { %v6011_v16 = vsel %vm6001_vm5, %v5994_v51, %v5730_v54  ;;  %v5996_v25 = vsel %vm5984_vm4, %v5979_v2, %v5670_v10 }
 0x99f   : > { %v5608_v12 = vpop.permute.xlu0 %5607  ;;  %v6013_v7 = vsel %vm6001_vm5, %v5996_v25, %v5734_v22  ;;  %v5387_v22 = vmul.f32 %v9086_v47, %v14806_v57  ;;  %v14810_v25 = vld [vmem:[#allocation92_spill] sm:$0xff] }
 0x9a0   : > { %9089 = vrcp.f32 %v14810_v25 }
 0x9a1   : > { %v5794_v0 = vpop.permute.xlu1 %5793  ;;  %6112 = vadd.xlane.f32.xlu1 %v6111_v62  ;;  %v5963_v62 = vsel %vm1926_vm2, %v5387_v22, %v13497_v63 }
 0x9a2   : > { %v6028_v44 = vsel %vm6018_vm6, %v6011_v16, %v5794_v0  ;;  %v5980_v0 = vsel %vm5967_vm3, %v5963_v62, %v5608_v12 }
 0x9a3   : > { %v5612_v28 = vpop.permute.xlu0 %5611 }
 0x9a5   : > { %v5798_v50 = vpop.permute.xlu1 %5797  ;;  %6118 = vadd.xlane.f32.xlu1 %v6117_v42 }
 0x9a6   : > { %v6030_v38 = vsel %vm6018_vm6, %v6013_v7, %v5798_v50  ;;  %v14807_v50 = vld [vmem:[#allocation78_spill] sm:$0xff]  ;;  %v14811_v7 = vld [vmem:[#allocation60_spill] sm:$0xff] }
 0x9a7   : > { %v5672_v58 = vpop.permute.xlu0 %5671  ;;  %v5389_v27 = vmul.f32 %v9088_v19, %v14807_v50  ;;  %9091 = vrcp.f32 %v14811_v7  ;;  %v14814_v50 = vld [vmem:[#allocation19_spill] sm:$0xff] }
 0x9a9   : > { %v5858_v30 = vpop.permute.xlu1 %5857  ;;  %v5965_v26 = vsel %vm1926_vm2, %v5389_v27, %v13515_v11 }
 0x9aa   : > { %v6045_v46 = vsel %vm6035_vm7, %v6028_v44, %v5858_v30  ;;  %v5997_v30 = vsel %vm5984_vm4, %v5980_v0, %v5672_v58  ;;  %v5982_v17 = vsel %vm5967_vm3, %v5965_v26, %v5612_v28  ;;  %v14808_v58 = vld [vmem:[#allocation18_spill] sm:$0xff] }
 0x9ab   : > { %v5676_v5 = vpop.permute.xlu0 %5675 }
 0x9ac   : > { %v5999_v12 = vsel %vm5984_vm4, %v5982_v17, %v5676_v5  ;;  %v14809_v5 = vld [vmem:[#allocation20_spill] sm:$0xff] }
 0x9ad   : > { %v5862_v53 = vpop.permute.xlu1 %5861  ;;  %v9090_v36 = vpop.eup %9089 }
 0x9ae   : > { %v6047_v14 = vsel %vm6035_vm7, %v6030_v38, %v5862_v53 }
 0x9af   : > { %v5736_v21 = vpop.permute.xlu0 %5735 }
 0x9b0   : > { %v6014_v9 = vsel %vm6001_vm5, %v5997_v30, %v5736_v21 }
 0x9b1   : > { %v5922_v23 = vpop.permute.xlu1 %5921 }
 0x9b2   : > { %v6062_v20 = vsel %vm6052_vm8, %v6045_v46, %v5922_v23 }
 0x9b3   : > { %v13551_v6 = vadd.f32 %v6062_v20, %v14803_v15  ;;  %v5740_v24 = vpop.permute.xlu0 %5739 }
 0x9b4   : > { %v6016_v34 = vsel %vm6001_vm5, %v5999_v12, %v5740_v24 }
 0x9b5   : > { %v5926_v35 = vpop.permute.xlu1 %5925  ;;  %v6114_v8 = vsel %vm530_vm1, %v13551_v6, 0.0 }
 0x9b6   : > { %v6064_v10 = vsel %vm6052_vm8, %v6047_v14, %v5926_v35  ;;  %6115 = vadd.xlane.f32.xlu0 %v6114_v8  ;;  %v14812_v14 = vld [vmem:[#allocation26_spill] sm:$0xff]  ;;  %v9092_v8 = vpop.eup %9091 }
 0x9b7   : > { %v13560_v49 = vadd.f32 %v6064_v10, %v14805_v43  ;;  %v5800_v54 = vpop.permute.xlu0 %5799  ;;  %v5388_v35 = vmul.f32 %v9090_v36, %v14812_v14 }
 0x9b8   : > { %v6031_v45 = vsel %vm6018_vm6, %v6014_v9, %v5800_v54 }
 0x9b9   : > { %v5546_v32 = vpop.permute.xlu1 %5545  ;;  %v6120_v29 = vsel %vm530_vm1, %v13560_v49, 0.0 }
 0x9ba   : > { %6121 = vadd.xlane.f32.xlu0 %v6120_v29  ;;  %v5964_v10 = vsel %vm1926_vm2, %v5388_v35, %v5546_v32  ;;  %v14813_v29 = vld [vmem:[#allocation52_spill] sm:$0xff] }
 0x9bb   : > { %v5804_v59 = vpop.permute.xlu0 %5803 }
 0x9bc   : > { %v6033_v21 = vsel %vm6018_vm6, %v6016_v34, %v5804_v59  ;;  %v5390_v59 = vmul.f32 %v9092_v8, %v14813_v29 }
 0x9bd   : > { %v5550_v1 = vpop.permute.xlu1 %5549 }
 0x9be   : > { %v5966_v57 = vsel %vm1926_vm2, %v5390_v59, %v5550_v1 }
 0x9bf   : > { %v5864_v3 = vpop.permute.xlu0 %5863 }
 0x9c0   : > { %v6048_v53 = vsel %vm6035_vm7, %v6031_v45, %v5864_v3  ;;  %v14815_v45 = vld [vmem:[#allocation21_spill] sm:$0xff] }
 0x9c1   : > { %v5610_v41 = vpop.permute.xlu1 %5609 }
 0x9c2   : > { %v5981_v43 = vsel %vm5967_vm3, %v5964_v10, %v5610_v41 }
 0x9c3   : > { %v5868_v42 = vpop.permute.xlu0 %5867 }
 0x9c4   : > { %v6050_v11 = vsel %vm6035_vm7, %v6033_v21, %v5868_v42 }
 0x9c5   : > { %v5614_v13 = vpop.permute.xlu1 %5613 }
 0x9c6   : > { %v5983_v19 = vsel %vm5967_vm3, %v5966_v57, %v5614_v13 }
 0x9c7   : > { %v5928_v63 = vpop.permute.xlu0 %5927 }
 0x9c8   : > { %v6065_v33 = vsel %vm6052_vm8, %v6048_v53, %v5928_v63 }
 0x9c9   : > { %v13580_v51 = vadd.f32 %v6065_v33, %v14808_v58  ;;  %v5674_v16 = vpop.permute.xlu1 %5673 }
 0x9ca   : > { %v5998_v47 = vsel %vm5984_vm4, %v5981_v43, %v5674_v16 }
 0x9cb   : > { %v5932_v39 = vpop.permute.xlu0 %5931  ;;  %v6123_v28 = vsel %vm530_vm1, %v13580_v51, 0.0 }
 0x9cc   : > { %v6067_v40 = vsel %vm6052_vm8, %v6050_v11, %v5932_v39  ;;  %6124 = vadd.xlane.f32.xlu1 %v6123_v28 }
 0x9cd   : > { %v13588_v44 = vadd.f32 %v6067_v40, %v14809_v5  ;;  %v5678_v2 = vpop.permute.xlu1 %5677 }
 0x9ce   : > { %v6000_v32 = vsel %vm5984_vm4, %v5983_v19, %v5678_v2 }
 0x9cf   : > { %v6129_v46 = vsel %vm530_vm1, %v13588_v44, 0.0 }
 0x9d0   : > { %6130 = vadd.xlane.f32.xlu1 %v6129_v46 }
 0x9d1   : > { %v5738_v23 = vpop.permute.xlu1 %5737 }
 0x9d2   : > { %v6015_v3 = vsel %vm6001_vm5, %v5998_v47, %v5738_v23 }
 0x9d5   : > { %v5742_v20 = vpop.permute.xlu1 %5741 }
 0x9d6   : > { %v6017_v42 = vsel %vm6001_vm5, %v6000_v32, %v5742_v20 }
 0x9d9   : > { %v5802_v15 = vpop.permute.xlu1 %5801 }
 0x9da   : > { %v6032_v22 = vsel %vm6018_vm6, %v6015_v3, %v5802_v15 }
 0x9dd   : > { %v5806_v24 = vpop.permute.xlu1 %5805 }
 0x9de   : > { %v6034_v30 = vsel %vm6018_vm6, %v6017_v42, %v5806_v24 }
 0x9e1   : > { %v5866_v38 = vpop.permute.xlu1 %5865 }
 0x9e2   : > { %v6049_v62 = vsel %vm6035_vm7, %v6032_v22, %v5866_v38 }
 0x9e5   : > { %v5870_v54 = vpop.permute.xlu1 %5869 }
 0x9e6   : > { %v6051_v1 = vsel %vm6035_vm7, %v6034_v30, %v5870_v54 }
 0x9e9   : > { %v5930_v0 = vpop.permute.xlu1 %5929 }
 0x9ea   : > { %v6066_v41 = vsel %vm6052_vm8, %v6049_v62, %v5930_v0 }
 0x9eb   : > { %v13608_v27 = vadd.f32 %v6066_v41, %v14814_v50 }
 0x9ed   : > { %v5934_v9 = vpop.permute.xlu1 %5933  ;;  %v6126_v13 = vsel %vm530_vm1, %v13608_v27, 0.0 }
 0x9ee   : > { %v6068_v26 = vsel %vm6052_vm8, %v6051_v1, %v5934_v9  ;;  %6127 = vadd.xlane.f32.xlu0 %v6126_v13 }
 0x9ef   : > { %v13616_v17 = vadd.f32 %v6068_v26, %v14815_v45 }
 0x9f1   : > { %v6132_v53 = vsel %vm530_vm1, %v13616_v17, 0.0 }
 0x9f2   : > { %6133 = vadd.xlane.f32.xlu0 %v6132_v53 }
 0x9fd   : > { %v6089_v63 = vpop.xlane.xlu0 %6088 }
 0x9fe   : > { %v6136_v12 = vmul.f32 0.015625, %v6089_v63 }
 0xa00   : > { %v13621_v33 = vsub.f32 %v13347_v60, %v6136_v12 }
 0xa01   : > { %v6095_v34 = vpop.xlane.xlu0 %6094 }
 0xa02   : > { %v6138_v58 = vmul.f32 0.015625, %v6095_v34  ;;  %v6168_v16 = vmul.f32 %v13621_v33, %v13621_v33 }
 0xa04   : > { %v13626_v21 = vsub.f32 %v13362_v52, %v6138_v58  ;;  %v6184_v11 = vsel %vm530_vm1, %v6168_v16, 0.0  ;;  %v8573_v58 = vld [vmem:[%s13992_s9 + $0x8] sm:$0xff]  }
 0xa05   : > { %6185 = vadd.xlane.f32.xlu1 %v6184_v11  ;;  %v6098_v40 = vpop.xlane.xlu0 %6097 }
 0xa06   : > { %v6170_v39 = vmul.f32 %v13626_v21, %v13626_v21  ;;  %v6139_v60 = vmul.f32 0.015625, %v6098_v40 }
 0xa08   : > { %v6190_v28 = vsel %vm530_vm1, %v6170_v39, 0.0  ;;  %v13633_v23 = vsub.f32 %v13381_v37, %v6139_v60 }
 0xa09   : > { %6191 = vadd.xlane.f32.xlu1 %v6190_v28  ;;  %v6104_v5 = vpop.xlane.xlu0 %6103 }
 0xa0a   : > { %v6141_v25 = vmul.f32 0.015625, %v6104_v5  ;;  %v6171_v36 = vmul.f32 %v13633_v23, %v13633_v23 }
 0xa0c   : > { %v13643_v38 = vsub.f32 %v13402_v31, %v6141_v25  ;;  %v6193_v43 = vsel %vm530_vm1, %v6171_v36, 0.0 }
 0xa0d   : > { %v6110_v20 = vpop.xlane.xlu0 %6109 }
 0xa0e   : > { %v6143_v14 = vmul.f32 0.015625, %v6110_v20 }
 0xa10   : > { %v13653_v54 = vsub.f32 %v13413_v48, %v6143_v14 }
 0xa12   : > { %v6175_v22 = vmul.f32 %v13653_v54, %v13653_v54 }
 0xa1e   : > { %v6092_v2 = vpop.xlane.xlu1 %6091 }
 0xa1f   : > { %v6137_v46 = vmul.f32 0.015625, %v6092_v2 }
 0xa21   : > { %v13636_v52 = vsub.f32 %v13463_v4, %v6137_v46 }
 0xa22   : > { %v6101_v7 = vpop.xlane.xlu1 %6100 }
 0xa23   : > { %v6140_v15 = vmul.f32 0.015625, %v6101_v7  ;;  %v6169_v24 = vmul.f32 %v13636_v52, %v13636_v52 }
 0xa25   : > { %v13646_v37 = vsub.f32 %v13481_v61, %v6140_v15  ;;  %v6187_v35 = vsel %vm530_vm1, %v6169_v24, 0.0  ;;  %v6173_v61 = vmul.f32 %v13643_v38, %v13643_v38 }
 0xa26   : > { %6188 = vadd.xlane.f32.xlu0 %v6187_v35  ;;  %v6107_v4 = vpop.xlane.xlu1 %6106 }
 0xa27   : > { %v6142_v8 = vmul.f32 0.015625, %v6107_v4  ;;  %v6172_v10 = vmul.f32 %v13646_v37, %v13646_v37  ;;  %v6199_v48 = vsel %vm530_vm1, %v6173_v61, 0.0 }
 0xa29   : > { %v13656_v31 = vsub.f32 %v13500_v18, %v6142_v8  ;;  %v6196_v29 = vsel %vm530_vm1, %v6172_v10, 0.0 }
 0xa2a   : > { %6194 = vadd.xlane.f32.xlu0 %v6193_v43  ;;  %6197 = vadd.xlane.f32.xlu1 %v6196_v29  ;;  %v6113_v59 = vpop.xlane.xlu1 %6112 }
 0xa2b   : > { %v6144_v47 = vmul.f32 0.015625, %v6113_v59  ;;  %v6174_v3 = vmul.f32 %v13656_v31, %v13656_v31 }
 0xa2d   : > { %v13664_v57 = vsub.f32 %v13519_v56, %v6144_v47  ;;  %v6202_v18 = vsel %vm530_vm1, %v6174_v3, 0.0  ;;  %v6205_v56 = vsel %vm530_vm1, %v6175_v22, 0.0 }
 0xa2e   : > { %6200 = vadd.xlane.f32.xlu0 %v6199_v48  ;;  %6203 = vadd.xlane.f32.xlu1 %v6202_v18  ;;  %v6119_v19 = vpop.xlane.xlu1 %6118 }
 0xa2f   : > { %v6146_v62 = vmul.f32 0.015625, %v6119_v19  ;;  %v6176_v0 = vmul.f32 %v13664_v57, %v13664_v57 }
 0xa31   : > { %v13673_v32 = vsub.f32 %v13526_v55, %v6146_v62  ;;  %v6208_v41 = vsel %vm530_vm1, %v6176_v0, 0.0  ;;  %v8571_v55 = vld [vmem:[%s13992_s9 + $0x18] sm:$0xff]  }
 0xa32   : > { %6206 = vadd.xlane.f32.xlu0 %v6205_v56  ;;  %6209 = vadd.xlane.f32.xlu1 %v6208_v41 }
 0xa33   : > { %v6178_v42 = vmul.f32 %v13673_v32, %v13673_v32  ;;  %7837 = vmatprep.subr.bf16.mxu1 %v8571_v55 }
 0xa34   : > { %7838 = vmatpush3.bf16.msra.mxu1 %v8571_v55 }
 0xa35   : > { %v6214_v50 = vsel %vm530_vm1, %v6178_v42, 0.0 }
 0xa36   : > { %6215 = vadd.xlane.f32.xlu1 %v6214_v50 }
 0xa3f   : > { %v6116_v30 = vpop.xlane.xlu0 %6115 }
 0xa40   : > { %v6145_v1 = vmul.f32 0.015625, %v6116_v30 }
 0xa42   : > { %v13681_v9 = vsub.f32 %v13551_v6, %v6145_v1  ;;  %v8572_v6 = vld [vmem:[%s13992_s9 + $0x10] sm:$0xff]  }
 0xa43   : > { %v6122_v13 = vpop.xlane.xlu0 %6121  ;;  %7839 = vmatprep.subr.bf16.mxu1 %v8572_v6 }
 0xa44   : > { %v6147_v26 = vmul.f32 0.015625, %v6122_v13  ;;  %v6177_v45 = vmul.f32 %v13681_v9, %v13681_v9  ;;  %7840 = vmatpush3.bf16.msra.mxu1 %v8572_v6  ;;  %v13732_v6 = vld [vmem:[%s13990_s7] ss:$0 sm:$0xff] }
 0xa45   : > { %7841 = vmatprep.subr.bf16.mxu1 %v8573_v58 }
 0xa46   : > { %v13689_v53 = vsub.f32 %v13560_v49, %v6147_v26  ;;  %v6211_v63 = vsel %vm530_vm1, %v6177_v45, 0.0  ;;  %v8574_v49 = vld [vmem:[%s13992_s9] sm:$0xff]  }
 0xa47   : > { %6212 = vadd.xlane.f32.xlu0 %v6211_v63 }
 0xa48   : > { %v6179_v12 = vmul.f32 %v13689_v53, %v13689_v53  ;;  %7842 = vmatpush3.bf16.msra.mxu1 %v8573_v58 }
 0xa49   : > { %7843 = vmatprep.subr.bf16.mxu1 %v8574_v49 }
 0xa4a   : > { %v6217_v34 = vsel %vm530_vm1, %v6179_v12, 0.0 }
 0xa4b   : > { %6218 = vadd.xlane.f32.xlu0 %v6217_v34 }
 0xa4c   : > { %7844 = vmatpush3.bf16.msra.mxu1 %v8574_v49 }
 0xa55   : > { %v6125_v16 = vpop.xlane.xlu1 %6124 }
 0xa56   : > { %v6148_v11 = vmul.f32 0.015625, %v6125_v16 }
 0xa58   : > { %v13705_v39 = vsub.f32 %v13580_v51, %v6148_v11  ;;  %v13740_v11 = vld [vmem:[%s13991_s8] ss:$0 sm:$0xff] }
 0xa59   : > { %v6131_v28 = vpop.xlane.xlu1 %6130 }
 0xa5a   : > { %v6150_v40 = vmul.f32 0.015625, %v6131_v28  ;;  %v6180_v60 = vmul.f32 %v13705_v39, %v13705_v39 }
 0xa5c   : > { %v13710_v5 = vsub.f32 %v13588_v44, %v6150_v40  ;;  %v6220_v2 = vsel %vm530_vm1, %v6180_v60, 0.0 }
 0xa5d   : > { %6221 = vadd.xlane.f32.xlu1 %v6220_v2 }
 0xa5e   : > { %v6182_v46 = vmul.f32 %v13710_v5, %v13710_v5 }
 0xa60   : > { %v6226_v25 = vsel %vm530_vm1, %v6182_v46, 0.0 }
 0xa61   : > { %6227 = vadd.xlane.f32.xlu1 %v6226_v25 }
 0xa77   : > { %v6128_v20 = vpop.xlane.xlu0 %6127 }
 0xa78   : > { %v6149_v51 = vmul.f32 0.015625, %v6128_v20 }
 0xa7a   : > { %v13717_v7 = vsub.f32 %v13608_v27, %v6149_v51 }
 0xa7b   : > { %v6134_v15 = vpop.xlane.xlu0 %6133 }
 0xa7c   : > { %v6151_v24 = vmul.f32 0.015625, %v6134_v15  ;;  %v6181_v44 = vmul.f32 %v13717_v7, %v13717_v7 }
 0xa7e   : > { %v13722_v36 = vsub.f32 %v13616_v17, %v6151_v24  ;;  %v6223_v14 = vsel %vm530_vm1, %v6181_v44, 0.0 }
 0xa7f   : > { %6224 = vadd.xlane.f32.xlu0 %v6223_v14 }
 0xa80   : > { %v6183_v35 = vmul.f32 %v13722_v36, %v13722_v36 }
 0xa82   : > { %v6229_v4 = vsel %vm530_vm1, %v6183_v35, 0.0 }
 0xa83   : > { %6230 = vadd.xlane.f32.xlu0 %v6229_v4 }
 0xa8e   : > { %v6186_v8 = vpop.xlane.xlu1 %6185 }
 0xa8f   : > { %v6232_v27 = vmul.f32 0.015625, %v6186_v8 }
 0xa91   : > { %v6248_v43 = vadd.f32 1e-05, %v6232_v27 }
 0xa92   : > { %v6192_v10 = vpop.xlane.xlu1 %6191 }
 0xa93   : > { %v6234_v29 = vmul.f32 0.015625, %v6192_v10  ;;  %9093 = vrsqrt.f32 %v6248_v43 }
 0xa95   : > { %v6250_v61 = vadd.f32 1e-05, %v6234_v29 }
 0xa97   : > { %9095 = vrsqrt.f32 %v6250_v61 }
 0xaa0   : > { %v9094_v1 = vpop.eup %9093 }
 0xaa1   : > { %v6280_v45 = vmul.f32 %v9094_v1, %v13621_v33 }
 0xaa3   : > { %v6302_v16 = vmul.f32 %v13732_v6, %v6280_v45 }
 0xaa4   : > { %v9096_v63 = vpop.eup %9095 }
 0xaa5   : > { %v6282_v34 = vmul.f32 %v9096_v63, %v13626_v21  ;;  %v13746_v21 = vadd.f32 %v13740_v11, %v6302_v16 }
 0xaa7   : > { %v6304_v60 = vmul.f32 %v13732_v6, %v6282_v34 }
 0xaa9   : > { %v13753_v14 = vadd.f32 %v13740_v11, %v6304_v60 }
 0xaaf   : > { %v6189_v59 = vpop.xlane.xlu0 %6188 }
 0xab0   : > { %v6233_v47 = vmul.f32 0.015625, %v6189_v59 }
 0xab2   : > { %v6249_v17 = vadd.f32 1e-05, %v6233_v47 }
 0xab3   : > { %v6195_v3 = vpop.xlane.xlu0 %6194  ;;  %v6198_v48 = vpop.xlane.xlu1 %6197 }
 0xab4   : > { %9097 = vrsqrt.f32 %v6249_v17  ;;  %v6235_v18 = vmul.f32 0.015625, %v6195_v3  ;;  %v6236_v22 = vmul.f32 0.015625, %v6198_v48 }
 0xab6   : > { %v6251_v19 = vadd.f32 1e-05, %v6235_v18  ;;  %v6252_v62 = vadd.f32 1e-05, %v6236_v22 }
 0xab7   : > { %v6201_v0 = vpop.xlane.xlu0 %6200  ;;  %v6204_v56 = vpop.xlane.xlu1 %6203 }
 0xab8   : > { %9099 = vrsqrt.f32 %v6251_v19  ;;  %v6237_v41 = vmul.f32 0.015625, %v6201_v0  ;;  %v6238_v42 = vmul.f32 0.015625, %v6204_v56 }
 0xab9   : > { %9101 = vrsqrt.f32 %v6252_v62 }
 0xaba   : > { %v6253_v50 = vadd.f32 1e-05, %v6237_v41  ;;  %v6254_v30 = vadd.f32 1e-05, %v6238_v42 }
 0xabb   : > { %v6207_v55 = vpop.xlane.xlu0 %6206  ;;  %v6210_v58 = vpop.xlane.xlu1 %6209 }
 0xabc   : > { %9103 = vrsqrt.f32 %v6253_v50  ;;  %v6239_v13 = vmul.f32 0.015625, %v6207_v55  ;;  %v6240_v46 = vmul.f32 0.015625, %v6210_v58 }
 0xabd   : > { %9105 = vrsqrt.f32 %v6254_v30 }
 0xabe   : > { %v6255_v26 = vadd.f32 1e-05, %v6239_v13  ;;  %v6256_v8 = vadd.f32 1e-05, %v6240_v46 }
 0xabf   : > { %v6216_v51 = vpop.xlane.xlu1 %6215 }
 0xac0   : > { %9107 = vrsqrt.f32 %v6255_v26  ;;  %v6242_v27 = vmul.f32 0.015625, %v6216_v51 }
 0xac1   : > { %v9098_v12 = vpop.eup %9097  ;;  %9109 = vrsqrt.f32 %v6256_v8 }
 0xac2   : > { %v6281_v49 = vmul.f32 %v9098_v12, %v13636_v52 }
 0xac4   : > { %v6303_v33 = vmul.f32 %v13732_v6, %v6281_v49 }
 0xac5   : > { %v9100_v28 = vpop.eup %9099 }
 0xac6   : > { %v9102_v40 = vpop.eup %9101  ;;  %v6283_v2 = vmul.f32 %v9100_v28, %v13633_v23  ;;  %v6325_v52 = vadd.f32 %v13740_v11, %v6303_v33 }
 0xac7   : > { %v6284_v25 = vmul.f32 %v9102_v40, %v13646_v37 }
 0xac8   : > { %v6305_v20 = vmul.f32 %v13732_v6, %v6283_v2  ;;  %v6340_v15 = vpack.c.bf16 %v6325_v52, %v13746_v21 }
 0xac9   : > { %v9104_v24 = vpop.eup %9103  ;;  %v6306_v4 = vmul.f32 %v13732_v6, %v6284_v25 }
 0xaca   : > { %v9106_v44 = vpop.eup %9105  ;;  %v6327_v23 = vadd.f32 %v13740_v11, %v6305_v20  ;;  %7845 = vmatprep.mubr.msk.bf16.mxu1 %vm530_vm1, %v6340_v15  ;;  %v6285_v35 = vmul.f32 %v9104_v24, %v13643_v38 }
 0xacb   : > { %v6286_v37 = vmul.f32 %v9106_v44, %v13656_v31  ;;  %v13765_v59 = vadd.f32 %v13740_v11, %v6306_v4  ;;  %v6258_v31 = vadd.f32 1e-05, %v6242_v27 }
 0xacc   : > { %v6341_v10 = vpack.c.bf16 %v6327_v23, %v13753_v14  ;;  %v6307_v43 = vmul.f32 %v13732_v6, %v6285_v35 }
 0xacd   : > { %v9108_v29 = vpop.eup %9107  ;;  %v6308_v47 = vmul.f32 %v13732_v6, %v6286_v37  ;;  %9111 = vrsqrt.f32 %v6258_v31 }
 0xace   : > { %v6287_v61 = vmul.f32 %v9108_v29, %v13653_v54  ;;  %7846 = vmatmul.mubr.msk.bf16.vlgmr.msra.gmra.mxu1 %vm530_vm1, %v6341_v10  ;;  %v6329_v38 = vadd.f32 %v13740_v11, %v6307_v43  ;;  %v9110_v42 = vpop.eup %9109 }
 0xacf   : > { %v13773_v54 = vadd.f32 %v13740_v11, %v6308_v47  ;;  %v6288_v50 = vmul.f32 %v9110_v42, %v13664_v57 }
 0xad0   : > { %v6213_v17 = vpop.xlane.xlu0 %6212  ;;  %v6342_v3 = vpack.c.bf16 %v6329_v38, %v13765_v59  ;;  %v6309_v48 = vmul.f32 %v13732_v6, %v6287_v61 }
 0xad1   : > { %v6241_v18 = vmul.f32 0.015625, %v6213_v17  ;;  %v6310_v26 = vmul.f32 %v13732_v6, %v6288_v50 }
 0xad2   : > { %7849 = vmatprep.mubr.msk.bf16.mxu1 %vm530_vm1, %v6342_v3  ;;  %v6331_v22 = vadd.f32 %v13740_v11, %v6309_v48 }
 0xad3   : > { %v6257_v19 = vadd.f32 1e-05, %v6241_v18  ;;  %v13785_v34 = vadd.f32 %v13740_v11, %v6310_v26 }
 0xad4   : > { %v6219_v62 = vpop.xlane.xlu0 %6218  ;;  %v6343_v0 = vpack.c.bf16 %v6331_v22, %v13773_v54 }
 0xad5   : > { %9113 = vrsqrt.f32 %v6257_v19  ;;  %v6243_v56 = vmul.f32 0.015625, %v6219_v62 }
 0xad6   : > { %7850 = vmatmul.mubr.msk.bf16.gmra.mxu1 %vm530_vm1, %v6343_v0 }
 0xad7   : > { %v6259_v41 = vadd.f32 1e-05, %v6243_v56 }
 0xad9   : > { %9115 = vrsqrt.f32 %v6259_v41 }
 0xada   : > { %v9112_v30 = vpop.eup %9111 }
 0xadb   : > { %v6290_v55 = vmul.f32 %v9112_v30, %v13673_v32 }
 0xadd   : > { %v6312_v57 = vmul.f32 %v13732_v6, %v6290_v55 }
 0xae2   : > { %v9114_v1 = vpop.eup %9113 }
 0xae3   : > { %v6289_v13 = vmul.f32 %v9114_v1, %v13681_v9  ;;  %v13793_v9 = vadd.f32 %v13740_v11, %v6312_v57 }
 0xae5   : > { %v6311_v45 = vmul.f32 %v13732_v6, %v6289_v13 }
 0xae6   : > { %v9116_v63 = vpop.eup %9115  ;;  %v6222_v33 = vpop.xlane.xlu1 %6221 }
 0xae7   : > { %v6291_v12 = vmul.f32 %v9116_v63, %v13689_v53  ;;  %v6333_v58 = vadd.f32 %v13740_v11, %v6311_v45  ;;  %v6244_v28 = vmul.f32 0.015625, %v6222_v33 }
 0xae9   : > { %v6344_v49 = vpack.c.bf16 %v6333_v58, %v13785_v34  ;;  %v6313_v32 = vmul.f32 %v13732_v6, %v6291_v12  ;;  %v6260_v60 = vadd.f32 1e-05, %v6244_v28 }
 0xaea   : > { %v6228_v40 = vpop.xlane.xlu1 %6227 }
 0xaeb   : > { %7853 = vmatprep.mubr.msk.bf16.mxu1 %vm530_vm1, %v6344_v49  ;;  %v6335_v16 = vadd.f32 %v13740_v11, %v6313_v32  ;;  %v6246_v2 = vmul.f32 0.015625, %v6228_v40  ;;  %9117 = vrsqrt.f32 %v6260_v60 }
 0xaed   : > { %v6345_v53 = vpack.c.bf16 %v6335_v16, %v13793_v9  ;;  %v6262_v52 = vadd.f32 1e-05, %v6246_v2 }
 0xaef   : > { %7854 = vmatmul.mubr.msk.bf16.gmra.mxu1 %vm530_vm1, %v6345_v53  ;;  %9119 = vrsqrt.f32 %v6262_v52 }
 0xaf8   : > { %v9118_v44 = vpop.eup %9117 }
 0xaf9   : > { %v6292_v23 = vmul.f32 %v9118_v44, %v13705_v39 }
 0xafb   : > { %v6314_v27 = vmul.f32 %v13732_v6, %v6292_v23 }
 0xafc   : > { %v9120_v35 = vpop.eup %9119 }
 0xafd   : > { %v6294_v37 = vmul.f32 %v9120_v35, %v13710_v5  ;;  %v6336_v61 = vadd.f32 %v13740_v11, %v6314_v27 }
 0xaff   : > { %v6316_v47 = vmul.f32 %v13732_v6, %v6294_v37 }
 0xb01   : > { %v6338_v5 = vadd.f32 %v13740_v11, %v6316_v47 }
 0xb08   : > { %v6225_v46 = vpop.xlane.xlu0 %6224 }
 0xb09   : > { %v6245_v25 = vmul.f32 0.015625, %v6225_v46 }
 0xb0b   : > { %v6261_v20 = vadd.f32 1e-05, %v6245_v25 }
 0xb0c   : > { %v6231_v51 = vpop.xlane.xlu0 %6230 }
 0xb0d   : > { %9121 = vrsqrt.f32 %v6261_v20  ;;  %v6247_v15 = vmul.f32 0.015625, %v6231_v51 }
 0xb0f   : > { %v6263_v24 = vadd.f32 1e-05, %v6247_v15 }
 0xb11   : > { %9123 = vrsqrt.f32 %v6263_v24 }
 0xb1a   : > { %v9122_v4 = vpop.eup %9121 }
 0xb1b   : > { %v6293_v8 = vmul.f32 %v9122_v4, %v13717_v7 }
 0xb1d   : > { %v6315_v10 = vmul.f32 %v13732_v6, %v6293_v8 }
 0xb1e   : > { %v9124_v43 = vpop.eup %9123 }
 0xb1f   : > { %v6295_v29 = vmul.f32 %v9124_v43, %v13722_v36  ;;  %v6337_v38 = vadd.f32 %v13740_v11, %v6315_v10  ;;  %v6961_v36 = vld [vmem:[%s13993_s10] ss:$0 sm:$0xff] }
 0xb21   : > { %v6346_v39 = vpack.c.bf16 %v6337_v38, %v6336_v61  ;;  %v6317_v31 = vmul.f32 %v13732_v6, %v6295_v29 }
 0xb23   : > { %7857 = vmatprep.mubr.msk.bf16.mxu1 %vm530_vm1, %v6346_v39  ;;  %v6339_v7 = vadd.f32 %v13740_v11, %v6317_v31 }
 0xb25   : > { %v6347_v17 = vpack.c.bf16 %v6339_v7, %v6338_v5 }
 0xb27   : > { %7858 = vmatmul.mubr.msk.bf16.gmra.mxu1 %vm530_vm1, %v6347_v17 }
 0xb8e   : > { %v7847_v3 = vpop.f32.mrf.mxu1 }
 0xb8f   : > { %v6453_v48 = vadd.f32 %v7847_v3, %v6961_v36 }
 0xb90   : > { %v6445_v18 = vpop.f32.mrf.mxu1 }
 0xb91   : > { %v6501_v22 = vadd.f32 %v6453_v48, %v13753_v14  ;;  %v6446_v19 = vadd.f32 %v6961_v36, %v6445_v18 }
 0xb92   : > { %v7848_v6 = vpop.f32.mrf.mxu1 }
 0xb93   : > { %v6500_v62 = vadd.f32 %v6446_v19, %v13746_v21  ;;  %v6513_v0 = vsel %vm530_vm1, %v6501_v22, 0.0 }
 0xb94   : > { %6514 = vadd.xlane.f32.xlu0 %v6513_v0  ;;  %v6448_v11 = vpop.f32.mrf.mxu1  ;;  %v8576_v0 = vld [vmem:[%s13996_s13 + $0x10] sm:$0xff]  }
 0xb95   : > { %v6510_v56 = vsel %vm530_vm1, %v6500_v62, 0.0  ;;  %v8577_v11 = vld [vmem:[%s13996_s13 + $0x8] sm:$0xff]  }
 0xb96   : > { %6511 = vadd.xlane.f32.xlu1 %v6510_v56  ;;  %v7851_v41 = vpop.f32.mrf.mxu1  ;;  %v8578_v56 = vld [vmem:[%s13996_s13] sm:$0xff]  }
 0xb97   : > { %v6467_v42 = vadd.f32 %v7851_v41, %v6961_v36 }
 0xb98   : > { %v6459_v50 = vpop.f32.mrf.mxu1 }
 0xb99   : > { %v6503_v30 = vadd.f32 %v6467_v42, %v13773_v54  ;;  %v6460_v1 = vadd.f32 %v6961_v36, %v6459_v50 }
 0xb9a   : > { %v7852_v55 = vpop.f32.mrf.mxu1 }
 0xb9b   : > { %v6502_v14 = vadd.f32 %v6460_v1, %v13765_v59  ;;  %v6519_v13 = vsel %vm530_vm1, %v6503_v30, 0.0 }
 0xb9c   : > { %6520 = vadd.xlane.f32.xlu0 %v6519_v13  ;;  %v6462_v21 = vpop.f32.mrf.mxu1 }
 0xb9d   : > { %v6516_v26 = vsel %vm530_vm1, %v6502_v14, 0.0 }
 0xb9e   : > { %6517 = vadd.xlane.f32.xlu1 %v6516_v26 }
 0xbaf   : > { %v7855_v45 = vpop.f32.mrf.mxu1 }
 0xbb0   : > { %v6481_v63 = vadd.f32 %v7855_v45, %v6961_v36 }
 0xbb1   : > { %v6473_v12 = vpop.f32.mrf.mxu1 }
 0xbb2   : > { %v6505_v58 = vadd.f32 %v6481_v63, %v13793_v9  ;;  %v6474_v57 = vadd.f32 %v6961_v36, %v6473_v12 }
 0xbb3   : > { %v7856_v49 = vpop.f32.mrf.mxu1 }
 0xbb4   : > { %v6504_v54 = vadd.f32 %v6474_v57, %v13785_v34  ;;  %v6525_v32 = vsel %vm530_vm1, %v6505_v58, 0.0 }
 0xbb5   : > { %6526 = vadd.xlane.f32.xlu0 %v6525_v32  ;;  %v6476_v59 = vpop.f32.mrf.mxu1 }
 0xbb6   : > { %v6522_v16 = vsel %vm530_vm1, %v6504_v54, 0.0 }
 0xbb7   : > { %6523 = vadd.xlane.f32.xlu1 %v6522_v16 }
 0xbe7   : > { %v7859_v53 = vpop.f32.mrf.mxu1 }
 0xbe8   : > { %v6495_v33 = vadd.f32 %v7859_v53, %v6961_v36 }
 0xbe9   : > { %v6487_v28 = vpop.f32.mrf.mxu1 }
 0xbea   : > { %v6507_v40 = vadd.f32 %v6495_v33, %v6338_v5  ;;  %v6488_v60 = vadd.f32 %v6961_v36, %v6487_v28 }
 0xbeb   : > { %v7860_v2 = vpop.f32.mrf.mxu1 }
 0xbec   : > { %v6506_v52 = vadd.f32 %v6488_v60, %v6336_v61  ;;  %v6531_v9 = vsel %vm530_vm1, %v6507_v40, 0.0 }
 0xbed   : > { %6532 = vadd.xlane.f32.xlu0 %v6531_v9  ;;  %v6490_v46 = vpop.f32.mrf.mxu1 }
 0xbee   : > { %v6528_v34 = vsel %vm530_vm1, %v6506_v52, 0.0  ;;  %v6975_v46 = vld [vmem:[%s13995_s12] ss:$0 sm:$0xff] }
 0xbef   : > { %6529 = vadd.xlane.f32.xlu1 %v6528_v34 }
 0xc1d   : > { %v6515_v25 = vpop.xlane.xlu0 %6514 }
 0xc1e   : > { %v6535_v20 = vmul.f32 0.015625, %v6515_v25 }
 0xc1f   : > { %v6512_v51 = vpop.xlane.xlu1 %6511 }
 0xc20   : > { %v13829_v15 = vsub.f32 %v6501_v22, %v6535_v20  ;;  %v6534_v24 = vmul.f32 0.015625, %v6512_v51 }
 0xc22   : > { %v13831_v44 = vsub.f32 %v6500_v62, %v6534_v24  ;;  %v6551_v23 = vmul.f32 %v13829_v15, %v13829_v15  ;;  %v8575_v62 = vld [vmem:[%s13996_s13 + $0x18] sm:$0xff]  }
 0xc23   : > { %7861 = vmatprep.subr.bf16.mxu0 %v8575_v62 }
 0xc24   : > { %v6561_v35 = vsel %vm530_vm1, %v6551_v23, 0.0  ;;  %v6550_v4 = vmul.f32 %v13831_v44, %v13831_v44  ;;  %7862 = vmatpush3.bf16.msra.mxu0 %v8575_v62 }
 0xc25   : > { %v6521_v37 = vpop.xlane.xlu0 %6520  ;;  %6562 = vadd.xlane.f32.xlu0 %v6561_v35  ;;  %7863 = vmatprep.subr.bf16.mxu0 %v8576_v0 }
 0xc26   : > { %v6537_v8 = vmul.f32 0.015625, %v6521_v37  ;;  %v6558_v27 = vsel %vm530_vm1, %v6550_v4, 0.0 }
 0xc27   : > { %6559 = vadd.xlane.f32.xlu1 %v6558_v27  ;;  %v6518_v10 = vpop.xlane.xlu1 %6517 }
 0xc28   : > { %v13839_v43 = vsub.f32 %v6503_v30, %v6537_v8  ;;  %v6536_v29 = vmul.f32 0.015625, %v6518_v10  ;;  %7864 = vmatpush3.bf16.msra.mxu0 %v8576_v0 }
 0xc29   : > { %7865 = vmatprep.subr.bf16.mxu0 %v8577_v11 }
 0xc2a   : > { %v13841_v61 = vsub.f32 %v6502_v14, %v6536_v29  ;;  %v6553_v38 = vmul.f32 %v13839_v43, %v13839_v43 }
 0xc2c   : > { %v6567_v47 = vsel %vm530_vm1, %v6553_v38, 0.0  ;;  %v6552_v39 = vmul.f32 %v13841_v61, %v13841_v61  ;;  %7866 = vmatpush3.bf16.msra.mxu0 %v8577_v11 }
 0xc2d   : > { %6568 = vadd.xlane.f32.xlu0 %v6567_v47  ;;  %7867 = vmatprep.subr.bf16.mxu0 %v8578_v56 }
 0xc2e   : > { %v6564_v31 = vsel %vm530_vm1, %v6552_v39, 0.0 }
 0xc2f   : > { %6565 = vadd.xlane.f32.xlu1 %v6564_v31 }
 0xc30   : > { %7868 = vmatpush3.bf16.msra.mxu0 %v8578_v56 }
 0xc3e   : > { %v6527_v5 = vpop.xlane.xlu0 %6526 }
 0xc3f   : > { %v6539_v7 = vmul.f32 0.015625, %v6527_v5 }
 0xc40   : > { %v6524_v17 = vpop.xlane.xlu1 %6523 }
 0xc41   : > { %v13849_v36 = vsub.f32 %v6505_v58, %v6539_v7  ;;  %v6538_v3 = vmul.f32 0.015625, %v6524_v17 }
 0xc43   : > { %v13851_v48 = vsub.f32 %v6504_v54, %v6538_v3  ;;  %v6555_v18 = vmul.f32 %v13849_v36, %v13849_v36 }
 0xc45   : > { %v6573_v22 = vsel %vm530_vm1, %v6555_v18, 0.0  ;;  %v6554_v19 = vmul.f32 %v13851_v48, %v13851_v48 }
 0xc46   : > { %6574 = vadd.xlane.f32.xlu0 %v6573_v22 }
 0xc47   : > { %v6570_v6 = vsel %vm530_vm1, %v6554_v19, 0.0 }
 0xc48   : > { %6571 = vadd.xlane.f32.xlu1 %v6570_v6 }
 0xc76   : > { %v6533_v41 = vpop.xlane.xlu0 %6532 }
 0xc77   : > { %v6541_v42 = vmul.f32 0.015625, %v6533_v41 }
 0xc78   : > { %v6530_v50 = vpop.xlane.xlu1 %6529 }
 0xc79   : > { %v13871_v30 = vsub.f32 %v6507_v40, %v6541_v42  ;;  %v6540_v1 = vmul.f32 0.015625, %v6530_v50  ;;  %v6974_v40 = vld [vmem:[%s13994_s11] ss:$0 sm:$0xff] }
 0xc7b   : > { %v13873_v55 = vsub.f32 %v6506_v52, %v6540_v1  ;;  %v6557_v14 = vmul.f32 %v13871_v30, %v13871_v30 }
 0xc7d   : > { %v6579_v13 = vsel %vm530_vm1, %v6557_v14, 0.0  ;;  %v6556_v21 = vmul.f32 %v13873_v55, %v13873_v55 }
 0xc7e   : > { %6580 = vadd.xlane.f32.xlu0 %v6579_v13 }
 0xc7f   : > { %v6576_v26 = vsel %vm530_vm1, %v6556_v21, 0.0 }
 0xc80   : > { %6577 = vadd.xlane.f32.xlu1 %v6576_v26 }
 0xcae   : > { %v6563_v45 = vpop.xlane.xlu0 %6562 }
 0xcaf   : > { %v6583_v63 = vmul.f32 0.015625, %v6563_v45  ;;  %v6976_v45 = vld [vmem:[%s13997_s14] ss:$0 sm:$0xff] }
 0xcb0   : > { %v6560_v12 = vpop.xlane.xlu1 %6559 }
 0xcb1   : > { %v6591_v58 = vadd.f32 1e-05, %v6583_v63  ;;  %v6582_v57 = vmul.f32 0.015625, %v6560_v12 }
 0xcb3   : > { %9125 = vrsqrt.f32 %v6591_v58  ;;  %v6590_v49 = vadd.f32 1e-05, %v6582_v57 }
 0xcb5   : > { %9127 = vrsqrt.f32 %v6590_v49 }
 0xcb6   : > { %v6569_v54 = vpop.xlane.xlu0 %6568 }
 0xcb7   : > { %v6585_v32 = vmul.f32 0.015625, %v6569_v54  ;;  %v9142_v54 = vld [vmem:[%s9383_s26] sm:$0xff] }
 0xcb8   : > { %v6566_v59 = vpop.xlane.xlu1 %6565 }
 0xcb9   : > { %v6593_v16 = vadd.f32 1e-05, %v6585_v32  ;;  %v6584_v53 = vmul.f32 0.015625, %v6566_v59 }
 0xcbb   : > { %9129 = vrsqrt.f32 %v6593_v16  ;;  %v6592_v33 = vadd.f32 1e-05, %v6584_v53  ;;  %v9143_v53 = vld [vmem:[%s9383_s26 + $0x18] sm:$0xff] }
 0xcbd   : > { %9131 = vrsqrt.f32 %v6592_v33 }
 0xcc0   : > { %v9126_v28 = vpop.eup %9125 }
 0xcc1   : > { %v6607_v60 = vmul.f32 %v9126_v28, %v13829_v15 }
 0xcc2   : > { %v9128_v2 = vpop.eup %9127 }
 0xcc3   : > { %v6606_v52 = vmul.f32 %v9128_v2, %v13831_v44  ;;  %v6621_v9 = vmul.f32 %v6974_v40, %v6607_v60 }
 0xcc5   : > { %v6620_v34 = vmul.f32 %v6974_v40, %v6606_v52  ;;  %v6635_v20 = vadd.f32 %v6975_v46, %v6621_v9 }
 0xcc7   : > { %v6634_v25 = vadd.f32 %v6975_v46, %v6620_v34 }
 0xcc8   : > { %v9130_v51 = vpop.eup %9129 }
 0xcc9   : > { %v6609_v24 = vmul.f32 %v9130_v51, %v13839_v43  ;;  %v6642_v23 = vpack.c.bf16 %v6635_v20, %v6634_v25  ;;  %v9146_v51 = vld [vmem:[%s9383_s26 + $0x20] sm:$0xff] }
 0xcca   : > { %v9132_v35 = vpop.eup %9131 }
 0xccb   : > { %v6623_v4 = vmul.f32 %v6974_v40, %v6609_v24  ;;  %v6608_v37 = vmul.f32 %v9132_v35, %v13841_v61  ;;  %7869 = vmatprep.mubr.msk.bf16.mxu0 %vm530_vm1, %v6642_v23 }
 0xccd   : > { %v6622_v15 = vmul.f32 %v6974_v40, %v6608_v37  ;;  %v6637_v44 = vadd.f32 %v6975_v46, %v6623_v4  ;;  %v9147_v4 = vld [vmem:[%s9383_s26 + $0x38] sm:$0xff] }
 0xccf   : > { %v6636_v8 = vadd.f32 %v6975_v46, %v6622_v15  ;;  %v6575_v27 = vpop.xlane.xlu0 %6574 }
 0xcd0   : > { %v6587_v10 = vmul.f32 0.015625, %v6575_v27 }
 0xcd1   : > { %v6643_v29 = vpack.c.bf16 %v6637_v44, %v6636_v8  ;;  %v6572_v38 = vpop.xlane.xlu1 %6571  ;;  %v9148_v44 = vld [vmem:[%s9383_s26 + $0x28] sm:$0xff] }
 0xcd2   : > { %v6595_v47 = vadd.f32 1e-05, %v6587_v10  ;;  %v6586_v39 = vmul.f32 0.015625, %v6572_v38 }
 0xcd3   : > { %7870 = vmatmul.mubr.msk.bf16.vlgmr.msra.gmra.mxu0 %vm530_vm1, %v6643_v29 }
 0xcd4   : > { %9133 = vrsqrt.f32 %v6595_v47  ;;  %v6594_v43 = vadd.f32 1e-05, %v6586_v39 }
 0xcd6   : > { %9135 = vrsqrt.f32 %v6594_v43 }
 0xce1   : > { %v9134_v31 = vpop.eup %9133 }
 0xce2   : > { %v6611_v5 = vmul.f32 %v9134_v31, %v13849_v36 }
 0xce3   : > { %v9136_v61 = vpop.eup %9135 }
 0xce4   : > { %v6610_v7 = vmul.f32 %v9136_v61, %v13851_v48  ;;  %v6625_v17 = vmul.f32 %v6974_v40, %v6611_v5 }
 0xce6   : > { %v6624_v3 = vmul.f32 %v6974_v40, %v6610_v7  ;;  %v6639_v22 = vadd.f32 %v6975_v46, %v6625_v17 }
 0xce8   : > { %v6638_v18 = vadd.f32 %v6975_v46, %v6624_v3 }
 0xcea   : > { %v6644_v19 = vpack.c.bf16 %v6639_v22, %v6638_v18 }
 0xcec   : > { %7873 = vmatprep.mubr.msk.bf16.mxu0 %vm530_vm1, %v6644_v19 }
 0xd07   : > { %v6581_v6 = vpop.xlane.xlu0 %6580 }
 0xd08   : > { %v6589_v62 = vmul.f32 0.015625, %v6581_v6 }
 0xd09   : > { %v6578_v0 = vpop.xlane.xlu1 %6577 }
 0xd0a   : > { %v6597_v11 = vadd.f32 1e-05, %v6589_v62  ;;  %v6588_v56 = vmul.f32 0.015625, %v6578_v0 }
 0xd0c   : > { %9137 = vrsqrt.f32 %v6597_v11  ;;  %v6596_v41 = vadd.f32 1e-05, %v6588_v56 }
 0xd0e   : > { %9139 = vrsqrt.f32 %v6596_v41 }
 0xd19   : > { %v9138_v36 = vpop.eup %9137 }
 0xd1a   : > { %v6613_v48 = vmul.f32 %v9138_v36, %v13871_v30 }
 0xd1b   : > { %v9140_v42 = vpop.eup %9139 }
 0xd1c   : > { %v6612_v50 = vmul.f32 %v9140_v42, %v13873_v55  ;;  %v6627_v1 = vmul.f32 %v6974_v40, %v6613_v48  ;;  %v9141_v55 = vld [vmem:[%s9383_s26 + $0x10] sm:$0xff] }
 0xd1e   : > { %v6626_v14 = vmul.f32 %v6974_v40, %v6612_v50  ;;  %v6641_v21 = vadd.f32 %v6975_v46, %v6627_v1  ;;  %v9144_v40 = vld [vmem:[%s9383_s26 + $0x8] sm:$0xff] }
 0xd20   : > { %v6640_v13 = vadd.f32 %v6975_v46, %v6626_v14  ;;  %v9145_v46 = vld [vmem:[%s9383_s26 + $0x30] sm:$0xff]  ;;  %s9155_s26 = scalar_lea.vmem %s9154_s24, 2048 }
 0xd21   : > { %p9157_p1 = scmp.lt.s32.totalorder %s9155_s26, %s9149_s25 }
 0xd22   : > { %v6645_v26 = vpack.c.bf16 %v6641_v21, %v6640_v13 }
 0xd23   : > { %p9158_p2 = por %p9157_p1, %p9156_p0 }
 0xd24   : > { %7874 = vmatmul.mubr.msk.bf16.gmra.mxu0 %vm530_vm1, %v6645_v26 }
 0xd25   : > { %p9159_p3 = pnand %p9158_p2, %p9152_p13 }
 0xd93   : > { %v7871_v30 = vpop.f32.mrf.mxu0 }
 0xd94   : > { %v6740_v63 = vadd.f32 %v7871_v30, %v6976_v45 }
 0xd95   : > { %v6731_v12 = vpop.f32.mrf.mxu0 }
 0xd96   : > { %v6764_v58 = vadd.f32 %v9141_v55, %v6740_v63  ;;  %v6732_v57 = vadd.f32 %v6976_v45, %v6731_v12 }
 0xd97   : > { %v7872_v49 = vpop.f32.mrf.mxu0 }
 0xd98   : > { %6772 = vst.msk [vmem:[%s13906_s20 + $0x10] sm:$0xff] %vm530_vm1, %v6764_v58  ;;  %v6762_v32 = vadd.f32 %v9142_v54, %v6732_v57  ;;  %v6743_v59 = vadd.f32 %v7872_v49, %v6976_v45 }
 0xd99   : > { %v6734_v16 = vpop.f32.mrf.mxu0 }
 0xd9a   : > { %6770 = vst.msk [vmem:[%s13906_s20] sm:$0xff] %vm530_vm1, %v6762_v32  ;;  %v6765_v33 = vadd.f32 %v9143_v53, %v6743_v59  ;;  %v6735_v28 = vadd.f32 %v6976_v45, %v6734_v16 }
 0xd9c   : > { %6773 = vst.msk [vmem:[%s13906_s20 + $0x18] sm:$0xff] %vm530_vm1, %v6765_v33  ;;  %v6763_v60 = vadd.f32 %v9144_v40, %v6735_v28 }
 0xd9e   : > { %6771 = vst.msk [vmem:[%s13906_s20 + $0x8] sm:$0xff] %vm530_vm1, %v6763_v60 }
 0xde4   : > { %v7875_v2 = vpop.f32.mrf.mxu0 }
 0xde5   : > { %v6756_v52 = vadd.f32 %v7875_v2, %v6976_v45 }
 0xde6   : > { %v6747_v9 = vpop.f32.mrf.mxu0 }
 0xde7   : > { %v6768_v34 = vadd.f32 %v9145_v46, %v6756_v52  ;;  %v6748_v25 = vadd.f32 %v6976_v45, %v6747_v9 }
 0xde8   : > { %v7876_v20 = vpop.f32.mrf.mxu0 }
 0xde9   : > { %6776 = vst.msk [vmem:[%s13906_s20 + $0x30] sm:$0xff] %vm530_vm1, %v6768_v34  ;;  %v6766_v24 = vadd.f32 %v9146_v51, %v6748_v25  ;;  %v6759_v23 = vadd.f32 %v7876_v20, %v6976_v45 }
 0xdea   : > { %v6750_v35 = vpop.f32.mrf.mxu0 }
 0xdeb   : > { %6774 = vst.msk [vmem:[%s13906_s20 + $0x20] sm:$0xff] %vm530_vm1, %v6766_v24  ;;  %v6769_v37 = vadd.f32 %v9147_v4, %v6759_v23  ;;  %v6751_v15 = vadd.f32 %v6976_v45, %v6750_v35 }
 0xded   : > { %6777 = vst.msk [vmem:[%s13906_s20 + $0x38] sm:$0xff] %vm530_vm1, %v6769_v37  ;;  %v6767_v8 = vadd.f32 %v9148_v44, %v6751_v15 }
 0xdef   : > { %6775 = vst.msk [vmem:[%s13906_s20 + $0x28] sm:$0xff] %vm530_vm1, %v6767_v8 }
 0xdf0   : > { %9162 = shalt.err (!%p9159_p3)
}
 0xdf1   : > { %s9163_s0 = scalar_lea.hbm %s13931_s1, 1024  ;;  %s9167_s23 = scalar_lea.hbm %s13998_s15, 2048 }
 0xdf2   : > { %p9164_p4 = scmp.ne.s32.totalorder %s13931_s1, %s9163_s0  ;;  %p9168_p9 = scmp.lt.s32.totalorder %s13931_s1, %s13998_s15 }
 0xdf3   : > { %p9169_p10 = scmp.lt.s32.totalorder %s9167_s23, %s9163_s0 }
 0xdf4   : > { %p9165_p7 = pnand %p9164_p4, %p9349_p5 }
 0xdf5   : > { %p9170_p11 = por %p9169_p10, %p9168_p9 }
 0xdf6   : > { %p9166_p8 = pneg %p9165_p7 }
 0xdf8   : > { %p9171_p12 = pnand %p9170_p11, %p9166_p8 }
 0xdfa   : > { %9174 = shalt.err (!%p9171_p12)
}
 0xdfb   : > { %s9230_s25 = smov 128   ;;  %s14816_s24 = smov 8  }
 0xdfc   : > { %7941 = dma.vmem_to_hbm [thread:$0]  (%p9349_p5), %s13936_s16, 1024, %s13931_s1, %s13942_s22, %s9230_s25, %s9230_s25, %s14816_s24  }
 0xdfd PF: > { %p7947_p13 = scmp.ge.s32.totalorder %s9209_s21, 2  ;;  %s6807_s26 = sand.u32 1, %s9197_s18  }
 0xdfe   : > { %s6808_s27 = scalar_lea.sflag [#allocation3], %s6807_s26 }
 0xdff   : > { %p7944_p0 = pnand %p7947_p13, %p9353_p6 }
 0xe01   : > { %p7945_p1 = pneg %p7944_p0 }
 0xe03   : > { %9192 = dma.done.wait (%p7945_p1), %s6808_s27, 1024  }
 0xe04   : > { %9194 = vsyncadd (%p7945_p1), %s6808_s27, 4294966272  ;;  %s14817_s21 = sld [smem:[#allocation6_spill]]  ;;  %s14820_s18 = smov %s9201_s19 }
 0xe05   : > { %s14818_s28 = sld [smem:[#allocation5_spill]] }
 0xe06   : > { %s14819_s20 = sld [smem:[#allocation7_spill]] }
 0xe0a   : > { %p25_p2 = scmp.ge.s32.totalorder %s14817_s21, 4  }
 0xe0b   : > { %s14821_s19 = smov %s14818_s28 }
 0xe0c   :  { %27 = sbr.rel (!%p25_p2) target bundleno = 6 (0x6), region = 118 }
 0xe11   :  { %6813 = vsyncpa [#allocation3], 1 }
 0xe12   :  { %6815 = vsyncpa [#allocation3 + $0x1], 1 }

</bundles_post_ra>
